<compile_context>
chip_gen: v6e
topology: v6e:2x2x1
jax: 0.10.0
libtpu: 0.0.40
codegen_flags: <defaults>
</compile_context>

<pallas_src>
import jax
import jax.numpy as jnp
from jax.experimental import pallas as pl
from jax.experimental.pallas import tpu as pltpu

TN0 = 512  # layer-0 N tile (N=1024 -> 2 grid steps); w0 block = 5184x512 bf16 ~ 5.3 MB


# ---------------- fully fused forward kernel ----------------
def _fused_kernel(x_ref, w0_ref, s0_ref, t0_ref,
                  w1_ref, s1_ref, t1_ref,
                  w2_ref, s2_ref, t2_ref,
                  w3_ref, b3_ref,
                  o_ref, h_ref):
    j = pl.program_id(0)
    tn = w0_ref.shape[1]

    # ---- layer 0 tile: Linear + BN(eval) + ReLU, result kept in VMEM scratch ----
    h0 = jnp.dot(x_ref[...], w0_ref[...], preferred_element_type=jnp.float32)
    h0 = jnp.maximum(h0 * s0_ref[...] + t0_ref[...], 0.0)
    h_ref[:, pl.ds(pl.multiple_of(j * tn, tn), tn)] = h0

    # ---- tail (layers 1-3 + LogSoftmax) on the last grid step ----
    @pl.when(j == pl.num_programs(0) - 1)
    def _():
        h = h_ref[...].astype(jnp.bfloat16)

        h1 = jnp.dot(h, w1_ref[...], preferred_element_type=jnp.float32)
        h1 = jnp.maximum(h1 * s1_ref[...] + t1_ref[...], 0.0)

        h2 = jnp.dot(h1.astype(jnp.bfloat16), w2_ref[...],
                     preferred_element_type=jnp.float32)
        h2 = jnp.maximum(h2 * s2_ref[...] + t2_ref[...], 0.0)

        # Dropout: identity in eval mode.
        z = jnp.dot(h2.astype(jnp.bfloat16), w3_ref[...],
                    preferred_element_type=jnp.float32) + b3_ref[...]

        m = jnp.max(z, axis=1, keepdims=True)
        lse = m + jnp.log(jnp.sum(jnp.exp(z - m), axis=1, keepdims=True))
        o_ref[...] = (z - lse).astype(o_ref.dtype)


def classifier_office_forward(prep, x):
    B = x.shape[0]
    K0, N0 = prep["w0"].shape
    N1 = prep["w1"].shape[1]
    N2 = prep["w2"].shape[1]
    C = prep["w3"].shape[1]
    assert N0 % TN0 == 0

    xb = x.astype(jnp.bfloat16)  # cast once; MXU input is bf16 either way

    return pl.pallas_call(
        _fused_kernel,
        out_shape=jax.ShapeDtypeStruct((B, C), jnp.float32),
        grid_spec=pltpu.PrefetchScalarGridSpec(
            num_scalar_prefetch=0,
            grid=(N0 // TN0,),
            in_specs=[
                pl.BlockSpec((B, K0), lambda j: (0, 0)),        # x, resident
                pl.BlockSpec((K0, TN0), lambda j: (0, j)),      # w0 N-tile stream
                pl.BlockSpec((1, TN0), lambda j: (0, j)),       # scale0 tile
                pl.BlockSpec((1, TN0), lambda j: (0, j)),       # shift0 tile
                pl.BlockSpec((N0, N1), lambda j: (0, 0)),       # w1, resident
                pl.BlockSpec((1, N1), lambda j: (0, 0)),
                pl.BlockSpec((1, N1), lambda j: (0, 0)),
                pl.BlockSpec((N1, N2), lambda j: (0, 0)),       # w2, resident
                pl.BlockSpec((1, N2), lambda j: (0, 0)),
                pl.BlockSpec((1, N2), lambda j: (0, 0)),
                pl.BlockSpec((N2, C), lambda j: (0, 0)),        # w3, resident
                pl.BlockSpec((1, C), lambda j: (0, 0)),         # b3
            ],
            out_specs=pl.BlockSpec((B, C), lambda j: (0, 0)),
            scratch_shapes=[pltpu.VMEM((B, N0), jnp.float32)],  # layer-0 activation
        ),
        compiler_params=pltpu.CompilerParams(
            dimension_semantics=("arbitrary",),
            vmem_limit_bytes=32 * 1024 * 1024,
        ),
    )(xb, prep["w0"], prep["scale0"], prep["shift0"],
      prep["w1"], prep["scale1"], prep["shift1"],
      prep["w2"], prep["scale2"], prep["shift2"],
      prep["w3"], prep["b3"])


# ---------------- parameter construction / one-time preparation ----------------
def init_params(key, class_num):
    dims = [(64 * 9 * 9, 1024), (1024, 512), (512, 256), (256, class_num)]
    params = {}
    for i, (fin, fout) in enumerate(dims):
        key, kw, kb = jax.random.split(key, 3)
        bound = 1.0 / (fin ** 0.5)
        params[f"w{i}"] = jax.random.uniform(kw, (fin, fout), jnp.float32, -bound, bound)
        params[f"b{i}"] = jax.random.uniform(kb, (fout,), jnp.float32, -bound, bound)
    for i, (_, fout) in enumerate(dims[:3]):  # BN params for the 3 hidden layers
        key, kg, kb, km, kv = jax.random.split(key, 5)
        params[f"gamma{i}"] = 1.0 + 0.1 * jax.random.normal(kg, (fout,), jnp.float32)
        params[f"beta{i}"] = 0.1 * jax.random.normal(kb, (fout,), jnp.float32)
        params[f"mean{i}"] = 0.1 * jax.random.normal(km, (fout,), jnp.float32)
        params[f"var{i}"] = 1.0 + 0.1 * jnp.abs(jax.random.normal(kv, (fout,), jnp.float32))
    return params


def prepare_params(params, *, eps=1e-5):
    """One-time (outside the forward path): cast weights to bf16 and fold
    bias + eval-mode BatchNorm into a single (scale, shift) affine per layer."""
    prep = {}
    for i in range(4):
        prep[f"w{i}"] = params[f"w{i}"].astype(jnp.bfloat16)
    for i in (0, 1, 2):
        N = params[f"w{i}"].shape[1]
        scale = params[f"gamma{i}"] / jnp.sqrt(params[f"var{i}"] + eps)
        shift = (params[f"b{i}"] - params[f"mean{i}"]) * scale + params[f"beta{i}"]
        prep[f"scale{i}"] = scale.reshape(1, N).astype(jnp.float32)
        prep[f"shift{i}"] = shift.reshape(1, N).astype(jnp.float32)
    C = params["w3"].shape[1]
    prep["b3"] = params["b3"].reshape(1, C).astype(jnp.float32)
    return jax.tree_util.tree_map(jnp.asarray, prep)


# ---------------- references ----------------
def _mm(a, w_bf16):
    return jnp.dot(a.astype(jnp.bfloat16), w_bf16, preferred_element_type=jnp.float32)


def reference_prepared(prep, x):
    """Pure-JAX reference using the same prepared (bf16) weights / folded affine."""
    h = jnp.maximum(_mm(x, prep["w0"]) * prep["scale0"] + prep["shift0"], 0.0)
    h = jnp.maximum(_mm(h, prep["w1"]) * prep["scale1"] + prep["shift1"], 0.0)
    h = jnp.maximum(_mm(h, prep["w2"]) * prep["scale2"] + prep["shift2"], 0.0)
    z = _mm(h, prep["w3"]) + prep["b3"]
    return jax.nn.log_softmax(z, axis=1)


def reference_f32(params, x, eps=1e-5):
    """Full-f32 reference of the original module (eval mode)."""
    h = x
    for i in range(3):
        h = h @ params[f"w{i}"] + params[f"b{i}"]
        h = (h - params[f"mean{i}"]) / jnp.sqrt(params[f"var{i}"] + eps)
        h = h * params[f"gamma{i}"] + params[f"beta{i}"]
        h = jnp.maximum(h, 0.0)
    z = h @ params["w3"] + params["b3"]
    return jax.nn.log_softmax(z, axis=1)


if __name__ == "__main__":
    class_num = 31  # Office-31
    B = 8
    key = jax.random.PRNGKey(0)
    kx, kp = jax.random.split(key)
    x = jax.random.normal(kx, (B, 64 * 9 * 9), jnp.float32)
    params = init_params(kp, class_num)
    prep = prepare_params(params)

    fwd = jax.jit(classifier_office_forward)
    out = jax.block_until_ready(fwd(prep, x))

    assert out.shape == (B, class_num)
    # Exact-math check against the same bf16 weights / folded affine.
    ref = reference_prepared(prep, x)
    assert jnp.allclose(out, ref, atol=2e-3, rtol=2e-3), "mismatch vs prepared reference"
    # Semantics check against the original full-f32 module (bf16 weight quantization only).
    ref32 = reference_f32(params, x)
    assert jnp.allclose(out, ref32, atol=1e-1), "mismatch vs f32 reference"
    print("KERNEL_OK")
</pallas_src>

<mosaic_0001>
module attributes {stable_mosaic.version = 11 : i64} {
  func.func @_fused_kernel(%arg0: i32, %arg1: memref<8x5184xbf16, #tpu.memory_space<vmem>>, %arg2: memref<5184x512xbf16, #tpu.memory_space<vmem>>, %arg3: memref<1x512xf32, #tpu.memory_space<vmem>>, %arg4: memref<1x512xf32, #tpu.memory_space<vmem>>, %arg5: memref<1024x512xbf16, #tpu.memory_space<vmem>>, %arg6: memref<1x512xf32, #tpu.memory_space<vmem>>, %arg7: memref<1x512xf32, #tpu.memory_space<vmem>>, %arg8: memref<512x256xbf16, #tpu.memory_space<vmem>>, %arg9: memref<1x256xf32, #tpu.memory_space<vmem>>, %arg10: memref<1x256xf32, #tpu.memory_space<vmem>>, %arg11: memref<256x31xbf16, #tpu.memory_space<vmem>>, %arg12: memref<1x31xf32, #tpu.memory_space<vmem>>, %arg13: memref<8x31xf32, #tpu.memory_space<vmem>>, %arg14: memref<8x1024xf32, #tpu.memory_space<vmem>>) attributes {dimension_semantics = [#tpu.dimension_semantics<arbitrary>], iteration_bounds = array<i64: 2>, scalar_prefetch = 0 : i64, scratch_operands = 1 : i64, tpu.core_type = #tpu.core_type<tc>, window_params = [{pipeline_mode = #tpu.pipeline_mode<synchronous>, transform_indices = @transform_0, window_bounds = array<i64: 8, 5184>}, {transform_indices = @transform_1, window_bounds = array<i64: 5184, 512>}, {transform_indices = @transform_2, window_bounds = array<i64: 1, 512>}, {transform_indices = @transform_3, window_bounds = array<i64: 1, 512>}, {pipeline_mode = #tpu.pipeline_mode<synchronous>, transform_indices = @transform_4, window_bounds = array<i64: 1024, 512>}, {pipeline_mode = #tpu.pipeline_mode<synchronous>, transform_indices = @transform_5, window_bounds = array<i64: 1, 512>}, {pipeline_mode = #tpu.pipeline_mode<synchronous>, transform_indices = @transform_6, window_bounds = array<i64: 1, 512>}, {pipeline_mode = #tpu.pipeline_mode<synchronous>, transform_indices = @transform_7, window_bounds = array<i64: 512, 256>}, {pipeline_mode = #tpu.pipeline_mode<synchronous>, transform_indices = @transform_8, window_bounds = array<i64: 1, 256>}, {pipeline_mode = #tpu.pipeline_mode<synchronous>, transform_indices = @transform_9, window_bounds = array<i64: 1, 256>}, {pipeline_mode = #tpu.pipeline_mode<synchronous>, transform_indices = @transform_10, window_bounds = array<i64: 256, 31>}, {pipeline_mode = #tpu.pipeline_mode<synchronous>, transform_indices = @transform_11, window_bounds = array<i64: 1, 31>}, {pipeline_mode = #tpu.pipeline_mode<synchronous>, transform_indices = @transform_12, window_bounds = array<i64: 8, 31>}]} {
    %c0 = arith.constant 0 : index
    %c0_0 = arith.constant 0 : index
    %0 = vector.load %arg1[%c0, %c0_0] : memref<8x5184xbf16, #tpu.memory_space<vmem>>, vector<8x5184xbf16>
    %c0_1 = arith.constant 0 : index
    %c0_2 = arith.constant 0 : index
    %1 = vector.load %arg2[%c0_1, %c0_2] : memref<5184x512xbf16, #tpu.memory_space<vmem>>, vector<5184x512xbf16>
    %cst = arith.constant dense<0.000000e+00> : vector<8x512xf32>
    %2 = tpu.matmul %0, %1, %cst {dimension_numbers = #tpu.dot_dimension_numbers<[1], [0], [0], [1], [0, 0, 1, 1], [], []>} : vector<8x5184xbf16>, vector<5184x512xbf16>, vector<8x512xf32> -> vector<8x512xf32>
    %c0_3 = arith.constant 0 : index
    %c0_4 = arith.constant 0 : index
    %3 = vector.load %arg3[%c0_3, %c0_4] : memref<1x512xf32, #tpu.memory_space<vmem>>, vector<1x512xf32>
    %4 = vector.broadcast %3 : vector<1x512xf32> to vector<8x512xf32>
    %5 = arith.mulf %2, %4 : vector<8x512xf32>
    %c0_5 = arith.constant 0 : index
    %c0_6 = arith.constant 0 : index
    %6 = vector.load %arg4[%c0_5, %c0_6] : memref<1x512xf32, #tpu.memory_space<vmem>>, vector<1x512xf32>
    %7 = vector.broadcast %6 : vector<1x512xf32> to vector<8x512xf32>
    %8 = arith.addf %5, %7 : vector<8x512xf32>
    %cst_7 = arith.constant 0.000000e+00 : f32
    %9 = vector.broadcast %cst_7 : f32 to vector<8x512xf32>
    %10 = arith.maximumf %8, %9 : vector<8x512xf32>
    %c512_i32 = arith.constant 512 : i32
    %11 = arith.muli %arg0, %c512_i32 : i32
    %12 = tpu.assume_multiple %11, 512 : i32
    %c0_8 = arith.constant 0 : index
    %13 = arith.index_cast %12 : i32 to index
    %14 = vector.load %arg14[%c0_8, %13] : memref<8x1024xf32, #tpu.memory_space<vmem>>, vector<8x512xf32>
    tpu.vector_store %arg14[%c0_8, %13], %10 {strides = array<i32>} : memref<8x1024xf32, #tpu.memory_space<vmem>>, vector<8x512xf32>,
    %c1_i32 = arith.constant 1 : i32
    %15 = arith.cmpi eq, %arg0, %c1_i32 : i32
    %16 = arith.extui %15 : i1 to i32
    %c0_i32 = arith.constant 0 : i32
    %17 = arith.cmpi ne, %16, %c0_i32 : i32
    scf.if %17 {
      %c0_9 = arith.constant 0 : index
      %c0_10 = arith.constant 0 : index
      %18 = vector.load %arg14[%c0_9, %c0_10] : memref<8x1024xf32, #tpu.memory_space<vmem>>, vector<8x1024xf32>
      %19 = arith.truncf %18 : vector<8x1024xf32> to vector<8x1024xbf16>
      %c0_11 = arith.constant 0 : index
      %c0_12 = arith.constant 0 : index
      %20 = vector.load %arg5[%c0_11, %c0_12] : memref<1024x512xbf16, #tpu.memory_space<vmem>>, vector<1024x512xbf16>
      %cst_13 = arith.constant dense<0.000000e+00> : vector<8x512xf32>
      %21 = tpu.matmul %19, %20, %cst_13 {dimension_numbers = #tpu.dot_dimension_numbers<[1], [0], [0], [1], [0, 0, 1, 1], [], []>} : vector<8x1024xbf16>, vector<1024x512xbf16>, vector<8x512xf32> -> vector<8x512xf32>
      %c0_14 = arith.constant 0 : index
      %c0_15 = arith.constant 0 : index
      %22 = vector.load %arg6[%c0_14, %c0_15] : memref<1x512xf32, #tpu.memory_space<vmem>>, vector<1x512xf32>
      %23 = vector.broadcast %22 : vector<1x512xf32> to vector<8x512xf32>
      %24 = arith.mulf %21, %23 : vector<8x512xf32>
      %c0_16 = arith.constant 0 : index
      %c0_17 = arith.constant 0 : index
      %25 = vector.load %arg7[%c0_16, %c0_17] : memref<1x512xf32, #tpu.memory_space<vmem>>, vector<1x512xf32>
      %26 = vector.broadcast %25 : vector<1x512xf32> to vector<8x512xf32>
      %27 = arith.addf %24, %26 : vector<8x512xf32>
      %cst_18 = arith.constant 0.000000e+00 : f32
      %28 = vector.broadcast %cst_18 : f32 to vector<8x512xf32>
      %29 = arith.maximumf %27, %28 : vector<8x512xf32>
      %30 = arith.truncf %29 : vector<8x512xf32> to vector<8x512xbf16>
      %c0_19 = arith.constant 0 : index
      %c0_20 = arith.constant 0 : index
      %31 = vector.load %arg8[%c0_19, %c0_20] : memref<512x256xbf16, #tpu.memory_space<vmem>>, vector<512x256xbf16>
      %cst_21 = arith.constant dense<0.000000e+00> : vector<8x256xf32>
      %32 = tpu.matmul %30, %31, %cst_21 {dimension_numbers = #tpu.dot_dimension_numbers<[1], [0], [0], [1], [0, 0, 1, 1], [], []>} : vector<8x512xbf16>, vector<512x256xbf16>, vector<8x256xf32> -> vector<8x256xf32>
      %c0_22 = arith.constant 0 : index
      %c0_23 = arith.constant 0 : index
      %33 = vector.load %arg9[%c0_22, %c0_23] : memref<1x256xf32, #tpu.memory_space<vmem>>, vector<1x256xf32>
      %34 = vector.broadcast %33 : vector<1x256xf32> to vector<8x256xf32>
      %35 = arith.mulf %32, %34 : vector<8x256xf32>
      %c0_24 = arith.constant 0 : index
      %c0_25 = arith.constant 0 : index
      %36 = vector.load %arg10[%c0_24, %c0_25] : memref<1x256xf32, #tpu.memory_space<vmem>>, vector<1x256xf32>
      %37 = vector.broadcast %36 : vector<1x256xf32> to vector<8x256xf32>
      %38 = arith.addf %35, %37 : vector<8x256xf32>
      %cst_26 = arith.constant 0.000000e+00 : f32
      %39 = vector.broadcast %cst_26 : f32 to vector<8x256xf32>
      %40 = arith.maximumf %38, %39 : vector<8x256xf32>
      %41 = arith.truncf %40 : vector<8x256xf32> to vector<8x256xbf16>
      %c0_27 = arith.constant 0 : index
      %c0_28 = arith.constant 0 : index
      %42 = vector.load %arg11[%c0_27, %c0_28] : memref<256x31xbf16, #tpu.memory_space<vmem>>, vector<256x31xbf16>
      %cst_29 = arith.constant dense<0.000000e+00> : vector<8x31xf32>
      %43 = tpu.matmul %41, %42, %cst_29 {dimension_numbers = #tpu.dot_dimension_numbers<[1], [0], [0], [1], [0, 0, 1, 1], [], []>} : vector<8x256xbf16>, vector<256x31xbf16>, vector<8x31xf32> -> vector<8x31xf32>
      %c0_30 = arith.constant 0 : index
      %c0_31 = arith.constant 0 : index
      %44 = vector.load %arg12[%c0_30, %c0_31] : memref<1x31xf32, #tpu.memory_space<vmem>>, vector<1x31xf32>
      %45 = vector.broadcast %44 : vector<1x31xf32> to vector<8x31xf32>
      %46 = arith.addf %43, %45 : vector<8x31xf32>
      %cst_32 = arith.constant dense<0xFF800000> : vector<8xf32>
      %47 = vector.multi_reduction <maximumf>, %46, %cst_32 [1] : vector<8x31xf32> to vector<8xf32>
      %48 = vector.shape_cast %47 : vector<8xf32> to vector<8x1xf32>
      %49 = vector.broadcast %48 : vector<8x1xf32> to vector<8x31xf32>
      %50 = arith.subf %46, %49 : vector<8x31xf32>
      %51 = math.exp %50 : vector<8x31xf32>
      %cst_33 = arith.constant dense<0.000000e+00> : vector<8xf32>
      %52 = vector.multi_reduction <add>, %51, %cst_33 [1] : vector<8x31xf32> to vector<8xf32>
      %53 = vector.shape_cast %52 : vector<8xf32> to vector<8x1xf32>
      %54 = math.log %53 : vector<8x1xf32>
      %55 = arith.addf %48, %54 : vector<8x1xf32>
      %56 = vector.broadcast %55 : vector<8x1xf32> to vector<8x31xf32>
      %57 = arith.subf %46, %56 : vector<8x31xf32>
      %c0_34 = arith.constant 0 : index
      %c0_35 = arith.constant 0 : index
      %58 = vector.load %arg13[%c0_34, %c0_35] : memref<8x31xf32, #tpu.memory_space<vmem>>, vector<8x31xf32>
      tpu.vector_store %arg13[%c0_34, %c0_35], %57 {strides = array<i32>} : memref<8x31xf32, #tpu.memory_space<vmem>>, vector<8x31xf32>,
    } else {
    }
    return
  }
  func.func @transform_0(%arg0: i32) -> (i32, i32) {
    %c0_i32 = arith.constant 0 : i32
    %c0_i32_0 = arith.constant 0 : i32
    %c0_i32_1 = arith.constant 0 : i32
    return %c0_i32, %c0_i32_0 : i32, i32
  }
  func.func @transform_1(%arg0: i32) -> (i32, i32) {
    %c0_i32 = arith.constant 0 : i32
    %c0_i32_0 = arith.constant 0 : i32
    return %c0_i32, %arg0 : i32, i32
  }
  func.func @transform_2(%arg0: i32) -> (i32, i32) {
    %c0_i32 = arith.constant 0 : i32
    %c0_i32_0 = arith.constant 0 : i32
    return %c0_i32, %arg0 : i32, i32
  }
  func.func @transform_3(%arg0: i32) -> (i32, i32) {
    %c0_i32 = arith.constant 0 : i32
    %c0_i32_0 = arith.constant 0 : i32
    return %c0_i32, %arg0 : i32, i32
  }
  func.func @transform_4(%arg0: i32) -> (i32, i32) {
    %c0_i32 = arith.constant 0 : i32
    %c0_i32_0 = arith.constant 0 : i32
    %c0_i32_1 = arith.constant 0 : i32
    return %c0_i32, %c0_i32_0 : i32, i32
  }
  func.func @transform_5(%arg0: i32) -> (i32, i32) {
    %c0_i32 = arith.constant 0 : i32
    %c0_i32_0 = arith.constant 0 : i32
    %c0_i32_1 = arith.constant 0 : i32
    return %c0_i32, %c0_i32_0 : i32, i32
  }
  func.func @transform_6(%arg0: i32) -> (i32, i32) {
    %c0_i32 = arith.constant 0 : i32
    %c0_i32_0 = arith.constant 0 : i32
    %c0_i32_1 = arith.constant 0 : i32
    return %c0_i32, %c0_i32_0 : i32, i32
  }
  func.func @transform_7(%arg0: i32) -> (i32, i32) {
    %c0_i32 = arith.constant 0 : i32
    %c0_i32_0 = arith.constant 0 : i32
    %c0_i32_1 = arith.constant 0 : i32
    return %c0_i32, %c0_i32_0 : i32, i32
  }
  func.func @transform_8(%arg0: i32) -> (i32, i32) {
    %c0_i32 = arith.constant 0 : i32
    %c0_i32_0 = arith.constant 0 : i32
    %c0_i32_1 = arith.constant 0 : i32
    return %c0_i32, %c0_i32_0 : i32, i32
  }
  func.func @transform_9(%arg0: i32) -> (i32, i32) {
    %c0_i32 = arith.constant 0 : i32
    %c0_i32_0 = arith.constant 0 : i32
    %c0_i32_1 = arith.constant 0 : i32
    return %c0_i32, %c0_i32_0 : i32, i32
  }
  func.func @transform_10(%arg0: i32) -> (i32, i32) {
    %c0_i32 = arith.constant 0 : i32
    %c0_i32_0 = arith.constant 0 : i32
    %c0_i32_1 = arith.constant 0 : i32
    return %c0_i32, %c0_i32_0 : i32, i32
  }
  func.func @transform_11(%arg0: i32) -> (i32, i32) {
    %c0_i32 = arith.constant 0 : i32
    %c0_i32_0 = arith.constant 0 : i32
    %c0_i32_1 = arith.constant 0 : i32
    return %c0_i32, %c0_i32_0 : i32, i32
  }
  func.func @transform_12(%arg0: i32) -> (i32, i32) {
    %c0_i32 = arith.constant 0 : i32
    %c0_i32_0 = arith.constant 0 : i32
    %c0_i32_1 = arith.constant 0 : i32
    return %c0_i32, %c0_i32_0 : i32, i32
  }
}

</mosaic_0001>

<bundles_post_ra>
// kernel: classifier_office_forward.1
= control target key start
LH: loop header
LB: loop body
LE: loop exit
PB: predicated region body
PF: predicated region fallthrough
CT: control target
= control target key end

     0   :  { %s20076_s0 = inlined_call_operand.vmem [shape: bf16[8,5184], index: 0, kind: input, shape index: {}]   ;;  %s20077_s1 = inlined_call_operand.hbm [shape: bf16[5184,1024], index: 1, kind: input, shape index: {}]   ;;  %s20078_s2 = inlined_call_operand.hbm [shape: f32[1,1024], index: 2, kind: input, shape index: {}]   ;;  %s20079_s3 = inlined_call_operand.hbm [shape: f32[1,1024], index: 3, kind: input, shape index: {}]   ;;  %s20080_s4 = inlined_call_operand.hbm [shape: bf16[1024,512], index: 4, kind: input, shape index: {}]   ;;  %s20081_s5 = inlined_call_operand.hbm [shape: f32[1,512], index: 5, kind: input, shape index: {}]   ;;  %s20082_s6 = inlined_call_operand.hbm [shape: f32[1,512], index: 6, kind: input, shape index: {}]   ;;  %s20083_s7 = inlined_call_operand.hbm [shape: bf16[512,256], index: 7, kind: input, shape index: {}]   ;;  %s20084_s8 = inlined_call_operand.hbm [shape: f32[1,256], index: 8, kind: input, shape index: {}]   ;;  %s20085_s9 = inlined_call_operand.hbm [shape: f32[1,256], index: 9, kind: input, shape index: {}]   ;;  %s20086_s10 = inlined_call_operand.vmem [shape: bf16[256,31], index: 10, kind: input, shape index: {}]   ;;  %s20087_s11 = inlined_call_operand.hbm [shape: f32[1,31], index: 11, kind: input, shape index: {}]   ;;  %s20088_s12 = inlined_call_operand.hbm [shape: f32[8,31], index: 12, kind: output, shape index: {}]  }
   0x1   :  { %20109 = sst [smem:[#allocation31_spill]] %s20076_s0 }
   0x2   :  { %20110 = sst [smem:[#allocation32_spill]] %s20080_s4 }
   0x3   :  { %20111 = sst [smem:[#allocation33_spill]] %s20082_s6 }
   0x4   :  { %20112 = sst [smem:[#allocation34_spill]] %s20084_s8 }
   0x5   :  { %20113 = sst [smem:[#allocation35_spill]] %s20086_s10 }
   0x6   :  { %20114 = sst [smem:[#allocation36_spill]] %s20088_s12 }
   0x7   :  { %17 = vsyncpa [#allocation4], 0 }
   0x8   :  { %19 = vsyncpa [#allocation4 + $0x1], 0 }
   0x9   :  { %20 = vsyncpa [#allocation7], 0 }
   0xa   :  { %22 = vsyncpa [#allocation7 + $0x1], 0 }
   0xb   :  { %23 = vsyncpa [#allocation10], 0 }
   0xc   :  { %24 = vsyncpa [#allocation13], 0 }
   0xd   :  { %25 = vsyncpa [#allocation16], 0 }
   0xe   :  { %26 = vsyncpa [#allocation19], 0 }
   0xf   :  { %27 = vsyncpa [#allocation5], 0  ;;  %s17912_s21 = smov 0   ;;  %s17914_s22 = smov 0  }
  0x10   :  { %s17916_s23 = smov 0   ;;  %s17918_s24 = smov 0  }
  0x11 LB: > { %20115 = sst [smem:[#allocation28_spill]] %s17824_s23  ;;  %s17830_s25 = smov [#allocation9]   ;;  %s17828_s24 = sphi %s17918_s24, %s20148_s24   ;;  %s17824_s23 = sphi %s17916_s23, %s20150_s23   ;;  %s17820_s22 = sphi %s17914_s22, %s20152_s22   ;;  %s17816_s21 = sphi %s17912_s21, %s20151_s21  }
  0x12   : > { %s341_s26 = sshll.u32 %s17830_s25, 4  ;;  %s17933_s27 = sadd.s32 4294967295, %s17828_s24   ;;  %s342_s26 = int_to_ptr.vmem [resolvable:$true] %s341_s26 }
  0x13   : > { %p13122_p0 = scmp.ge.s32.totalorder %s17828_s24, 1  ;;  %p20096_p1 = scmp.eq.s32.totalorder %s17933_s27, 0 }
  0x14   : > { %p326_p2 = scmp.lt.s32.totalorder %s17828_s24, 3  ;;  %s17831_s29 = smov [#allocation12]  }
  0x15   : > { %s366_s30 = sshll.u32 %s17831_s29, 4  ;;  %s17832_s14 = smov [#allocation15]   ;;  %s367_s30 = int_to_ptr.vmem [resolvable:$true] %s366_s30 }
  0x16   : > { %p17938_p3 = pnand %p13122_p0, %p326_p2  ;;  %s390_s15 = sshll.u32 %s17832_s14, 4  ;;  %s17950_s15 = int_to_ptr.vmem [resolvable:$true] %s390_s15 }
  0x17   : > { %s17491_s17 = scalar_lea.vmem %s342_s26, 32768  ;;  %p17499_p10 = scmp.lt.s32.totalorder %s342_s26, %s342_s26 }
  0x18   : > { %s20116_s28 = scalar_select %p17938_p3, 1, 0 }
  0x19   : > { %p14897_p4 = pneg %p17938_p3  ;;  %p17492_p7 = scmp.ne.s32.totalorder %s342_s26, %s17491_s17 }
  0x1a   : > { %p17500_p11 = scmp.lt.s32.totalorder %s17491_s17, %s17491_s17 }
  0x1b   : > { %p17946_p5 = pnand %p14897_p4, %p20096_p1 }
  0x1c   : > { %p17501_p12 = por %p17500_p11, %p17499_p10 }
  0x1d   : > { %s20117_s13 = scalar_select %p17946_p5, 1, 0 }
  0x1e   : > { %p17954_p6 = pneg %p17946_p5 }
  0x20   : > { %s20118_s16 = scalar_select %p17954_p6, 1, 0 }
  0x21   : > { %p17494_p8 = pnand %p17492_p7, %p17954_p6 }
  0x23   : > { %p17495_p9 = pneg %p17494_p8 }
  0x25   : > { %p17502_p13 = pnand %p17501_p12, %p17495_p9 }
  0x27   : > { %17505 = shalt.err (!%p17502_p13)
}
  0x28   : > { %s20089_s18 = smov 256   ;;  %s20090_s19 = smov 16  }
  0x29   : > { %s20119_s4 = sld [smem:[#allocation32_spill]]  ;;  %s17517_s29 = scalar_lea.vmem %s367_s30, 64 }
  0x2a   : > { %p17518_p0 = scmp.ne.s32.totalorder %s367_s30, %s17517_s29  ;;  %p17525_p7 = scmp.lt.s32.totalorder %s367_s30, %s367_s30 }
  0x2b   : > { %p17526_p8 = scmp.lt.s32.totalorder %s17517_s29, %s17517_s29 }
  0x2c   : > { %p17520_p2 = pnand %p17518_p0, %p17954_p6 }
  0x2d   : > { %p17527_p9 = por %p17526_p8, %p17525_p7 }
  0x2e   : > { %p17521_p4 = pneg %p17520_p2 }
  0x2f   : > { %14900 = dma.hbm_to_vmem [thread:$0]  (!%p17946_p5), %s20119_s4, 32768, %s342_s26, [#allocation10], %s20089_s18, %s20089_s18, %s20090_s19  }
  0x30   : > { %p17528_p10 = pnand %p17527_p9, %p17521_p4 }
  0x32   : > { %17531 = shalt.err (!%p17528_p10)
}
  0x33   : > { %s20120_s6 = sld [smem:[#allocation33_spill]]  ;;  %s17543_s26 = scalar_lea.vmem %s17950_s15, 32 }
  0x34   : > { %p17544_p11 = scmp.ne.s32.totalorder %s17950_s15, %s17543_s26  ;;  %p17551_p0 = scmp.lt.s32.totalorder %s17950_s15, %s17950_s15 }
  0x35   : > { %p17552_p2 = scmp.lt.s32.totalorder %s17543_s26, %s17543_s26 }
  0x36   : > { %p17546_p12 = pnand %p17544_p11, %p17954_p6 }
  0x37   : > { %p17553_p4 = por %p17552_p2, %p17551_p0 }
  0x38   : > { %p17547_p13 = pneg %p17546_p12 }
  0x39   : > { %14906 = dma.hbm_to_vmem [thread:$0]  (!%p17946_p5), %s20120_s6, 64, %s367_s30, [#allocation13]  }
  0x3a   : > { %p17554_p7 = pnand %p17553_p4, %p17547_p13 }
  0x3c   : > { %17557 = shalt.err (!%p17554_p7)
}
  0x3d   : > { %s20121_s8 = sld [smem:[#allocation34_spill]]  ;;  %s17988_s30 = sadd.s32 1, %s17828_s24  }
  0x3e   : > { %20122 = sst [smem:[#allocation29_spill]] %s17988_s30  ;;  %s58_s29 = ssub.s32 %s17828_s24, %s17988_s30 }
  0x3f   : > { %s61_s14 = sadd.s32 1, %s17824_s23  ;;  %p59_p8 = scmp.eq.s32.totalorder %s58_s29, 0 }
  0x40   : > { %p68_p9 = scmp.ne.s32.totalorder %s17824_s23, %s17820_s22  ;;  %p69_p10 = scmp.eq.s32.totalorder %s17828_s24, 0 }
  0x41   : > { %p74_p11 = scmp.ne.s32.totalorder %s17820_s22, %s17816_s21  ;;  %p14936_p0 = scmp.lt.s32.totalorder %s17828_s24, 2 }
  0x42   : > { %s17999_s17 = scalar_select %p59_p8, %s17824_s23, %s61_s14  }
  0x43   : > { %14912 = dma.hbm_to_vmem [thread:$0]  (!%p17946_p5), %s20121_s8, 32, %s17950_s15, [#allocation16]  }
  0x44   : > { %20123 = sst [smem:[#allocation30_spill]] %s17999_s17  ;;  %p70_p12 = por %p69_p10, %p68_p9 }
  0x45   : > { %p18003_p13 = por %p20096_p1, %p74_p11  ;;  %s18009_s15 = sand.u32 1, %s17824_s23  }
  0x46   : > { %s14857_s20 = smul.u32 10368, %s18009_s15  ;;  %p18012_p2 = pnand %p14936_p0, %p70_p12 }
  0x47   : > { %s20124_s26 = scalar_select %p18003_p13, 1, 0 }
  0x48   : > { %s20125_s25 = scalar_select %p18012_p2, 1, 0 }
  0x49   : > { %s447_s21 = sand.u32 1, %s17828_s24   ;;  %s430_s29 = scalar_lea.vmem [#allocation3], %s14857_s20 }
  0x4a   : > { %s437_s14 = sshll.u32 %s430_s29, 4  ;;  %s20095_s18 = sshll.u32 %s18009_s15, 2  ;;  %s18017_s14 = int_to_ptr.vmem [resolvable:$true] %s437_s14 }
  0x4b   : > { %s20094_s19 = sshll.u32 %s17828_s24, 6  ;;  %s451_s17 = scalar_lea.vmem [#allocation6], %s20095_s18 }
  0x4c   : > { %s18026_s8 = scalar_lea.hbm %s20078_s2, %s20094_s19  ;;  %s459_s23 = sshll.u32 %s451_s17, 4  ;;  %s460_s23 = int_to_ptr.vmem [resolvable:$true] %s459_s23 }
  0x4d   : > { %s18030_s30 = scalar_lea.sflag [#allocation7], %s447_s21  ;;  %s17558_s20 = scalar_lea.hbm %s18026_s8, 64 }
  0x4e   : > { %p17559_p4 = scmp.ne.s32.totalorder %s18026_s8, %s17558_s20  ;;  %p18036_p7 = pneg %p18012_p2 }
  0x4f   : > { %s17563_s19 = scalar_lea.hbm %s20078_s2, 128  ;;  %p17564_p10 = scmp.lt.s32.totalorder %s18026_s8, %s20078_s2 }
  0x50   : > { %s20126_s29 = scalar_select %p18036_p7, 1, 0 }
  0x51   : > { %p17561_p8 = pnand %p18036_p7, %p17559_p4  ;;  %p17565_p11 = scmp.lt.s32.totalorder %s17563_s19, %s17558_s20 }
  0x53   : > { %p17562_p9 = pneg %p17561_p8  ;;  %p17566_p12 = por %p17565_p11, %p17564_p10 }
  0x55   : > { %p17567_p0 = pnand %p17566_p12, %p17562_p9 }
  0x57   : > { %17570 = shalt.err (!%p17567_p0)
}
  0x58   : > { %s17571_s21 = scalar_lea.vmem %s460_s23, 64  ;;  %s17835_s12 = smov [#allocation6]  }
  0x59   : > { %p17572_p1 = scmp.ne.s32.totalorder %s460_s23, %s17571_s21  ;;  %s17576_s10 = sshll.u32 %s17835_s12, 4  ;;  %s17577_s10 = int_to_ptr.vmem [resolvable:$false] %s17576_s10 }
  0x5a   : > { %s17578_s0 = scalar_lea.vmem %s17577_s10, 128  ;;  %p17579_p4 = scmp.lt.s32.totalorder %s460_s23, %s17577_s10 }
  0x5b   : > { %p17574_p13 = pnand %p17572_p1, %p18036_p7  ;;  %p17580_p8 = scmp.lt.s32.totalorder %s17578_s0, %s17571_s21 }
  0x5d   : > { %p17575_p3 = pneg %p17574_p13  ;;  %p17581_p5 = por %p17580_p8, %p17579_p4 }
  0x5f   : > { %p17582_p6 = pnand %p17581_p5, %p17575_p3 }
  0x61   : > { %17585 = shalt.err (!%p17582_p6)
}
  0x62   : > { %14925 = dma.hbm_to_vmem [thread:$0]  (!%p18012_p2), %s18026_s8, 64, %s460_s23, %s18030_s30  }
  0x63   : > { %s20127_s18 = sshll.u32 %s17828_s24, 6  ;;  %s17836_s12 = smov [#allocation11]  }
  0x64   : > { %s18060_s4 = scalar_lea.hbm %s20079_s3, %s20127_s18  ;;  %s355_s6 = sshll.u32 %s17836_s12, 4  ;;  %s356_s6 = int_to_ptr.vmem [resolvable:$true] %s355_s6 }
  0x65   : > { %s17837_s0 = smov [#allocation14]   ;;  %s17597_s17 = scalar_lea.vmem %s356_s6, 64 }
  0x66   : > { %s376_s10 = sshll.u32 %s17837_s0, 4  ;;  %p17598_p1 = scmp.ne.s32.totalorder %s356_s6, %s17597_s17  ;;  %s377_s10 = int_to_ptr.vmem [resolvable:$true] %s376_s10 }
  0x67   : > { %p20128_p3 = scmp.ne.s32.totalorder %s20118_s16, 0  ;;  %p17605_p13 = scmp.lt.s32.totalorder %s356_s6, %s356_s6 }
  0x68   : > { %p17606_p9 = scmp.lt.s32.totalorder %s17597_s17, %s17597_s17 }
  0x69   : > { %p17600_p5 = pnand %p17598_p1, %p20128_p3 }
  0x6a   : > { %p17607_p10 = por %p17606_p9, %p17605_p13 }
  0x6b   : > { %p17601_p6 = pneg %p17600_p5 }
  0x6d   : > { %p17608_p11 = pnand %p17607_p10, %p17601_p6 }
  0x6f   : > { %17611 = shalt.err (!%p17608_p11)
}
  0x70   : > { %p20129_p12 = scmp.ne.s32.totalorder %s20117_s13, 0  ;;  %s17623_s21 = scalar_lea.vmem %s377_s10, 8192 }
  0x71   : > { %p17624_p0 = scmp.ne.s32.totalorder %s377_s10, %s17623_s21  ;;  %p17631_p1 = scmp.lt.s32.totalorder %s377_s10, %s377_s10 }
  0x72   : > { %14903 = dma.hbm_to_vmem [thread:$0]  (!%p20129_p12), %s20081_s5, 64, %s356_s6, [#allocation10]  }
  0x73   : > { %p17626_p4 = pnand %p17624_p0, %p20128_p3  ;;  %p17632_p5 = scmp.lt.s32.totalorder %s17623_s21, %s17623_s21 }
  0x75   : > { %p17627_p8 = pneg %p17626_p4  ;;  %p17633_p2 = por %p17632_p5, %p17631_p1 }
  0x77   : > { %p17634_p7 = pnand %p17633_p2, %p17627_p8 }
  0x79   : > { %17637 = shalt.err (!%p17634_p7)
}
  0x7a   : > { %s17838_s18 = smov 128   ;;  %s17839_s19 = smov 8  }
  0x7b   : > { %14909 = dma.hbm_to_vmem [thread:$0]  (!%p20129_p12), %s20083_s7, 8192, %s377_s10, [#allocation13], %s17838_s18, %s17838_s18, %s17839_s19  }
  0x7c   : > { %s17840_s6 = smov [#allocation17]   ;;  %s17841_s17 = smov [#allocation18]  }
  0x7d   : > { %s401_s0 = sshll.u32 %s17840_s6, 4  ;;  %s415_s8 = sshll.u32 %s17841_s17, 4  ;;  %s402_s0 = int_to_ptr.vmem [resolvable:$true] %s401_s0  ;;  %s416_s8 = int_to_ptr.vmem [resolvable:$true] %s415_s8 }
  0x7e   : > { %s17649_s23 = scalar_lea.vmem %s402_s0, 32  ;;  %p17657_p7 = scmp.lt.s32.totalorder %s402_s0, %s402_s0 }
  0x7f   : > { %p17650_p6 = scmp.ne.s32.totalorder %s402_s0, %s17649_s23  ;;  %p17658_p9 = scmp.lt.s32.totalorder %s17649_s23, %s17649_s23 }
  0x81   : > { %p17652_p13 = pnand %p17650_p6, %p20128_p3  ;;  %p17659_p10 = por %p17658_p9, %p17657_p7 }
  0x83   : > { %p17653_p2 = pneg %p17652_p13 }
  0x85   : > { %p17660_p11 = pnand %p17659_p10, %p17653_p2 }
  0x87   : > { %17663 = shalt.err (!%p17660_p11)
}
  0x88   : > { %14915 = dma.hbm_to_vmem [thread:$0]  (!%p20129_p12), %s20085_s9, 32, %s402_s0, [#allocation16]  }
  0x89   : > { %s14832_s10 = sshll.u32 %s17828_s24, 8  ;;  %s17675_s18 = scalar_lea.vmem %s416_s8, 16 }
  0x8a   : > { %p17676_p0 = scmp.ne.s32.totalorder %s416_s8, %s17675_s18  ;;  %s17682_s19 = scalar_lea.vmem %s416_s8, 32 }
  0x8b   : > { %p17683_p1 = scmp.lt.s32.totalorder %s416_s8, %s416_s8  ;;  %p17684_p5 = scmp.lt.s32.totalorder %s17682_s19, %s17675_s18 }
  0x8c   : > { %p17678_p4 = pnand %p17676_p0, %p20128_p3 }
  0x8d   : > { %p17685_p6 = por %p17684_p5, %p17683_p1 }
  0x8e   : > { %p17679_p8 = pneg %p17678_p4 }
  0x90   : > { %p17686_p13 = pnand %p17685_p6, %p17679_p8 }
  0x92   : > { %17689 = shalt.err (!%p17686_p13)
}
  0x93   : > { %14918 = dma.hbm_to_vmem [thread:$0]  (!%p20129_p12), %s20087_s11, 16, %s416_s8, [#allocation19]  }
  0x94   : > { %s18094_s16 = scalar_lea.hbm %s20077_s1, %s14832_s10  ;;  %s427_s17 = scalar_lea.sflag [#allocation4], %s18009_s15 }
  0x95   : > { %s17690_s23 = scalar_lea.hbm %s18094_s16, 165888  ;;  %p20130_p2 = scmp.ne.s32.totalorder %s20126_s29, 0 }
  0x96   : > { %p17691_p3 = scmp.ne.s32.totalorder %s18094_s16, %s17690_s23  ;;  %s17695_s20 = scalar_lea.hbm %s20077_s1, 331776 }
  0x97   : > { %p17696_p12 = scmp.lt.s32.totalorder %s18094_s16, %s20077_s1  ;;  %p17697_p10 = scmp.lt.s32.totalorder %s17695_s20, %s17690_s23 }
  0x98   : > { %p17693_p7 = pnand %p17691_p3, %p20130_p2 }
  0x99   : > { %p17698_p11 = por %p17697_p10, %p17696_p12 }
  0x9a   : > { %p17694_p9 = pneg %p17693_p7 }
  0x9c   : > { %p17699_p0 = pnand %p17698_p11, %p17694_p9 }
  0x9e   : > { %17702 = shalt.err (!%p17699_p0)
}
  0x9f   : > { %s17703_s10 = scalar_lea.vmem %s18017_s14, 165888  ;;  %s17842_s19 = smov [#allocation3]  }
  0xa0   : > { %p17704_p4 = scmp.ne.s32.totalorder %s18017_s14, %s17703_s10  ;;  %s17708_s12 = sshll.u32 %s17842_s19, 4  ;;  %s17709_s12 = int_to_ptr.vmem [resolvable:$false] %s17708_s12 }
  0xa1   : > { %s17710_s6 = scalar_lea.vmem %s17709_s12, 331776  ;;  %p17711_p5 = scmp.lt.s32.totalorder %s18017_s14, %s17709_s12 }
  0xa2   : > { %p17706_p8 = pnand %p17704_p4, %p20130_p2  ;;  %p17712_p6 = scmp.lt.s32.totalorder %s17710_s6, %s17703_s10 }
  0xa4   : > { %p17707_p1 = pneg %p17706_p8  ;;  %p17713_p13 = por %p17712_p6, %p17711_p5 }
  0xa6   : > { %p17714_p3 = pnand %p17713_p13, %p17707_p1 }
  0xa8   : > { %17717 = shalt.err (!%p17714_p3)
}
  0xa9   : > { %s17843_s24 = smov 512   ;;  %p20131_p7 = scmp.ne.s32.totalorder %s20125_s25, 0 }
  0xaa   : > { %s20132_s0 = smov 16   ;;  %s20133_s23 = smov 256  }
  0xab   : > { %14922 = dma.hbm_to_vmem [thread:$0]  (!%p20131_p7), %s18094_s16, 165888, %s18017_s14, %s427_s17, %s17843_s24, %s20133_s23, %s20132_s0  }
  0xac   : > { %s20134_s13 = sshll.u32 %s18009_s15, 2  ;;  %s17718_s18 = scalar_lea.hbm %s18060_s4, 64 }
  0xad   : > { %s470_s21 = scalar_lea.vmem [#allocation8], %s20134_s13  ;;  %p17719_p9 = scmp.ne.s32.totalorder %s18060_s4, %s17718_s18 }
  0xae   : > { %s478_s20 = sshll.u32 %s470_s21, 4  ;;  %s17723_s19 = scalar_lea.hbm %s20079_s3, 128  ;;  %s479_s20 = int_to_ptr.vmem [resolvable:$true] %s478_s20 }
  0xaf   : > { %p17721_p12 = pnand %p17719_p9, %p20130_p2  ;;  %p17724_p11 = scmp.lt.s32.totalorder %s18060_s4, %s20079_s3 }
  0xb0   : > { %p17725_p0 = scmp.lt.s32.totalorder %s17723_s19, %s17718_s18 }
  0xb1   : > { %p17722_p10 = pneg %p17721_p12 }
  0xb2   : > { %p17726_p4 = por %p17725_p0, %p17724_p11 }
  0xb4   : > { %p17727_p8 = pnand %p17726_p4, %p17722_p10 }
  0xb6   : > { %17730 = shalt.err (!%p17727_p8)
}
  0xb7   : > { %s17731_s15 = scalar_lea.vmem %s479_s20, 64  ;;  %s17844_s14 = smov [#allocation8]  }
  0xb8   : > { %p17732_p1 = scmp.ne.s32.totalorder %s479_s20, %s17731_s15  ;;  %s17736_s16 = sshll.u32 %s17844_s14, 4  ;;  %s17737_s16 = int_to_ptr.vmem [resolvable:$false] %s17736_s16 }
  0xb9   : > { %s17738_s17 = scalar_lea.vmem %s17737_s16, 128  ;;  %p17739_p13 = scmp.lt.s32.totalorder %s479_s20, %s17737_s16 }
  0xba   : > { %p17734_p5 = pnand %p17732_p1, %p20130_p2  ;;  %p17740_p3 = scmp.lt.s32.totalorder %s17738_s17, %s17731_s15 }
  0xbc   : > { %p17735_p6 = pneg %p17734_p5  ;;  %p17741_p9 = por %p17740_p3, %p17739_p13 }
  0xbe   : > { %p17742_p12 = pnand %p17741_p9, %p17735_p6 }
  0xc0   : > { %17745 = shalt.err (!%p17742_p12)
}
  0xc1   : > { %14928 = dma.hbm_to_vmem [thread:$0]  (!%p20131_p7), %s18060_s4, 64, %s479_s20, %s18030_s30  }
  0xc2   : > { %p20135_p10 = scmp.ne.s32.totalorder %s20116_s28, 0 }
  0xc3   : > { %s489_s29 = sand.u32 (!%p20135_p10), 1, %s17820_s22   ;;  %p20136_p2 = scmp.ne.s32.totalorder (!%p20135_p10), %s20124_s26, 0 }
  0xc4   : > { %487 = sbr.rel (%p20135_p10) target bundleno = 2928 (0xb70), region = 68  ;;  %s490_s0 = scalar_lea.sflag (!%p20135_p10), [#allocation4], %s489_s29 }
  0xc5   : > { %s14858_s24 = smul.u32 (!%p20135_p10), 10368, %s489_s29 }
  0xc7   : > { %s18143_s23 = scalar_lea.vmem (!%p20135_p10), [#allocation3], %s14858_s24 }
  0xc9   : > { %17787 = dma.done.wait (%p20136_p2), %s490_s0, 165888  }
  0xca   : > { %17789 = vsyncadd (%p20136_p2), %s490_s0, 4294801408  ;;  %s498_s25 = sand.u32 1, %s17933_s27   ;;  %s13140_s13 = sshll.u32 %s489_s29, 2 }
  0xcb   : > { %s499_s30 = scalar_lea.sflag [#allocation7], %s498_s25  ;;  %s18150_s4 = scalar_lea.vmem [#allocation6], %s13140_s13 }
  0xcc   : > { %17791 = dma.done.wait (%p20136_p2), %s499_s30, 128  }
  0xcd   : > { %17793 = vsyncadd (%p20136_p2), %s499_s30, 4294967168  ;;  %s18156_s28 = scalar_lea.vmem [#allocation8], %s13140_s13  ;;  %p20137_p7 = scmp.eq.s32.totalorder %s17933_s27, 0 }
  0xcf   : > { %17795 = dma.done.wait (%p20137_p7), [#allocation10], 32832   ;;  %p20138_p11 = pmov %p20137_p7 }
  0xd0   : > { %p20139_p0 = pmov %p20137_p7 }
  0xd1   : > { %17797 = vsyncadd (%p20138_p11), [#allocation10], 4294934464 }
  0xd2   : > { %17799 = dma.done.wait (%p20139_p0), [#allocation13], 8256   ;;  %p20140_p4 = pmov %p20139_p0 }
  0xd3   : > { %p20141_p8 = pmov %p20139_p0 }
  0xd4   : > { %17801 = vsyncadd (%p20140_p4), [#allocation13], 4294959040 }
  0xd5   : > { %17803 = dma.done.wait (%p20141_p8), [#allocation16], 64   ;;  %p20142_p1 = pmov %p20139_p0 }
  0xd6   : > { %p20143_p5 = pmov %p20139_p0 }
  0xd7   : > { %17805 = vsyncadd (%p20142_p1), [#allocation16], 4294967232 }
  0xd8   : > { %17807 = dma.done.wait (%p20143_p5), [#allocation19], 16   ;;  %p20144_p6 = pmov %p20139_p0 }
  0xd9   : > { %v14992_v0 = vld [vmem:[%s18143_s23 + $0xe4] ss:$16 sps:$4 sm:$0xff]   ;;  %v14996_v2 = vld [vmem:[%s18143_s23 + $0xe0] ss:$16 sps:$4 sm:$0xff]   ;;  %s20145_s20 = sld [smem:[#allocation31_spill]]  ;;  %vm8529_vm0 = vcmask 523264  }
  0xda   : > { %17809 = vsyncadd (%p20144_p6), [#allocation19], 4294967280  ;;  %v14994_v1 = vld [vmem:[%s18143_s23 + $0x2e4] ss:$16 sps:$4 sm:$0xff]   ;;  %8533 = vmatprep.subr.bf16.mxu0 %v14992_v0  ;;  %v14997_v3 = vld [vmem:[%s18143_s23 + $0x2e0] ss:$16 sps:$4 sm:$0xff]  }
  0xdb   : > { %8574 = vmatprep.subr.bf16.mxu1 %v14994_v1  ;;  %v14998_v4 = vld [vmem:[%s18143_s23 + $0xc4] ss:$16 sps:$4 sm:$0xff]   ;;  %8534 = vmatpush1.bf16.msra.mxu0 %v14996_v2  ;;  %v15002_v6 = vld [vmem:[%s18143_s23 + $0xc0] ss:$16 sps:$4 sm:$0xff]   ;;  %s14488_s12 = sshll.u32 %s17933_s27, 9  ;;  %p14490_p13 = scmp.ne.s32.totalorder %s17933_s27, 1 }
  0xdc   : > { %8575 = vmatpush1.bf16.msra.mxu1 %v14997_v3  ;;  %v15000_v5 = vld [vmem:[%s18143_s23 + $0x2c4] ss:$16 sps:$4 sm:$0xff]   ;;  %8535 = vmatprep.subr.bf16.mxu0 %v14998_v4  ;;  %v15003_v7 = vld [vmem:[%s18143_s23 + $0x2c0] ss:$16 sps:$4 sm:$0xff]   ;;  %s19400_s6 = sshra.s32 %s14488_s12, 7 }
  0xdd   : > { %8576 = vmatprep.subr.bf16.mxu1 %v15000_v5  ;;  %v15004_v8 = vld [vmem:[%s18143_s23 + $0xa4] ss:$16 sps:$4 sm:$0xff]   ;;  %v15008_v10 = vld [vmem:[%s18143_s23 + $0xa0] ss:$16 sps:$4 sm:$0xff]   ;;  %s14489_s15 = sshll.u32 %s19400_s6, 3 }
  0xde   : > { %v15006_v9 = vld [vmem:[%s18143_s23 + $0x2a4] ss:$16 sps:$4 sm:$0xff]   ;;  %v15009_v11 = vld [vmem:[%s18143_s23 + $0x2a0] ss:$16 sps:$4 sm:$0xff]   ;;  %s19415_s14 = scalar_lea.vmem [#allocation2], %s14489_s15 }
  0xdf   : > { %8536 = vmatpush1.bf16.msra.mxu0 %v15002_v6  ;;  %v15010_v12 = vld [vmem:[%s18143_s23 + $0x84] ss:$16 sps:$4 sm:$0xff]   ;;  %v15014_v14 = vld [vmem:[%s18143_s23 + $0x80] ss:$16 sps:$4 sm:$0xff]   ;;  %v590_v48 = vld [vmem:[%s20145_s20 + $0x8] sm:$0xff] }
  0xe0   : > { %8577 = vmatpush1.bf16.msra.mxu1 %v15003_v7  ;;  %8537 = vmatprep.subr.bf16.mxu0 %v15004_v8  ;;  %v15012_v13 = vld [vmem:[%s18143_s23 + $0x284] ss:$16 sps:$4 sm:$0xff]   ;;  %v15015_v15 = vld [vmem:[%s18143_s23 + $0x280] ss:$16 sps:$4 sm:$0xff]   ;;  %v18230_v51 = vcombine.high %v590_v48, %v590_v48  ;;  %v18254_v7 = vcombine.low %v590_v48, %v590_v48 }
  0xe1   : > { %8578 = vmatprep.subr.bf16.mxu1 %v15006_v9  ;;  %v15016_v16 = vld [vmem:[%s18143_s23 + $0x64] ss:$16 sps:$4 sm:$0xff]   ;;  %v15020_v18 = vld [vmem:[%s18143_s23 + $0x60] ss:$16 sps:$4 sm:$0xff]  }
  0xe2   : > { %v15018_v17 = vld [vmem:[%s18143_s23 + $0x264] ss:$16 sps:$4 sm:$0xff]   ;;  %v15021_v19 = vld [vmem:[%s18143_s23 + $0x260] ss:$16 sps:$4 sm:$0xff]   ;;  %8606 = vmatprep.mubr.bf16.mxu1 %v18230_v51 }
  0xe3   : > { %8538 = vmatpush1.bf16.msra.mxu0 %v15008_v10  ;;  %v15022_v20 = vld [vmem:[%s18143_s23 + $0x44] ss:$16 sps:$4 sm:$0xff]   ;;  %v15026_v22 = vld [vmem:[%s18143_s23 + $0x40] ss:$16 sps:$4 sm:$0xff]  }
  0xe4   : > { %8579 = vmatpush1.bf16.msra.mxu1 %v15009_v11  ;;  %8539 = vmatprep.subr.bf16.mxu0 %v15010_v12  ;;  %v15024_v21 = vld [vmem:[%s18143_s23 + $0x244] ss:$16 sps:$4 sm:$0xff]   ;;  %v15027_v23 = vld [vmem:[%s18143_s23 + $0x240] ss:$16 sps:$4 sm:$0xff]  }
  0xe5   : > { %8580 = vmatprep.subr.bf16.mxu1 %v15012_v13  ;;  %v15028_v24 = vld [vmem:[%s18143_s23 + $0x24] ss:$16 sps:$4 sm:$0xff]   ;;  %v15032_v26 = vld [vmem:[%s18143_s23 + $0x20] ss:$16 sps:$4 sm:$0xff]  }
  0xe6   : > { %v15030_v25 = vld [vmem:[%s18143_s23 + $0x224] ss:$16 sps:$4 sm:$0xff]   ;;  %v15033_v27 = vld [vmem:[%s18143_s23 + $0x220] ss:$16 sps:$4 sm:$0xff]  }
  0xe7   : > { %8540 = vmatpush1.bf16.msra.mxu0 %v15014_v14  ;;  %v15034_v28 = vld [vmem:[%s18143_s23 + $0x4] ss:$16 sps:$4 sm:$0xff]   ;;  %v15038_v30 = vld [vmem:[%s18143_s23] ss:$16 sps:$4 sm:$0xff]  }
  0xe8   : > { %8581 = vmatpush1.bf16.msra.mxu1 %v15015_v15  ;;  %8541 = vmatprep.subr.bf16.mxu0 %v15016_v16  ;;  %v15036_v29 = vld [vmem:[%s18143_s23 + $0x204] ss:$16 sps:$4 sm:$0xff]   ;;  %v15039_v31 = vld [vmem:[%s18143_s23 + $0x200] ss:$16 sps:$4 sm:$0xff]  }
  0xe9   : > { %8582 = vmatprep.subr.bf16.mxu1 %v15018_v17  ;;  %v15040_v32 = vld [vmem:[%s18143_s23 + $0x1e4] ss:$16 sps:$4 sm:$0xff]   ;;  %v15044_v34 = vld [vmem:[%s18143_s23 + $0x1e0] ss:$16 sps:$4 sm:$0xff]  }
  0xea   : > { %v15042_v33 = vld [vmem:[%s18143_s23 + $0x3e4] ss:$16 sps:$4 sm:$0xff]   ;;  %v15045_v35 = vld [vmem:[%s18143_s23 + $0x3e0] ss:$16 sps:$4 sm:$0xff]  }
  0xeb   : > { %8542 = vmatpush1.bf16.msra.mxu0 %v15020_v18  ;;  %v15046_v36 = vld [vmem:[%s18143_s23 + $0x1c4] ss:$16 sps:$4 sm:$0xff]   ;;  %v15050_v38 = vld [vmem:[%s18143_s23 + $0x1c0] ss:$16 sps:$4 sm:$0xff]  }
  0xec   : > { %8583 = vmatpush1.bf16.msra.mxu1 %v15021_v19  ;;  %8543 = vmatprep.subr.bf16.mxu0 %v15022_v20  ;;  %v15048_v37 = vld [vmem:[%s18143_s23 + $0x3c4] ss:$16 sps:$4 sm:$0xff]   ;;  %v15051_v39 = vld [vmem:[%s18143_s23 + $0x3c0] ss:$16 sps:$4 sm:$0xff]  }
  0xed   : > { %8584 = vmatprep.subr.bf16.mxu1 %v15024_v21  ;;  %v15052_v40 = vld [vmem:[%s18143_s23 + $0x1a4] ss:$16 sps:$4 sm:$0xff]   ;;  %v15056_v42 = vld [vmem:[%s18143_s23 + $0x1a0] ss:$16 sps:$4 sm:$0xff]  }
  0xee   : > { %v15054_v41 = vld [vmem:[%s18143_s23 + $0x3a4] ss:$16 sps:$4 sm:$0xff]   ;;  %v15057_v43 = vld [vmem:[%s18143_s23 + $0x3a0] ss:$16 sps:$4 sm:$0xff]  }
  0xef   : > { %8544 = vmatpush1.bf16.msra.mxu0 %v15026_v22  ;;  %v15058_v44 = vld [vmem:[%s18143_s23 + $0x184] ss:$16 sps:$4 sm:$0xff]   ;;  %v15062_v49 = vld [vmem:[%s18143_s23 + $0x180] ss:$16 sps:$4 sm:$0xff]  }
  0xf0   : > { %8585 = vmatpush1.bf16.msra.mxu1 %v15027_v23  ;;  %8545 = vmatprep.subr.bf16.mxu0 %v15028_v24  ;;  %v15060_v45 = vld [vmem:[%s18143_s23 + $0x384] ss:$16 sps:$4 sm:$0xff]   ;;  %v15063_v50 = vld [vmem:[%s18143_s23 + $0x380] ss:$16 sps:$4 sm:$0xff]  }
  0xf1   : > { %8586 = vmatprep.subr.bf16.mxu1 %v15030_v25  ;;  %v589_v46 = vld [vmem:[%s20145_s20] sm:$0xff] }
  0xf2   : > { %v18223_v47 = vcombine.high %v589_v46, %v589_v46  ;;  %v15064_v52 = vld [vmem:[%s18143_s23 + $0x164] ss:$16 sps:$4 sm:$0xff]   ;;  %v15068_v54 = vld [vmem:[%s18143_s23 + $0x160] ss:$16 sps:$4 sm:$0xff]   ;;  %v18252_v6 = vcombine.low %v589_v46, %v589_v46 }
  0xf3   : > { %8546 = vmatpush1.bf16.msra.mxu0 %v15032_v26  ;;  %v15066_v53 = vld [vmem:[%s18143_s23 + $0x364] ss:$16 sps:$4 sm:$0xff]   ;;  %v15069_v55 = vld [vmem:[%s18143_s23 + $0x360] ss:$16 sps:$4 sm:$0xff]  }
  0xf4   : > { %8587 = vmatpush1.bf16.msra.mxu1 %v15033_v27  ;;  %8547 = vmatprep.subr.bf16.mxu0 %v15034_v28  ;;  %v15070_v56 = vld [vmem:[%s18143_s23 + $0x144] ss:$16 sps:$4 sm:$0xff]   ;;  %v15074_v58 = vld [vmem:[%s18143_s23 + $0x140] ss:$16 sps:$4 sm:$0xff]  }
  0xf5   : > { %8588 = vmatprep.subr.bf16.mxu1 %v15036_v29  ;;  %8565 = vmatprep.mubr.bf16.mxu0 %v18223_v47  ;;  %v15072_v57 = vld [vmem:[%s18143_s23 + $0x344] ss:$16 sps:$4 sm:$0xff]   ;;  %v15075_v59 = vld [vmem:[%s18143_s23 + $0x340] ss:$16 sps:$4 sm:$0xff]  }
  0xf6   : > { %v15076_v60 = vld [vmem:[%s18143_s23 + $0x124] ss:$16 sps:$4 sm:$0xff]   ;;  %v15080_v62 = vld [vmem:[%s18143_s23 + $0x120] ss:$16 sps:$4 sm:$0xff]  }
  0xf7   : > { %8548 = vmatpush1.bf16.msra.mxu0 %v15038_v30  ;;  %v15078_v61 = vld [vmem:[%s18143_s23 + $0x324] ss:$16 sps:$4 sm:$0xff]   ;;  %v15081_v63 = vld [vmem:[%s18143_s23 + $0x320] ss:$16 sps:$4 sm:$0xff]  }
  0xf8   : > { %8589 = vmatpush1.bf16.msra.mxu1 %v15039_v31  ;;  %8549 = vmatprep.subr.bf16.mxu0 %v15040_v32  ;;  %v15082_v0 = vld [vmem:[%s18143_s23 + $0x104] ss:$16 sps:$4 sm:$0xff]   ;;  %v15086_v2 = vld [vmem:[%s18143_s23 + $0x100] ss:$16 sps:$4 sm:$0xff]  }
  0xf9   : > { %8590 = vmatprep.subr.bf16.mxu1 %v15042_v33  ;;  %v15084_v1 = vld [vmem:[%s18143_s23 + $0x304] ss:$16 sps:$4 sm:$0xff]   ;;  %v15087_v3 = vld [vmem:[%s18143_s23 + $0x300] ss:$16 sps:$4 sm:$0xff]   ;;  %v18290_v33 = vld [vmem:[%s20145_s20 + $0x18] sm:$0xff] }
  0xfa   : > { %v15094_v4 = vld [vmem:[%s18143_s23 + $0x4e4] ss:$16 sps:$4 sm:$0xff]   ;;  %v15092_v8 = vld [vmem:[%s18143_s23 + $0x4e0] ss:$16 sps:$4 sm:$0xff]  }
  0xfb   : > { %8550 = vmatpush2.bf16.msra.mxu0 %v15044_v34  ;;  %v15097_v5 = vld [vmem:[%s18143_s23 + $0x6e4] ss:$16 sps:$4 sm:$0xff]   ;;  %v15095_v9 = vld [vmem:[%s18143_s23 + $0x6e0] ss:$16 sps:$4 sm:$0xff]  }
  0xfc   : > { %8591 = vmatpush2.bf16.msra.mxu1 %v15045_v35  ;;  %8551 = vmatprep.subr.bf16.mxu0 %v15046_v36  ;;  %v15100_v10 = vld [vmem:[%s18143_s23 + $0x4c4] ss:$16 sps:$4 sm:$0xff]   ;;  %v15098_v12 = vld [vmem:[%s18143_s23 + $0x4c0] ss:$16 sps:$4 sm:$0xff]  }
  0xfd   : > { %8592 = vmatprep.subr.bf16.mxu1 %v15048_v37  ;;  %v15103_v11 = vld [vmem:[%s18143_s23 + $0x6c4] ss:$16 sps:$4 sm:$0xff]   ;;  %v15101_v13 = vld [vmem:[%s18143_s23 + $0x6c0] ss:$16 sps:$4 sm:$0xff]   ;;  %v18300_v37 = vcombine.high %v18290_v33, %v18290_v33 }
  0xfe   : > { %v15106_v14 = vld [vmem:[%s18143_s23 + $0x4a4] ss:$16 sps:$4 sm:$0xff]   ;;  %v15104_v16 = vld [vmem:[%s18143_s23 + $0x4a0] ss:$16 sps:$4 sm:$0xff]  }
  0xff   : > { %8552 = vmatpush2.bf16.msra.mxu0 %v15050_v38  ;;  %v15109_v15 = vld [vmem:[%s18143_s23 + $0x6a4] ss:$16 sps:$4 sm:$0xff]   ;;  %v15107_v17 = vld [vmem:[%s18143_s23 + $0x6a0] ss:$16 sps:$4 sm:$0xff]  }
 0x100   : > { %8593 = vmatpush2.bf16.msra.mxu1 %v15051_v39  ;;  %8553 = vmatprep.subr.bf16.mxu0 %v15052_v40  ;;  %v15112_v18 = vld [vmem:[%s18143_s23 + $0x484] ss:$16 sps:$4 sm:$0xff]   ;;  %v15110_v20 = vld [vmem:[%s18143_s23 + $0x480] ss:$16 sps:$4 sm:$0xff]  }
 0x101   : > { %8594 = vmatprep.subr.bf16.mxu1 %v15054_v41  ;;  %v15115_v19 = vld [vmem:[%s18143_s23 + $0x684] ss:$16 sps:$4 sm:$0xff]   ;;  %v15113_v21 = vld [vmem:[%s18143_s23 + $0x680] ss:$16 sps:$4 sm:$0xff]  }
 0x102   : > { %v15118_v22 = vld [vmem:[%s18143_s23 + $0x464] ss:$16 sps:$4 sm:$0xff]   ;;  %v15116_v24 = vld [vmem:[%s18143_s23 + $0x460] ss:$16 sps:$4 sm:$0xff]  }
 0x103   : > { %8554 = vmatpush2.bf16.msra.mxu0 %v15056_v42  ;;  %v15121_v23 = vld [vmem:[%s18143_s23 + $0x664] ss:$16 sps:$4 sm:$0xff]   ;;  %v15119_v25 = vld [vmem:[%s18143_s23 + $0x660] ss:$16 sps:$4 sm:$0xff]  }
 0x104   : > { %8595 = vmatpush2.bf16.msra.mxu1 %v15057_v43  ;;  %8555 = vmatprep.subr.bf16.mxu0 %v15058_v44  ;;  %v15124_v26 = vld [vmem:[%s18143_s23 + $0x444] ss:$16 sps:$4 sm:$0xff]   ;;  %v15122_v28 = vld [vmem:[%s18143_s23 + $0x440] ss:$16 sps:$4 sm:$0xff]  }
 0x105   : > { %8596 = vmatprep.subr.bf16.mxu1 %v15060_v45  ;;  %v15127_v27 = vld [vmem:[%s18143_s23 + $0x644] ss:$16 sps:$4 sm:$0xff]   ;;  %v15125_v29 = vld [vmem:[%s18143_s23 + $0x640] ss:$16 sps:$4 sm:$0xff]  }
 0x106   : > { %v15130_v30 = vld [vmem:[%s18143_s23 + $0x424] ss:$16 sps:$4 sm:$0xff]   ;;  %v15128_v34 = vld [vmem:[%s18143_s23 + $0x420] ss:$16 sps:$4 sm:$0xff]  }
 0x107   : > { %8556 = vmatpush2.bf16.msra.mxu0 %v15062_v49  ;;  %v15133_v31 = vld [vmem:[%s18143_s23 + $0x624] ss:$16 sps:$4 sm:$0xff]   ;;  %v15131_v35 = vld [vmem:[%s18143_s23 + $0x620] ss:$16 sps:$4 sm:$0xff]  }
 0x108   : > { %8597 = vmatpush2.bf16.msra.mxu1 %v15063_v50  ;;  %8557 = vmatprep.subr.bf16.mxu0 %v15064_v52  ;;  %v18285_v32 = vld [vmem:[%s20145_s20 + $0x10] sm:$0xff] }
 0x109   : > { %8598 = vmatprep.subr.bf16.mxu1 %v15066_v53  ;;  %v18296_v36 = vcombine.high %v18285_v32, %v18285_v32  ;;  %v15136_v38 = vld [vmem:[%s18143_s23 + $0x404] ss:$16 sps:$4 sm:$0xff]   ;;  %v15134_v40 = vld [vmem:[%s18143_s23 + $0x400] ss:$16 sps:$4 sm:$0xff]  }
 0x10a   : > { %v15139_v39 = vld [vmem:[%s18143_s23 + $0x604] ss:$16 sps:$4 sm:$0xff]   ;;  %v15137_v41 = vld [vmem:[%s18143_s23 + $0x600] ss:$16 sps:$4 sm:$0xff]  }
 0x10b   : > { %8558 = vmatpush2.bf16.msra.mxu0 %v15068_v54  ;;  %v15142_v42 = vld [vmem:[%s18143_s23 + $0x5e4] ss:$16 sps:$4 sm:$0xff]   ;;  %v15140_v44 = vld [vmem:[%s18143_s23 + $0x5e0] ss:$16 sps:$4 sm:$0xff]  }
 0x10c   : > { %8599 = vmatpush2.bf16.msra.mxu1 %v15069_v55  ;;  %8559 = vmatprep.subr.bf16.mxu0 %v15070_v56  ;;  %v15145_v43 = vld [vmem:[%s18143_s23 + $0x7e4] ss:$16 sps:$4 sm:$0xff]   ;;  %v15143_v45 = vld [vmem:[%s18143_s23 + $0x7e0] ss:$16 sps:$4 sm:$0xff]  }
 0x10d   : > { %8600 = vmatprep.subr.bf16.mxu1 %v15072_v57  ;;  %v15148_v46 = vld [vmem:[%s18143_s23 + $0x5c4] ss:$16 sps:$4 sm:$0xff]   ;;  %v15146_v49 = vld [vmem:[%s18143_s23 + $0x5c0] ss:$16 sps:$4 sm:$0xff]  }
 0x10e   : > { %v15151_v48 = vld [vmem:[%s18143_s23 + $0x7c4] ss:$16 sps:$4 sm:$0xff]   ;;  %v15149_v50 = vld [vmem:[%s18143_s23 + $0x7c0] ss:$16 sps:$4 sm:$0xff]  }
 0x10f   : > { %8560 = vmatpush2.bf16.msra.mxu0 %v15074_v58  ;;  %v15154_v52 = vld [vmem:[%s18143_s23 + $0x5a4] ss:$16 sps:$4 sm:$0xff]   ;;  %v15152_v54 = vld [vmem:[%s18143_s23 + $0x5a0] ss:$16 sps:$4 sm:$0xff]  }
 0x110   : > { %8601 = vmatpush2.bf16.msra.mxu1 %v15075_v59  ;;  %8561 = vmatprep.subr.bf16.mxu0 %v15076_v60  ;;  %v15157_v53 = vld [vmem:[%s18143_s23 + $0x7a4] ss:$16 sps:$4 sm:$0xff]   ;;  %v15155_v55 = vld [vmem:[%s18143_s23 + $0x7a0] ss:$16 sps:$4 sm:$0xff]  }
 0x111   : > { %8602 = vmatprep.subr.bf16.mxu1 %v15078_v61  ;;  %v15160_v56 = vld [vmem:[%s18143_s23 + $0x584] ss:$16 sps:$4 sm:$0xff]   ;;  %v15158_v58 = vld [vmem:[%s18143_s23 + $0x580] ss:$16 sps:$4 sm:$0xff]  }
 0x112   : > { %v15163_v57 = vld [vmem:[%s18143_s23 + $0x784] ss:$16 sps:$4 sm:$0xff]   ;;  %v15161_v59 = vld [vmem:[%s18143_s23 + $0x780] ss:$16 sps:$4 sm:$0xff]  }
 0x113   : > { %8562 = vmatpush2.bf16.msra.mxu0 %v15080_v62  ;;  %v15166_v60 = vld [vmem:[%s18143_s23 + $0x564] ss:$16 sps:$4 sm:$0xff]   ;;  %v15164_v62 = vld [vmem:[%s18143_s23 + $0x560] ss:$16 sps:$4 sm:$0xff]  }
 0x114   : > { %8603 = vmatpush2.bf16.msra.mxu1 %v15081_v63  ;;  %8563 = vmatprep.subr.bf16.mxu0 %v15082_v0  ;;  %v15169_v61 = vld [vmem:[%s18143_s23 + $0x764] ss:$16 sps:$4 sm:$0xff]   ;;  %v15167_v63 = vld [vmem:[%s18143_s23 + $0x760] ss:$16 sps:$4 sm:$0xff]  }
 0x115   : > { %8604 = vmatprep.subr.bf16.mxu1 %v15084_v1  ;;  %v15172_v0 = vld [vmem:[%s18143_s23 + $0x544] ss:$16 sps:$4 sm:$0xff]  }
 0x116   : > { %v15175_v1 = vld [vmem:[%s18143_s23 + $0x744] ss:$16 sps:$4 sm:$0xff]  }
 0x117   : > { %8564 = vmatpush2.bf16.msra.mxu0 %v15086_v2  ;;  %v15170_v2 = vld [vmem:[%s18143_s23 + $0x540] ss:$16 sps:$4 sm:$0xff]  }
 0x118   : > { %8605 = vmatpush2.bf16.msra.mxu1 %v15087_v3  ;;  %8615 = vmatprep.subr.bf16.mxu0 %v15094_v4  ;;  %v15173_v3 = vld [vmem:[%s18143_s23 + $0x740] ss:$16 sps:$4 sm:$0xff]   ;;  %v15178_v4 = vld [vmem:[%s18143_s23 + $0x524] ss:$16 sps:$4 sm:$0xff]  }
 0x119   : > { %8656 = vmatprep.subr.bf16.mxu1 %v15097_v5  ;;  %v15181_v5 = vld [vmem:[%s18143_s23 + $0x724] ss:$16 sps:$4 sm:$0xff]  }
 0x11a   : > { %8566 = vmatmul.mubr.bf16.vlgmr.msra.gmra.mxu0 %v18252_v6 }
 0x11b   : > { %8607 = vmatmul.mubr.bf16.vlgmr.msra.gmra.mxu1 %v18254_v7  ;;  %8616 = vmatpush1.bf16.msra.mxu0 %v15092_v8  ;;  %v15176_v8 = vld [vmem:[%s18143_s23 + $0x520] ss:$16 sps:$4 sm:$0xff]  }
 0x11c   : > { %8657 = vmatpush1.bf16.msra.mxu1 %v15095_v9  ;;  %8617 = vmatprep.subr.bf16.mxu0 %v15100_v10  ;;  %v15179_v9 = vld [vmem:[%s18143_s23 + $0x720] ss:$16 sps:$4 sm:$0xff]   ;;  %v15184_v10 = vld [vmem:[%s18143_s23 + $0x504] ss:$16 sps:$4 sm:$0xff]  }
 0x11d   : > { %8658 = vmatprep.subr.bf16.mxu1 %v15103_v11  ;;  %8647 = vmatprep.mubr.bf16.mxu0 %v18296_v36  ;;  %v15187_v11 = vld [vmem:[%s18143_s23 + $0x704] ss:$16 sps:$4 sm:$0xff]  }
 0x11e   : > { %8688 = vmatprep.mubr.bf16.mxu1 %v18300_v37 }
 0x11f   : > { %8618 = vmatpush1.bf16.msra.mxu0 %v15098_v12  ;;  %v15182_v12 = vld [vmem:[%s18143_s23 + $0x500] ss:$16 sps:$4 sm:$0xff]  }
 0x120   : > { %8659 = vmatpush1.bf16.msra.mxu1 %v15101_v13  ;;  %8619 = vmatprep.subr.bf16.mxu0 %v15106_v14  ;;  %v15185_v13 = vld [vmem:[%s18143_s23 + $0x700] ss:$16 sps:$4 sm:$0xff]   ;;  %v15194_v14 = vld [vmem:[%s18143_s23 + $0x8e4] ss:$16 sps:$4 sm:$0xff]  }
 0x121   : > { %8660 = vmatprep.subr.bf16.mxu1 %v15109_v15  ;;  %v15197_v15 = vld [vmem:[%s18143_s23 + $0xae4] ss:$16 sps:$4 sm:$0xff]  }
 0x123   : > { %8620 = vmatpush1.bf16.msra.mxu0 %v15104_v16  ;;  %v18344_v16 = vcombine.low %v18285_v32, %v18285_v32  ;;  %v15212_v32 = vld [vmem:[%s18143_s23 + $0x884] ss:$16 sps:$4 sm:$0xff]  }
 0x124   : > { %8661 = vmatpush1.bf16.msra.mxu1 %v15107_v17  ;;  %8621 = vmatprep.subr.bf16.mxu0 %v15112_v18  ;;  %v18348_v17 = vcombine.low %v18290_v33, %v18290_v33  ;;  %v15192_v18 = vld [vmem:[%s18143_s23 + $0x8e0] ss:$16 sps:$4 sm:$0xff]   ;;  %v15215_v33 = vld [vmem:[%s18143_s23 + $0xa84] ss:$16 sps:$4 sm:$0xff]  }
 0x125   : > { %8662 = vmatprep.subr.bf16.mxu1 %v15115_v19  ;;  %v15195_v19 = vld [vmem:[%s18143_s23 + $0xae0] ss:$16 sps:$4 sm:$0xff]  }
 0x127   : > { %8622 = vmatpush1.bf16.msra.mxu0 %v15110_v20  ;;  %v15200_v20 = vld [vmem:[%s18143_s23 + $0x8c4] ss:$16 sps:$4 sm:$0xff]  }
 0x128   : > { %8663 = vmatpush1.bf16.msra.mxu1 %v15113_v21  ;;  %8623 = vmatprep.subr.bf16.mxu0 %v15118_v22  ;;  %v15203_v21 = vld [vmem:[%s18143_s23 + $0xac4] ss:$16 sps:$4 sm:$0xff]  }
 0x129   : > { %8664 = vmatprep.subr.bf16.mxu1 %v15121_v23  ;;  %v18357_v22 = vld [vmem:[%s20145_s20 + $0x20] sm:$0xff]  ;;  %v18362_v23 = vld [vmem:[%s20145_s20 + $0x28] sm:$0xff] }
 0x12b   : > { %8624 = vmatpush1.bf16.msra.mxu0 %v15116_v24  ;;  %v18366_v24 = vcombine.high %v18357_v22, %v18357_v22 }
 0x12c   : > { %8665 = vmatpush1.bf16.msra.mxu1 %v15119_v25  ;;  %8625 = vmatprep.subr.bf16.mxu0 %v15124_v26  ;;  %v18370_v25 = vcombine.high %v18362_v23, %v18362_v23  ;;  %v15198_v26 = vld [vmem:[%s18143_s23 + $0x8c0] ss:$16 sps:$4 sm:$0xff]  }
 0x12d   : > { %8666 = vmatprep.subr.bf16.mxu1 %v15127_v27  ;;  %v15201_v27 = vld [vmem:[%s18143_s23 + $0xac0] ss:$16 sps:$4 sm:$0xff]  }
 0x12f   : > { %8626 = vmatpush1.bf16.msra.mxu0 %v15122_v28  ;;  %v15206_v28 = vld [vmem:[%s18143_s23 + $0x8a4] ss:$16 sps:$4 sm:$0xff]  }
 0x130   : > { %8667 = vmatpush1.bf16.msra.mxu1 %v15125_v29  ;;  %8627 = vmatprep.subr.bf16.mxu0 %v15130_v30  ;;  %v15209_v29 = vld [vmem:[%s18143_s23 + $0xaa4] ss:$16 sps:$4 sm:$0xff]   ;;  %v15204_v30 = vld [vmem:[%s18143_s23 + $0x8a0] ss:$16 sps:$4 sm:$0xff]  }
 0x131   : > { %8668 = vmatprep.subr.bf16.mxu1 %v15133_v31  ;;  %v15207_v31 = vld [vmem:[%s18143_s23 + $0xaa0] ss:$16 sps:$4 sm:$0xff]  }
 0x133   : > { %8628 = vmatpush1.bf16.msra.mxu0 %v15128_v34  ;;  %v15210_v34 = vld [vmem:[%s18143_s23 + $0x880] ss:$16 sps:$4 sm:$0xff]  }
 0x134   : > { %8669 = vmatpush1.bf16.msra.mxu1 %v15131_v35  ;;  %8629 = vmatprep.subr.bf16.mxu0 %v15136_v38  ;;  %v15213_v35 = vld [vmem:[%s18143_s23 + $0xa80] ss:$16 sps:$4 sm:$0xff]   ;;  %v15218_v38 = vld [vmem:[%s18143_s23 + $0x864] ss:$16 sps:$4 sm:$0xff]  }
 0x135   : > { %8670 = vmatprep.subr.bf16.mxu1 %v15139_v39  ;;  %v15221_v39 = vld [vmem:[%s18143_s23 + $0xa64] ss:$16 sps:$4 sm:$0xff]  }
 0x137   : > { %8630 = vmatpush1.bf16.msra.mxu0 %v15134_v40  ;;  %v15216_v40 = vld [vmem:[%s18143_s23 + $0x860] ss:$16 sps:$4 sm:$0xff]  }
 0x138   : > { %8671 = vmatpush1.bf16.msra.mxu1 %v15137_v41  ;;  %8631 = vmatprep.subr.bf16.mxu0 %v15142_v42  ;;  %v15219_v41 = vld [vmem:[%s18143_s23 + $0xa60] ss:$16 sps:$4 sm:$0xff]   ;;  %v15224_v42 = vld [vmem:[%s18143_s23 + $0x844] ss:$16 sps:$4 sm:$0xff]  }
 0x139   : > { %8672 = vmatprep.subr.bf16.mxu1 %v15145_v43  ;;  %v15227_v43 = vld [vmem:[%s18143_s23 + $0xa44] ss:$16 sps:$4 sm:$0xff]  }
 0x13b   : > { %8632 = vmatpush2.bf16.msra.mxu0 %v15140_v44  ;;  %v15222_v44 = vld [vmem:[%s18143_s23 + $0x840] ss:$16 sps:$4 sm:$0xff]  }
 0x13c   : > { %8673 = vmatpush2.bf16.msra.mxu1 %v15143_v45  ;;  %8633 = vmatprep.subr.bf16.mxu0 %v15148_v46  ;;  %v15225_v45 = vld [vmem:[%s18143_s23 + $0xa40] ss:$16 sps:$4 sm:$0xff]   ;;  %v15230_v46 = vld [vmem:[%s18143_s23 + $0x824] ss:$16 sps:$4 sm:$0xff]  }
 0x13d   : > { %8674 = vmatprep.subr.bf16.mxu1 %v15151_v48  ;;  %v15233_v48 = vld [vmem:[%s18143_s23 + $0xa24] ss:$16 sps:$4 sm:$0xff]  }
 0x13f   : > { %8634 = vmatpush2.bf16.msra.mxu0 %v15146_v49  ;;  %v15228_v49 = vld [vmem:[%s18143_s23 + $0x820] ss:$16 sps:$4 sm:$0xff]  }
 0x140   : > { %8675 = vmatpush2.bf16.msra.mxu1 %v15149_v50  ;;  %8635 = vmatprep.subr.bf16.mxu0 %v15154_v52  ;;  %v15231_v50 = vld [vmem:[%s18143_s23 + $0xa20] ss:$16 sps:$4 sm:$0xff]   ;;  %v15236_v52 = vld [vmem:[%s18143_s23 + $0x804] ss:$16 sps:$4 sm:$0xff]  }
 0x141   : > { %8676 = vmatprep.subr.bf16.mxu1 %v15157_v53  ;;  %v15239_v53 = vld [vmem:[%s18143_s23 + $0xa04] ss:$16 sps:$4 sm:$0xff]  }
 0x143   : > { %8636 = vmatpush2.bf16.msra.mxu0 %v15152_v54  ;;  %v15234_v54 = vld [vmem:[%s18143_s23 + $0x800] ss:$16 sps:$4 sm:$0xff]  }
 0x144   : > { %8677 = vmatpush2.bf16.msra.mxu1 %v15155_v55  ;;  %8637 = vmatprep.subr.bf16.mxu0 %v15160_v56  ;;  %v15237_v55 = vld [vmem:[%s18143_s23 + $0xa00] ss:$16 sps:$4 sm:$0xff]   ;;  %v15242_v56 = vld [vmem:[%s18143_s23 + $0x9e4] ss:$16 sps:$4 sm:$0xff]  }
 0x145   : > { %8678 = vmatprep.subr.bf16.mxu1 %v15163_v57  ;;  %v15245_v57 = vld [vmem:[%s18143_s23 + $0xbe4] ss:$16 sps:$4 sm:$0xff]  }
 0x147   : > { %8638 = vmatpush2.bf16.msra.mxu0 %v15158_v58  ;;  %v15240_v58 = vld [vmem:[%s18143_s23 + $0x9e0] ss:$16 sps:$4 sm:$0xff]  }
 0x148   : > { %8679 = vmatpush2.bf16.msra.mxu1 %v15161_v59  ;;  %8639 = vmatprep.subr.bf16.mxu0 %v15166_v60  ;;  %v15243_v59 = vld [vmem:[%s18143_s23 + $0xbe0] ss:$16 sps:$4 sm:$0xff]   ;;  %v15248_v60 = vld [vmem:[%s18143_s23 + $0x9c4] ss:$16 sps:$4 sm:$0xff]  }
 0x149   : > { %8680 = vmatprep.subr.bf16.mxu1 %v15169_v61  ;;  %v15251_v61 = vld [vmem:[%s18143_s23 + $0xbc4] ss:$16 sps:$4 sm:$0xff]  }
 0x14b   : > { %8640 = vmatpush2.bf16.msra.mxu0 %v15164_v62  ;;  %v15246_v62 = vld [vmem:[%s18143_s23 + $0x9c0] ss:$16 sps:$4 sm:$0xff]  }
 0x14c   : > { %8681 = vmatpush2.bf16.msra.mxu1 %v15167_v63  ;;  %8641 = vmatprep.subr.bf16.mxu0 %v15172_v0  ;;  %v15249_v63 = vld [vmem:[%s18143_s23 + $0xbc0] ss:$16 sps:$4 sm:$0xff]   ;;  %v15254_v0 = vld [vmem:[%s18143_s23 + $0x9a4] ss:$16 sps:$4 sm:$0xff]  }
 0x14d   : > { %8682 = vmatprep.subr.bf16.mxu1 %v15175_v1  ;;  %v15257_v1 = vld [vmem:[%s18143_s23 + $0xba4] ss:$16 sps:$4 sm:$0xff]  }
 0x14f   : > { %8642 = vmatpush2.bf16.msra.mxu0 %v15170_v2  ;;  %v15252_v2 = vld [vmem:[%s18143_s23 + $0x9a0] ss:$16 sps:$4 sm:$0xff]  }
 0x150   : > { %8683 = vmatpush2.bf16.msra.mxu1 %v15173_v3  ;;  %8643 = vmatprep.subr.bf16.mxu0 %v15178_v4  ;;  %v15255_v3 = vld [vmem:[%s18143_s23 + $0xba0] ss:$16 sps:$4 sm:$0xff]   ;;  %v15260_v4 = vld [vmem:[%s18143_s23 + $0x984] ss:$16 sps:$4 sm:$0xff]  }
 0x151   : > { %8684 = vmatprep.subr.bf16.mxu1 %v15181_v5  ;;  %v15263_v5 = vld [vmem:[%s18143_s23 + $0xb84] ss:$16 sps:$4 sm:$0xff]  }
 0x153   : > { %8644 = vmatpush2.bf16.msra.mxu0 %v15176_v8  ;;  %v15258_v8 = vld [vmem:[%s18143_s23 + $0x980] ss:$16 sps:$4 sm:$0xff]  }
 0x154   : > { %8685 = vmatpush2.bf16.msra.mxu1 %v15179_v9  ;;  %8645 = vmatprep.subr.bf16.mxu0 %v15184_v10  ;;  %v15261_v9 = vld [vmem:[%s18143_s23 + $0xb80] ss:$16 sps:$4 sm:$0xff]   ;;  %v15266_v10 = vld [vmem:[%s18143_s23 + $0x964] ss:$16 sps:$4 sm:$0xff]  }
 0x155   : > { %8686 = vmatprep.subr.bf16.mxu1 %v15187_v11  ;;  %v15269_v11 = vld [vmem:[%s18143_s23 + $0xb64] ss:$16 sps:$4 sm:$0xff]  }
 0x157   : > { %8646 = vmatpush2.bf16.msra.mxu0 %v15182_v12  ;;  %v15264_v12 = vld [vmem:[%s18143_s23 + $0x960] ss:$16 sps:$4 sm:$0xff]  }
 0x158   : > { %8687 = vmatpush2.bf16.msra.mxu1 %v15185_v13  ;;  %8697 = vmatprep.subr.bf16.mxu0 %v15194_v14  ;;  %v15267_v13 = vld [vmem:[%s18143_s23 + $0xb60] ss:$16 sps:$4 sm:$0xff]   ;;  %v15272_v14 = vld [vmem:[%s18143_s23 + $0x944] ss:$16 sps:$4 sm:$0xff]  }
 0x159   : > { %8738 = vmatprep.subr.bf16.mxu1 %v15197_v15  ;;  %v15275_v15 = vld [vmem:[%s18143_s23 + $0xb44] ss:$16 sps:$4 sm:$0xff]  }
 0x15a   : > { %8648 = vmatmul.mubr.bf16.vlgmr.msra.gmra.mxu0 %v18344_v16 }
 0x15b   : > { %8689 = vmatmul.mubr.bf16.vlgmr.msra.gmra.mxu1 %v18348_v17  ;;  %8698 = vmatpush1.bf16.msra.mxu0 %v15192_v18  ;;  %v15270_v18 = vld [vmem:[%s18143_s23 + $0x940] ss:$16 sps:$4 sm:$0xff]  }
 0x15c   : > { %8739 = vmatpush1.bf16.msra.mxu1 %v15195_v19  ;;  %8699 = vmatprep.subr.bf16.mxu0 %v15200_v20  ;;  %v15273_v19 = vld [vmem:[%s18143_s23 + $0xb40] ss:$16 sps:$4 sm:$0xff]   ;;  %v15278_v20 = vld [vmem:[%s18143_s23 + $0x924] ss:$16 sps:$4 sm:$0xff]  }
 0x15d   : > { %8740 = vmatprep.subr.bf16.mxu1 %v15203_v21  ;;  %8729 = vmatprep.mubr.bf16.mxu0 %v18366_v24  ;;  %v15281_v21 = vld [vmem:[%s18143_s23 + $0xb24] ss:$16 sps:$4 sm:$0xff]  }
 0x15e   : > { %8770 = vmatprep.mubr.bf16.mxu1 %v18370_v25 }
 0x15f   : > { %8700 = vmatpush1.bf16.msra.mxu0 %v15198_v26  ;;  %v15276_v26 = vld [vmem:[%s18143_s23 + $0x920] ss:$16 sps:$4 sm:$0xff]  }
 0x160   : > { %8741 = vmatpush1.bf16.msra.mxu1 %v15201_v27  ;;  %8701 = vmatprep.subr.bf16.mxu0 %v15206_v28  ;;  %v15279_v27 = vld [vmem:[%s18143_s23 + $0xb20] ss:$16 sps:$4 sm:$0xff]   ;;  %v15284_v28 = vld [vmem:[%s18143_s23 + $0x904] ss:$16 sps:$4 sm:$0xff]  }
 0x161   : > { %8742 = vmatprep.subr.bf16.mxu1 %v15209_v29  ;;  %v15287_v29 = vld [vmem:[%s18143_s23 + $0xb04] ss:$16 sps:$4 sm:$0xff]  }
 0x163   : > { %8702 = vmatpush1.bf16.msra.mxu0 %v15204_v30  ;;  %v15282_v30 = vld [vmem:[%s18143_s23 + $0x900] ss:$16 sps:$4 sm:$0xff]  }
 0x164   : > { %8743 = vmatpush1.bf16.msra.mxu1 %v15207_v31  ;;  %8703 = vmatprep.subr.bf16.mxu0 %v15212_v32  ;;  %v15285_v31 = vld [vmem:[%s18143_s23 + $0xb00] ss:$16 sps:$4 sm:$0xff]   ;;  %v15294_v32 = vld [vmem:[%s18143_s23 + $0xce4] ss:$16 sps:$4 sm:$0xff]  }
 0x165   : > { %8744 = vmatprep.subr.bf16.mxu1 %v15215_v33  ;;  %v15297_v33 = vld [vmem:[%s18143_s23 + $0xee4] ss:$16 sps:$4 sm:$0xff]  }
 0x167   : > { %8704 = vmatpush1.bf16.msra.mxu0 %v15210_v34  ;;  %v15292_v34 = vld [vmem:[%s18143_s23 + $0xce0] ss:$16 sps:$4 sm:$0xff]  }
 0x168   : > { %8745 = vmatpush1.bf16.msra.mxu1 %v15213_v35  ;;  %8705 = vmatprep.subr.bf16.mxu0 %v15218_v38  ;;  %v15295_v35 = vld [vmem:[%s18143_s23 + $0xee0] ss:$16 sps:$4 sm:$0xff]   ;;  %v18440_v38 = vcombine.low %v18357_v22, %v18357_v22  ;;  %v15300_v22 = vld [vmem:[%s18143_s23 + $0xcc4] ss:$16 sps:$4 sm:$0xff]  }
 0x169   : > { %8746 = vmatprep.subr.bf16.mxu1 %v15221_v39  ;;  %v18444_v39 = vcombine.low %v18362_v23, %v18362_v23  ;;  %v15303_v23 = vld [vmem:[%s18143_s23 + $0xec4] ss:$16 sps:$4 sm:$0xff]  }
 0x16b   : > { %8706 = vmatpush1.bf16.msra.mxu0 %v15216_v40  ;;  %v18449_v40 = vld [vmem:[%s20145_s20 + $0x30] sm:$0xff] }
 0x16c   : > { %8747 = vmatpush1.bf16.msra.mxu1 %v15219_v41  ;;  %8707 = vmatprep.subr.bf16.mxu0 %v15224_v42  ;;  %v18454_v41 = vld [vmem:[%s20145_s20 + $0x38] sm:$0xff]  ;;  %v18460_v42 = vcombine.high %v18449_v40, %v18449_v40 }
 0x16d   : > { %8748 = vmatprep.subr.bf16.mxu1 %v15227_v43  ;;  %v18464_v43 = vcombine.high %v18454_v41, %v18454_v41 }
 0x16f   : > { %8708 = vmatpush1.bf16.msra.mxu0 %v15222_v44  ;;  %v15298_v44 = vld [vmem:[%s18143_s23 + $0xcc0] ss:$16 sps:$4 sm:$0xff]  }
 0x170   : > { %8749 = vmatpush1.bf16.msra.mxu1 %v15225_v45  ;;  %8709 = vmatprep.subr.bf16.mxu0 %v15230_v46  ;;  %v15301_v45 = vld [vmem:[%s18143_s23 + $0xec0] ss:$16 sps:$4 sm:$0xff]   ;;  %v15306_v46 = vld [vmem:[%s18143_s23 + $0xca4] ss:$16 sps:$4 sm:$0xff]  }
 0x171   : > { %8750 = vmatprep.subr.bf16.mxu1 %v15233_v48  ;;  %v15309_v48 = vld [vmem:[%s18143_s23 + $0xea4] ss:$16 sps:$4 sm:$0xff]  }
 0x173   : > { %8710 = vmatpush1.bf16.msra.mxu0 %v15228_v49  ;;  %v15304_v49 = vld [vmem:[%s18143_s23 + $0xca0] ss:$16 sps:$4 sm:$0xff]  }
 0x174   : > { %8751 = vmatpush1.bf16.msra.mxu1 %v15231_v50  ;;  %8711 = vmatprep.subr.bf16.mxu0 %v15236_v52  ;;  %v15307_v50 = vld [vmem:[%s18143_s23 + $0xea0] ss:$16 sps:$4 sm:$0xff]   ;;  %v15312_v52 = vld [vmem:[%s18143_s23 + $0xc84] ss:$16 sps:$4 sm:$0xff]  }
 0x175   : > { %8752 = vmatprep.subr.bf16.mxu1 %v15239_v53  ;;  %v15315_v53 = vld [vmem:[%s18143_s23 + $0xe84] ss:$16 sps:$4 sm:$0xff]  }
 0x177   : > { %8712 = vmatpush1.bf16.msra.mxu0 %v15234_v54  ;;  %v15310_v54 = vld [vmem:[%s18143_s23 + $0xc80] ss:$16 sps:$4 sm:$0xff]  }
 0x178   : > { %8753 = vmatpush1.bf16.msra.mxu1 %v15237_v55  ;;  %8713 = vmatprep.subr.bf16.mxu0 %v15242_v56  ;;  %v15313_v55 = vld [vmem:[%s18143_s23 + $0xe80] ss:$16 sps:$4 sm:$0xff]   ;;  %v15318_v56 = vld [vmem:[%s18143_s23 + $0xc64] ss:$16 sps:$4 sm:$0xff]  }
 0x179   : > { %8754 = vmatprep.subr.bf16.mxu1 %v15245_v57  ;;  %v15321_v57 = vld [vmem:[%s18143_s23 + $0xe64] ss:$16 sps:$4 sm:$0xff]  }
 0x17b   : > { %8714 = vmatpush2.bf16.msra.mxu0 %v15240_v58  ;;  %v15316_v58 = vld [vmem:[%s18143_s23 + $0xc60] ss:$16 sps:$4 sm:$0xff]  }
 0x17c   : > { %8755 = vmatpush2.bf16.msra.mxu1 %v15243_v59  ;;  %8715 = vmatprep.subr.bf16.mxu0 %v15248_v60  ;;  %v15319_v59 = vld [vmem:[%s18143_s23 + $0xe60] ss:$16 sps:$4 sm:$0xff]   ;;  %v15324_v60 = vld [vmem:[%s18143_s23 + $0xc44] ss:$16 sps:$4 sm:$0xff]  }
 0x17d   : > { %8756 = vmatprep.subr.bf16.mxu1 %v15251_v61  ;;  %v15327_v61 = vld [vmem:[%s18143_s23 + $0xe44] ss:$16 sps:$4 sm:$0xff]  }
 0x17f   : > { %8716 = vmatpush2.bf16.msra.mxu0 %v15246_v62  ;;  %v15322_v62 = vld [vmem:[%s18143_s23 + $0xc40] ss:$16 sps:$4 sm:$0xff]  }
 0x180   : > { %8757 = vmatpush2.bf16.msra.mxu1 %v15249_v63  ;;  %8717 = vmatprep.subr.bf16.mxu0 %v15254_v0  ;;  %v15325_v63 = vld [vmem:[%s18143_s23 + $0xe40] ss:$16 sps:$4 sm:$0xff]   ;;  %v15330_v0 = vld [vmem:[%s18143_s23 + $0xc24] ss:$16 sps:$4 sm:$0xff]  }
 0x181   : > { %8758 = vmatprep.subr.bf16.mxu1 %v15257_v1  ;;  %v15333_v1 = vld [vmem:[%s18143_s23 + $0xe24] ss:$16 sps:$4 sm:$0xff]  }
 0x183   : > { %8718 = vmatpush2.bf16.msra.mxu0 %v15252_v2  ;;  %v15328_v2 = vld [vmem:[%s18143_s23 + $0xc20] ss:$16 sps:$4 sm:$0xff]  }
 0x184   : > { %8759 = vmatpush2.bf16.msra.mxu1 %v15255_v3  ;;  %8719 = vmatprep.subr.bf16.mxu0 %v15260_v4  ;;  %v15331_v3 = vld [vmem:[%s18143_s23 + $0xe20] ss:$16 sps:$4 sm:$0xff]   ;;  %v15336_v4 = vld [vmem:[%s18143_s23 + $0xc04] ss:$16 sps:$4 sm:$0xff]  }
 0x185   : > { %8760 = vmatprep.subr.bf16.mxu1 %v15263_v5  ;;  %v15339_v5 = vld [vmem:[%s18143_s23 + $0xe04] ss:$16 sps:$4 sm:$0xff]  }
 0x187   : > { %8720 = vmatpush2.bf16.msra.mxu0 %v15258_v8  ;;  %v15334_v8 = vld [vmem:[%s18143_s23 + $0xc00] ss:$16 sps:$4 sm:$0xff]  }
 0x188   : > { %8761 = vmatpush2.bf16.msra.mxu1 %v15261_v9  ;;  %8721 = vmatprep.subr.bf16.mxu0 %v15266_v10  ;;  %v15337_v9 = vld [vmem:[%s18143_s23 + $0xe00] ss:$16 sps:$4 sm:$0xff]   ;;  %v15342_v10 = vld [vmem:[%s18143_s23 + $0xde4] ss:$16 sps:$4 sm:$0xff]  }
 0x189   : > { %8762 = vmatprep.subr.bf16.mxu1 %v15269_v11  ;;  %v15345_v11 = vld [vmem:[%s18143_s23 + $0xfe4] ss:$16 sps:$4 sm:$0xff]  }
 0x18b   : > { %8722 = vmatpush2.bf16.msra.mxu0 %v15264_v12  ;;  %v15340_v12 = vld [vmem:[%s18143_s23 + $0xde0] ss:$16 sps:$4 sm:$0xff]  }
 0x18c   : > { %8763 = vmatpush2.bf16.msra.mxu1 %v15267_v13  ;;  %8723 = vmatprep.subr.bf16.mxu0 %v15272_v14  ;;  %v15343_v13 = vld [vmem:[%s18143_s23 + $0xfe0] ss:$16 sps:$4 sm:$0xff]   ;;  %v15348_v14 = vld [vmem:[%s18143_s23 + $0xdc4] ss:$16 sps:$4 sm:$0xff]  }
 0x18d   : > { %8764 = vmatprep.subr.bf16.mxu1 %v15275_v15  ;;  %v15351_v15 = vld [vmem:[%s18143_s23 + $0xfc4] ss:$16 sps:$4 sm:$0xff]  }
 0x18f   : > { %8724 = vmatpush2.bf16.msra.mxu0 %v15270_v18  ;;  %v15346_v18 = vld [vmem:[%s18143_s23 + $0xdc0] ss:$16 sps:$4 sm:$0xff]  }
 0x190   : > { %8765 = vmatpush2.bf16.msra.mxu1 %v15273_v19  ;;  %8725 = vmatprep.subr.bf16.mxu0 %v15278_v20  ;;  %v15349_v19 = vld [vmem:[%s18143_s23 + $0xfc0] ss:$16 sps:$4 sm:$0xff]   ;;  %v15354_v20 = vld [vmem:[%s18143_s23 + $0xda4] ss:$16 sps:$4 sm:$0xff]  }
 0x191   : > { %8766 = vmatprep.subr.bf16.mxu1 %v15281_v21  ;;  %v15357_v21 = vld [vmem:[%s18143_s23 + $0xfa4] ss:$16 sps:$4 sm:$0xff]  }
 0x193   : > { %8726 = vmatpush2.bf16.msra.mxu0 %v15276_v26  ;;  %v15352_v26 = vld [vmem:[%s18143_s23 + $0xda0] ss:$16 sps:$4 sm:$0xff]  }
 0x194   : > { %8767 = vmatpush2.bf16.msra.mxu1 %v15279_v27  ;;  %8727 = vmatprep.subr.bf16.mxu0 %v15284_v28  ;;  %v15355_v27 = vld [vmem:[%s18143_s23 + $0xfa0] ss:$16 sps:$4 sm:$0xff]   ;;  %v15360_v28 = vld [vmem:[%s18143_s23 + $0xd84] ss:$16 sps:$4 sm:$0xff]  }
 0x195   : > { %8768 = vmatprep.subr.bf16.mxu1 %v15287_v29  ;;  %v15363_v29 = vld [vmem:[%s18143_s23 + $0xf84] ss:$16 sps:$4 sm:$0xff]  }
 0x197   : > { %8728 = vmatpush2.bf16.msra.mxu0 %v15282_v30  ;;  %v15358_v30 = vld [vmem:[%s18143_s23 + $0xd80] ss:$16 sps:$4 sm:$0xff]  }
 0x198   : > { %8769 = vmatpush2.bf16.msra.mxu1 %v15285_v31  ;;  %8779 = vmatprep.subr.bf16.mxu0 %v15294_v32  ;;  %v15361_v31 = vld [vmem:[%s18143_s23 + $0xf80] ss:$16 sps:$4 sm:$0xff]   ;;  %v15366_v32 = vld [vmem:[%s18143_s23 + $0xd64] ss:$16 sps:$4 sm:$0xff]  }
 0x199   : > { %8820 = vmatprep.subr.bf16.mxu1 %v15297_v33  ;;  %v15369_v33 = vld [vmem:[%s18143_s23 + $0xf64] ss:$16 sps:$4 sm:$0xff]  }
 0x19a   : > { %8730 = vmatmul.mubr.bf16.vlgmr.msra.gmra.mxu0 %v18440_v38 }
 0x19b   : > { %8771 = vmatmul.mubr.bf16.vlgmr.msra.gmra.mxu1 %v18444_v39  ;;  %8780 = vmatpush1.bf16.msra.mxu0 %v15292_v34  ;;  %v15364_v34 = vld [vmem:[%s18143_s23 + $0xd60] ss:$16 sps:$4 sm:$0xff]  }
 0x19c   : > { %8821 = vmatpush1.bf16.msra.mxu1 %v15295_v35  ;;  %8781 = vmatprep.subr.bf16.mxu0 %v15300_v22  ;;  %v15367_v35 = vld [vmem:[%s18143_s23 + $0xf60] ss:$16 sps:$4 sm:$0xff]   ;;  %v15372_v22 = vld [vmem:[%s18143_s23 + $0xd44] ss:$16 sps:$4 sm:$0xff]  }
 0x19d   : > { %8822 = vmatprep.subr.bf16.mxu1 %v15303_v23  ;;  %8811 = vmatprep.mubr.bf16.mxu0 %v18460_v42  ;;  %v15375_v23 = vld [vmem:[%s18143_s23 + $0xf44] ss:$16 sps:$4 sm:$0xff]  }
 0x19e   : > { %8852 = vmatprep.mubr.bf16.mxu1 %v18464_v43 }
 0x19f   : > { %8782 = vmatpush1.bf16.msra.mxu0 %v15298_v44  ;;  %v15370_v44 = vld [vmem:[%s18143_s23 + $0xd40] ss:$16 sps:$4 sm:$0xff]  }
 0x1a0   : > { %8823 = vmatpush1.bf16.msra.mxu1 %v15301_v45  ;;  %8783 = vmatprep.subr.bf16.mxu0 %v15306_v46  ;;  %v15373_v45 = vld [vmem:[%s18143_s23 + $0xf40] ss:$16 sps:$4 sm:$0xff]   ;;  %v15378_v46 = vld [vmem:[%s18143_s23 + $0xd24] ss:$16 sps:$4 sm:$0xff]  }
 0x1a1   : > { %8824 = vmatprep.subr.bf16.mxu1 %v15309_v48  ;;  %v15381_v48 = vld [vmem:[%s18143_s23 + $0xf24] ss:$16 sps:$4 sm:$0xff]  }
 0x1a3   : > { %8784 = vmatpush1.bf16.msra.mxu0 %v15304_v49  ;;  %v15376_v49 = vld [vmem:[%s18143_s23 + $0xd20] ss:$16 sps:$4 sm:$0xff]  }
 0x1a4   : > { %8825 = vmatpush1.bf16.msra.mxu1 %v15307_v50  ;;  %8785 = vmatprep.subr.bf16.mxu0 %v15312_v52  ;;  %v15379_v50 = vld [vmem:[%s18143_s23 + $0xf20] ss:$16 sps:$4 sm:$0xff]   ;;  %v15384_v52 = vld [vmem:[%s18143_s23 + $0xd04] ss:$16 sps:$4 sm:$0xff]  }
 0x1a5   : > { %8826 = vmatprep.subr.bf16.mxu1 %v15315_v53  ;;  %v15387_v53 = vld [vmem:[%s18143_s23 + $0xf04] ss:$16 sps:$4 sm:$0xff]  }
 0x1a7   : > { %8786 = vmatpush1.bf16.msra.mxu0 %v15310_v54  ;;  %v15382_v54 = vld [vmem:[%s18143_s23 + $0xd00] ss:$16 sps:$4 sm:$0xff]  }
 0x1a8   : > { %8827 = vmatpush1.bf16.msra.mxu1 %v15313_v55  ;;  %8787 = vmatprep.subr.bf16.mxu0 %v15318_v56  ;;  %v15385_v55 = vld [vmem:[%s18143_s23 + $0xf00] ss:$16 sps:$4 sm:$0xff]   ;;  %v15394_v56 = vld [vmem:[%s18143_s23 + $0x10e4] ss:$16 sps:$4 sm:$0xff]  }
 0x1a9   : > { %8828 = vmatprep.subr.bf16.mxu1 %v15321_v57  ;;  %v15397_v57 = vld [vmem:[%s18143_s23 + $0x12e4] ss:$16 sps:$4 sm:$0xff]  }
 0x1ab   : > { %8788 = vmatpush1.bf16.msra.mxu0 %v15316_v58  ;;  %v18533_v58 = vld [vmem:[%s20145_s20 + $0x40] sm:$0xff] }
 0x1ac   : > { %8829 = vmatpush1.bf16.msra.mxu1 %v15319_v59  ;;  %8789 = vmatprep.subr.bf16.mxu0 %v15324_v60  ;;  %v18537_v59 = vcombine.low %v18449_v40, %v18449_v40  ;;  %v18541_v60 = vcombine.low %v18454_v41, %v18454_v41  ;;  %v15400_v40 = vld [vmem:[%s18143_s23 + $0x10c4] ss:$16 sps:$4 sm:$0xff]   ;;  %v18554_v41 = vcombine.high %v18533_v58, %v18533_v58 }
 0x1ad   : > { %8830 = vmatprep.subr.bf16.mxu1 %v15327_v61  ;;  %v18546_v61 = vld [vmem:[%s20145_s20 + $0x48] sm:$0xff] }
 0x1af   : > { %8790 = vmatpush1.bf16.msra.mxu0 %v15322_v62  ;;  %v15392_v62 = vld [vmem:[%s18143_s23 + $0x10e0] ss:$16 sps:$4 sm:$0xff]  }
 0x1b0   : > { %8831 = vmatpush1.bf16.msra.mxu1 %v15325_v63  ;;  %8791 = vmatprep.subr.bf16.mxu0 %v15330_v0  ;;  %v15395_v63 = vld [vmem:[%s18143_s23 + $0x12e0] ss:$16 sps:$4 sm:$0xff]   ;;  %v15403_v0 = vld [vmem:[%s18143_s23 + $0x12c4] ss:$16 sps:$4 sm:$0xff]  }
 0x1b1   : > { %8832 = vmatprep.subr.bf16.mxu1 %v15333_v1  ;;  %v18558_v1 = vcombine.high %v18546_v61, %v18546_v61 }
 0x1b3   : > { %8792 = vmatpush1.bf16.msra.mxu0 %v15328_v2 }
 0x1b4   : > { %8833 = vmatpush1.bf16.msra.mxu1 %v15331_v3  ;;  %8793 = vmatprep.subr.bf16.mxu0 %v15336_v4  ;;  %v15398_v4 = vld [vmem:[%s18143_s23 + $0x10c0] ss:$16 sps:$4 sm:$0xff]  }
 0x1b5   : > { %8834 = vmatprep.subr.bf16.mxu1 %v15339_v5  ;;  %v15401_v5 = vld [vmem:[%s18143_s23 + $0x12c0] ss:$16 sps:$4 sm:$0xff]  }
 0x1b7   : > { %8794 = vmatpush1.bf16.msra.mxu0 %v15334_v8 }
 0x1b8   : > { %8835 = vmatpush1.bf16.msra.mxu1 %v15337_v9  ;;  %8795 = vmatprep.subr.bf16.mxu0 %v15342_v10  ;;  %v15406_v9 = vld [vmem:[%s18143_s23 + $0x10a4] ss:$16 sps:$4 sm:$0xff]  }
 0x1b9   : > { %8836 = vmatprep.subr.bf16.mxu1 %v15345_v11 }
 0x1bb   : > { %8796 = vmatpush2.bf16.msra.mxu0 %v15340_v12  ;;  %v15409_v12 = vld [vmem:[%s18143_s23 + $0x12a4] ss:$16 sps:$4 sm:$0xff]  }
 0x1bc   : > { %8837 = vmatpush2.bf16.msra.mxu1 %v15343_v13  ;;  %8797 = vmatprep.subr.bf16.mxu0 %v15348_v14 }
 0x1bd   : > { %8838 = vmatprep.subr.bf16.mxu1 %v15351_v15 }
 0x1bf   : > { %8798 = vmatpush2.bf16.msra.mxu0 %v15346_v18  ;;  %v15404_v18 = vld [vmem:[%s18143_s23 + $0x10a0] ss:$16 sps:$4 sm:$0xff]  }
 0x1c0   : > { %8839 = vmatpush2.bf16.msra.mxu1 %v15349_v19  ;;  %8799 = vmatprep.subr.bf16.mxu0 %v15354_v20  ;;  %v15407_v19 = vld [vmem:[%s18143_s23 + $0x12a0] ss:$16 sps:$4 sm:$0xff]   ;;  %v15412_v20 = vld [vmem:[%s18143_s23 + $0x1084] ss:$16 sps:$4 sm:$0xff]  }
 0x1c1   : > { %8840 = vmatprep.subr.bf16.mxu1 %v15357_v21 }
 0x1c3   : > { %8800 = vmatpush2.bf16.msra.mxu0 %v15352_v26 }
 0x1c4   : > { %8841 = vmatpush2.bf16.msra.mxu1 %v15355_v27  ;;  %8801 = vmatprep.subr.bf16.mxu0 %v15360_v28  ;;  %v15415_v27 = vld [vmem:[%s18143_s23 + $0x1284] ss:$16 sps:$4 sm:$0xff]   ;;  %v15410_v28 = vld [vmem:[%s18143_s23 + $0x1080] ss:$16 sps:$4 sm:$0xff]  }
 0x1c5   : > { %8842 = vmatprep.subr.bf16.mxu1 %v15363_v29  ;;  %v15413_v29 = vld [vmem:[%s18143_s23 + $0x1280] ss:$16 sps:$4 sm:$0xff]  }
 0x1c7   : > { %8802 = vmatpush2.bf16.msra.mxu0 %v15358_v30  ;;  %v15418_v30 = vld [vmem:[%s18143_s23 + $0x1064] ss:$16 sps:$4 sm:$0xff]  }
 0x1c8   : > { %8843 = vmatpush2.bf16.msra.mxu1 %v15361_v31  ;;  %8803 = vmatprep.subr.bf16.mxu0 %v15366_v32  ;;  %v15421_v31 = vld [vmem:[%s18143_s23 + $0x1264] ss:$16 sps:$4 sm:$0xff]   ;;  %v15416_v32 = vld [vmem:[%s18143_s23 + $0x1060] ss:$16 sps:$4 sm:$0xff]  }
 0x1c9   : > { %8844 = vmatprep.subr.bf16.mxu1 %v15369_v33  ;;  %v15419_v33 = vld [vmem:[%s18143_s23 + $0x1260] ss:$16 sps:$4 sm:$0xff]  }
 0x1cb   : > { %8804 = vmatpush2.bf16.msra.mxu0 %v15364_v34  ;;  %v15424_v34 = vld [vmem:[%s18143_s23 + $0x1044] ss:$16 sps:$4 sm:$0xff]  }
 0x1cc   : > { %8845 = vmatpush2.bf16.msra.mxu1 %v15367_v35  ;;  %8805 = vmatprep.subr.bf16.mxu0 %v15372_v22  ;;  %v15427_v35 = vld [vmem:[%s18143_s23 + $0x1244] ss:$16 sps:$4 sm:$0xff]   ;;  %v15422_v22 = vld [vmem:[%s18143_s23 + $0x1040] ss:$16 sps:$4 sm:$0xff]  }
 0x1cd   : > { %8846 = vmatprep.subr.bf16.mxu1 %v15375_v23  ;;  %v15425_v23 = vld [vmem:[%s18143_s23 + $0x1240] ss:$16 sps:$4 sm:$0xff]  }
 0x1cf   : > { %8806 = vmatpush2.bf16.msra.mxu0 %v15370_v44  ;;  %v15430_v44 = vld [vmem:[%s18143_s23 + $0x1024] ss:$16 sps:$4 sm:$0xff]  }
 0x1d0   : > { %8847 = vmatpush2.bf16.msra.mxu1 %v15373_v45  ;;  %8807 = vmatprep.subr.bf16.mxu0 %v15378_v46  ;;  %v15433_v45 = vld [vmem:[%s18143_s23 + $0x1224] ss:$16 sps:$4 sm:$0xff]   ;;  %v15428_v46 = vld [vmem:[%s18143_s23 + $0x1020] ss:$16 sps:$4 sm:$0xff]  }
 0x1d1   : > { %8848 = vmatprep.subr.bf16.mxu1 %v15381_v48  ;;  %v15431_v48 = vld [vmem:[%s18143_s23 + $0x1220] ss:$16 sps:$4 sm:$0xff]  }
 0x1d3   : > { %8808 = vmatpush2.bf16.msra.mxu0 %v15376_v49  ;;  %v15436_v49 = vld [vmem:[%s18143_s23 + $0x1004] ss:$16 sps:$4 sm:$0xff]  }
 0x1d4   : > { %8849 = vmatpush2.bf16.msra.mxu1 %v15379_v50  ;;  %8809 = vmatprep.subr.bf16.mxu0 %v15384_v52  ;;  %v15439_v50 = vld [vmem:[%s18143_s23 + $0x1204] ss:$16 sps:$4 sm:$0xff]   ;;  %v15434_v52 = vld [vmem:[%s18143_s23 + $0x1000] ss:$16 sps:$4 sm:$0xff]  }
 0x1d5   : > { %8850 = vmatprep.subr.bf16.mxu1 %v15387_v53  ;;  %v15437_v53 = vld [vmem:[%s18143_s23 + $0x1200] ss:$16 sps:$4 sm:$0xff]  }
 0x1d7   : > { %8810 = vmatpush2.bf16.msra.mxu0 %v15382_v54  ;;  %v15442_v54 = vld [vmem:[%s18143_s23 + $0x11e4] ss:$16 sps:$4 sm:$0xff]  }
 0x1d8   : > { %8851 = vmatpush2.bf16.msra.mxu1 %v15385_v55  ;;  %8861 = vmatprep.subr.bf16.mxu0 %v15394_v56  ;;  %v15445_v55 = vld [vmem:[%s18143_s23 + $0x13e4] ss:$16 sps:$4 sm:$0xff]   ;;  %v15440_v56 = vld [vmem:[%s18143_s23 + $0x11e0] ss:$16 sps:$4 sm:$0xff]  }
 0x1d9   : > { %8902 = vmatprep.subr.bf16.mxu1 %v15397_v57  ;;  %v15443_v57 = vld [vmem:[%s18143_s23 + $0x13e0] ss:$16 sps:$4 sm:$0xff]  }
 0x1da   : > { %v8567_v2 = vpop.f32.mrf.mxu0  ;;  %8812 = vmatmul.mubr.bf16.vlgmr.msra.gmra.mxu0 %v18537_v59 }
 0x1db   : > { %v8608_v3 = vpop.f32.mrf.mxu1  ;;  %8853 = vmatmul.mubr.bf16.vlgmr.msra.gmra.mxu1 %v18541_v60  ;;  %8862 = vmatpush1.bf16.msra.mxu0 %v15392_v62  ;;  %v15448_v62 = vld [vmem:[%s18143_s23 + $0x11c4] ss:$16 sps:$4 sm:$0xff]  }
 0x1dc   : > { %v18564_v8 = vadd.f32 %v8608_v3, %v8567_v2  ;;  %8903 = vmatpush1.bf16.msra.mxu1 %v15395_v63  ;;  %v8569_v10 = vpop.f32.mrf.mxu0  ;;  %8863 = vmatprep.subr.bf16.mxu0 %v15400_v40  ;;  %v15451_v63 = vld [vmem:[%s18143_s23 + $0x13c4] ss:$16 sps:$4 sm:$0xff]   ;;  %v15446_v40 = vld [vmem:[%s18143_s23 + $0x11c0] ss:$16 sps:$4 sm:$0xff]  }
 0x1dd   : > { %v8610_v11 = vpop.f32.mrf.mxu1  ;;  %8904 = vmatprep.subr.bf16.mxu1 %v15403_v0  ;;  %8893 = vmatprep.mubr.bf16.mxu0 %v18554_v41  ;;  %v15449_v0 = vld [vmem:[%s18143_s23 + $0x13c0] ss:$16 sps:$4 sm:$0xff]   ;;  %v15454_v2 = vld [vmem:[%s18143_s23 + $0x11a4] ss:$16 sps:$4 sm:$0xff]  }
 0x1de   : > { %v18568_v13 = vadd.f32 %v8610_v11, %v8569_v10  ;;  %8934 = vmatprep.mubr.bf16.mxu1 %v18558_v1  ;;  %v8571_v14 = vpop.f32.mrf.mxu0  ;;  %v15457_v3 = vld [vmem:[%s18143_s23 + $0x13a4] ss:$16 sps:$4 sm:$0xff]   ;;  %v15458_v11 = vld [vmem:[%s18143_s23 + $0x1180] ss:$16 sps:$4 sm:$0xff]  }
 0x1df   : > { %v8612_v15 = vpop.f32.mrf.mxu1  ;;  %8864 = vmatpush1.bf16.msra.mxu0 %v15398_v4  ;;  %v15452_v4 = vld [vmem:[%s18143_s23 + $0x11a0] ss:$16 sps:$4 sm:$0xff]   ;;  %v15463_v10 = vld [vmem:[%s18143_s23 + $0x1384] ss:$16 sps:$4 sm:$0xff]  }
 0x1e0   : > { %8905 = vmatpush1.bf16.msra.mxu1 %v15401_v5  ;;  %v8572_v21 = vpop.f32.mrf.mxu0  ;;  %8865 = vmatprep.subr.bf16.mxu0 %v15406_v9  ;;  %v15455_v5 = vld [vmem:[%s18143_s23 + $0x13a0] ss:$16 sps:$4 sm:$0xff]   ;;  %v15460_v9 = vld [vmem:[%s18143_s23 + $0x1184] ss:$16 sps:$4 sm:$0xff]  }
 0x1e1   : > { %v8613_v26 = vpop.f32.mrf.mxu1  ;;  %8906 = vmatprep.subr.bf16.mxu1 %v15409_v12  ;;  %v15461_v12 = vld [vmem:[%s18143_s23 + $0x1380] ss:$16 sps:$4 sm:$0xff]   ;;  %v15466_v14 = vld [vmem:[%s18143_s23 + $0x1164] ss:$16 sps:$4 sm:$0xff]  }
 0x1e2   : > { %v15469_v15 = vld [vmem:[%s18143_s23 + $0x1364] ss:$16 sps:$4 sm:$0xff]   ;;  %v15470_v26 = vld [vmem:[%s18143_s23 + $0x1140] ss:$16 sps:$4 sm:$0xff]  }
 0x1e3   : > { %8866 = vmatpush1.bf16.msra.mxu0 %v15404_v18  ;;  %v15464_v18 = vld [vmem:[%s18143_s23 + $0x1160] ss:$16 sps:$4 sm:$0xff]   ;;  %v15475_v21 = vld [vmem:[%s18143_s23 + $0x1344] ss:$16 sps:$4 sm:$0xff]  }
 0x1e4   : > { %8907 = vmatpush1.bf16.msra.mxu1 %v15407_v19  ;;  %8867 = vmatprep.subr.bf16.mxu0 %v15412_v20  ;;  %v15467_v19 = vld [vmem:[%s18143_s23 + $0x1360] ss:$16 sps:$4 sm:$0xff]   ;;  %v15472_v20 = vld [vmem:[%s18143_s23 + $0x1144] ss:$16 sps:$4 sm:$0xff]  }
 0x1e5   : > { %8908 = vmatprep.subr.bf16.mxu1 %v15415_v27  ;;  %v15473_v27 = vld [vmem:[%s18143_s23 + $0x1340] ss:$16 sps:$4 sm:$0xff]  }
 0x1e7   : > { %8868 = vmatpush1.bf16.msra.mxu0 %v15410_v28  ;;  %v15478_v28 = vld [vmem:[%s18143_s23 + $0x1124] ss:$16 sps:$4 sm:$0xff]  }
 0x1e8   : > { %8909 = vmatpush1.bf16.msra.mxu1 %v15413_v29  ;;  %8869 = vmatprep.subr.bf16.mxu0 %v15418_v30  ;;  %v15481_v29 = vld [vmem:[%s18143_s23 + $0x1324] ss:$16 sps:$4 sm:$0xff]   ;;  %v15476_v30 = vld [vmem:[%s18143_s23 + $0x1120] ss:$16 sps:$4 sm:$0xff]  }
 0x1e9   : > { %8910 = vmatprep.subr.bf16.mxu1 %v15421_v31  ;;  %v15479_v31 = vld [vmem:[%s18143_s23 + $0x1320] ss:$16 sps:$4 sm:$0xff]  }
 0x1eb   : > { %8870 = vmatpush1.bf16.msra.mxu0 %v15416_v32  ;;  %v15484_v32 = vld [vmem:[%s18143_s23 + $0x1104] ss:$16 sps:$4 sm:$0xff]  }
 0x1ec   : > { %8911 = vmatpush1.bf16.msra.mxu1 %v15419_v33  ;;  %8871 = vmatprep.subr.bf16.mxu0 %v15424_v34  ;;  %v15487_v33 = vld [vmem:[%s18143_s23 + $0x1304] ss:$16 sps:$4 sm:$0xff]   ;;  %v15482_v34 = vld [vmem:[%s18143_s23 + $0x1100] ss:$16 sps:$4 sm:$0xff]  }
 0x1ed   : > { %8912 = vmatprep.subr.bf16.mxu1 %v15427_v35  ;;  %v15485_v35 = vld [vmem:[%s18143_s23 + $0x1300] ss:$16 sps:$4 sm:$0xff]  }
 0x1ef   : > { %8872 = vmatpush1.bf16.msra.mxu0 %v15422_v22  ;;  %v15494_v22 = vld [vmem:[%s18143_s23 + $0x14e4] ss:$16 sps:$4 sm:$0xff]  }
 0x1f0   : > { %8913 = vmatpush1.bf16.msra.mxu1 %v15425_v23  ;;  %8873 = vmatprep.subr.bf16.mxu0 %v15430_v44  ;;  %v15497_v23 = vld [vmem:[%s18143_s23 + $0x16e4] ss:$16 sps:$4 sm:$0xff]   ;;  %v15492_v44 = vld [vmem:[%s18143_s23 + $0x14e0] ss:$16 sps:$4 sm:$0xff]  }
 0x1f1   : > { %8914 = vmatprep.subr.bf16.mxu1 %v15433_v45  ;;  %v15495_v45 = vld [vmem:[%s18143_s23 + $0x16e0] ss:$16 sps:$4 sm:$0xff]  }
 0x1f3   : > { %8874 = vmatpush1.bf16.msra.mxu0 %v15428_v46  ;;  %v18632_v46 = vcombine.low %v18533_v58, %v18533_v58  ;;  %v15500_v58 = vld [vmem:[%s18143_s23 + $0x14c4] ss:$16 sps:$4 sm:$0xff]  }
 0x1f4   : > { %8915 = vmatpush1.bf16.msra.mxu1 %v15431_v48  ;;  %8875 = vmatprep.subr.bf16.mxu0 %v15436_v49  ;;  %v18636_v48 = vcombine.low %v18546_v61, %v18546_v61  ;;  %v18641_v49 = vld [vmem:[%s20145_s20 + $0x50] sm:$0xff] }
 0x1f5   : > { %8916 = vmatprep.subr.bf16.mxu1 %v15439_v50  ;;  %v18646_v50 = vld [vmem:[%s20145_s20 + $0x58] sm:$0xff]  ;;  %v15501_v61 = vld [vmem:[%s18143_s23 + $0x16c0] ss:$16 sps:$4 sm:$0xff]  }
 0x1f7   : > { %8876 = vmatpush1.bf16.msra.mxu0 %v15434_v52  ;;  %v15503_v52 = vld [vmem:[%s18143_s23 + $0x16c4] ss:$16 sps:$4 sm:$0xff]  }
 0x1f8   : > { %8917 = vmatpush1.bf16.msra.mxu1 %v15437_v53  ;;  %8877 = vmatprep.subr.bf16.mxu0 %v15442_v54  ;;  %v15498_v53 = vld [vmem:[%s18143_s23 + $0x14c0] ss:$16 sps:$4 sm:$0xff]   ;;  %v18654_v54 = vcombine.high %v18641_v49, %v18641_v49 }
 0x1f9   : > { %8918 = vmatprep.subr.bf16.mxu1 %v15445_v55  ;;  %v18658_v55 = vcombine.high %v18646_v50, %v18646_v50 }
 0x1fb   : > { %8878 = vmatpush2.bf16.msra.mxu0 %v15440_v56 }
 0x1fc   : > { %8919 = vmatpush2.bf16.msra.mxu1 %v15443_v57  ;;  %8879 = vmatprep.subr.bf16.mxu0 %v15448_v62 }
 0x1fd   : > { %8920 = vmatprep.subr.bf16.mxu1 %v15451_v63 }
 0x1ff   : > { %8880 = vmatpush2.bf16.msra.mxu0 %v15446_v40 }
 0x200   : > { %8921 = vmatpush2.bf16.msra.mxu1 %v15449_v0  ;;  %8881 = vmatprep.subr.bf16.mxu0 %v15454_v2  ;;  %v15506_v0 = vld [vmem:[%s18143_s23 + $0x14a4] ss:$16 sps:$4 sm:$0xff]  }
 0x201   : > { %8922 = vmatprep.subr.bf16.mxu1 %v15457_v3  ;;  %v15509_v2 = vld [vmem:[%s18143_s23 + $0x16a4] ss:$16 sps:$4 sm:$0xff]  }
 0x203   : > { %8882 = vmatpush2.bf16.msra.mxu0 %v15452_v4 }
 0x204   : > { %8923 = vmatpush2.bf16.msra.mxu1 %v15455_v5  ;;  %8883 = vmatprep.subr.bf16.mxu0 %v15460_v9  ;;  %v15504_v5 = vld [vmem:[%s18143_s23 + $0x14a0] ss:$16 sps:$4 sm:$0xff]  }
 0x205   : > { %8924 = vmatprep.subr.bf16.mxu1 %v15463_v10  ;;  %v15507_v9 = vld [vmem:[%s18143_s23 + $0x16a0] ss:$16 sps:$4 sm:$0xff]  }
 0x207   : > { %8884 = vmatpush2.bf16.msra.mxu0 %v15458_v11 }
 0x208   : > { %8925 = vmatpush2.bf16.msra.mxu1 %v15461_v12  ;;  %8885 = vmatprep.subr.bf16.mxu0 %v15466_v14 }
 0x209   : > { %8926 = vmatprep.subr.bf16.mxu1 %v15469_v15  ;;  %v15515_v15 = vld [vmem:[%s18143_s23 + $0x1684] ss:$16 sps:$4 sm:$0xff]  }
 0x20b   : > { %8886 = vmatpush2.bf16.msra.mxu0 %v15464_v18  ;;  %v15510_v18 = vld [vmem:[%s18143_s23 + $0x1480] ss:$16 sps:$4 sm:$0xff]  }
 0x20c   : > { %8927 = vmatpush2.bf16.msra.mxu1 %v15467_v19  ;;  %8887 = vmatprep.subr.bf16.mxu0 %v15472_v20  ;;  %v15513_v19 = vld [vmem:[%s18143_s23 + $0x1680] ss:$16 sps:$4 sm:$0xff]   ;;  %v15518_v20 = vld [vmem:[%s18143_s23 + $0x1464] ss:$16 sps:$4 sm:$0xff]  }
 0x20d   : > { %8928 = vmatprep.subr.bf16.mxu1 %v15475_v21  ;;  %v15521_v21 = vld [vmem:[%s18143_s23 + $0x1664] ss:$16 sps:$4 sm:$0xff]  }
 0x20f   : > { %8888 = vmatpush2.bf16.msra.mxu0 %v15470_v26  ;;  %v15516_v26 = vld [vmem:[%s18143_s23 + $0x1460] ss:$16 sps:$4 sm:$0xff]  }
 0x210   : > { %8929 = vmatpush2.bf16.msra.mxu1 %v15473_v27  ;;  %8889 = vmatprep.subr.bf16.mxu0 %v15478_v28  ;;  %v15519_v27 = vld [vmem:[%s18143_s23 + $0x1660] ss:$16 sps:$4 sm:$0xff]   ;;  %v15524_v28 = vld [vmem:[%s18143_s23 + $0x1444] ss:$16 sps:$4 sm:$0xff]  }
 0x211   : > { %8930 = vmatprep.subr.bf16.mxu1 %v15481_v29  ;;  %v15527_v29 = vld [vmem:[%s18143_s23 + $0x1644] ss:$16 sps:$4 sm:$0xff]  }
 0x213   : > { %8890 = vmatpush2.bf16.msra.mxu0 %v15476_v30  ;;  %v15522_v30 = vld [vmem:[%s18143_s23 + $0x1440] ss:$16 sps:$4 sm:$0xff]  }
 0x214   : > { %8931 = vmatpush2.bf16.msra.mxu1 %v15479_v31  ;;  %8891 = vmatprep.subr.bf16.mxu0 %v15484_v32  ;;  %v15525_v31 = vld [vmem:[%s18143_s23 + $0x1640] ss:$16 sps:$4 sm:$0xff]   ;;  %v15530_v32 = vld [vmem:[%s18143_s23 + $0x1424] ss:$16 sps:$4 sm:$0xff]  }
 0x215   : > { %8932 = vmatprep.subr.bf16.mxu1 %v15487_v33  ;;  %v15533_v33 = vld [vmem:[%s18143_s23 + $0x1624] ss:$16 sps:$4 sm:$0xff]  }
 0x217   : > { %8892 = vmatpush2.bf16.msra.mxu0 %v15482_v34  ;;  %v15528_v34 = vld [vmem:[%s18143_s23 + $0x1420] ss:$16 sps:$4 sm:$0xff]  }
 0x218   : > { %8933 = vmatpush2.bf16.msra.mxu1 %v15485_v35  ;;  %8943 = vmatprep.subr.bf16.mxu0 %v15494_v22  ;;  %v15531_v35 = vld [vmem:[%s18143_s23 + $0x1620] ss:$16 sps:$4 sm:$0xff]   ;;  %v15536_v22 = vld [vmem:[%s18143_s23 + $0x1404] ss:$16 sps:$4 sm:$0xff]  }
 0x219   : > { %8984 = vmatprep.subr.bf16.mxu1 %v15497_v23  ;;  %v15539_v23 = vld [vmem:[%s18143_s23 + $0x1604] ss:$16 sps:$4 sm:$0xff]  }
 0x21a   : > { %v8649_v56 = vpop.f32.mrf.mxu0  ;;  %8894 = vmatmul.mubr.bf16.vlgmr.msra.gmra.mxu0 %v18632_v46 }
 0x21b   : > { %v8690_v57 = vpop.f32.mrf.mxu1  ;;  %8935 = vmatmul.mubr.bf16.vlgmr.msra.gmra.mxu1 %v18636_v48  ;;  %v8650_v62 = vadd.f32 %v8649_v56, %v18564_v8  ;;  %8944 = vmatpush1.bf16.msra.mxu0 %v15492_v44  ;;  %v15534_v44 = vld [vmem:[%s18143_s23 + $0x1400] ss:$16 sps:$4 sm:$0xff]   ;;  %v15548_v56 = vld [vmem:[%s18143_s23 + $0x15c4] ss:$16 sps:$4 sm:$0xff]  }
 0x21c   : > { %8985 = vmatpush1.bf16.msra.mxu1 %v15495_v45  ;;  %v8651_v63 = vpop.f32.mrf.mxu0  ;;  %8945 = vmatprep.subr.bf16.mxu0 %v15500_v58  ;;  %v15537_v45 = vld [vmem:[%s18143_s23 + $0x1600] ss:$16 sps:$4 sm:$0xff]   ;;  %v15542_v58 = vld [vmem:[%s18143_s23 + $0x15e4] ss:$16 sps:$4 sm:$0xff]  }
 0x21d   : > { %v8692_v40 = vpop.f32.mrf.mxu1  ;;  %8986 = vmatprep.subr.bf16.mxu1 %v15503_v52  ;;  %v18665_v3 = vadd.f32 %v8690_v57, %v8650_v62  ;;  %v8652_v4 = vadd.f32 %v8651_v63, %v18568_v13  ;;  %8975 = vmatprep.mubr.bf16.mxu0 %v18654_v54  ;;  %v15512_v13 = vld [vmem:[%s18143_s23 + $0x1484] ss:$16 sps:$4 sm:$0xff]   ;;  %v15546_v62 = vld [vmem:[%s18143_s23 + $0x15c0] ss:$16 sps:$4 sm:$0xff]  }
 0x21e   : > { %9016 = vmatprep.mubr.bf16.mxu1 %v18658_v55  ;;  %v8653_v8 = vpop.f32.mrf.mxu0  ;;  %v15545_v52 = vld [vmem:[%s18143_s23 + $0x17e4] ss:$16 sps:$4 sm:$0xff]   ;;  %v15549_v63 = vld [vmem:[%s18143_s23 + $0x17c0] ss:$16 sps:$4 sm:$0xff]  }
 0x21f   : > { %v8694_v10 = vpop.f32.mrf.mxu1  ;;  %v18672_v11 = vadd.f32 %v8692_v40, %v8652_v4  ;;  %8946 = vmatpush1.bf16.msra.mxu0 %v15498_v53  ;;  %v15540_v53 = vld [vmem:[%s18143_s23 + $0x15e0] ss:$16 sps:$4 sm:$0xff]   ;;  %v15551_v57 = vld [vmem:[%s18143_s23 + $0x17c4] ss:$16 sps:$4 sm:$0xff]  }
 0x220   : > { %8987 = vmatpush1.bf16.msra.mxu1 %v15501_v61  ;;  %v8654_v12 = vpop.f32.mrf.mxu0  ;;  %8947 = vmatprep.subr.bf16.mxu0 %v15506_v0  ;;  %v15543_v61 = vld [vmem:[%s18143_s23 + $0x17e0] ss:$16 sps:$4 sm:$0xff]   ;;  %v15554_v40 = vld [vmem:[%s18143_s23 + $0x15a4] ss:$16 sps:$4 sm:$0xff]  }
 0x221   : > { %v8695_v14 = vpop.f32.mrf.mxu1  ;;  %8988 = vmatprep.subr.bf16.mxu1 %v15509_v2  ;;  %v15557_v0 = vld [vmem:[%s18143_s23 + $0x17a4] ss:$16 sps:$4 sm:$0xff]   ;;  %v15552_v2 = vld [vmem:[%s18143_s23 + $0x15a0] ss:$16 sps:$4 sm:$0xff]  }
 0x222   : > { %v15555_v4 = vld [vmem:[%s18143_s23 + $0x17a0] ss:$16 sps:$4 sm:$0xff]   ;;  %v15566_v12 = vld [vmem:[%s18143_s23 + $0x1564] ss:$16 sps:$4 sm:$0xff]  }
 0x223   : > { %8948 = vmatpush1.bf16.msra.mxu0 %v15504_v5  ;;  %v15560_v5 = vld [vmem:[%s18143_s23 + $0x1584] ss:$16 sps:$4 sm:$0xff]   ;;  %v15558_v8 = vld [vmem:[%s18143_s23 + $0x1580] ss:$16 sps:$4 sm:$0xff]  }
 0x224   : > { %8989 = vmatpush1.bf16.msra.mxu1 %v15507_v9  ;;  %8949 = vmatprep.subr.bf16.mxu0 %v15512_v13  ;;  %v15563_v9 = vld [vmem:[%s18143_s23 + $0x1784] ss:$16 sps:$4 sm:$0xff]   ;;  %v15561_v10 = vld [vmem:[%s18143_s23 + $0x1780] ss:$16 sps:$4 sm:$0xff]  }
 0x225   : > { %8990 = vmatprep.subr.bf16.mxu1 %v15515_v15  ;;  %v15569_v14 = vld [vmem:[%s18143_s23 + $0x1764] ss:$16 sps:$4 sm:$0xff]   ;;  %v15564_v13 = vld [vmem:[%s18143_s23 + $0x1560] ss:$16 sps:$4 sm:$0xff]  }
 0x226   : > { %v15567_v15 = vld [vmem:[%s18143_s23 + $0x1760] ss:$16 sps:$4 sm:$0xff]  }
 0x227   : > { %8950 = vmatpush1.bf16.msra.mxu0 %v15510_v18  ;;  %v15572_v18 = vld [vmem:[%s18143_s23 + $0x1544] ss:$16 sps:$4 sm:$0xff]  }
 0x228   : > { %8991 = vmatpush1.bf16.msra.mxu1 %v15513_v19  ;;  %8951 = vmatprep.subr.bf16.mxu0 %v15518_v20  ;;  %v15575_v19 = vld [vmem:[%s18143_s23 + $0x1744] ss:$16 sps:$4 sm:$0xff]   ;;  %v15570_v20 = vld [vmem:[%s18143_s23 + $0x1540] ss:$16 sps:$4 sm:$0xff]  }
 0x229   : > { %8992 = vmatprep.subr.bf16.mxu1 %v15521_v21  ;;  %v15573_v21 = vld [vmem:[%s18143_s23 + $0x1740] ss:$16 sps:$4 sm:$0xff]  }
 0x22b   : > { %8952 = vmatpush1.bf16.msra.mxu0 %v15516_v26  ;;  %v15578_v26 = vld [vmem:[%s18143_s23 + $0x1524] ss:$16 sps:$4 sm:$0xff]  }
 0x22c   : > { %8993 = vmatpush1.bf16.msra.mxu1 %v15519_v27  ;;  %8953 = vmatprep.subr.bf16.mxu0 %v15524_v28  ;;  %v15581_v27 = vld [vmem:[%s18143_s23 + $0x1724] ss:$16 sps:$4 sm:$0xff]   ;;  %v15576_v28 = vld [vmem:[%s18143_s23 + $0x1520] ss:$16 sps:$4 sm:$0xff]  }
 0x22d   : > { %8994 = vmatprep.subr.bf16.mxu1 %v15527_v29  ;;  %v15579_v29 = vld [vmem:[%s18143_s23 + $0x1720] ss:$16 sps:$4 sm:$0xff]  }
 0x22f   : > { %8954 = vmatpush1.bf16.msra.mxu0 %v15522_v30  ;;  %v15584_v30 = vld [vmem:[%s18143_s23 + $0x1504] ss:$16 sps:$4 sm:$0xff]  }
 0x230   : > { %8995 = vmatpush1.bf16.msra.mxu1 %v15525_v31  ;;  %8955 = vmatprep.subr.bf16.mxu0 %v15530_v32  ;;  %v15587_v31 = vld [vmem:[%s18143_s23 + $0x1704] ss:$16 sps:$4 sm:$0xff]   ;;  %v15582_v32 = vld [vmem:[%s18143_s23 + $0x1500] ss:$16 sps:$4 sm:$0xff]  }
 0x231   : > { %8996 = vmatprep.subr.bf16.mxu1 %v15533_v33  ;;  %v15585_v33 = vld [vmem:[%s18143_s23 + $0x1700] ss:$16 sps:$4 sm:$0xff]  }
 0x233   : > { %8956 = vmatpush1.bf16.msra.mxu0 %v15528_v34  ;;  %v15594_v34 = vld [vmem:[%s18143_s23 + $0x18e4] ss:$16 sps:$4 sm:$0xff]  }
 0x234   : > { %8997 = vmatpush1.bf16.msra.mxu1 %v15531_v35  ;;  %8957 = vmatprep.subr.bf16.mxu0 %v15536_v22  ;;  %v15597_v35 = vld [vmem:[%s18143_s23 + $0x1ae4] ss:$16 sps:$4 sm:$0xff]   ;;  %v15592_v22 = vld [vmem:[%s18143_s23 + $0x18e0] ss:$16 sps:$4 sm:$0xff]  }
 0x235   : > { %8998 = vmatprep.subr.bf16.mxu1 %v15539_v23  ;;  %v15595_v23 = vld [vmem:[%s18143_s23 + $0x1ae0] ss:$16 sps:$4 sm:$0xff]  }
 0x237   : > { %8958 = vmatpush1.bf16.msra.mxu0 %v15534_v44  ;;  %v18732_v44 = vcombine.low %v18641_v49, %v18641_v49  ;;  %v15600_v49 = vld [vmem:[%s18143_s23 + $0x18c4] ss:$16 sps:$4 sm:$0xff]  }
 0x238   : > { %8999 = vmatpush1.bf16.msra.mxu1 %v15537_v45  ;;  %8959 = vmatprep.subr.bf16.mxu0 %v15542_v58  ;;  %v18736_v45 = vcombine.low %v18646_v50, %v18646_v50  ;;  %v18741_v58 = vld [vmem:[%s20145_s20 + $0x60] sm:$0xff] }
 0x239   : > { %9000 = vmatprep.subr.bf16.mxu1 %v15545_v52  ;;  %v18746_v52 = vld [vmem:[%s20145_s20 + $0x68] sm:$0xff]  ;;  %v15601_v50 = vld [vmem:[%s18143_s23 + $0x1ac0] ss:$16 sps:$4 sm:$0xff]  }
 0x23b   : > { %8960 = vmatpush2.bf16.msra.mxu0 %v15540_v53  ;;  %v15603_v53 = vld [vmem:[%s18143_s23 + $0x1ac4] ss:$16 sps:$4 sm:$0xff]  }
 0x23c   : > { %9001 = vmatpush2.bf16.msra.mxu1 %v15543_v61  ;;  %8961 = vmatprep.subr.bf16.mxu0 %v15548_v56  ;;  %v15598_v61 = vld [vmem:[%s18143_s23 + $0x18c0] ss:$16 sps:$4 sm:$0xff]   ;;  %v18754_v56 = vcombine.high %v18741_v58, %v18741_v58 }
 0x23d   : > { %9002 = vmatprep.subr.bf16.mxu1 %v15551_v57  ;;  %v18758_v57 = vcombine.high %v18746_v52, %v18746_v52 }
 0x23f   : > { %8962 = vmatpush2.bf16.msra.mxu0 %v15546_v62 }
 0x240   : > { %9003 = vmatpush2.bf16.msra.mxu1 %v15549_v63  ;;  %8963 = vmatprep.subr.bf16.mxu0 %v15554_v40 }
 0x241   : > { %9004 = vmatprep.subr.bf16.mxu1 %v15557_v0 }
 0x243   : > { %8964 = vmatpush2.bf16.msra.mxu0 %v15552_v2 }
 0x244   : > { %9005 = vmatpush2.bf16.msra.mxu1 %v15555_v4  ;;  %8965 = vmatprep.subr.bf16.mxu0 %v15560_v5  ;;  %v15606_v4 = vld [vmem:[%s18143_s23 + $0x18a4] ss:$16 sps:$4 sm:$0xff]  }
 0x245   : > { %9006 = vmatprep.subr.bf16.mxu1 %v15563_v9  ;;  %v15609_v5 = vld [vmem:[%s18143_s23 + $0x1aa4] ss:$16 sps:$4 sm:$0xff]  }
 0x247   : > { %8966 = vmatpush2.bf16.msra.mxu0 %v15558_v8 }
 0x248   : > { %9007 = vmatpush2.bf16.msra.mxu1 %v15561_v10  ;;  %8967 = vmatprep.subr.bf16.mxu0 %v15566_v12  ;;  %v15604_v10 = vld [vmem:[%s18143_s23 + $0x18a0] ss:$16 sps:$4 sm:$0xff]  }
 0x249   : > { %9008 = vmatprep.subr.bf16.mxu1 %v15569_v14  ;;  %v15607_v12 = vld [vmem:[%s18143_s23 + $0x1aa0] ss:$16 sps:$4 sm:$0xff]  }
 0x24b   : > { %8968 = vmatpush2.bf16.msra.mxu0 %v15564_v13 }
 0x24c   : > { %9009 = vmatpush2.bf16.msra.mxu1 %v15567_v15  ;;  %8969 = vmatprep.subr.bf16.mxu0 %v15572_v18 }
 0x24d   : > { %9010 = vmatprep.subr.bf16.mxu1 %v15575_v19  ;;  %v15615_v19 = vld [vmem:[%s18143_s23 + $0x1a84] ss:$16 sps:$4 sm:$0xff]  }
 0x24f   : > { %8970 = vmatpush2.bf16.msra.mxu0 %v15570_v20  ;;  %v15610_v20 = vld [vmem:[%s18143_s23 + $0x1880] ss:$16 sps:$4 sm:$0xff]  }
 0x250   : > { %9011 = vmatpush2.bf16.msra.mxu1 %v15573_v21  ;;  %8971 = vmatprep.subr.bf16.mxu0 %v15578_v26  ;;  %v15613_v21 = vld [vmem:[%s18143_s23 + $0x1a80] ss:$16 sps:$4 sm:$0xff]   ;;  %v15618_v26 = vld [vmem:[%s18143_s23 + $0x1864] ss:$16 sps:$4 sm:$0xff]  }
 0x251   : > { %9012 = vmatprep.subr.bf16.mxu1 %v15581_v27  ;;  %v15621_v27 = vld [vmem:[%s18143_s23 + $0x1a64] ss:$16 sps:$4 sm:$0xff]  }
 0x253   : > { %8972 = vmatpush2.bf16.msra.mxu0 %v15576_v28  ;;  %v15616_v28 = vld [vmem:[%s18143_s23 + $0x1860] ss:$16 sps:$4 sm:$0xff]  }
 0x254   : > { %9013 = vmatpush2.bf16.msra.mxu1 %v15579_v29  ;;  %8973 = vmatprep.subr.bf16.mxu0 %v15584_v30  ;;  %v15619_v29 = vld [vmem:[%s18143_s23 + $0x1a60] ss:$16 sps:$4 sm:$0xff]   ;;  %v15624_v30 = vld [vmem:[%s18143_s23 + $0x1844] ss:$16 sps:$4 sm:$0xff]  }
 0x255   : > { %9014 = vmatprep.subr.bf16.mxu1 %v15587_v31  ;;  %v15627_v31 = vld [vmem:[%s18143_s23 + $0x1a44] ss:$16 sps:$4 sm:$0xff]  }
 0x257   : > { %8974 = vmatpush2.bf16.msra.mxu0 %v15582_v32  ;;  %v15622_v32 = vld [vmem:[%s18143_s23 + $0x1840] ss:$16 sps:$4 sm:$0xff]  }
 0x258   : > { %9015 = vmatpush2.bf16.msra.mxu1 %v15585_v33  ;;  %9025 = vmatprep.subr.bf16.mxu0 %v15594_v34  ;;  %v15625_v33 = vld [vmem:[%s18143_s23 + $0x1a40] ss:$16 sps:$4 sm:$0xff]   ;;  %v15630_v34 = vld [vmem:[%s18143_s23 + $0x1824] ss:$16 sps:$4 sm:$0xff]  }
 0x259   : > { %9066 = vmatprep.subr.bf16.mxu1 %v15597_v35  ;;  %v15633_v35 = vld [vmem:[%s18143_s23 + $0x1a24] ss:$16 sps:$4 sm:$0xff]  }
 0x25a   : > { %v8731_v62 = vpop.f32.mrf.mxu0  ;;  %8976 = vmatmul.mubr.bf16.vlgmr.msra.gmra.mxu0 %v18732_v44 }
 0x25b   : > { %v8772_v63 = vpop.f32.mrf.mxu1  ;;  %9017 = vmatmul.mubr.bf16.vlgmr.msra.gmra.mxu1 %v18736_v45  ;;  %v8732_v40 = vadd.f32 %v8731_v62, %v18665_v3  ;;  %9026 = vmatpush1.bf16.msra.mxu0 %v15592_v22  ;;  %v15628_v22 = vld [vmem:[%s18143_s23 + $0x1820] ss:$16 sps:$4 sm:$0xff]   ;;  %v15642_v62 = vld [vmem:[%s18143_s23 + $0x19e4] ss:$16 sps:$4 sm:$0xff]  }
 0x25c   : > { %9067 = vmatpush1.bf16.msra.mxu1 %v15595_v23  ;;  %v8733_v0 = vpop.f32.mrf.mxu0  ;;  %9027 = vmatprep.subr.bf16.mxu0 %v15600_v49  ;;  %v15631_v23 = vld [vmem:[%s18143_s23 + $0x1a20] ss:$16 sps:$4 sm:$0xff]   ;;  %v15636_v49 = vld [vmem:[%s18143_s23 + $0x1804] ss:$16 sps:$4 sm:$0xff]  }
 0x25d   : > { %v8774_v2 = vpop.f32.mrf.mxu1  ;;  %9068 = vmatprep.subr.bf16.mxu1 %v15603_v53  ;;  %v18765_v9 = vadd.f32 %v8772_v63, %v8732_v40  ;;  %v8734_v8 = vadd.f32 %v8733_v0, %v18672_v11  ;;  %9057 = vmatprep.mubr.bf16.mxu0 %v18754_v56  ;;  %v15612_v11 = vld [vmem:[%s18143_s23 + $0x1884] ss:$16 sps:$4 sm:$0xff]   ;;  %v15640_v40 = vld [vmem:[%s18143_s23 + $0x19e0] ss:$16 sps:$4 sm:$0xff]  }
 0x25e   : > { %9098 = vmatprep.mubr.bf16.mxu1 %v18758_v57  ;;  %v8735_v3 = vpop.f32.mrf.mxu0  ;;  %v15639_v53 = vld [vmem:[%s18143_s23 + $0x1a04] ss:$16 sps:$4 sm:$0xff]   ;;  %v15643_v0 = vld [vmem:[%s18143_s23 + $0x1be0] ss:$16 sps:$4 sm:$0xff]  }
 0x25f   : > { %v8776_v14 = vpop.f32.mrf.mxu1  ;;  %v18772_v13 = vadd.f32 %v8774_v2, %v8734_v8  ;;  %9028 = vmatpush1.bf16.msra.mxu0 %v15598_v61  ;;  %v15634_v61 = vld [vmem:[%s18143_s23 + $0x1800] ss:$16 sps:$4 sm:$0xff]   ;;  %v15645_v63 = vld [vmem:[%s18143_s23 + $0x1be4] ss:$16 sps:$4 sm:$0xff]  }
 0x260   : > { %9069 = vmatpush1.bf16.msra.mxu1 %v15601_v50  ;;  %v8736_v15 = vpop.f32.mrf.mxu0  ;;  %9029 = vmatprep.subr.bf16.mxu0 %v15606_v4  ;;  %v15637_v50 = vld [vmem:[%s18143_s23 + $0x1a00] ss:$16 sps:$4 sm:$0xff]   ;;  %v15648_v2 = vld [vmem:[%s18143_s23 + $0x19c4] ss:$16 sps:$4 sm:$0xff]  }
 0x261   : > { %v8777_v18 = vpop.f32.mrf.mxu1  ;;  %9070 = vmatprep.subr.bf16.mxu1 %v15609_v5  ;;  %v15651_v4 = vld [vmem:[%s18143_s23 + $0x1bc4] ss:$16 sps:$4 sm:$0xff]   ;;  %v15646_v5 = vld [vmem:[%s18143_s23 + $0x19c0] ss:$16 sps:$4 sm:$0xff]  }
 0x262   : > { %v15649_v8 = vld [vmem:[%s18143_s23 + $0x1bc0] ss:$16 sps:$4 sm:$0xff]   ;;  %v15660_v15 = vld [vmem:[%s18143_s23 + $0x1984] ss:$16 sps:$4 sm:$0xff]  }
 0x263   : > { %9030 = vmatpush1.bf16.msra.mxu0 %v15604_v10  ;;  %v15654_v10 = vld [vmem:[%s18143_s23 + $0x19a4] ss:$16 sps:$4 sm:$0xff]   ;;  %v15652_v3 = vld [vmem:[%s18143_s23 + $0x19a0] ss:$16 sps:$4 sm:$0xff]  }
 0x264   : > { %9071 = vmatpush1.bf16.msra.mxu1 %v15607_v12  ;;  %9031 = vmatprep.subr.bf16.mxu0 %v15612_v11  ;;  %v15657_v12 = vld [vmem:[%s18143_s23 + $0x1ba4] ss:$16 sps:$4 sm:$0xff]   ;;  %v15655_v14 = vld [vmem:[%s18143_s23 + $0x1ba0] ss:$16 sps:$4 sm:$0xff]  }
 0x265   : > { %9072 = vmatprep.subr.bf16.mxu1 %v15615_v19  ;;  %v15663_v18 = vld [vmem:[%s18143_s23 + $0x1b84] ss:$16 sps:$4 sm:$0xff]   ;;  %v15658_v11 = vld [vmem:[%s18143_s23 + $0x1980] ss:$16 sps:$4 sm:$0xff]  }
 0x266   : > { %v15661_v19 = vld [vmem:[%s18143_s23 + $0x1b80] ss:$16 sps:$4 sm:$0xff]  }
 0x267   : > { %9032 = vmatpush1.bf16.msra.mxu0 %v15610_v20  ;;  %v15666_v20 = vld [vmem:[%s18143_s23 + $0x1964] ss:$16 sps:$4 sm:$0xff]  }
 0x268   : > { %9073 = vmatpush1.bf16.msra.mxu1 %v15613_v21  ;;  %9033 = vmatprep.subr.bf16.mxu0 %v15618_v26  ;;  %v15669_v21 = vld [vmem:[%s18143_s23 + $0x1b64] ss:$16 sps:$4 sm:$0xff]   ;;  %v15664_v26 = vld [vmem:[%s18143_s23 + $0x1960] ss:$16 sps:$4 sm:$0xff]  }
 0x269   : > { %9074 = vmatprep.subr.bf16.mxu1 %v15621_v27  ;;  %v15667_v27 = vld [vmem:[%s18143_s23 + $0x1b60] ss:$16 sps:$4 sm:$0xff]  }
 0x26b   : > { %9034 = vmatpush1.bf16.msra.mxu0 %v15616_v28  ;;  %v15672_v28 = vld [vmem:[%s18143_s23 + $0x1944] ss:$16 sps:$4 sm:$0xff]  }
 0x26c   : > { %9075 = vmatpush1.bf16.msra.mxu1 %v15619_v29  ;;  %9035 = vmatprep.subr.bf16.mxu0 %v15624_v30  ;;  %v15675_v29 = vld [vmem:[%s18143_s23 + $0x1b44] ss:$16 sps:$4 sm:$0xff]   ;;  %v15670_v30 = vld [vmem:[%s18143_s23 + $0x1940] ss:$16 sps:$4 sm:$0xff]  }
 0x26d   : > { %9076 = vmatprep.subr.bf16.mxu1 %v15627_v31  ;;  %v15673_v31 = vld [vmem:[%s18143_s23 + $0x1b40] ss:$16 sps:$4 sm:$0xff]  }
 0x26f   : > { %9036 = vmatpush1.bf16.msra.mxu0 %v15622_v32  ;;  %v15678_v32 = vld [vmem:[%s18143_s23 + $0x1924] ss:$16 sps:$4 sm:$0xff]  }
 0x270   : > { %9077 = vmatpush1.bf16.msra.mxu1 %v15625_v33  ;;  %9037 = vmatprep.subr.bf16.mxu0 %v15630_v34  ;;  %v15681_v33 = vld [vmem:[%s18143_s23 + $0x1b24] ss:$16 sps:$4 sm:$0xff]   ;;  %v15676_v34 = vld [vmem:[%s18143_s23 + $0x1920] ss:$16 sps:$4 sm:$0xff]  }
 0x271   : > { %9078 = vmatprep.subr.bf16.mxu1 %v15633_v35  ;;  %v15679_v35 = vld [vmem:[%s18143_s23 + $0x1b20] ss:$16 sps:$4 sm:$0xff]  }
 0x273   : > { %9038 = vmatpush1.bf16.msra.mxu0 %v15628_v22  ;;  %v15684_v22 = vld [vmem:[%s18143_s23 + $0x1904] ss:$16 sps:$4 sm:$0xff]  }
 0x274   : > { %9079 = vmatpush1.bf16.msra.mxu1 %v15631_v23  ;;  %9039 = vmatprep.subr.bf16.mxu0 %v15636_v49  ;;  %v15687_v23 = vld [vmem:[%s18143_s23 + $0x1b04] ss:$16 sps:$4 sm:$0xff]   ;;  %v15682_v49 = vld [vmem:[%s18143_s23 + $0x1900] ss:$16 sps:$4 sm:$0xff]  }
 0x275   : > { %9080 = vmatprep.subr.bf16.mxu1 %v15639_v53  ;;  %v15685_v53 = vld [vmem:[%s18143_s23 + $0x1b00] ss:$16 sps:$4 sm:$0xff]  }
 0x277   : > { %9040 = vmatpush1.bf16.msra.mxu0 %v15634_v61  ;;  %v15694_v61 = vld [vmem:[%s18143_s23 + $0x1ce4] ss:$16 sps:$4 sm:$0xff]  }
 0x278   : > { %9081 = vmatpush1.bf16.msra.mxu1 %v15637_v50  ;;  %9041 = vmatprep.subr.bf16.mxu0 %v15642_v62  ;;  %v15697_v50 = vld [vmem:[%s18143_s23 + $0x1ee4] ss:$16 sps:$4 sm:$0xff]   ;;  %v15692_v62 = vld [vmem:[%s18143_s23 + $0x1ce0] ss:$16 sps:$4 sm:$0xff]  }
 0x279   : > { %9082 = vmatprep.subr.bf16.mxu1 %v15645_v63  ;;  %v15695_v63 = vld [vmem:[%s18143_s23 + $0x1ee0] ss:$16 sps:$4 sm:$0xff]  }
 0x27b   : > { %9042 = vmatpush2.bf16.msra.mxu0 %v15640_v40  ;;  %v18832_v40 = vcombine.low %v18741_v58, %v18741_v58  ;;  %v15700_v58 = vld [vmem:[%s18143_s23 + $0x1cc4] ss:$16 sps:$4 sm:$0xff]  }
 0x27c   : > { %9083 = vmatpush2.bf16.msra.mxu1 %v15643_v0  ;;  %9043 = vmatprep.subr.bf16.mxu0 %v15648_v2  ;;  %v18836_v0 = vcombine.low %v18746_v52, %v18746_v52  ;;  %v18841_v2 = vld [vmem:[%s20145_s20 + $0x70] sm:$0xff] }
 0x27d   : > { %9084 = vmatprep.subr.bf16.mxu1 %v15651_v4  ;;  %v18846_v4 = vld [vmem:[%s20145_s20 + $0x78] sm:$0xff]  ;;  %v15701_v52 = vld [vmem:[%s18143_s23 + $0x1ec0] ss:$16 sps:$4 sm:$0xff]  }
 0x27f   : > { %9044 = vmatpush2.bf16.msra.mxu0 %v15646_v5  ;;  %v15703_v5 = vld [vmem:[%s18143_s23 + $0x1ec4] ss:$16 sps:$4 sm:$0xff]  }
 0x280   : > { %9085 = vmatpush2.bf16.msra.mxu1 %v15649_v8  ;;  %9045 = vmatprep.subr.bf16.mxu0 %v15654_v10  ;;  %v15698_v8 = vld [vmem:[%s18143_s23 + $0x1cc0] ss:$16 sps:$4 sm:$0xff]   ;;  %v18854_v10 = vcombine.high %v18841_v2, %v18841_v2 }
 0x281   : > { %9086 = vmatprep.subr.bf16.mxu1 %v15657_v12  ;;  %v18858_v12 = vcombine.high %v18846_v4, %v18846_v4 }
 0x283   : > { %9046 = vmatpush2.bf16.msra.mxu0 %v15652_v3 }
 0x284   : > { %9087 = vmatpush2.bf16.msra.mxu1 %v15655_v14  ;;  %9047 = vmatprep.subr.bf16.mxu0 %v15660_v15 }
 0x285   : > { %9088 = vmatprep.subr.bf16.mxu1 %v15663_v18 }
 0x287   : > { %9048 = vmatpush2.bf16.msra.mxu0 %v15658_v11 }
 0x288   : > { %9089 = vmatpush2.bf16.msra.mxu1 %v15661_v19  ;;  %9049 = vmatprep.subr.bf16.mxu0 %v15666_v20  ;;  %v15706_v19 = vld [vmem:[%s18143_s23 + $0x1ca4] ss:$16 sps:$4 sm:$0xff]  }
 0x289   : > { %9090 = vmatprep.subr.bf16.mxu1 %v15669_v21  ;;  %v15709_v20 = vld [vmem:[%s18143_s23 + $0x1ea4] ss:$16 sps:$4 sm:$0xff]  }
 0x28b   : > { %9050 = vmatpush2.bf16.msra.mxu0 %v15664_v26 }
 0x28c   : > { %9091 = vmatpush2.bf16.msra.mxu1 %v15667_v27  ;;  %9051 = vmatprep.subr.bf16.mxu0 %v15672_v28  ;;  %v15704_v27 = vld [vmem:[%s18143_s23 + $0x1ca0] ss:$16 sps:$4 sm:$0xff]  }
 0x28d   : > { %9092 = vmatprep.subr.bf16.mxu1 %v15675_v29  ;;  %v15707_v28 = vld [vmem:[%s18143_s23 + $0x1ea0] ss:$16 sps:$4 sm:$0xff]  }
 0x28f   : > { %9052 = vmatpush2.bf16.msra.mxu0 %v15670_v30 }
 0x290   : > { %9093 = vmatpush2.bf16.msra.mxu1 %v15673_v31  ;;  %9053 = vmatprep.subr.bf16.mxu0 %v15678_v32 }
 0x291   : > { %9094 = vmatprep.subr.bf16.mxu1 %v15681_v33  ;;  %v15715_v33 = vld [vmem:[%s18143_s23 + $0x1e84] ss:$16 sps:$4 sm:$0xff]  }
 0x293   : > { %9054 = vmatpush2.bf16.msra.mxu0 %v15676_v34  ;;  %v15710_v34 = vld [vmem:[%s18143_s23 + $0x1c80] ss:$16 sps:$4 sm:$0xff]  }
 0x294   : > { %9095 = vmatpush2.bf16.msra.mxu1 %v15679_v35  ;;  %9055 = vmatprep.subr.bf16.mxu0 %v15684_v22  ;;  %v15713_v35 = vld [vmem:[%s18143_s23 + $0x1e80] ss:$16 sps:$4 sm:$0xff]   ;;  %v15718_v22 = vld [vmem:[%s18143_s23 + $0x1c64] ss:$16 sps:$4 sm:$0xff]  }
 0x295   : > { %9096 = vmatprep.subr.bf16.mxu1 %v15687_v23  ;;  %v15721_v23 = vld [vmem:[%s18143_s23 + $0x1e64] ss:$16 sps:$4 sm:$0xff]  }
 0x297   : > { %9056 = vmatpush2.bf16.msra.mxu0 %v15682_v49  ;;  %v15716_v49 = vld [vmem:[%s18143_s23 + $0x1c60] ss:$16 sps:$4 sm:$0xff]  }
 0x298   : > { %9097 = vmatpush2.bf16.msra.mxu1 %v15685_v53  ;;  %9107 = vmatprep.subr.bf16.mxu0 %v15694_v61  ;;  %v15719_v53 = vld [vmem:[%s18143_s23 + $0x1e60] ss:$16 sps:$4 sm:$0xff]   ;;  %v15724_v61 = vld [vmem:[%s18143_s23 + $0x1c44] ss:$16 sps:$4 sm:$0xff]  }
 0x299   : > { %9148 = vmatprep.subr.bf16.mxu1 %v15697_v50  ;;  %v15727_v50 = vld [vmem:[%s18143_s23 + $0x1e44] ss:$16 sps:$4 sm:$0xff]  }
 0x29a   : > { %v8813_v3 = vpop.f32.mrf.mxu0  ;;  %9058 = vmatmul.mubr.bf16.vlgmr.msra.gmra.mxu0 %v18832_v40 }
 0x29b   : > { %v8854_v14 = vpop.f32.mrf.mxu1  ;;  %9099 = vmatmul.mubr.bf16.vlgmr.msra.gmra.mxu1 %v18836_v0  ;;  %v8814_v15 = vadd.f32 %v8813_v3, %v18765_v9  ;;  %9108 = vmatpush1.bf16.msra.mxu0 %v15692_v62  ;;  %v15722_v62 = vld [vmem:[%s18143_s23 + $0x1c40] ss:$16 sps:$4 sm:$0xff]   ;;  %v15736_v3 = vld [vmem:[%s18143_s23 + $0x1c04] ss:$16 sps:$4 sm:$0xff]  }
 0x29c   : > { %9149 = vmatpush1.bf16.msra.mxu1 %v15695_v63  ;;  %v8815_v18 = vpop.f32.mrf.mxu0  ;;  %9109 = vmatprep.subr.bf16.mxu0 %v15700_v58  ;;  %v15725_v63 = vld [vmem:[%s18143_s23 + $0x1e40] ss:$16 sps:$4 sm:$0xff]   ;;  %v15730_v58 = vld [vmem:[%s18143_s23 + $0x1c24] ss:$16 sps:$4 sm:$0xff]  }
 0x29d   : > { %v8856_v11 = vpop.f32.mrf.mxu1  ;;  %9150 = vmatprep.subr.bf16.mxu1 %v15703_v5  ;;  %v18865_v21 = vadd.f32 %v8854_v14, %v8814_v15  ;;  %v8816_v26 = vadd.f32 %v8815_v18, %v18772_v13  ;;  %9139 = vmatprep.mubr.bf16.mxu0 %v18854_v10  ;;  %v15712_v13 = vld [vmem:[%s18143_s23 + $0x1c84] ss:$16 sps:$4 sm:$0xff]   ;;  %v15734_v15 = vld [vmem:[%s18143_s23 + $0x1c00] ss:$16 sps:$4 sm:$0xff]  }
 0x29e   : > { %9180 = vmatprep.mubr.bf16.mxu1 %v18858_v12  ;;  %v8817_v9 = vpop.f32.mrf.mxu0  ;;  %v15733_v5 = vld [vmem:[%s18143_s23 + $0x1e24] ss:$16 sps:$4 sm:$0xff]   ;;  %v15737_v18 = vld [vmem:[%s18143_s23 + $0x1e00] ss:$16 sps:$4 sm:$0xff]  }
 0x29f   : > { %v8858_v29 = vpop.f32.mrf.mxu1  ;;  %v18872_v30 = vadd.f32 %v8856_v11, %v8816_v26  ;;  %9110 = vmatpush1.bf16.msra.mxu0 %v15698_v8  ;;  %v15728_v8 = vld [vmem:[%s18143_s23 + $0x1c20] ss:$16 sps:$4 sm:$0xff]   ;;  %v15739_v14 = vld [vmem:[%s18143_s23 + $0x1e04] ss:$16 sps:$4 sm:$0xff]  }
 0x2a0   : > { %9151 = vmatpush1.bf16.msra.mxu1 %v15701_v52  ;;  %v8818_v31 = vpop.f32.mrf.mxu0  ;;  %9111 = vmatprep.subr.bf16.mxu0 %v15706_v19  ;;  %v15731_v52 = vld [vmem:[%s18143_s23 + $0x1e20] ss:$16 sps:$4 sm:$0xff]   ;;  %v15742_v11 = vld [vmem:[%s18143_s23 + $0x1de4] ss:$16 sps:$4 sm:$0xff]  }
 0x2a1   : > { %v8859_v32 = vpop.f32.mrf.mxu1  ;;  %9152 = vmatprep.subr.bf16.mxu1 %v15709_v20  ;;  %v15745_v19 = vld [vmem:[%s18143_s23 + $0x1fe4] ss:$16 sps:$4 sm:$0xff]   ;;  %v15740_v20 = vld [vmem:[%s18143_s23 + $0x1de0] ss:$16 sps:$4 sm:$0xff]  }
 0x2a2   : > { %v15743_v26 = vld [vmem:[%s18143_s23 + $0x1fe0] ss:$16 sps:$4 sm:$0xff]   ;;  %v15754_v31 = vld [vmem:[%s18143_s23 + $0x1da4] ss:$16 sps:$4 sm:$0xff]  }
 0x2a3   : > { %9112 = vmatpush1.bf16.msra.mxu0 %v15704_v27  ;;  %v15748_v27 = vld [vmem:[%s18143_s23 + $0x1dc4] ss:$16 sps:$4 sm:$0xff]   ;;  %v15746_v9 = vld [vmem:[%s18143_s23 + $0x1dc0] ss:$16 sps:$4 sm:$0xff]  }
 0x2a4   : > { %9153 = vmatpush1.bf16.msra.mxu1 %v15707_v28  ;;  %9113 = vmatprep.subr.bf16.mxu0 %v15712_v13  ;;  %v15751_v28 = vld [vmem:[%s18143_s23 + $0x1fc4] ss:$16 sps:$4 sm:$0xff]   ;;  %v15749_v29 = vld [vmem:[%s18143_s23 + $0x1fc0] ss:$16 sps:$4 sm:$0xff]  }
 0x2a5   : > { %9154 = vmatprep.subr.bf16.mxu1 %v15715_v33  ;;  %v15757_v32 = vld [vmem:[%s18143_s23 + $0x1fa4] ss:$16 sps:$4 sm:$0xff]   ;;  %v15752_v13 = vld [vmem:[%s18143_s23 + $0x1da0] ss:$16 sps:$4 sm:$0xff]  }
 0x2a6   : > { %v15755_v33 = vld [vmem:[%s18143_s23 + $0x1fa0] ss:$16 sps:$4 sm:$0xff]  }
 0x2a7   : > { %9114 = vmatpush1.bf16.msra.mxu0 %v15710_v34  ;;  %v15760_v34 = vld [vmem:[%s18143_s23 + $0x1d84] ss:$16 sps:$4 sm:$0xff]  }
 0x2a8   : > { %9155 = vmatpush1.bf16.msra.mxu1 %v15713_v35  ;;  %9115 = vmatprep.subr.bf16.mxu0 %v15718_v22  ;;  %v15763_v35 = vld [vmem:[%s18143_s23 + $0x1f84] ss:$16 sps:$4 sm:$0xff]   ;;  %v15758_v22 = vld [vmem:[%s18143_s23 + $0x1d80] ss:$16 sps:$4 sm:$0xff]  }
 0x2a9   : > { %9156 = vmatprep.subr.bf16.mxu1 %v15721_v23  ;;  %v15761_v23 = vld [vmem:[%s18143_s23 + $0x1f80] ss:$16 sps:$4 sm:$0xff]  }
 0x2ab   : > { %9116 = vmatpush1.bf16.msra.mxu0 %v15716_v49  ;;  %v15766_v49 = vld [vmem:[%s18143_s23 + $0x1d64] ss:$16 sps:$4 sm:$0xff]  }
 0x2ac   : > { %9157 = vmatpush1.bf16.msra.mxu1 %v15719_v53  ;;  %9117 = vmatprep.subr.bf16.mxu0 %v15724_v61  ;;  %v15769_v53 = vld [vmem:[%s18143_s23 + $0x1f64] ss:$16 sps:$4 sm:$0xff]   ;;  %v15764_v61 = vld [vmem:[%s18143_s23 + $0x1d60] ss:$16 sps:$4 sm:$0xff]  }
 0x2ad   : > { %9158 = vmatprep.subr.bf16.mxu1 %v15727_v50  ;;  %v15767_v50 = vld [vmem:[%s18143_s23 + $0x1f60] ss:$16 sps:$4 sm:$0xff]  }
 0x2af   : > { %9118 = vmatpush1.bf16.msra.mxu0 %v15722_v62  ;;  %v15772_v62 = vld [vmem:[%s18143_s23 + $0x1d44] ss:$16 sps:$4 sm:$0xff]  }
 0x2b0   : > { %9159 = vmatpush1.bf16.msra.mxu1 %v15725_v63  ;;  %9119 = vmatprep.subr.bf16.mxu0 %v15730_v58  ;;  %v15775_v63 = vld [vmem:[%s18143_s23 + $0x1f44] ss:$16 sps:$4 sm:$0xff]   ;;  %v15770_v58 = vld [vmem:[%s18143_s23 + $0x1d40] ss:$16 sps:$4 sm:$0xff]  }
 0x2b1   : > { %9160 = vmatprep.subr.bf16.mxu1 %v15733_v5  ;;  %v15773_v5 = vld [vmem:[%s18143_s23 + $0x1f40] ss:$16 sps:$4 sm:$0xff]  }
 0x2b3   : > { %9120 = vmatpush1.bf16.msra.mxu0 %v15728_v8  ;;  %v15778_v8 = vld [vmem:[%s18143_s23 + $0x1d24] ss:$16 sps:$4 sm:$0xff]  }
 0x2b4   : > { %9161 = vmatpush1.bf16.msra.mxu1 %v15731_v52  ;;  %9121 = vmatprep.subr.bf16.mxu0 %v15736_v3  ;;  %v15781_v52 = vld [vmem:[%s18143_s23 + $0x1f24] ss:$16 sps:$4 sm:$0xff]   ;;  %v15776_v3 = vld [vmem:[%s18143_s23 + $0x1d20] ss:$16 sps:$4 sm:$0xff]  }
 0x2b5   : > { %9162 = vmatprep.subr.bf16.mxu1 %v15739_v14  ;;  %v15779_v14 = vld [vmem:[%s18143_s23 + $0x1f20] ss:$16 sps:$4 sm:$0xff]  }
 0x2b7   : > { %9122 = vmatpush1.bf16.msra.mxu0 %v15734_v15  ;;  %v15784_v15 = vld [vmem:[%s18143_s23 + $0x1d04] ss:$16 sps:$4 sm:$0xff]  }
 0x2b8   : > { %9163 = vmatpush1.bf16.msra.mxu1 %v15737_v18  ;;  %9123 = vmatprep.subr.bf16.mxu0 %v15742_v11  ;;  %v15787_v18 = vld [vmem:[%s18143_s23 + $0x1f04] ss:$16 sps:$4 sm:$0xff]   ;;  %v15782_v11 = vld [vmem:[%s18143_s23 + $0x1d00] ss:$16 sps:$4 sm:$0xff]  }
 0x2b9   : > { %9164 = vmatprep.subr.bf16.mxu1 %v15745_v19  ;;  %v15785_v19 = vld [vmem:[%s18143_s23 + $0x1f00] ss:$16 sps:$4 sm:$0xff]  }
 0x2bb   : > { %9124 = vmatpush2.bf16.msra.mxu0 %v15740_v20  ;;  %v15794_v20 = vld [vmem:[%s18143_s23 + $0x20e4] ss:$16 sps:$4 sm:$0xff]  }
 0x2bc   : > { %9165 = vmatpush2.bf16.msra.mxu1 %v15743_v26  ;;  %9125 = vmatprep.subr.bf16.mxu0 %v15748_v27  ;;  %v15797_v26 = vld [vmem:[%s18143_s23 + $0x22e4] ss:$16 sps:$4 sm:$0xff]   ;;  %v15792_v27 = vld [vmem:[%s18143_s23 + $0x20e0] ss:$16 sps:$4 sm:$0xff]  }
 0x2bd   : > { %9166 = vmatprep.subr.bf16.mxu1 %v15751_v28  ;;  %v15795_v28 = vld [vmem:[%s18143_s23 + $0x22e0] ss:$16 sps:$4 sm:$0xff]  }
 0x2bf   : > { %9126 = vmatpush2.bf16.msra.mxu0 %v15746_v9  ;;  %v18932_v9 = vcombine.low %v18841_v2, %v18841_v2  ;;  %v15800_v2 = vld [vmem:[%s18143_s23 + $0x20c4] ss:$16 sps:$4 sm:$0xff]  }
 0x2c0   : > { %9167 = vmatpush2.bf16.msra.mxu1 %v15749_v29  ;;  %9127 = vmatprep.subr.bf16.mxu0 %v15754_v31  ;;  %v18936_v29 = vcombine.low %v18846_v4, %v18846_v4  ;;  %v18941_v31 = vld [vmem:[%s20145_s20 + $0x80] sm:$0xff] }
 0x2c1   : > { %9168 = vmatprep.subr.bf16.mxu1 %v15757_v32  ;;  %v18946_v32 = vld [vmem:[%s20145_s20 + $0x88] sm:$0xff]  ;;  %v15801_v4 = vld [vmem:[%s18143_s23 + $0x22c0] ss:$16 sps:$4 sm:$0xff]  }
 0x2c3   : > { %9128 = vmatpush2.bf16.msra.mxu0 %v15752_v13  ;;  %v15803_v13 = vld [vmem:[%s18143_s23 + $0x22c4] ss:$16 sps:$4 sm:$0xff]  }
 0x2c4   : > { %9169 = vmatpush2.bf16.msra.mxu1 %v15755_v33  ;;  %9129 = vmatprep.subr.bf16.mxu0 %v15760_v34  ;;  %v15798_v33 = vld [vmem:[%s18143_s23 + $0x20c0] ss:$16 sps:$4 sm:$0xff]   ;;  %v18954_v34 = vcombine.high %v18941_v31, %v18941_v31 }
 0x2c5   : > { %9170 = vmatprep.subr.bf16.mxu1 %v15763_v35  ;;  %v18958_v35 = vcombine.high %v18946_v32, %v18946_v32 }
 0x2c7   : > { %9130 = vmatpush2.bf16.msra.mxu0 %v15758_v22 }
 0x2c8   : > { %9171 = vmatpush2.bf16.msra.mxu1 %v15761_v23  ;;  %9131 = vmatprep.subr.bf16.mxu0 %v15766_v49 }
 0x2c9   : > { %9172 = vmatprep.subr.bf16.mxu1 %v15769_v53 }
 0x2cb   : > { %9132 = vmatpush2.bf16.msra.mxu0 %v15764_v61 }
 0x2cc   : > { %9173 = vmatpush2.bf16.msra.mxu1 %v15767_v50  ;;  %9133 = vmatprep.subr.bf16.mxu0 %v15772_v62  ;;  %v15806_v50 = vld [vmem:[%s18143_s23 + $0x20a4] ss:$16 sps:$4 sm:$0xff]  }
 0x2cd   : > { %9174 = vmatprep.subr.bf16.mxu1 %v15775_v63  ;;  %v15809_v62 = vld [vmem:[%s18143_s23 + $0x22a4] ss:$16 sps:$4 sm:$0xff]  }
 0x2cf   : > { %9134 = vmatpush2.bf16.msra.mxu0 %v15770_v58 }
 0x2d0   : > { %9175 = vmatpush2.bf16.msra.mxu1 %v15773_v5  ;;  %9135 = vmatprep.subr.bf16.mxu0 %v15778_v8  ;;  %v15804_v5 = vld [vmem:[%s18143_s23 + $0x20a0] ss:$16 sps:$4 sm:$0xff]  }
 0x2d1   : > { %9176 = vmatprep.subr.bf16.mxu1 %v15781_v52  ;;  %v15807_v8 = vld [vmem:[%s18143_s23 + $0x22a0] ss:$16 sps:$4 sm:$0xff]  }
 0x2d3   : > { %9136 = vmatpush2.bf16.msra.mxu0 %v15776_v3 }
 0x2d4   : > { %9177 = vmatpush2.bf16.msra.mxu1 %v15779_v14  ;;  %9137 = vmatprep.subr.bf16.mxu0 %v15784_v15 }
 0x2d5   : > { %9178 = vmatprep.subr.bf16.mxu1 %v15787_v18  ;;  %v15815_v18 = vld [vmem:[%s18143_s23 + $0x2284] ss:$16 sps:$4 sm:$0xff]  }
 0x2d7   : > { %9138 = vmatpush2.bf16.msra.mxu0 %v15782_v11  ;;  %v15810_v11 = vld [vmem:[%s18143_s23 + $0x2080] ss:$16 sps:$4 sm:$0xff]  }
 0x2d8   : > { %9179 = vmatpush2.bf16.msra.mxu1 %v15785_v19  ;;  %9189 = vmatprep.subr.bf16.mxu0 %v15794_v20  ;;  %v15813_v19 = vld [vmem:[%s18143_s23 + $0x2280] ss:$16 sps:$4 sm:$0xff]   ;;  %v15818_v20 = vld [vmem:[%s18143_s23 + $0x2064] ss:$16 sps:$4 sm:$0xff]  }
 0x2d9   : > { %9230 = vmatprep.subr.bf16.mxu1 %v15797_v26  ;;  %v15821_v26 = vld [vmem:[%s18143_s23 + $0x2264] ss:$16 sps:$4 sm:$0xff]  }
 0x2da   : > { %v8895_v22 = vpop.f32.mrf.mxu0  ;;  %9140 = vmatmul.mubr.bf16.vlgmr.msra.gmra.mxu0 %v18932_v9 }
 0x2db   : > { %v8936_v23 = vpop.f32.mrf.mxu1  ;;  %9181 = vmatmul.mubr.bf16.vlgmr.msra.gmra.mxu1 %v18936_v29  ;;  %v8896_v49 = vadd.f32 %v8895_v22, %v18865_v21  ;;  %9190 = vmatpush1.bf16.msra.mxu0 %v15792_v27  ;;  %v15816_v27 = vld [vmem:[%s18143_s23 + $0x2060] ss:$16 sps:$4 sm:$0xff]   ;;  %v15830_v22 = vld [vmem:[%s18143_s23 + $0x2024] ss:$16 sps:$4 sm:$0xff]  }
 0x2dc   : > { %9231 = vmatpush1.bf16.msra.mxu1 %v15795_v28  ;;  %v8897_v53 = vpop.f32.mrf.mxu0  ;;  %9191 = vmatprep.subr.bf16.mxu0 %v15800_v2  ;;  %v15819_v28 = vld [vmem:[%s18143_s23 + $0x2260] ss:$16 sps:$4 sm:$0xff]   ;;  %v15824_v2 = vld [vmem:[%s18143_s23 + $0x2044] ss:$16 sps:$4 sm:$0xff]  }
 0x2dd   : > { %v8938_v61 = vpop.f32.mrf.mxu1  ;;  %9232 = vmatprep.subr.bf16.mxu1 %v15803_v13  ;;  %v18965_v63 = vadd.f32 %v8936_v23, %v8896_v49  ;;  %v8898_v58 = vadd.f32 %v8897_v53, %v18872_v30  ;;  %9221 = vmatprep.mubr.bf16.mxu0 %v18954_v34  ;;  %v15812_v30 = vld [vmem:[%s18143_s23 + $0x2084] ss:$16 sps:$4 sm:$0xff]   ;;  %v15828_v49 = vld [vmem:[%s18143_s23 + $0x2020] ss:$16 sps:$4 sm:$0xff]  }
 0x2de   : > { %9262 = vmatprep.mubr.bf16.mxu1 %v18958_v35  ;;  %v8899_v21 = vpop.f32.mrf.mxu0  ;;  %v15827_v13 = vld [vmem:[%s18143_s23 + $0x2244] ss:$16 sps:$4 sm:$0xff]   ;;  %v15831_v53 = vld [vmem:[%s18143_s23 + $0x2220] ss:$16 sps:$4 sm:$0xff]  }
 0x2df   : > { %v8940_v52 = vpop.f32.mrf.mxu1  ;;  %v18972_v3 = vadd.f32 %v8938_v61, %v8898_v58  ;;  %9192 = vmatpush1.bf16.msra.mxu0 %v15798_v33  ;;  %v15822_v33 = vld [vmem:[%s18143_s23 + $0x2040] ss:$16 sps:$4 sm:$0xff]   ;;  %v15833_v23 = vld [vmem:[%s18143_s23 + $0x2224] ss:$16 sps:$4 sm:$0xff]  }
 0x2e0   : > { %9233 = vmatpush1.bf16.msra.mxu1 %v15801_v4  ;;  %v8900_v14 = vpop.f32.mrf.mxu0  ;;  %9193 = vmatprep.subr.bf16.mxu0 %v15806_v50  ;;  %v15825_v4 = vld [vmem:[%s18143_s23 + $0x2240] ss:$16 sps:$4 sm:$0xff]   ;;  %v15836_v61 = vld [vmem:[%s18143_s23 + $0x2004] ss:$16 sps:$4 sm:$0xff]  }
 0x2e1   : > { %v8941_v15 = vpop.f32.mrf.mxu1  ;;  %9234 = vmatprep.subr.bf16.mxu1 %v15809_v62  ;;  %v15839_v50 = vld [vmem:[%s18143_s23 + $0x2204] ss:$16 sps:$4 sm:$0xff]   ;;  %v15834_v62 = vld [vmem:[%s18143_s23 + $0x2000] ss:$16 sps:$4 sm:$0xff]  }
 0x2e2   : > { %v15837_v58 = vld [vmem:[%s18143_s23 + $0x2200] ss:$16 sps:$4 sm:$0xff]   ;;  %v15848_v14 = vld [vmem:[%s18143_s23 + $0x21c4] ss:$16 sps:$4 sm:$0xff]  }
 0x2e3   : > { %9194 = vmatpush1.bf16.msra.mxu0 %v15804_v5  ;;  %v15842_v5 = vld [vmem:[%s18143_s23 + $0x21e4] ss:$16 sps:$4 sm:$0xff]   ;;  %v15840_v21 = vld [vmem:[%s18143_s23 + $0x21e0] ss:$16 sps:$4 sm:$0xff]  }
 0x2e4   : > { %9235 = vmatpush1.bf16.msra.mxu1 %v15807_v8  ;;  %9195 = vmatprep.subr.bf16.mxu0 %v15812_v30  ;;  %v15845_v8 = vld [vmem:[%s18143_s23 + $0x23e4] ss:$16 sps:$4 sm:$0xff]   ;;  %v15843_v52 = vld [vmem:[%s18143_s23 + $0x23e0] ss:$16 sps:$4 sm:$0xff]  }
 0x2e5   : > { %9236 = vmatprep.subr.bf16.mxu1 %v15815_v18  ;;  %v15851_v15 = vld [vmem:[%s18143_s23 + $0x23c4] ss:$16 sps:$4 sm:$0xff]   ;;  %v15846_v30 = vld [vmem:[%s18143_s23 + $0x21c0] ss:$16 sps:$4 sm:$0xff]  }
 0x2e6   : > { %v15849_v18 = vld [vmem:[%s18143_s23 + $0x23c0] ss:$16 sps:$4 sm:$0xff]  }
 0x2e7   : > { %9196 = vmatpush1.bf16.msra.mxu0 %v15810_v11  ;;  %v15854_v11 = vld [vmem:[%s18143_s23 + $0x21a4] ss:$16 sps:$4 sm:$0xff]  }
 0x2e8   : > { %9237 = vmatpush1.bf16.msra.mxu1 %v15813_v19  ;;  %9197 = vmatprep.subr.bf16.mxu0 %v15818_v20  ;;  %v15857_v19 = vld [vmem:[%s18143_s23 + $0x23a4] ss:$16 sps:$4 sm:$0xff]   ;;  %v15852_v20 = vld [vmem:[%s18143_s23 + $0x21a0] ss:$16 sps:$4 sm:$0xff]  }
 0x2e9   : > { %9238 = vmatprep.subr.bf16.mxu1 %v15821_v26  ;;  %v15855_v26 = vld [vmem:[%s18143_s23 + $0x23a0] ss:$16 sps:$4 sm:$0xff]  }
 0x2eb   : > { %9198 = vmatpush1.bf16.msra.mxu0 %v15816_v27  ;;  %v15860_v27 = vld [vmem:[%s18143_s23 + $0x2184] ss:$16 sps:$4 sm:$0xff]  }
 0x2ec   : > { %9239 = vmatpush1.bf16.msra.mxu1 %v15819_v28  ;;  %9199 = vmatprep.subr.bf16.mxu0 %v15824_v2  ;;  %v15863_v28 = vld [vmem:[%s18143_s23 + $0x2384] ss:$16 sps:$4 sm:$0xff]   ;;  %v15858_v2 = vld [vmem:[%s18143_s23 + $0x2180] ss:$16 sps:$4 sm:$0xff]  }
 0x2ed   : > { %9240 = vmatprep.subr.bf16.mxu1 %v15827_v13  ;;  %v15861_v13 = vld [vmem:[%s18143_s23 + $0x2380] ss:$16 sps:$4 sm:$0xff]  }
 0x2ef   : > { %9200 = vmatpush1.bf16.msra.mxu0 %v15822_v33  ;;  %v15866_v33 = vld [vmem:[%s18143_s23 + $0x2164] ss:$16 sps:$4 sm:$0xff]  }
 0x2f0   : > { %9241 = vmatpush1.bf16.msra.mxu1 %v15825_v4  ;;  %9201 = vmatprep.subr.bf16.mxu0 %v15830_v22  ;;  %v15869_v4 = vld [vmem:[%s18143_s23 + $0x2364] ss:$16 sps:$4 sm:$0xff]   ;;  %v15864_v22 = vld [vmem:[%s18143_s23 + $0x2160] ss:$16 sps:$4 sm:$0xff]  }
 0x2f1   : > { %9242 = vmatprep.subr.bf16.mxu1 %v15833_v23  ;;  %v15867_v23 = vld [vmem:[%s18143_s23 + $0x2360] ss:$16 sps:$4 sm:$0xff]  }
 0x2f3   : > { %9202 = vmatpush1.bf16.msra.mxu0 %v15828_v49  ;;  %v15872_v49 = vld [vmem:[%s18143_s23 + $0x2144] ss:$16 sps:$4 sm:$0xff]  }
 0x2f4   : > { %9243 = vmatpush1.bf16.msra.mxu1 %v15831_v53  ;;  %9203 = vmatprep.subr.bf16.mxu0 %v15836_v61  ;;  %v15875_v53 = vld [vmem:[%s18143_s23 + $0x2344] ss:$16 sps:$4 sm:$0xff]   ;;  %v15870_v61 = vld [vmem:[%s18143_s23 + $0x2140] ss:$16 sps:$4 sm:$0xff]  }
 0x2f5   : > { %9244 = vmatprep.subr.bf16.mxu1 %v15839_v50  ;;  %v15873_v50 = vld [vmem:[%s18143_s23 + $0x2340] ss:$16 sps:$4 sm:$0xff]  }
 0x2f7   : > { %9204 = vmatpush1.bf16.msra.mxu0 %v15834_v62  ;;  %v15878_v62 = vld [vmem:[%s18143_s23 + $0x2124] ss:$16 sps:$4 sm:$0xff]  }
 0x2f8   : > { %9245 = vmatpush1.bf16.msra.mxu1 %v15837_v58  ;;  %9205 = vmatprep.subr.bf16.mxu0 %v15842_v5  ;;  %v15881_v58 = vld [vmem:[%s18143_s23 + $0x2324] ss:$16 sps:$4 sm:$0xff]   ;;  %v15876_v5 = vld [vmem:[%s18143_s23 + $0x2120] ss:$16 sps:$4 sm:$0xff]  }
 0x2f9   : > { %9246 = vmatprep.subr.bf16.mxu1 %v15845_v8  ;;  %v15879_v8 = vld [vmem:[%s18143_s23 + $0x2320] ss:$16 sps:$4 sm:$0xff]  }
 0x2fb   : > { %9206 = vmatpush2.bf16.msra.mxu0 %v15840_v21  ;;  %v15884_v21 = vld [vmem:[%s18143_s23 + $0x2104] ss:$16 sps:$4 sm:$0xff]  }
 0x2fc   : > { %9247 = vmatpush2.bf16.msra.mxu1 %v15843_v52  ;;  %9207 = vmatprep.subr.bf16.mxu0 %v15848_v14  ;;  %v15887_v52 = vld [vmem:[%s18143_s23 + $0x2304] ss:$16 sps:$4 sm:$0xff]   ;;  %v15882_v14 = vld [vmem:[%s18143_s23 + $0x2100] ss:$16 sps:$4 sm:$0xff]  }
 0x2fd   : > { %9248 = vmatprep.subr.bf16.mxu1 %v15851_v15  ;;  %v15885_v15 = vld [vmem:[%s18143_s23 + $0x2300] ss:$16 sps:$4 sm:$0xff]  }
 0x2ff   : > { %9208 = vmatpush2.bf16.msra.mxu0 %v15846_v30  ;;  %v15894_v30 = vld [vmem:[%s18143_s23 + $0x24e4] ss:$16 sps:$4 sm:$0xff]  }
 0x300   : > { %9249 = vmatpush2.bf16.msra.mxu1 %v15849_v18  ;;  %9209 = vmatprep.subr.bf16.mxu0 %v15854_v11  ;;  %v15897_v18 = vld [vmem:[%s18143_s23 + $0x26e4] ss:$16 sps:$4 sm:$0xff]  }
 0x301   : > { %9250 = vmatprep.subr.bf16.mxu1 %v15857_v19  ;;  %v19031_v11 = vld [vmem:[%s20145_s20 + $0x90] sm:$0xff]  ;;  %v19036_v19 = vld [vmem:[%s20145_s20 + $0x98] sm:$0xff] }
 0x303   : > { %9210 = vmatpush2.bf16.msra.mxu0 %v15852_v20  ;;  %v15892_v20 = vld [vmem:[%s18143_s23 + $0x24e0] ss:$16 sps:$4 sm:$0xff]  }
 0x304   : > { %9251 = vmatpush2.bf16.msra.mxu1 %v15855_v26  ;;  %9211 = vmatprep.subr.bf16.mxu0 %v15860_v27  ;;  %v15895_v26 = vld [vmem:[%s18143_s23 + $0x26e0] ss:$16 sps:$4 sm:$0xff]   ;;  %v19042_v27 = vcombine.low %v18941_v31, %v18941_v31  ;;  %v19058_v31 = vcombine.high %v19036_v19, %v19036_v19 }
 0x305   : > { %9252 = vmatprep.subr.bf16.mxu1 %v15863_v28  ;;  %v19046_v28 = vcombine.low %v18946_v32, %v18946_v32 }
 0x307   : > { %9212 = vmatpush2.bf16.msra.mxu0 %v15858_v2  ;;  %v15900_v2 = vld [vmem:[%s18143_s23 + $0x24c4] ss:$16 sps:$4 sm:$0xff]  }
 0x308   : > { %9253 = vmatpush2.bf16.msra.mxu1 %v15861_v13  ;;  %9213 = vmatprep.subr.bf16.mxu0 %v15866_v33  ;;  %v15903_v13 = vld [vmem:[%s18143_s23 + $0x26c4] ss:$16 sps:$4 sm:$0xff]   ;;  %v15898_v33 = vld [vmem:[%s18143_s23 + $0x24c0] ss:$16 sps:$4 sm:$0xff]  }
 0x309   : > { %9254 = vmatprep.subr.bf16.mxu1 %v15869_v4  ;;  %v15901_v4 = vld [vmem:[%s18143_s23 + $0x26c0] ss:$16 sps:$4 sm:$0xff]  }
 0x30b   : > { %9214 = vmatpush2.bf16.msra.mxu0 %v15864_v22  ;;  %v19054_v22 = vcombine.high %v19031_v11, %v19031_v11 }
 0x30c   : > { %9255 = vmatpush2.bf16.msra.mxu1 %v15867_v23  ;;  %9215 = vmatprep.subr.bf16.mxu0 %v15872_v49 }
 0x30d   : > { %9256 = vmatprep.subr.bf16.mxu1 %v15875_v53 }
 0x30f   : > { %9216 = vmatpush2.bf16.msra.mxu0 %v15870_v61 }
 0x310   : > { %9257 = vmatpush2.bf16.msra.mxu1 %v15873_v50  ;;  %9217 = vmatprep.subr.bf16.mxu0 %v15878_v62  ;;  %v15906_v50 = vld [vmem:[%s18143_s23 + $0x24a4] ss:$16 sps:$4 sm:$0xff]  }
 0x311   : > { %9258 = vmatprep.subr.bf16.mxu1 %v15881_v58  ;;  %v15909_v62 = vld [vmem:[%s18143_s23 + $0x26a4] ss:$16 sps:$4 sm:$0xff]  }
 0x313   : > { %9218 = vmatpush2.bf16.msra.mxu0 %v15876_v5 }
 0x314   : > { %9259 = vmatpush2.bf16.msra.mxu1 %v15879_v8  ;;  %9219 = vmatprep.subr.bf16.mxu0 %v15884_v21  ;;  %v15904_v8 = vld [vmem:[%s18143_s23 + $0x24a0] ss:$16 sps:$4 sm:$0xff]  }
 0x315   : > { %9260 = vmatprep.subr.bf16.mxu1 %v15887_v52  ;;  %v15907_v21 = vld [vmem:[%s18143_s23 + $0x26a0] ss:$16 sps:$4 sm:$0xff]  }
 0x317   : > { %9220 = vmatpush2.bf16.msra.mxu0 %v15882_v14 }
 0x318   : > { %9261 = vmatpush2.bf16.msra.mxu1 %v15885_v15  ;;  %9271 = vmatprep.subr.bf16.mxu0 %v15894_v30  ;;  %v15912_v30 = vld [vmem:[%s18143_s23 + $0x2484] ss:$16 sps:$4 sm:$0xff]  }
 0x319   : > { %9312 = vmatprep.subr.bf16.mxu1 %v15897_v18  ;;  %v15915_v18 = vld [vmem:[%s18143_s23 + $0x2684] ss:$16 sps:$4 sm:$0xff]  }
 0x31a   : > { %v8977_v32 = vpop.f32.mrf.mxu0  ;;  %9222 = vmatmul.mubr.bf16.vlgmr.msra.gmra.mxu0 %v19042_v27 }
 0x31b   : > { %v9018_v23 = vpop.f32.mrf.mxu1  ;;  %9263 = vmatmul.mubr.bf16.vlgmr.msra.gmra.mxu1 %v19046_v28  ;;  %v8978_v49 = vadd.f32 %v8977_v32, %v18965_v63  ;;  %9272 = vmatpush1.bf16.msra.mxu0 %v15892_v20  ;;  %v15910_v20 = vld [vmem:[%s18143_s23 + $0x2480] ss:$16 sps:$4 sm:$0xff]   ;;  %v15924_v32 = vld [vmem:[%s18143_s23 + $0x2444] ss:$16 sps:$4 sm:$0xff]  }
 0x31c   : > { %9313 = vmatpush1.bf16.msra.mxu1 %v15895_v26  ;;  %v8979_v53 = vpop.f32.mrf.mxu0  ;;  %9273 = vmatprep.subr.bf16.mxu0 %v15900_v2  ;;  %v15913_v26 = vld [vmem:[%s18143_s23 + $0x2680] ss:$16 sps:$4 sm:$0xff]   ;;  %v15918_v2 = vld [vmem:[%s18143_s23 + $0x2464] ss:$16 sps:$4 sm:$0xff]  }
 0x31d   : > { %v9020_v61 = vpop.f32.mrf.mxu1  ;;  %9314 = vmatprep.subr.bf16.mxu1 %v15903_v13  ;;  %v19065_v58 = vadd.f32 %v9018_v23, %v8978_v49  ;;  %v8980_v5 = vadd.f32 %v8979_v53, %v18972_v3  ;;  %9303 = vmatprep.mubr.bf16.mxu0 %v19054_v22  ;;  %v15921_v13 = vld [vmem:[%s18143_s23 + $0x2664] ss:$16 sps:$4 sm:$0xff]   ;;  %v15922_v49 = vld [vmem:[%s18143_s23 + $0x2440] ss:$16 sps:$4 sm:$0xff]  }
 0x31e   : > { %9344 = vmatprep.mubr.bf16.mxu1 %v19058_v31  ;;  %v8981_v63 = vpop.f32.mrf.mxu0  ;;  %v15927_v23 = vld [vmem:[%s18143_s23 + $0x2644] ss:$16 sps:$4 sm:$0xff]   ;;  %v15925_v53 = vld [vmem:[%s18143_s23 + $0x2640] ss:$16 sps:$4 sm:$0xff]  }
 0x31f   : > { %v9022_v52 = vpop.f32.mrf.mxu1  ;;  %v19072_v14 = vadd.f32 %v9020_v61, %v8980_v5  ;;  %9274 = vmatpush1.bf16.msra.mxu0 %v15898_v33  ;;  %v15916_v33 = vld [vmem:[%s18143_s23 + $0x2460] ss:$16 sps:$4 sm:$0xff]   ;;  %v15930_v61 = vld [vmem:[%s18143_s23 + $0x2424] ss:$16 sps:$4 sm:$0xff]  }
 0x320   : > { %9315 = vmatpush1.bf16.msra.mxu1 %v15901_v4  ;;  %v8982_v15 = vpop.f32.mrf.mxu0  ;;  %9275 = vmatprep.subr.bf16.mxu0 %v15906_v50  ;;  %v15919_v4 = vld [vmem:[%s18143_s23 + $0x2660] ss:$16 sps:$4 sm:$0xff]   ;;  %v15933_v50 = vld [vmem:[%s18143_s23 + $0x2624] ss:$16 sps:$4 sm:$0xff]  }
 0x321   : > { %v9023_v3 = vpop.f32.mrf.mxu1  ;;  %9316 = vmatprep.subr.bf16.mxu1 %v15909_v62  ;;  %v15928_v62 = vld [vmem:[%s18143_s23 + $0x2420] ss:$16 sps:$4 sm:$0xff]   ;;  %v15942_v15 = vld [vmem:[%s18143_s23 + $0x25e4] ss:$16 sps:$4 sm:$0xff]  }
 0x322   : > { %v15931_v5 = vld [vmem:[%s18143_s23 + $0x2620] ss:$16 sps:$4 sm:$0xff]   ;;  %v15945_v3 = vld [vmem:[%s18143_s23 + $0x27e4] ss:$16 sps:$4 sm:$0xff]  }
 0x323   : > { %9276 = vmatpush1.bf16.msra.mxu0 %v15904_v8  ;;  %v15936_v8 = vld [vmem:[%s18143_s23 + $0x2404] ss:$16 sps:$4 sm:$0xff]   ;;  %v15934_v63 = vld [vmem:[%s18143_s23 + $0x2400] ss:$16 sps:$4 sm:$0xff]  }
 0x324   : > { %9317 = vmatpush1.bf16.msra.mxu1 %v15907_v21  ;;  %9277 = vmatprep.subr.bf16.mxu0 %v15912_v30  ;;  %v15939_v21 = vld [vmem:[%s18143_s23 + $0x2604] ss:$16 sps:$4 sm:$0xff]   ;;  %v15937_v52 = vld [vmem:[%s18143_s23 + $0x2600] ss:$16 sps:$4 sm:$0xff]  }
 0x325   : > { %9318 = vmatprep.subr.bf16.mxu1 %v15915_v18  ;;  %v15940_v30 = vld [vmem:[%s18143_s23 + $0x25e0] ss:$16 sps:$4 sm:$0xff]  }
 0x326   : > { %v15943_v18 = vld [vmem:[%s18143_s23 + $0x27e0] ss:$16 sps:$4 sm:$0xff]  }
 0x327   : > { %9278 = vmatpush1.bf16.msra.mxu0 %v15910_v20  ;;  %v15948_v20 = vld [vmem:[%s18143_s23 + $0x25c4] ss:$16 sps:$4 sm:$0xff]  }
 0x328   : > { %9319 = vmatpush1.bf16.msra.mxu1 %v15913_v26  ;;  %9279 = vmatprep.subr.bf16.mxu0 %v15918_v2  ;;  %v15951_v26 = vld [vmem:[%s18143_s23 + $0x27c4] ss:$16 sps:$4 sm:$0xff]   ;;  %v15946_v2 = vld [vmem:[%s18143_s23 + $0x25c0] ss:$16 sps:$4 sm:$0xff]  }
 0x329   : > { %9320 = vmatprep.subr.bf16.mxu1 %v15921_v13  ;;  %v15949_v13 = vld [vmem:[%s18143_s23 + $0x27c0] ss:$16 sps:$4 sm:$0xff]  }
 0x32b   : > { %9280 = vmatpush1.bf16.msra.mxu0 %v15916_v33  ;;  %v15954_v33 = vld [vmem:[%s18143_s23 + $0x25a4] ss:$16 sps:$4 sm:$0xff]  }
 0x32c   : > { %9321 = vmatpush1.bf16.msra.mxu1 %v15919_v4  ;;  %9281 = vmatprep.subr.bf16.mxu0 %v15924_v32  ;;  %v15957_v4 = vld [vmem:[%s18143_s23 + $0x27a4] ss:$16 sps:$4 sm:$0xff]   ;;  %v15952_v32 = vld [vmem:[%s18143_s23 + $0x25a0] ss:$16 sps:$4 sm:$0xff]  }
 0x32d   : > { %9322 = vmatprep.subr.bf16.mxu1 %v15927_v23  ;;  %v15955_v23 = vld [vmem:[%s18143_s23 + $0x27a0] ss:$16 sps:$4 sm:$0xff]  }
 0x32f   : > { %9282 = vmatpush1.bf16.msra.mxu0 %v15922_v49  ;;  %v15960_v49 = vld [vmem:[%s18143_s23 + $0x2584] ss:$16 sps:$4 sm:$0xff]  }
 0x330   : > { %9323 = vmatpush1.bf16.msra.mxu1 %v15925_v53  ;;  %9283 = vmatprep.subr.bf16.mxu0 %v15930_v61  ;;  %v15963_v53 = vld [vmem:[%s18143_s23 + $0x2784] ss:$16 sps:$4 sm:$0xff]   ;;  %v15958_v61 = vld [vmem:[%s18143_s23 + $0x2580] ss:$16 sps:$4 sm:$0xff]  }
 0x331   : > { %9324 = vmatprep.subr.bf16.mxu1 %v15933_v50  ;;  %v15961_v50 = vld [vmem:[%s18143_s23 + $0x2780] ss:$16 sps:$4 sm:$0xff]  }
 0x333   : > { %9284 = vmatpush1.bf16.msra.mxu0 %v15928_v62  ;;  %v15966_v62 = vld [vmem:[%s18143_s23 + $0x2564] ss:$16 sps:$4 sm:$0xff]  }
 0x334   : > { %9325 = vmatpush1.bf16.msra.mxu1 %v15931_v5  ;;  %9285 = vmatprep.subr.bf16.mxu0 %v15936_v8  ;;  %v15969_v5 = vld [vmem:[%s18143_s23 + $0x2764] ss:$16 sps:$4 sm:$0xff]   ;;  %v15964_v8 = vld [vmem:[%s18143_s23 + $0x2560] ss:$16 sps:$4 sm:$0xff]  }
 0x335   : > { %9326 = vmatprep.subr.bf16.mxu1 %v15939_v21  ;;  %v15967_v21 = vld [vmem:[%s18143_s23 + $0x2760] ss:$16 sps:$4 sm:$0xff]  }
 0x337   : > { %9286 = vmatpush1.bf16.msra.mxu0 %v15934_v63  ;;  %v15972_v63 = vld [vmem:[%s18143_s23 + $0x2544] ss:$16 sps:$4 sm:$0xff]  }
 0x338   : > { %9327 = vmatpush1.bf16.msra.mxu1 %v15937_v52  ;;  %9287 = vmatprep.subr.bf16.mxu0 %v15942_v15  ;;  %v15975_v52 = vld [vmem:[%s18143_s23 + $0x2744] ss:$16 sps:$4 sm:$0xff]   ;;  %v15970_v15 = vld [vmem:[%s18143_s23 + $0x2540] ss:$16 sps:$4 sm:$0xff]  }
 0x339   : > { %9328 = vmatprep.subr.bf16.mxu1 %v15945_v3  ;;  %v15973_v3 = vld [vmem:[%s18143_s23 + $0x2740] ss:$16 sps:$4 sm:$0xff]  }
 0x33b   : > { %9288 = vmatpush2.bf16.msra.mxu0 %v15940_v30  ;;  %v15978_v30 = vld [vmem:[%s18143_s23 + $0x2524] ss:$16 sps:$4 sm:$0xff]  }
 0x33c   : > { %9329 = vmatpush2.bf16.msra.mxu1 %v15943_v18  ;;  %9289 = vmatprep.subr.bf16.mxu0 %v15948_v20  ;;  %v15981_v18 = vld [vmem:[%s18143_s23 + $0x2724] ss:$16 sps:$4 sm:$0xff]   ;;  %v15976_v20 = vld [vmem:[%s18143_s23 + $0x2520] ss:$16 sps:$4 sm:$0xff]  }
 0x33d   : > { %9330 = vmatprep.subr.bf16.mxu1 %v15951_v26  ;;  %v15979_v26 = vld [vmem:[%s18143_s23 + $0x2720] ss:$16 sps:$4 sm:$0xff]  }
 0x33f   : > { %9290 = vmatpush2.bf16.msra.mxu0 %v15946_v2  ;;  %v15984_v2 = vld [vmem:[%s18143_s23 + $0x2504] ss:$16 sps:$4 sm:$0xff]  }
 0x340   : > { %9331 = vmatpush2.bf16.msra.mxu1 %v15949_v13  ;;  %9291 = vmatprep.subr.bf16.mxu0 %v15954_v33  ;;  %v15987_v13 = vld [vmem:[%s18143_s23 + $0x2704] ss:$16 sps:$4 sm:$0xff]   ;;  %v15982_v33 = vld [vmem:[%s18143_s23 + $0x2500] ss:$16 sps:$4 sm:$0xff]  }
 0x341   : > { %9332 = vmatprep.subr.bf16.mxu1 %v15957_v4  ;;  %v15985_v4 = vld [vmem:[%s18143_s23 + $0x2700] ss:$16 sps:$4 sm:$0xff]  }
 0x343   : > { %9292 = vmatpush2.bf16.msra.mxu0 %v15952_v32  ;;  %v15994_v32 = vld [vmem:[%s18143_s23 + $0x2864] ss:$16 sps:$4 sm:$0xff]  }
 0x344   : > { %9333 = vmatpush2.bf16.msra.mxu1 %v15955_v23  ;;  %9293 = vmatprep.subr.bf16.mxu0 %v15960_v49  ;;  %v15997_v23 = vld [vmem:[%s18143_s23 + $0xec] ss:$16 sps:$4 sm:$0xff]   ;;  %v15992_v49 = vld [vmem:[%s18143_s23 + $0x2860] ss:$16 sps:$4 sm:$0xff]  }
 0x345   : > { %9334 = vmatprep.subr.bf16.mxu1 %v15963_v53  ;;  %v15995_v53 = vld [vmem:[%s18143_s23 + $0xe8] ss:$16 sps:$4 sm:$0xff]  }
 0x347   : > { %9294 = vmatpush2.bf16.msra.mxu0 %v15958_v61  ;;  %v19132_v61 = vcombine.low %v19031_v11, %v19031_v11 }
 0x348   : > { %9335 = vmatpush2.bf16.msra.mxu1 %v15961_v50  ;;  %9295 = vmatprep.subr.bf16.mxu0 %v15966_v62  ;;  %v19136_v50 = vcombine.low %v19036_v19, %v19036_v19  ;;  %v16000_v62 = vld [vmem:[%s18143_s23 + $0x2844] ss:$16 sps:$4 sm:$0xff]  }
 0x349   : > { %9336 = vmatprep.subr.bf16.mxu1 %v15969_v5  ;;  %v16003_v5 = vld [vmem:[%s18143_s23 + $0xcc] ss:$16 sps:$4 sm:$0xff]  }
 0x34b   : > { %9296 = vmatpush2.bf16.msra.mxu0 %v15964_v8  ;;  %v15998_v8 = vld [vmem:[%s18143_s23 + $0x2840] ss:$16 sps:$4 sm:$0xff]  }
 0x34c   : > { %9337 = vmatpush2.bf16.msra.mxu1 %v15967_v21  ;;  %9297 = vmatprep.subr.bf16.mxu0 %v15972_v63  ;;  %v16001_v21 = vld [vmem:[%s18143_s23 + $0xc8] ss:$16 sps:$4 sm:$0xff]  }
 0x34d   : > { %9338 = vmatprep.subr.bf16.mxu1 %v15975_v52 }
 0x34f   : > { %9298 = vmatpush2.bf16.msra.mxu0 %v15970_v15 }
 0x350   : > { %9339 = vmatpush2.bf16.msra.mxu1 %v15973_v3  ;;  %9299 = vmatprep.subr.bf16.mxu0 %v15978_v30  ;;  %v16006_v3 = vld [vmem:[%s18143_s23 + $0x2824] ss:$16 sps:$4 sm:$0xff]   ;;  %v16009_v30 = vld [vmem:[%s18143_s23 + $0xac] ss:$16 sps:$4 sm:$0xff]  }
 0x351   : > { %9340 = vmatprep.subr.bf16.mxu1 %v15981_v18 }
 0x353   : > { %9300 = vmatpush2.bf16.msra.mxu0 %v15976_v20 }
 0x354   : > { %9341 = vmatpush2.bf16.msra.mxu1 %v15979_v26  ;;  %9301 = vmatprep.subr.bf16.mxu0 %v15984_v2  ;;  %v16004_v26 = vld [vmem:[%s18143_s23 + $0x2820] ss:$16 sps:$4 sm:$0xff]   ;;  %v16007_v2 = vld [vmem:[%s18143_s23 + $0xa8] ss:$16 sps:$4 sm:$0xff]  }
 0x355   : > { %9342 = vmatprep.subr.bf16.mxu1 %v15987_v13  ;;  %v17845_v13 = vmov 0  }
 0x357   : > { %9302 = vmatpush2.bf16.msra.mxu0 %v15982_v33 }
 0x358   : > { %9343 = vmatpush2.bf16.msra.mxu1 %v15985_v4  ;;  %9361 = vmatprep.subr.bf16.mxu0 %v15994_v32 }
 0x359   : > { %9394 = vmatprep.subr.bf16.mxu1 %v15997_v23  ;;  %v16012_v23 = vld [vmem:[%s18143_s23 + $0x2804] ss:$16 sps:$4 sm:$0xff]  }
 0x35a   : > { %v9059_v63 = vpop.f32.mrf.mxu0  ;;  %9304 = vmatmul.mubr.bf16.vlgmr.msra.gmra.mxu0 %v19132_v61 }
 0x35b   : > { %v9100_v52 = vpop.f32.mrf.mxu1  ;;  %9345 = vmatmul.mubr.bf16.vlgmr.msra.gmra.mxu1 %v19136_v50  ;;  %v9060_v11 = vadd.f32 %v9059_v63, %v19065_v58  ;;  %9362 = vmatpush1.bf16.msra.mxu0 %v15992_v49  ;;  %v16015_v49 = vld [vmem:[%s18143_s23 + $0x8c] ss:$16 sps:$4 sm:$0xff]   ;;  %v16020_v63 = vld [vmem:[%s18143_s23 + $0x2e8] ss:$16 sps:$4 sm:$0xff]  }
 0x35c   : > { %9395 = vmatpush1.bf16.msra.mxu1 %v15995_v53  ;;  %v9061_v19 = vpop.f32.mrf.mxu0  ;;  %9363 = vmatprep.subr.bf16.mxu0 %v16000_v62  ;;  %v16013_v53 = vld [vmem:[%s18143_s23 + $0x88] ss:$16 sps:$4 sm:$0xff]   ;;  %v16016_v62 = vld [vmem:[%s20145_s20 + $0xa0] ss:$0 sps:$4 sm:$0xff]  }
 0x35d   : > { %v9102_v15 = vpop.f32.mrf.mxu1  ;;  %9396 = vmatprep.subr.bf16.mxu1 %v16003_v5  ;;  %v19147_v18 = vadd.f32 %v9100_v52, %v9060_v11  ;;  %v9062_v20 = vadd.f32 %v9061_v19, %v19072_v14  ;;  %9385 = vmatprep.mubr.bf16.mxu0 %v17845_v13  ;;  %v16019_v5 = vld [vmem:[%s18143_s23 + $0x6c] ss:$16 sps:$4 sm:$0xff]   ;;  %v16023_v19 = vld [vmem:[%s18143_s23 + $0x48] ss:$16 sps:$4 sm:$0xff]  }
 0x35e   : > { %9426 = vmatprep.mubr.bf16.mxu1 %v18223_v47  ;;  %v9063_v58 = vpop.f32.mrf.mxu0  ;;  %v16010_v47 = vld [vmem:[%s18143_s23 + $0x2800] ss:$16 sps:$4 sm:$0xff]   ;;  %v16025_v52 = vld [vmem:[%s18143_s23 + $0x4c] ss:$16 sps:$4 sm:$0xff]  }
 0x35f   : > { %v9104_v33 = vpop.f32.mrf.mxu1  ;;  %v19154_v4 = vadd.f32 %v9102_v15, %v9062_v20  ;;  %9364 = vmatpush1.bf16.msra.mxu0 %v15998_v8  ;;  %v16022_v8 = vld [vmem:[%s18143_s23 + $0x2ec] ss:$16 sps:$4 sm:$0xff]   ;;  %v16026_v15 = vld [vmem:[%s18143_s23 + $0x2c8] ss:$16 sps:$4 sm:$0xff]  }
 0x360   : > { %9397 = vmatpush1.bf16.msra.mxu1 %v16001_v21  ;;  %v9064_v14 = vpop.f32.mrf.mxu0  ;;  %9365 = vmatprep.subr.bf16.mxu0 %v16006_v3  ;;  %v16017_v21 = vld [vmem:[%s18143_s23 + $0x68] ss:$16 sps:$4 sm:$0xff]   ;;  %v16028_v11 = vld [vmem:[%s18143_s23 + $0x2cc] ss:$16 sps:$4 sm:$0xff]  }
 0x361   : > { %v9105_v32 = vpop.f32.mrf.mxu1  ;;  %9398 = vmatprep.subr.bf16.mxu1 %v16009_v30  ;;  %v16031_v3 = vld [vmem:[%s18143_s23 + $0x2c] ss:$16 sps:$4 sm:$0xff]   ;;  %v16029_v20 = vld [vmem:[%s18143_s23 + $0x28] ss:$16 sps:$4 sm:$0xff]  }
 0x362   : > { %v16034_v30 = vld [vmem:[%s18143_s23 + $0x2ac] ss:$16 sps:$4 sm:$0xff]   ;;  %v16035_v33 = vld [vmem:[%s18143_s23 + $0x8] ss:$16 sps:$4 sm:$0xff]  }
 0x363   : > { %9366 = vmatpush1.bf16.msra.mxu0 %v16004_v26  ;;  %v16032_v26 = vld [vmem:[%s18143_s23 + $0x2a8] ss:$16 sps:$4 sm:$0xff]   ;;  %v16040_v58 = vld [vmem:[%s18143_s23 + $0x28c] ss:$16 sps:$4 sm:$0xff]  }
 0x364   : > { %9399 = vmatpush1.bf16.msra.mxu1 %v16007_v2  ;;  %9367 = vmatprep.subr.bf16.mxu0 %v16012_v23  ;;  %v16037_v2 = vld [vmem:[%s18143_s23 + $0xc] ss:$16 sps:$4 sm:$0xff]   ;;  %v16038_v14 = vld [vmem:[%s18143_s23 + $0x288] ss:$16 sps:$4 sm:$0xff]  }
 0x365   : > { %9400 = vmatprep.subr.bf16.mxu1 %v16015_v49  ;;  %v16046_v32 = vld [vmem:[%s18143_s23 + $0x26c] ss:$16 sps:$4 sm:$0xff]   ;;  %v16041_v23 = vld [vmem:[%s18143_s23 + $0x1e8] ss:$16 sps:$4 sm:$0xff]  }
 0x366   : > { %v16044_v49 = vld [vmem:[%s18143_s23 + $0x268] ss:$16 sps:$4 sm:$0xff]  }
 0x367   : > { %9368 = vmatpush1.bf16.msra.mxu0 %v16010_v47  ;;  %v16049_v47 = vld [vmem:[%s18143_s23 + $0x1cc] ss:$16 sps:$4 sm:$0xff]  }
 0x368   : > { %9401 = vmatpush1.bf16.msra.mxu1 %v16013_v53  ;;  %9435 = vmatprep.subr.bf16.mxu0 %v16022_v8  ;;  %v16052_v53 = vld [vmem:[%s18143_s23 + $0x24c] ss:$16 sps:$4 sm:$0xff]  }
 0x369   : > { %9402 = vmatprep.subr.bf16.mxu1 %v16019_v5  ;;  %v16050_v5 = vld [vmem:[%s18143_s23 + $0x248] ss:$16 sps:$4 sm:$0xff]   ;;  %v16055_v8 = vld [vmem:[%s18143_s23 + $0x1ac] ss:$16 sps:$4 sm:$0xff]  }
 0x36a   : > { %14486 = vmatmul.mubr.msk.bf16.vlgmr.msra.gmra.mxu0 %vm8529_vm0, %v16016_v62  ;;  %v16047_v62 = vld [vmem:[%s18143_s23 + $0x1c8] ss:$16 sps:$4 sm:$0xff]  }
 0x36b   : > { %9436 = vmatpush1.bf16.msra.mxu0 %v16020_v63  ;;  %9467 = vmatprep.mubr.bf16.mxu0 %v18230_v51  ;;  %v16043_v51 = vld [vmem:[%s18143_s23 + $0x1ec] ss:$16 sps:$4 sm:$0xff]   ;;  %v16053_v63 = vld [vmem:[%s18143_s23 + $0x1a8] ss:$16 sps:$4 sm:$0xff]  }
 0x36c   : > { %9403 = vmatpush1.bf16.msra.mxu1 %v16017_v21  ;;  %9437 = vmatprep.subr.bf16.mxu0 %v16028_v11  ;;  %v16058_v21 = vld [vmem:[%s18143_s23 + $0x22c] ss:$16 sps:$4 sm:$0xff]  }
 0x36d   : > { %9404 = vmatprep.subr.bf16.mxu1 %v16025_v52  ;;  %v16056_v52 = vld [vmem:[%s18143_s23 + $0x228] ss:$16 sps:$4 sm:$0xff]   ;;  %v16061_v11 = vld [vmem:[%s18143_s23 + $0x18c] ss:$16 sps:$4 sm:$0xff]  }
 0x36f   : > { %9438 = vmatpush1.bf16.msra.mxu0 %v16026_v15  ;;  %v16059_v15 = vld [vmem:[%s18143_s23 + $0x188] ss:$16 sps:$4 sm:$0xff]  }
 0x370   : > { %9405 = vmatpush1.bf16.msra.mxu1 %v16023_v19  ;;  %9439 = vmatprep.subr.bf16.mxu0 %v16034_v30  ;;  %v16064_v19 = vld [vmem:[%s18143_s23 + $0x20c] ss:$16 sps:$4 sm:$0xff]  }
 0x371   : > { %9406 = vmatprep.subr.bf16.mxu1 %v16031_v3  ;;  %v16062_v3 = vld [vmem:[%s18143_s23 + $0x208] ss:$16 sps:$4 sm:$0xff]   ;;  %v16067_v30 = vld [vmem:[%s18143_s23 + $0x16c] ss:$16 sps:$4 sm:$0xff]  }
 0x373   : > { %9440 = vmatpush1.bf16.msra.mxu0 %v16032_v26  ;;  %v16065_v26 = vld [vmem:[%s18143_s23 + $0x168] ss:$16 sps:$4 sm:$0xff]  }
 0x374   : > { %9407 = vmatpush1.bf16.msra.mxu1 %v16029_v20  ;;  %9441 = vmatprep.subr.bf16.mxu0 %v16040_v58  ;;  %v16070_v20 = vld [vmem:[%s18143_s23 + $0x3ec] ss:$16 sps:$4 sm:$0xff]  }
 0x375   : > { %9408 = vmatprep.subr.bf16.mxu1 %v16037_v2  ;;  %v16068_v2 = vld [vmem:[%s18143_s23 + $0x3e8] ss:$16 sps:$4 sm:$0xff]   ;;  %v16073_v58 = vld [vmem:[%s18143_s23 + $0x14c] ss:$16 sps:$4 sm:$0xff]  }
 0x377   : > { %9442 = vmatpush1.bf16.msra.mxu0 %v16038_v14  ;;  %v16071_v14 = vld [vmem:[%s18143_s23 + $0x148] ss:$16 sps:$4 sm:$0xff]  }
 0x378   : > { %9409 = vmatpush1.bf16.msra.mxu1 %v16035_v33  ;;  %9443 = vmatprep.subr.bf16.mxu0 %v16046_v32  ;;  %v16076_v33 = vld [vmem:[%s18143_s23 + $0x3cc] ss:$16 sps:$4 sm:$0xff]  }
 0x379   : > { %9410 = vmatprep.subr.bf16.mxu1 %v16043_v51  ;;  %v16074_v51 = vld [vmem:[%s18143_s23 + $0x3c8] ss:$16 sps:$4 sm:$0xff]   ;;  %v16079_v32 = vld [vmem:[%s18143_s23 + $0x12c] ss:$16 sps:$4 sm:$0xff]  }
 0x37b   : > { %9444 = vmatpush1.bf16.msra.mxu0 %v16044_v49  ;;  %v16077_v49 = vld [vmem:[%s18143_s23 + $0x128] ss:$16 sps:$4 sm:$0xff]  }
 0x37c   : > { %9411 = vmatpush2.bf16.msra.mxu1 %v16041_v23  ;;  %9445 = vmatprep.subr.bf16.mxu0 %v16052_v53  ;;  %v16082_v23 = vld [vmem:[%s18143_s23 + $0x3ac] ss:$16 sps:$4 sm:$0xff]  }
 0x37d   : > { %9412 = vmatprep.subr.bf16.mxu1 %v16049_v47  ;;  %v16080_v47 = vld [vmem:[%s18143_s23 + $0x3a8] ss:$16 sps:$4 sm:$0xff]   ;;  %v16085_v53 = vld [vmem:[%s18143_s23 + $0x10c] ss:$16 sps:$4 sm:$0xff]  }
 0x37f   : > { %9446 = vmatpush1.bf16.msra.mxu0 %v16050_v5  ;;  %v16083_v5 = vld [vmem:[%s18143_s23 + $0x108] ss:$16 sps:$4 sm:$0xff]  }
 0x380   : > { %9413 = vmatpush2.bf16.msra.mxu1 %v16047_v62  ;;  %9447 = vmatprep.subr.bf16.mxu0 %v16058_v21  ;;  %v16088_v62 = vld [vmem:[%s18143_s23 + $0x38c] ss:$16 sps:$4 sm:$0xff]  }
 0x381   : > { %9414 = vmatprep.subr.bf16.mxu1 %v16055_v8  ;;  %v16086_v8 = vld [vmem:[%s18143_s23 + $0x388] ss:$16 sps:$4 sm:$0xff]   ;;  %v16091_v21 = vld [vmem:[%s18143_s23 + $0x36c] ss:$16 sps:$4 sm:$0xff]  }
 0x383   : > { %9448 = vmatpush1.bf16.msra.mxu0 %v16056_v52  ;;  %v16089_v52 = vld [vmem:[%s18143_s23 + $0x368] ss:$16 sps:$4 sm:$0xff]  }
 0x384   : > { %9415 = vmatpush2.bf16.msra.mxu1 %v16053_v63  ;;  %9449 = vmatprep.subr.bf16.mxu0 %v16064_v19  ;;  %v16094_v63 = vld [vmem:[%s18143_s23 + $0x4ec] ss:$16 sps:$4 sm:$0xff]  }
 0x385   : > { %9416 = vmatprep.subr.bf16.mxu1 %v16061_v11  ;;  %v16092_v11 = vld [vmem:[%s18143_s23 + $0x4e8] ss:$16 sps:$4 sm:$0xff]   ;;  %v16097_v19 = vld [vmem:[%s18143_s23 + $0x34c] ss:$16 sps:$4 sm:$0xff]  }
 0x387   : > { %9450 = vmatpush1.bf16.msra.mxu0 %v16062_v3  ;;  %v16095_v3 = vld [vmem:[%s18143_s23 + $0x348] ss:$16 sps:$4 sm:$0xff]  }
 0x388   : > { %9417 = vmatpush2.bf16.msra.mxu1 %v16059_v15  ;;  %9451 = vmatprep.subr.bf16.mxu0 %v16070_v20  ;;  %v16100_v15 = vld [vmem:[%s18143_s23 + $0x4cc] ss:$16 sps:$4 sm:$0xff]  }
 0x389   : > { %9418 = vmatprep.subr.bf16.mxu1 %v16067_v30  ;;  %v16098_v30 = vld [vmem:[%s18143_s23 + $0x4c8] ss:$16 sps:$4 sm:$0xff]  }
 0x38b   : > { %9452 = vmatpush2.bf16.msra.mxu0 %v16068_v2 }
 0x38c   : > { %9419 = vmatpush2.bf16.msra.mxu1 %v16065_v26  ;;  %9453 = vmatprep.subr.bf16.mxu0 %v16076_v33 }
 0x38d   : > { %9420 = vmatprep.subr.bf16.mxu1 %v16073_v58 }
 0x38f   : > { %9454 = vmatpush2.bf16.msra.mxu0 %v16074_v51  ;;  %v16106_v51 = vld [vmem:[%s18143_s23 + $0x4ac] ss:$16 sps:$4 sm:$0xff]  }
 0x390   : > { %9421 = vmatpush2.bf16.msra.mxu1 %v16071_v14  ;;  %9455 = vmatprep.subr.bf16.mxu0 %v16082_v23  ;;  %v16103_v14 = vld [vmem:[%s18143_s23 + $0x32c] ss:$16 sps:$4 sm:$0xff]  }
 0x391   : > { %9422 = vmatprep.subr.bf16.mxu1 %v16079_v32 }
 0x393   : > { %9456 = vmatpush2.bf16.msra.mxu0 %v16080_v47  ;;  %v16104_v47 = vld [vmem:[%s18143_s23 + $0x4a8] ss:$16 sps:$4 sm:$0xff]  }
 0x394   : > { %9423 = vmatpush2.bf16.msra.mxu1 %v16077_v49  ;;  %9457 = vmatprep.subr.bf16.mxu0 %v16088_v62  ;;  %v16101_v49 = vld [vmem:[%s18143_s23 + $0x328] ss:$16 sps:$4 sm:$0xff]  }
 0x395   : > { %9424 = vmatprep.subr.bf16.mxu1 %v16085_v53 }
 0x397   : > { %9458 = vmatpush2.bf16.msra.mxu0 %v16086_v8  ;;  %v16112_v8 = vld [vmem:[%s18143_s23 + $0x48c] ss:$16 sps:$4 sm:$0xff]  }
 0x398   : > { %9425 = vmatpush2.bf16.msra.mxu1 %v16083_v5  ;;  %9459 = vmatprep.subr.bf16.mxu0 %v16091_v21  ;;  %v16110_v21 = vld [vmem:[%s18143_s23 + $0x488] ss:$16 sps:$4 sm:$0xff]  }
 0x399   : > { %9476 = vmatprep.subr.bf16.mxu1 %v16094_v63  ;;  %v16115_v63 = vld [vmem:[%s18143_s23 + $0x46c] ss:$16 sps:$4 sm:$0xff]  }
 0x39a   : > { %v9141_v20 = vpop.f32.mrf.mxu0 }
 0x39b   : > { %v9182_v26 = vpop.f32.mrf.mxu1  ;;  %9427 = vmatmul.mubr.bf16.vlgmr.msra.gmra.mxu1 %v18252_v6  ;;  %v9142_v2 = vadd.f32 %v9141_v20, %v19147_v18  ;;  %9460 = vmatpush2.bf16.msra.mxu0 %v16089_v52  ;;  %v16118_v52 = vld [vmem:[%s18143_s23 + $0x6ec] ss:$16 sps:$4 sm:$0xff]   ;;  %v16122_v20 = vld [vmem:[%s18143_s23 + $0x6c8] ss:$16 sps:$4 sm:$0xff]  }
 0x39c   : > { %9477 = vmatpush1.bf16.msra.mxu1 %v16092_v11  ;;  %v9143_v58 = vpop.f32.mrf.mxu0  ;;  %9461 = vmatprep.subr.bf16.mxu0 %v16097_v19  ;;  %v16113_v11 = vld [vmem:[%s18143_s23 + $0x468] ss:$16 sps:$4 sm:$0xff]  }
 0x39d   : > { %v9184_v33 = vpop.f32.mrf.mxu1  ;;  %9478 = vmatprep.subr.bf16.mxu1 %v16100_v15  ;;  %v19225_v32 = vadd.f32 %v9182_v26, %v9142_v2  ;;  %v9144_v23 = vadd.f32 %v9143_v58, %v19154_v4  ;;  %9508 = vmatprep.mubr.bf16.mxu1 %v18296_v36  ;;  %v16109_v4 = vld [vmem:[%s18143_s23 + $0x30c] ss:$16 sps:$4 sm:$0xff]   ;;  %v16107_v36 = vld [vmem:[%s18143_s23 + $0x308] ss:$16 sps:$4 sm:$0xff]  }
 0x39e   : > { %v9145_v6 = vpop.f32.mrf.mxu0  ;;  %v16116_v19 = vld [vmem:[%s18143_s23 + $0x6e8] ss:$16 sps:$4 sm:$0xff]   ;;  %v16121_v15 = vld [vmem:[%s18143_s23 + $0x44c] ss:$16 sps:$4 sm:$0xff]  }
 0x39f   : > { %v9186_v18 = vpop.f32.mrf.mxu1  ;;  %v19231_v53 = vadd.f32 %v9184_v33, %v9144_v23  ;;  %9462 = vmatpush2.bf16.msra.mxu0 %v16095_v3  ;;  %v16124_v3 = vld [vmem:[%s18143_s23 + $0x6cc] ss:$16 sps:$4 sm:$0xff]   ;;  %v16125_v58 = vld [vmem:[%s18143_s23 + $0x428] ss:$16 sps:$4 sm:$0xff]  }
 0x3a0   : > { %9479 = vmatpush1.bf16.msra.mxu1 %v16098_v30  ;;  %v9146_v62 = vpop.f32.mrf.mxu0  ;;  %9463 = vmatprep.subr.bf16.mxu0 %v16103_v14  ;;  %v16119_v30 = vld [vmem:[%s18143_s23 + $0x448] ss:$16 sps:$4 sm:$0xff]   ;;  %v16127_v26 = vld [vmem:[%s18143_s23 + $0x42c] ss:$16 sps:$4 sm:$0xff]  }
 0x3a1   : > { %v9187_v5 = vpop.f32.mrf.mxu1  ;;  %9480 = vmatprep.subr.bf16.mxu1 %v16106_v51  ;;  %v16130_v2 = vld [vmem:[%s18143_s23 + $0x6ac] ss:$16 sps:$4 sm:$0xff]   ;;  %v16131_v51 = vld [vmem:[%s18143_s23 + $0x408] ss:$16 sps:$4 sm:$0xff]  }
 0x3a2   : > { %v16133_v33 = vld [vmem:[%s18143_s23 + $0x40c] ss:$16 sps:$4 sm:$0xff]   ;;  %v16134_v23 = vld [vmem:[%s18143_s23 + $0x688] ss:$16 sps:$4 sm:$0xff]  }
 0x3a3   : > { %9464 = vmatpush2.bf16.msra.mxu0 %v16101_v49  ;;  %v16136_v14 = vld [vmem:[%s18143_s23 + $0x68c] ss:$16 sps:$4 sm:$0xff]   ;;  %v16140_v6 = vld [vmem:[%s18143_s23 + $0x668] ss:$16 sps:$4 sm:$0xff]  }
 0x3a4   : > { %9481 = vmatpush1.bf16.msra.mxu1 %v16104_v47  ;;  %9465 = vmatprep.subr.bf16.mxu0 %v16109_v4  ;;  %v16142_v49 = vld [vmem:[%s18143_s23 + $0x66c] ss:$16 sps:$4 sm:$0xff]   ;;  %v16137_v47 = vld [vmem:[%s18143_s23 + $0x5e8] ss:$16 sps:$4 sm:$0xff]  }
 0x3a5   : > { %9482 = vmatprep.subr.bf16.mxu1 %v16112_v8  ;;  %v16145_v18 = vld [vmem:[%s18143_s23 + $0x5cc] ss:$16 sps:$4 sm:$0xff]   ;;  %v16143_v5 = vld [vmem:[%s18143_s23 + $0x5c8] ss:$16 sps:$4 sm:$0xff]  }
 0x3a6   : > { %v16148_v62 = vld [vmem:[%s18143_s23 + $0x64c] ss:$16 sps:$4 sm:$0xff]   ;;  %v16146_v4 = vld [vmem:[%s18143_s23 + $0x648] ss:$16 sps:$4 sm:$0xff]  }
 0x3a7   : > { %9466 = vmatpush2.bf16.msra.mxu0 %v16107_v36  ;;  %v16151_v8 = vld [vmem:[%s18143_s23 + $0x5ac] ss:$16 sps:$4 sm:$0xff]  }
 0x3a8   : > { %9483 = vmatpush1.bf16.msra.mxu1 %v16110_v21  ;;  %9517 = vmatprep.subr.bf16.mxu0 %v16118_v52  ;;  %v16154_v36 = vld [vmem:[%s18143_s23 + $0x62c] ss:$16 sps:$4 sm:$0xff]   ;;  %v16149_v21 = vld [vmem:[%s18143_s23 + $0x5a8] ss:$16 sps:$4 sm:$0xff]  }
 0x3a9   : > { %9484 = vmatprep.subr.bf16.mxu1 %v16115_v63  ;;  %v16152_v63 = vld [vmem:[%s18143_s23 + $0x628] ss:$16 sps:$4 sm:$0xff]   ;;  %v16157_v52 = vld [vmem:[%s18143_s23 + $0x58c] ss:$16 sps:$4 sm:$0xff]  }
 0x3aa   : > { %9468 = vmatmul.mubr.bf16.vlgmr.msra.gmra.mxu0 %v18254_v7  ;;  %v16128_v7 = vld [vmem:[%s18143_s23 + $0x6a8] ss:$16 sps:$4 sm:$0xff]  }
 0x3ab   : > { %9518 = vmatpush1.bf16.msra.mxu0 %v16116_v19  ;;  %9549 = vmatprep.mubr.bf16.mxu0 %v18300_v37  ;;  %v16139_v37 = vld [vmem:[%s18143_s23 + $0x5ec] ss:$16 sps:$4 sm:$0xff]   ;;  %v16155_v19 = vld [vmem:[%s18143_s23 + $0x588] ss:$16 sps:$4 sm:$0xff]  }
 0x3ac   : > { %9485 = vmatpush1.bf16.msra.mxu1 %v16113_v11  ;;  %9519 = vmatprep.subr.bf16.mxu0 %v16124_v3  ;;  %v16160_v11 = vld [vmem:[%s18143_s23 + $0x60c] ss:$16 sps:$4 sm:$0xff]  }
 0x3ad   : > { %9486 = vmatprep.subr.bf16.mxu1 %v16121_v15  ;;  %v16158_v15 = vld [vmem:[%s18143_s23 + $0x608] ss:$16 sps:$4 sm:$0xff]   ;;  %v16163_v3 = vld [vmem:[%s18143_s23 + $0x56c] ss:$16 sps:$4 sm:$0xff]  }
 0x3af   : > { %9520 = vmatpush1.bf16.msra.mxu0 %v16122_v20  ;;  %v16161_v20 = vld [vmem:[%s18143_s23 + $0x568] ss:$16 sps:$4 sm:$0xff]  }
 0x3b0   : > { %9487 = vmatpush1.bf16.msra.mxu1 %v16119_v30  ;;  %9521 = vmatprep.subr.bf16.mxu0 %v16130_v2  ;;  %v16166_v30 = vld [vmem:[%s18143_s23 + $0x7ec] ss:$16 sps:$4 sm:$0xff]  }
 0x3b1   : > { %9488 = vmatprep.subr.bf16.mxu1 %v16127_v26  ;;  %v16164_v26 = vld [vmem:[%s18143_s23 + $0x7e8] ss:$16 sps:$4 sm:$0xff]   ;;  %v16169_v2 = vld [vmem:[%s18143_s23 + $0x54c] ss:$16 sps:$4 sm:$0xff]  }
 0x3b3   : > { %9522 = vmatpush1.bf16.msra.mxu0 %v16128_v7  ;;  %v16167_v7 = vld [vmem:[%s18143_s23 + $0x548] ss:$16 sps:$4 sm:$0xff]  }
 0x3b4   : > { %9489 = vmatpush1.bf16.msra.mxu1 %v16125_v58  ;;  %9523 = vmatprep.subr.bf16.mxu0 %v16136_v14  ;;  %v16172_v58 = vld [vmem:[%s18143_s23 + $0x7cc] ss:$16 sps:$4 sm:$0xff]  }
 0x3b5   : > { %9490 = vmatprep.subr.bf16.mxu1 %v16133_v33  ;;  %v16170_v33 = vld [vmem:[%s18143_s23 + $0x7c8] ss:$16 sps:$4 sm:$0xff]   ;;  %v16175_v14 = vld [vmem:[%s18143_s23 + $0x52c] ss:$16 sps:$4 sm:$0xff]  }
 0x3b7   : > { %9524 = vmatpush1.bf16.msra.mxu0 %v16134_v23  ;;  %v16173_v23 = vld [vmem:[%s18143_s23 + $0x528] ss:$16 sps:$4 sm:$0xff]  }
 0x3b8   : > { %9491 = vmatpush1.bf16.msra.mxu1 %v16131_v51  ;;  %9525 = vmatprep.subr.bf16.mxu0 %v16142_v49  ;;  %v16178_v51 = vld [vmem:[%s18143_s23 + $0x7ac] ss:$16 sps:$4 sm:$0xff]  }
 0x3b9   : > { %9492 = vmatprep.subr.bf16.mxu1 %v16139_v37  ;;  %v16176_v37 = vld [vmem:[%s18143_s23 + $0x7a8] ss:$16 sps:$4 sm:$0xff]   ;;  %v16181_v49 = vld [vmem:[%s18143_s23 + $0x50c] ss:$16 sps:$4 sm:$0xff]  }
 0x3bb   : > { %9526 = vmatpush1.bf16.msra.mxu0 %v16140_v6  ;;  %v16179_v6 = vld [vmem:[%s18143_s23 + $0x508] ss:$16 sps:$4 sm:$0xff]  }
 0x3bc   : > { %9493 = vmatpush2.bf16.msra.mxu1 %v16137_v47  ;;  %9527 = vmatprep.subr.bf16.mxu0 %v16148_v62  ;;  %v16184_v47 = vld [vmem:[%s18143_s23 + $0x78c] ss:$16 sps:$4 sm:$0xff]  }
 0x3bd   : > { %9494 = vmatprep.subr.bf16.mxu1 %v16145_v18  ;;  %v16182_v18 = vld [vmem:[%s18143_s23 + $0x788] ss:$16 sps:$4 sm:$0xff]   ;;  %v16187_v62 = vld [vmem:[%s18143_s23 + $0x76c] ss:$16 sps:$4 sm:$0xff]  }
 0x3bf   : > { %9528 = vmatpush1.bf16.msra.mxu0 %v16146_v4  ;;  %v16185_v4 = vld [vmem:[%s18143_s23 + $0x768] ss:$16 sps:$4 sm:$0xff]  }
 0x3c0   : > { %9495 = vmatpush2.bf16.msra.mxu1 %v16143_v5  ;;  %9529 = vmatprep.subr.bf16.mxu0 %v16154_v36  ;;  %v16190_v5 = vld [vmem:[%s18143_s23 + $0x8ec] ss:$16 sps:$4 sm:$0xff]  }
 0x3c1   : > { %9496 = vmatprep.subr.bf16.mxu1 %v16151_v8  ;;  %v16188_v8 = vld [vmem:[%s18143_s23 + $0x8e8] ss:$16 sps:$4 sm:$0xff]   ;;  %v16193_v36 = vld [vmem:[%s18143_s23 + $0x74c] ss:$16 sps:$4 sm:$0xff]  }
 0x3c3   : > { %9530 = vmatpush1.bf16.msra.mxu0 %v16152_v63 }
 0x3c4   : > { %9497 = vmatpush2.bf16.msra.mxu1 %v16149_v21  ;;  %9531 = vmatprep.subr.bf16.mxu0 %v16160_v11  ;;  %v16196_v21 = vld [vmem:[%s18143_s23 + $0x8cc] ss:$16 sps:$4 sm:$0xff]  }
 0x3c5   : > { %9498 = vmatprep.subr.bf16.mxu1 %v16157_v52 }
 0x3c7   : > { %9532 = vmatpush1.bf16.msra.mxu0 %v16158_v15  ;;  %v16194_v15 = vld [vmem:[%s18143_s23 + $0x8c8] ss:$16 sps:$4 sm:$0xff]  }
 0x3c8   : > { %9499 = vmatpush2.bf16.msra.mxu1 %v16155_v19  ;;  %9533 = vmatprep.subr.bf16.mxu0 %v16166_v30  ;;  %v16191_v19 = vld [vmem:[%s18143_s23 + $0x748] ss:$16 sps:$4 sm:$0xff]  }
 0x3c9   : > { %9500 = vmatprep.subr.bf16.mxu1 %v16163_v3 }
 0x3cb   : > { %9534 = vmatpush2.bf16.msra.mxu0 %v16164_v26  ;;  %v16202_v26 = vld [vmem:[%s18143_s23 + $0x8ac] ss:$16 sps:$4 sm:$0xff]  }
 0x3cc   : > { %9501 = vmatpush2.bf16.msra.mxu1 %v16161_v20  ;;  %9535 = vmatprep.subr.bf16.mxu0 %v16172_v58  ;;  %v16199_v20 = vld [vmem:[%s18143_s23 + $0x72c] ss:$16 sps:$4 sm:$0xff]  }
 0x3cd   : > { %9502 = vmatprep.subr.bf16.mxu1 %v16169_v2 }
 0x3cf   : > { %9536 = vmatpush2.bf16.msra.mxu0 %v16170_v33  ;;  %v16197_v33 = vld [vmem:[%s18143_s23 + $0x728] ss:$16 sps:$4 sm:$0xff]  }
 0x3d0   : > { %9503 = vmatpush2.bf16.msra.mxu1 %v16167_v7  ;;  %9537 = vmatprep.subr.bf16.mxu0 %v16178_v51 }
 0x3d1   : > { %9504 = vmatprep.subr.bf16.mxu1 %v16175_v14  ;;  %v16200_v14 = vld [vmem:[%s18143_s23 + $0x8a8] ss:$16 sps:$4 sm:$0xff]  }
 0x3d3   : > { %9538 = vmatpush2.bf16.msra.mxu0 %v16176_v37  ;;  %v16203_v37 = vld [vmem:[%s18143_s23 + $0x708] ss:$16 sps:$4 sm:$0xff]  }
 0x3d4   : > { %9505 = vmatpush2.bf16.msra.mxu1 %v16173_v23  ;;  %9539 = vmatprep.subr.bf16.mxu0 %v16184_v47  ;;  %v16211_v47 = vld [vmem:[%s18143_s23 + $0x86c] ss:$16 sps:$4 sm:$0xff]  }
 0x3d5   : > { %9506 = vmatprep.subr.bf16.mxu1 %v16181_v49  ;;  %v16206_v49 = vld [vmem:[%s18143_s23 + $0x888] ss:$16 sps:$4 sm:$0xff]  }
 0x3d7   : > { %9540 = vmatpush2.bf16.msra.mxu0 %v16182_v18  ;;  %v16209_v18 = vld [vmem:[%s18143_s23 + $0x868] ss:$16 sps:$4 sm:$0xff]  }
 0x3d8   : > { %9507 = vmatpush2.bf16.msra.mxu1 %v16179_v6  ;;  %9541 = vmatprep.subr.bf16.mxu0 %v16187_v62  ;;  %v16214_v6 = vld [vmem:[%s18143_s23 + $0xaec] ss:$16 sps:$4 sm:$0xff]   ;;  %v16212_v62 = vld [vmem:[%s18143_s23 + $0xae8] ss:$16 sps:$4 sm:$0xff]  }
 0x3d9   : > { %9558 = vmatprep.subr.bf16.mxu1 %v16190_v5  ;;  %v16217_v5 = vld [vmem:[%s18143_s23 + $0x84c] ss:$16 sps:$4 sm:$0xff]  }
 0x3da   : > { %v9223_v63 = vpop.f32.mrf.mxu0 }
 0x3db   : > { %v9264_v52 = vpop.f32.mrf.mxu1  ;;  %9509 = vmatmul.mubr.bf16.vlgmr.msra.gmra.mxu1 %v18344_v16  ;;  %v9224_v11 = vadd.f32 %v9223_v63, %v19225_v32  ;;  %9542 = vmatpush2.bf16.msra.mxu0 %v16185_v4  ;;  %v16220_v4 = vld [vmem:[%s18143_s23 + $0xacc] ss:$16 sps:$4 sm:$0xff]  }
 0x3dc   : > { %9559 = vmatpush1.bf16.msra.mxu1 %v16188_v8  ;;  %v9225_v3 = vpop.f32.mrf.mxu0  ;;  %9543 = vmatprep.subr.bf16.mxu0 %v16193_v36  ;;  %v16215_v8 = vld [vmem:[%s18143_s23 + $0x848] ss:$16 sps:$4 sm:$0xff]   ;;  %v16226_v63 = vld [vmem:[%s18143_s23 + $0xaac] ss:$16 sps:$4 sm:$0xff]  }
 0x3dd   : > { %v9266_v30 = vpop.f32.mrf.mxu1  ;;  %9560 = vmatprep.subr.bf16.mxu1 %v16196_v21  ;;  %v19299_v2 = vadd.f32 %v9264_v52, %v9224_v11  ;;  %v9226_v16 = vadd.f32 %v9225_v3, %v19231_v53  ;;  %9590 = vmatprep.mubr.bf16.mxu1 %v18366_v24  ;;  %v16205_v53 = vld [vmem:[%s18143_s23 + $0x70c] ss:$16 sps:$4 sm:$0xff]   ;;  %v16218_v36 = vld [vmem:[%s18143_s23 + $0xac8] ss:$16 sps:$4 sm:$0xff]  }
 0x3de   : > { %v9227_v32 = vpop.f32.mrf.mxu0  ;;  %v16208_v24 = vld [vmem:[%s18143_s23 + $0x88c] ss:$16 sps:$4 sm:$0xff]   ;;  %v16221_v52 = vld [vmem:[%s18143_s23 + $0x828] ss:$16 sps:$4 sm:$0xff]  }
 0x3df   : > { %v9268_v58 = vpop.f32.mrf.mxu1  ;;  %v19303_v7 = vadd.f32 %v9266_v30, %v9226_v16  ;;  %9544 = vmatpush2.bf16.msra.mxu0 %v16191_v19  ;;  %v16223_v21 = vld [vmem:[%s18143_s23 + $0x82c] ss:$16 sps:$4 sm:$0xff]   ;;  %v16230_v3 = vld [vmem:[%s18143_s23 + $0xa88] ss:$16 sps:$4 sm:$0xff]  }
 0x3e0   : > { %9561 = vmatpush1.bf16.msra.mxu1 %v16194_v15  ;;  %v9228_v51 = vpop.f32.mrf.mxu0  ;;  %9545 = vmatprep.subr.bf16.mxu0 %v16199_v20  ;;  %v16229_v11 = vld [vmem:[%s18143_s23 + $0x80c] ss:$16 sps:$4 sm:$0xff]   ;;  %v16227_v15 = vld [vmem:[%s18143_s23 + $0x808] ss:$16 sps:$4 sm:$0xff]  }
 0x3e1   : > { %v9269_v23 = vpop.f32.mrf.mxu1  ;;  %9562 = vmatprep.subr.bf16.mxu1 %v16202_v26  ;;  %v16232_v19 = vld [vmem:[%s18143_s23 + $0xa8c] ss:$16 sps:$4 sm:$0xff]   ;;  %v16233_v20 = vld [vmem:[%s18143_s23 + $0x9e8] ss:$16 sps:$4 sm:$0xff]  }
 0x3e2   : > { %v16238_v30 = vld [vmem:[%s18143_s23 + $0xa6c] ss:$16 sps:$4 sm:$0xff]   ;;  %v16236_v26 = vld [vmem:[%s18143_s23 + $0xa68] ss:$16 sps:$4 sm:$0xff]  }
 0x3e3   : > { %9546 = vmatpush2.bf16.msra.mxu0 %v16197_v33  ;;  %v16241_v16 = vld [vmem:[%s18143_s23 + $0x9cc] ss:$16 sps:$4 sm:$0xff]   ;;  %v16239_v58 = vld [vmem:[%s18143_s23 + $0x9c8] ss:$16 sps:$4 sm:$0xff]  }
 0x3e4   : > { %9563 = vmatpush1.bf16.msra.mxu1 %v16200_v14  ;;  %9547 = vmatprep.subr.bf16.mxu0 %v16205_v53  ;;  %v16244_v32 = vld [vmem:[%s18143_s23 + $0xa4c] ss:$16 sps:$4 sm:$0xff]   ;;  %v16242_v33 = vld [vmem:[%s18143_s23 + $0xa48] ss:$16 sps:$4 sm:$0xff]  }
 0x3e5   : > { %9564 = vmatprep.subr.bf16.mxu1 %v16208_v24  ;;  %v16247_v14 = vld [vmem:[%s18143_s23 + $0x9ac] ss:$16 sps:$4 sm:$0xff]   ;;  %v16245_v23 = vld [vmem:[%s18143_s23 + $0x9a8] ss:$16 sps:$4 sm:$0xff]  }
 0x3e6   : > { %v16250_v51 = vld [vmem:[%s18143_s23 + $0xa2c] ss:$16 sps:$4 sm:$0xff]   ;;  %v16248_v53 = vld [vmem:[%s18143_s23 + $0xa28] ss:$16 sps:$4 sm:$0xff]  }
 0x3e7   : > { %9548 = vmatpush2.bf16.msra.mxu0 %v16203_v37  ;;  %v16253_v24 = vld [vmem:[%s18143_s23 + $0x98c] ss:$16 sps:$4 sm:$0xff]  }
 0x3e8   : > { %9565 = vmatpush1.bf16.msra.mxu1 %v16206_v49  ;;  %9599 = vmatprep.subr.bf16.mxu0 %v16214_v6  ;;  %v16256_v37 = vld [vmem:[%s18143_s23 + $0xa0c] ss:$16 sps:$4 sm:$0xff]   ;;  %v16251_v49 = vld [vmem:[%s18143_s23 + $0x988] ss:$16 sps:$4 sm:$0xff]  }
 0x3e9   : > { %9566 = vmatprep.subr.bf16.mxu1 %v16211_v47  ;;  %v16254_v47 = vld [vmem:[%s18143_s23 + $0xa08] ss:$16 sps:$4 sm:$0xff]   ;;  %v16259_v6 = vld [vmem:[%s18143_s23 + $0x96c] ss:$16 sps:$4 sm:$0xff]  }
 0x3ea   : > { %9550 = vmatmul.mubr.bf16.vlgmr.msra.gmra.mxu0 %v18348_v17  ;;  %v16224_v17 = vld [vmem:[%s18143_s23 + $0xaa8] ss:$16 sps:$4 sm:$0xff]  }
 0x3eb   : > { %9600 = vmatpush1.bf16.msra.mxu0 %v16212_v62  ;;  %9631 = vmatprep.mubr.bf16.mxu0 %v18370_v25  ;;  %v16235_v25 = vld [vmem:[%s18143_s23 + $0x9ec] ss:$16 sps:$4 sm:$0xff]   ;;  %v16257_v62 = vld [vmem:[%s18143_s23 + $0x968] ss:$16 sps:$4 sm:$0xff]  }
 0x3ec   : > { %9567 = vmatpush1.bf16.msra.mxu1 %v16209_v18  ;;  %9601 = vmatprep.subr.bf16.mxu0 %v16220_v4  ;;  %v16262_v18 = vld [vmem:[%s18143_s23 + $0xbec] ss:$16 sps:$4 sm:$0xff]  }
 0x3ed   : > { %9568 = vmatprep.subr.bf16.mxu1 %v16217_v5  ;;  %v16260_v5 = vld [vmem:[%s18143_s23 + $0xbe8] ss:$16 sps:$4 sm:$0xff]   ;;  %v16265_v4 = vld [vmem:[%s18143_s23 + $0x94c] ss:$16 sps:$4 sm:$0xff]  }
 0x3ef   : > { %9602 = vmatpush1.bf16.msra.mxu0 %v16218_v36  ;;  %v16263_v36 = vld [vmem:[%s18143_s23 + $0x948] ss:$16 sps:$4 sm:$0xff]  }
 0x3f0   : > { %9569 = vmatpush1.bf16.msra.mxu1 %v16215_v8  ;;  %9603 = vmatprep.subr.bf16.mxu0 %v16226_v63  ;;  %v16268_v8 = vld [vmem:[%s18143_s23 + $0xbcc] ss:$16 sps:$4 sm:$0xff]  }
 0x3f1   : > { %9570 = vmatprep.subr.bf16.mxu1 %v16223_v21  ;;  %v16266_v21 = vld [vmem:[%s18143_s23 + $0xbc8] ss:$16 sps:$4 sm:$0xff]   ;;  %v16271_v63 = vld [vmem:[%s18143_s23 + $0x92c] ss:$16 sps:$4 sm:$0xff]  }
 0x3f3   : > { %9604 = vmatpush1.bf16.msra.mxu0 %v16224_v17  ;;  %v16269_v17 = vld [vmem:[%s18143_s23 + $0x928] ss:$16 sps:$4 sm:$0xff]  }
 0x3f4   : > { %9571 = vmatpush1.bf16.msra.mxu1 %v16221_v52  ;;  %9605 = vmatprep.subr.bf16.mxu0 %v16232_v19  ;;  %v16274_v52 = vld [vmem:[%s18143_s23 + $0xbac] ss:$16 sps:$4 sm:$0xff]  }
 0x3f5   : > { %9572 = vmatprep.subr.bf16.mxu1 %v16229_v11  ;;  %v16272_v11 = vld [vmem:[%s18143_s23 + $0xba8] ss:$16 sps:$4 sm:$0xff]   ;;  %v16277_v19 = vld [vmem:[%s18143_s23 + $0x90c] ss:$16 sps:$4 sm:$0xff]  }
 0x3f7   : > { %9606 = vmatpush1.bf16.msra.mxu0 %v16230_v3  ;;  %v16275_v3 = vld [vmem:[%s18143_s23 + $0x908] ss:$16 sps:$4 sm:$0xff]  }
 0x3f8   : > { %9573 = vmatpush1.bf16.msra.mxu1 %v16227_v15  ;;  %9607 = vmatprep.subr.bf16.mxu0 %v16238_v30  ;;  %v16280_v15 = vld [vmem:[%s18143_s23 + $0xb8c] ss:$16 sps:$4 sm:$0xff]  }
 0x3f9   : > { %9574 = vmatprep.subr.bf16.mxu1 %v16235_v25  ;;  %v16278_v25 = vld [vmem:[%s18143_s23 + $0xb88] ss:$16 sps:$4 sm:$0xff]   ;;  %v16283_v30 = vld [vmem:[%s18143_s23 + $0xb6c] ss:$16 sps:$4 sm:$0xff]  }
 0x3fb   : > { %9608 = vmatpush1.bf16.msra.mxu0 %v16236_v26  ;;  %v16281_v26 = vld [vmem:[%s18143_s23 + $0xb68] ss:$16 sps:$4 sm:$0xff]  }
 0x3fc   : > { %9575 = vmatpush2.bf16.msra.mxu1 %v16233_v20  ;;  %9609 = vmatprep.subr.bf16.mxu0 %v16244_v32  ;;  %v16286_v20 = vld [vmem:[%s18143_s23 + $0xcec] ss:$16 sps:$4 sm:$0xff]  }
 0x3fd   : > { %9576 = vmatprep.subr.bf16.mxu1 %v16241_v16  ;;  %v16284_v16 = vld [vmem:[%s18143_s23 + $0xce8] ss:$16 sps:$4 sm:$0xff]   ;;  %v16289_v32 = vld [vmem:[%s18143_s23 + $0xb4c] ss:$16 sps:$4 sm:$0xff]  }
 0x3ff   : > { %9610 = vmatpush1.bf16.msra.mxu0 %v16242_v33 }
 0x400   : > { %9577 = vmatpush2.bf16.msra.mxu1 %v16239_v58  ;;  %9611 = vmatprep.subr.bf16.mxu0 %v16250_v51  ;;  %v16292_v58 = vld [vmem:[%s18143_s23 + $0xccc] ss:$16 sps:$4 sm:$0xff]   ;;  %v16287_v51 = vld [vmem:[%s18143_s23 + $0xb48] ss:$16 sps:$4 sm:$0xff]  }
 0x401   : > { %9578 = vmatprep.subr.bf16.mxu1 %v16247_v14 }
 0x403   : > { %9612 = vmatpush1.bf16.msra.mxu0 %v16248_v53 }
 0x404   : > { %9579 = vmatpush2.bf16.msra.mxu1 %v16245_v23  ;;  %9613 = vmatprep.subr.bf16.mxu0 %v16256_v37  ;;  %v16290_v23 = vld [vmem:[%s18143_s23 + $0xcc8] ss:$16 sps:$4 sm:$0xff]   ;;  %v16295_v37 = vld [vmem:[%s18143_s23 + $0xb2c] ss:$16 sps:$4 sm:$0xff]  }
 0x405   : > { %9580 = vmatprep.subr.bf16.mxu1 %v16253_v24 }
 0x407   : > { %9614 = vmatpush1.bf16.msra.mxu0 %v16254_v47  ;;  %v10257_v47 = vlaneseq }
 0x408   : > { %9581 = vmatpush2.bf16.msra.mxu1 %v16251_v49  ;;  %9615 = vmatprep.subr.bf16.mxu0 %v16262_v18  ;;  %v16298_v49 = vld [vmem:[%s18143_s23 + $0xcac] ss:$16 sps:$4 sm:$0xff]   ;;  %v16293_v18 = vld [vmem:[%s18143_s23 + $0xb28] ss:$16 sps:$4 sm:$0xff]  }
 0x409   : > { %9582 = vmatprep.subr.bf16.mxu1 %v16259_v6 }
 0x40b   : > { %9616 = vmatpush2.bf16.msra.mxu0 %v16260_v5 }
 0x40c   : > { %9583 = vmatpush2.bf16.msra.mxu1 %v16257_v62  ;;  %9617 = vmatprep.subr.bf16.mxu0 %v16268_v8  ;;  %v16296_v62 = vld [vmem:[%s18143_s23 + $0xca8] ss:$16 sps:$4 sm:$0xff]   ;;  %v16301_v8 = vld [vmem:[%s18143_s23 + $0xb0c] ss:$16 sps:$4 sm:$0xff]  }
 0x40d   : > { %9584 = vmatprep.subr.bf16.mxu1 %v16265_v4 }
 0x40f   : > { %9618 = vmatpush2.bf16.msra.mxu0 %v16266_v21  ;;  %v19377_v21 = vshrl.u32 %v10257_v47, 7  ;;  %v16319_v47 = vld [vmem:[%s18143_s23 + $0xc2c] ss:$16 sps:$4 sm:$0xff]  }
 0x410   : > { %9585 = vmatpush2.bf16.msra.mxu1 %v16263_v36  ;;  %9619 = vmatprep.subr.bf16.mxu0 %v16274_v52  ;;  %v16304_v36 = vld [vmem:[%s18143_s23 + $0xc8c] ss:$16 sps:$4 sm:$0xff]  }
 0x411   : > { %9586 = vmatprep.subr.bf16.mxu1 %v16271_v63  ;;  %v16302_v63 = vld [vmem:[%s18143_s23 + $0xc88] ss:$16 sps:$4 sm:$0xff]   ;;  %v16307_v52 = vld [vmem:[%s18143_s23 + $0xc6c] ss:$16 sps:$4 sm:$0xff]  }
 0x413   : > { %9620 = vmatpush2.bf16.msra.mxu0 %v16272_v11 }
 0x414   : > { %9587 = vmatpush2.bf16.msra.mxu1 %v16269_v17  ;;  %9621 = vmatprep.subr.bf16.mxu0 %v16280_v15  ;;  %v16310_v17 = vld [vmem:[%s18143_s23 + $0xeec] ss:$16 sps:$4 sm:$0xff]   ;;  %v10255_v15 = vld [vmem:[%s18150_s4] sm:$0xf] }
 0x415   : > { %9588 = vmatprep.subr.bf16.mxu1 %v16277_v19  ;;  %v19385_v19 = vsub.s32 0, %v19377_v21 }
 0x417   : > { %9622 = vmatpush2.bf16.msra.mxu0 %v16278_v25 }
 0x418   : > { %9589 = vmatpush2.bf16.msra.mxu1 %v16275_v3  ;;  %9623 = vmatprep.subr.bf16.mxu0 %v16283_v30  ;;  %v16305_v3 = vld [vmem:[%s18143_s23 + $0xc68] ss:$16 sps:$4 sm:$0xff]  }
 0x419   : > { %9640 = vmatprep.subr.bf16.mxu1 %v16286_v20  ;;  %v10281_v30 = vld [vmem:[%s18156_s28] sm:$0xf] }
 0x41a   : > { %v9305_v33 = vpop.f32.mrf.mxu0  ;;  %v16308_v20 = vld [vmem:[%s18143_s23 + $0xee8] ss:$16 sps:$4 sm:$0xff]  }
 0x41b   : > { %v9346_v14 = vpop.f32.mrf.mxu1  ;;  %9591 = vmatmul.mubr.bf16.vlgmr.msra.gmra.mxu1 %v18440_v38  ;;  %9624 = vmatpush2.bf16.msra.mxu0 %v16281_v26  ;;  %v9306_v11 = vadd.f32 %v9305_v33, %v19299_v2  ;;  %v19394_v26 = vsub.s32 1, %v19377_v21  ;;  %v16313_v2 = vld [vmem:[%s18143_s23 + $0xc4c] ss:$16 sps:$4 sm:$0xff]   ;;  %v10286_v33 = vrot.slane %v10281_v30, %v19385_v19 }
 0x41c   : > { %9641 = vmatpush1.bf16.msra.mxu1 %v16284_v16  ;;  %v9307_v53 = vpop.f32.mrf.mxu0  ;;  %9625 = vmatprep.subr.bf16.mxu0 %v16289_v32  ;;  %v16316_v16 = vld [vmem:[%s18143_s23 + $0xecc] ss:$16 sps:$4 sm:$0xff]  }
 0x41d   : > { %v9348_v24 = vpop.f32.mrf.mxu1  ;;  %9642 = vmatprep.subr.bf16.mxu1 %v16292_v58  ;;  %9672 = vmatprep.mubr.bf16.mxu1 %v18460_v42  ;;  %v16299_v42 = vld [vmem:[%s18143_s23 + $0xb08] ss:$16 sps:$4 sm:$0xff]   ;;  %v9308_v25 = vadd.f32 %v9307_v53, %v19303_v7  ;;  %v9347_v32 = vadd.f32 %v9346_v14, %v9306_v11  ;;  %v10260_v58 = vrot.slane %v10255_v15, %v19385_v19 }
 0x41e   : > { %v9309_v6 = vpop.f32.mrf.mxu0  ;;  %v10264_v53 = vrot.slane %v10255_v15, %v19394_v26  ;;  %v16314_v14 = vld [vmem:[%s18143_s23 + $0xec8] ss:$16 sps:$4 sm:$0xff]  }
 0x41f   : > { %v9350_v38 = vpop.f32.mrf.mxu1  ;;  %9626 = vmatpush2.bf16.msra.mxu0 %v16287_v51  ;;  %v9349_v51 = vadd.f32 %v9348_v24, %v9308_v25  ;;  %v16322_v6 = vld [vmem:[%s18143_s23 + $0xeac] ss:$16 sps:$4 sm:$0xff]   ;;  %v10290_v24 = vrot.slane %v10281_v30, %v19394_v26  ;;  %v16323_v11 = vld [vmem:[%s18143_s23 + $0xc08] ss:$16 sps:$4 sm:$0xff]  }
 0x420   : > { %9643 = vmatpush1.bf16.msra.mxu1 %v16290_v23  ;;  %v9310_v5 = vpop.f32.mrf.mxu0  ;;  %9627 = vmatprep.subr.bf16.mxu0 %v16295_v37  ;;  %v16311_v37 = vld [vmem:[%s18143_s23 + $0xc48] ss:$16 sps:$4 sm:$0xff]   ;;  %v16334_v25 = vld [vmem:[%s18143_s23 + $0xe6c] ss:$16 sps:$4 sm:$0xff]  }
 0x421   : > { %v9351_v4 = vpop.f32.mrf.mxu1  ;;  %9644 = vmatprep.subr.bf16.mxu1 %v16298_v49  ;;  %v16326_v15 = vld [vmem:[%s18143_s23 + $0xe88] ss:$16 sps:$4 sm:$0xff]  }
 0x422   : > { %v16317_v4 = vld [vmem:[%s18143_s23 + $0xc28] ss:$16 sps:$4 sm:$0xff]  }
 0x423   : > { %9628 = vmatpush2.bf16.msra.mxu0 %v16293_v18  ;;  %v16329_v30 = vld [vmem:[%s18143_s23 + $0xde8] ss:$16 sps:$4 sm:$0xff]  }
 0x424   : > { %9645 = vmatpush1.bf16.msra.mxu1 %v16296_v62  ;;  %9629 = vmatprep.subr.bf16.mxu0 %v16301_v8  ;;  %v16320_v8 = vld [vmem:[%s18143_s23 + $0xea8] ss:$16 sps:$4 sm:$0xff]  }
 0x425   : > { %9646 = vmatprep.subr.bf16.mxu1 %v16304_v36 }
 0x427   : > { %9630 = vmatpush2.bf16.msra.mxu0 %v16299_v42  ;;  %v16325_v42 = vld [vmem:[%s18143_s23 + $0xc0c] ss:$16 sps:$4 sm:$0xff]  }
 0x428   : > { %9647 = vmatpush1.bf16.msra.mxu1 %v16302_v63  ;;  %9681 = vmatprep.subr.bf16.mxu0 %v16310_v17  ;;  %v16328_v63 = vld [vmem:[%s18143_s23 + $0xe8c] ss:$16 sps:$4 sm:$0xff]  }
 0x429   : > { %9648 = vmatprep.subr.bf16.mxu1 %v16307_v52 }
 0x42a   : > { %v9387_v7 = vpop.f32.mrf.mxu0  ;;  %9632 = vmatmul.mubr.bf16.vlgmr.msra.gmra.mxu0 %v18444_v39 }
 0x42b   : > { %v9388_v23 = vadd.f32 %v9387_v7, %v9347_v32  ;;  %9682 = vmatpush1.bf16.msra.mxu0 %v16308_v20  ;;  %9713 = vmatprep.mubr.bf16.mxu0 %v18464_v43  ;;  %v16332_v20 = vld [vmem:[%s18143_s23 + $0xe68] ss:$16 sps:$4 sm:$0xff]   ;;  %v16343_v7 = vld [vmem:[%s18143_s23 + $0xdac] ss:$16 sps:$4 sm:$0xff]  }
 0x42c   : > { %9649 = vmatpush1.bf16.msra.mxu1 %v16305_v3  ;;  %v9389_v49 = vpop.f32.mrf.mxu0  ;;  %9683 = vmatprep.subr.bf16.mxu0 %v16316_v16  ;;  %v16331_v3 = vld [vmem:[%s18143_s23 + $0xdec] ss:$16 sps:$4 sm:$0xff]   ;;  %v16335_v32 = vld [vmem:[%s18143_s23 + $0xdc8] ss:$16 sps:$4 sm:$0xff]  }
 0x42d   : > { %9650 = vmatprep.subr.bf16.mxu1 %v16313_v2  ;;  %v10277_v38 = vmul.f32 %v10260_v58, %v9388_v23  ;;  %v9390_v39 = vadd.f32 %v9389_v49, %v9349_v51  ;;  %v16337_v2 = vld [vmem:[%s18143_s23 + $0xdcc] ss:$16 sps:$4 sm:$0xff]   ;;  %v16338_v58 = vld [vmem:[%s18143_s23 + $0xe48] ss:$16 sps:$4 sm:$0xff]  }
 0x42e   : > { %v9391_v18 = vpop.f32.mrf.mxu0  ;;  %v16340_v16 = vld [vmem:[%s18143_s23 + $0xe4c] ss:$16 sps:$4 sm:$0xff]   ;;  %v16341_v51 = vld [vmem:[%s18143_s23 + $0xda8] ss:$16 sps:$4 sm:$0xff]  }
 0x42f   : > { %v10303_v62 = vadd.f32 %v10286_v33, %v10277_v38  ;;  %v10278_v5 = vmul.f32 %v10264_v53, %v9390_v39  ;;  %9684 = vmatpush1.bf16.msra.mxu0 %v16314_v14  ;;  %v16346_v33 = vld [vmem:[%s18143_s23 + $0xe2c] ss:$16 sps:$4 sm:$0xff]   ;;  %v16344_v23 = vld [vmem:[%s18143_s23 + $0xe28] ss:$16 sps:$4 sm:$0xff]  }
 0x430   : > { %9651 = vmatpush1.bf16.msra.mxu1 %v16311_v37  ;;  %v9392_v36 = vpop.f32.mrf.mxu0  ;;  %9685 = vmatprep.subr.bf16.mxu0 %v16322_v6  ;;  %v16349_v53 = vld [vmem:[%s18143_s23 + $0xd8c] ss:$16 sps:$4 sm:$0xff]   ;;  %v16347_v14 = vld [vmem:[%s18143_s23 + $0xd88] ss:$16 sps:$4 sm:$0xff]  }
 0x431   : > { %9652 = vmatprep.subr.bf16.mxu1 %v16319_v47  ;;  %v10307_v52 = vmax.f32 %v10303_v62, 0.0  ;;  %v10304_v17 = vadd.f32 %v10290_v24, %v10278_v5  ;;  %v16352_v37 = vld [vmem:[%s18143_s23 + $0xe0c] ss:$16 sps:$4 sm:$0xff]   ;;  %v16350_v49 = vld [vmem:[%s18143_s23 + $0xe08] ss:$16 sps:$4 sm:$0xff]  }
 0x432   : > { %v16355_v47 = vld [vmem:[%s18143_s23 + $0xd6c] ss:$16 sps:$4 sm:$0xff]   ;;  %v16353_v38 = vld [vmem:[%s18143_s23 + $0xd68] ss:$16 sps:$4 sm:$0xff]  }
 0x433   : > { %10316 = vst [vmem:[%s19415_s14] sm:$0xff] %v10307_v52  ;;  %v10308_v43 = vmax.f32 %v10304_v17, 0.0  ;;  %9686 = vmatpush1.bf16.msra.mxu0 %v16320_v8  ;;  %v16358_v6 = vld [vmem:[%s18143_s23 + $0xfec] ss:$16 sps:$4 sm:$0xff]   ;;  %v16356_v39 = vld [vmem:[%s18143_s23 + $0xfe8] ss:$16 sps:$4 sm:$0xff]  }
 0x434   : > { %9653 = vmatpush1.bf16.msra.mxu1 %v16317_v4  ;;  %9687 = vmatprep.subr.bf16.mxu0 %v16328_v63  ;;  %v16361_v24 = vld [vmem:[%s18143_s23 + $0xd4c] ss:$16 sps:$4 sm:$0xff]   ;;  %v16359_v62 = vld [vmem:[%s18143_s23 + $0xd48] ss:$16 sps:$4 sm:$0xff]  }
 0x435   : > { %9654 = vmatprep.subr.bf16.mxu1 %v16325_v42  ;;  %10317 = vst [vmem:[%s19415_s14 + $0x8] sm:$0xff] %v10308_v43  ;;  %v16364_v18 = vld [vmem:[%s18143_s23 + $0xfcc] ss:$16 sps:$4 sm:$0xff]   ;;  %v16362_v5 = vld [vmem:[%s18143_s23 + $0xfc8] ss:$16 sps:$4 sm:$0xff]  }
 0x436   : > { %v16367_v4 = vld [vmem:[%s18143_s23 + $0xd2c] ss:$16 sps:$4 sm:$0xff]   ;;  %v16365_v36 = vld [vmem:[%s18143_s23 + $0xd28] ss:$16 sps:$4 sm:$0xff]  }
 0x437   : > { %9688 = vmatpush1.bf16.msra.mxu0 %v16326_v15  ;;  %v16370_v8 = vld [vmem:[%s18143_s23 + $0xfac] ss:$16 sps:$4 sm:$0xff]   ;;  %v16368_v42 = vld [vmem:[%s18143_s23 + $0xfa8] ss:$16 sps:$4 sm:$0xff]  }
 0x438   : > { %9655 = vmatpush1.bf16.msra.mxu1 %v16323_v11  ;;  %9689 = vmatprep.subr.bf16.mxu0 %v16334_v25  ;;  %v16373_v63 = vld [vmem:[%s18143_s23 + $0xd0c] ss:$16 sps:$4 sm:$0xff]   ;;  %v16371_v17 = vld [vmem:[%s18143_s23 + $0xd08] ss:$16 sps:$4 sm:$0xff]  }
 0x439   : > { %9656 = vmatprep.subr.bf16.mxu1 %v16331_v3  ;;  %v16376_v52 = vld [vmem:[%s18143_s23 + $0xf8c] ss:$16 sps:$4 sm:$0xff]   ;;  %v16374_v43 = vld [vmem:[%s18143_s23 + $0xf88] ss:$16 sps:$4 sm:$0xff]  }
 0x43a   : > { %v16379_v11 = vld [vmem:[%s18143_s23 + $0xf6c] ss:$16 sps:$4 sm:$0xff]   ;;  %v16377_v3 = vld [vmem:[%s18143_s23 + $0xf68] ss:$16 sps:$4 sm:$0xff]  }
 0x43b   : > { %9690 = vmatpush1.bf16.msra.mxu0 %v16332_v20  ;;  %v16382_v15 = vld [vmem:[%s18143_s23 + $0x10ec] ss:$16 sps:$4 sm:$0xff]   ;;  %v16380_v25 = vld [vmem:[%s18143_s23 + $0x10e8] ss:$16 sps:$4 sm:$0xff]  }
 0x43c   : > { %9657 = vmatpush2.bf16.msra.mxu1 %v16329_v30  ;;  %9691 = vmatprep.subr.bf16.mxu0 %v16340_v16  ;;  %v16385_v30 = vld [vmem:[%s18143_s23 + $0xf4c] ss:$16 sps:$4 sm:$0xff]   ;;  %v16383_v16 = vld [vmem:[%s18143_s23 + $0xf48] ss:$16 sps:$4 sm:$0xff]  }
 0x43d   : > { %9658 = vmatprep.subr.bf16.mxu1 %v16337_v2  ;;  %v16388_v20 = vld [vmem:[%s18143_s23 + $0x10cc] ss:$16 sps:$4 sm:$0xff]  }
 0x43f   : > { %9692 = vmatpush1.bf16.msra.mxu0 %v16338_v58 }
 0x440   : > { %9659 = vmatpush2.bf16.msra.mxu1 %v16335_v32  ;;  %9693 = vmatprep.subr.bf16.mxu0 %v16346_v33  ;;  %v16386_v32 = vld [vmem:[%s18143_s23 + $0x10c8] ss:$16 sps:$4 sm:$0xff]   ;;  %v16394_v33 = vld [vmem:[%s18143_s23 + $0x10ac] ss:$16 sps:$4 sm:$0xff]  }
 0x441   : > { %9660 = vmatprep.subr.bf16.mxu1 %v16343_v7  ;;  %v16391_v7 = vld [vmem:[%s18143_s23 + $0xf2c] ss:$16 sps:$4 sm:$0xff]  }
 0x443   : > { %9694 = vmatpush1.bf16.msra.mxu0 %v16344_v23  ;;  %v16392_v23 = vld [vmem:[%s18143_s23 + $0x10a8] ss:$16 sps:$4 sm:$0xff]  }
 0x444   : > { %9661 = vmatpush2.bf16.msra.mxu1 %v16341_v51  ;;  %9695 = vmatprep.subr.bf16.mxu0 %v16352_v37  ;;  %v16397_v37 = vld [vmem:[%s18143_s23 + $0xf0c] ss:$16 sps:$4 sm:$0xff]  }
 0x445   : > { %9662 = vmatprep.subr.bf16.mxu1 %v16349_v53 }
 0x447   : > { %9696 = vmatpush1.bf16.msra.mxu0 %v16350_v49  ;;  %v16395_v49 = vld [vmem:[%s18143_s23 + $0xf08] ss:$16 sps:$4 sm:$0xff]  }
 0x448   : > { %9663 = vmatpush2.bf16.msra.mxu1 %v16347_v14  ;;  %9697 = vmatprep.subr.bf16.mxu0 %v16358_v6  ;;  %v16400_v14 = vld [vmem:[%s18143_s23 + $0x108c] ss:$16 sps:$4 sm:$0xff]  }
 0x449   : > { %9664 = vmatprep.subr.bf16.mxu1 %v16355_v47  ;;  %v16403_v47 = vld [vmem:[%s18143_s23 + $0x106c] ss:$16 sps:$4 sm:$0xff]  }
 0x44a   : > { %v16406_v6 = vld [vmem:[%s18143_s23 + $0x12ec] ss:$16 sps:$4 sm:$0xff]  }
 0x44b   : > { %9698 = vmatpush2.bf16.msra.mxu0 %v16356_v39  ;;  %v16404_v39 = vld [vmem:[%s18143_s23 + $0x12e8] ss:$16 sps:$4 sm:$0xff]  }
 0x44c   : > { %9665 = vmatpush2.bf16.msra.mxu1 %v16353_v38  ;;  %9699 = vmatprep.subr.bf16.mxu0 %v16364_v18  ;;  %v16401_v38 = vld [vmem:[%s18143_s23 + $0x1068] ss:$16 sps:$4 sm:$0xff]   ;;  %v16412_v18 = vld [vmem:[%s18143_s23 + $0x12cc] ss:$16 sps:$4 sm:$0xff]  }
 0x44d   : > { %9666 = vmatprep.subr.bf16.mxu1 %v16361_v24  ;;  %v16409_v24 = vld [vmem:[%s18143_s23 + $0x104c] ss:$16 sps:$4 sm:$0xff]  }
 0x44f   : > { %9700 = vmatpush2.bf16.msra.mxu0 %v16362_v5 }
 0x450   : > { %9667 = vmatpush2.bf16.msra.mxu1 %v16359_v62  ;;  %9701 = vmatprep.subr.bf16.mxu0 %v16370_v8  ;;  %v16410_v8 = vld [vmem:[%s18143_s23 + $0x12c8] ss:$16 sps:$4 sm:$0xff]  }
 0x451   : > { %9668 = vmatprep.subr.bf16.mxu1 %v16367_v4  ;;  %v16407_v4 = vld [vmem:[%s18143_s23 + $0x1048] ss:$16 sps:$4 sm:$0xff]  }
 0x453   : > { %9702 = vmatpush2.bf16.msra.mxu0 %v16368_v42  ;;  %v16415_v42 = vld [vmem:[%s18143_s23 + $0x102c] ss:$16 sps:$4 sm:$0xff]  }
 0x454   : > { %9669 = vmatpush2.bf16.msra.mxu1 %v16365_v36  ;;  %9703 = vmatprep.subr.bf16.mxu0 %v16376_v52 }
 0x455   : > { %9670 = vmatprep.subr.bf16.mxu1 %v16373_v63  ;;  %v16418_v63 = vld [vmem:[%s18143_s23 + $0x12ac] ss:$16 sps:$4 sm:$0xff]  }
 0x457   : > { %9704 = vmatpush2.bf16.msra.mxu0 %v16374_v43  ;;  %v16416_v43 = vld [vmem:[%s18143_s23 + $0x12a8] ss:$16 sps:$4 sm:$0xff]  }
 0x458   : > { %9671 = vmatpush2.bf16.msra.mxu1 %v16371_v17  ;;  %9705 = vmatprep.subr.bf16.mxu0 %v16379_v11  ;;  %v16413_v17 = vld [vmem:[%s18143_s23 + $0x1028] ss:$16 sps:$4 sm:$0xff]  }
 0x459   : > { %9722 = vmatprep.subr.bf16.mxu1 %v16382_v15  ;;  %v16421_v15 = vld [vmem:[%s18143_s23 + $0x100c] ss:$16 sps:$4 sm:$0xff]  }
 0x45b   : > { %v9428_v2 = vpop.f32.mrf.mxu1  ;;  %9673 = vmatmul.mubr.bf16.vlgmr.msra.gmra.mxu1 %v18537_v59  ;;  %9706 = vmatpush2.bf16.msra.mxu0 %v16377_v3  ;;  %v16389_v59 = vld [vmem:[%s18143_s23 + $0xf28] ss:$16 sps:$4 sm:$0xff]   ;;  %v16424_v3 = vld [vmem:[%s18143_s23 + $0x128c] ss:$16 sps:$4 sm:$0xff]  }
 0x45c   : > { %9723 = vmatpush1.bf16.msra.mxu1 %v16380_v25  ;;  %9707 = vmatprep.subr.bf16.mxu0 %v16385_v30  ;;  %v16419_v25 = vld [vmem:[%s18143_s23 + $0x1008] ss:$16 sps:$4 sm:$0xff]   ;;  %v16427_v30 = vld [vmem:[%s18143_s23 + $0x11ec] ss:$16 sps:$4 sm:$0xff]  }
 0x45d   : > { %v9430_v58 = vpop.f32.mrf.mxu1  ;;  %9724 = vmatprep.subr.bf16.mxu1 %v16388_v20  ;;  %9754 = vmatprep.mubr.bf16.mxu1 %v18554_v41  ;;  %v16398_v41 = vld [vmem:[%s18143_s23 + $0x1088] ss:$16 sps:$4 sm:$0xff]   ;;  %v16430_v20 = vld [vmem:[%s18143_s23 + $0x126c] ss:$16 sps:$4 sm:$0xff]  }
 0x45f   : > { %v9432_v51 = vpop.f32.mrf.mxu1  ;;  %9708 = vmatpush2.bf16.msra.mxu0 %v16383_v16  ;;  %v16428_v16 = vld [vmem:[%s18143_s23 + $0x1268] ss:$16 sps:$4 sm:$0xff]  }
 0x460   : > { %9725 = vmatpush1.bf16.msra.mxu1 %v16386_v32  ;;  %9709 = vmatprep.subr.bf16.mxu0 %v16391_v7  ;;  %v16433_v32 = vld [vmem:[%s18143_s23 + $0x11cc] ss:$16 sps:$4 sm:$0xff]   ;;  %v16431_v7 = vld [vmem:[%s18143_s23 + $0x11c8] ss:$16 sps:$4 sm:$0xff]  }
 0x461   : > { %v9433_v53 = vpop.f32.mrf.mxu1  ;;  %9726 = vmatprep.subr.bf16.mxu1 %v16394_v33  ;;  %v16434_v33 = vld [vmem:[%s18143_s23 + $0x1248] ss:$16 sps:$4 sm:$0xff]   ;;  %v16439_v51 = vld [vmem:[%s18143_s23 + $0x11ac] ss:$16 sps:$4 sm:$0xff]  }
 0x462   : > { %v16440_v53 = vld [vmem:[%s18143_s23 + $0x1228] ss:$16 sps:$4 sm:$0xff]  }
 0x463   : > { %9710 = vmatpush2.bf16.msra.mxu0 %v16389_v59  ;;  %v16442_v59 = vld [vmem:[%s18143_s23 + $0x122c] ss:$16 sps:$4 sm:$0xff]  }
 0x464   : > { %9727 = vmatpush1.bf16.msra.mxu1 %v16392_v23  ;;  %9711 = vmatprep.subr.bf16.mxu0 %v16397_v37  ;;  %v16437_v23 = vld [vmem:[%s18143_s23 + $0x11a8] ss:$16 sps:$4 sm:$0xff]   ;;  %v16445_v37 = vld [vmem:[%s18143_s23 + $0x118c] ss:$16 sps:$4 sm:$0xff]  }
 0x465   : > { %9728 = vmatprep.subr.bf16.mxu1 %v16400_v14  ;;  %v16448_v14 = vld [vmem:[%s18143_s23 + $0x120c] ss:$16 sps:$4 sm:$0xff]  }
 0x467   : > { %9712 = vmatpush2.bf16.msra.mxu0 %v16395_v49  ;;  %v16443_v49 = vld [vmem:[%s18143_s23 + $0x1188] ss:$16 sps:$4 sm:$0xff]  }
 0x468   : > { %9729 = vmatpush1.bf16.msra.mxu1 %v16398_v41  ;;  %9763 = vmatprep.subr.bf16.mxu0 %v16406_v6  ;;  %v16446_v41 = vld [vmem:[%s18143_s23 + $0x1208] ss:$16 sps:$4 sm:$0xff]   ;;  %v16454_v6 = vld [vmem:[%s18143_s23 + $0x13ec] ss:$16 sps:$4 sm:$0xff]  }
 0x469   : > { %9730 = vmatprep.subr.bf16.mxu1 %v16403_v47  ;;  %v16451_v47 = vld [vmem:[%s18143_s23 + $0x116c] ss:$16 sps:$4 sm:$0xff]  }
 0x46a   : > { %v9469_v62 = vpop.f32.mrf.mxu0  ;;  %9714 = vmatmul.mubr.bf16.vlgmr.msra.gmra.mxu0 %v18541_v60 }
 0x46b   : > { %v19478_v5 = vadd.f32 %v9469_v62, %v9428_v2  ;;  %9764 = vmatpush1.bf16.msra.mxu0 %v16404_v39  ;;  %9795 = vmatprep.mubr.bf16.mxu0 %v18558_v1  ;;  %v16422_v1 = vld [vmem:[%s18143_s23 + $0x1288] ss:$16 sps:$4 sm:$0xff]  }
 0x46c   : > { %9731 = vmatpush1.bf16.msra.mxu1 %v16401_v38  ;;  %v9471_v36 = vpop.f32.mrf.mxu0  ;;  %9765 = vmatprep.subr.bf16.mxu0 %v16412_v18  ;;  %v16425_v2 = vld [vmem:[%s18143_s23 + $0x11e8] ss:$16 sps:$4 sm:$0xff]   ;;  %v16460_v18 = vld [vmem:[%s18143_s23 + $0x13cc] ss:$16 sps:$4 sm:$0xff]  }
 0x46d   : > { %9732 = vmatprep.subr.bf16.mxu1 %v16409_v24  ;;  %v19484_v52 = vadd.f32 %v9471_v36, %v9430_v58  ;;  %v16436_v58 = vld [vmem:[%s18143_s23 + $0x124c] ss:$16 sps:$4 sm:$0xff]   ;;  %v16449_v38 = vld [vmem:[%s18143_s23 + $0x1168] ss:$16 sps:$4 sm:$0xff]  }
 0x46e   : > { %v9473_v60 = vpop.f32.mrf.mxu0  ;;  %v16452_v39 = vld [vmem:[%s18143_s23 + $0x13e8] ss:$16 sps:$4 sm:$0xff]   ;;  %v16457_v24 = vld [vmem:[%s18143_s23 + $0x114c] ss:$16 sps:$4 sm:$0xff]  }
 0x46f   : > { %9766 = vmatpush1.bf16.msra.mxu0 %v16410_v8  ;;  %v16455_v62 = vld [vmem:[%s18143_s23 + $0x1148] ss:$16 sps:$4 sm:$0xff]   ;;  %v16463_v8 = vld [vmem:[%s18143_s23 + $0x112c] ss:$16 sps:$4 sm:$0xff]  }
 0x470   : > { %9733 = vmatpush1.bf16.msra.mxu1 %v16407_v4  ;;  %v9474_v11 = vpop.f32.mrf.mxu0  ;;  %9767 = vmatprep.subr.bf16.mxu0 %v16418_v63  ;;  %v16458_v4 = vld [vmem:[%s18143_s23 + $0x13c8] ss:$16 sps:$4 sm:$0xff]   ;;  %v16466_v36 = vld [vmem:[%s18143_s23 + $0x13ac] ss:$16 sps:$4 sm:$0xff]  }
 0x471   : > { %9734 = vmatprep.subr.bf16.mxu1 %v16415_v42  ;;  %v16461_v42 = vld [vmem:[%s18143_s23 + $0x1128] ss:$16 sps:$4 sm:$0xff]   ;;  %v16469_v60 = vld [vmem:[%s18143_s23 + $0x110c] ss:$16 sps:$4 sm:$0xff]  }
 0x472   : > { %v16464_v63 = vld [vmem:[%s18143_s23 + $0x13a8] ss:$16 sps:$4 sm:$0xff]  }
 0x473   : > { %9768 = vmatpush1.bf16.msra.mxu0 %v16416_v43  ;;  %v16467_v43 = vld [vmem:[%s18143_s23 + $0x1108] ss:$16 sps:$4 sm:$0xff]  }
 0x474   : > { %9735 = vmatpush1.bf16.msra.mxu1 %v16413_v17  ;;  %9769 = vmatprep.subr.bf16.mxu0 %v16424_v3  ;;  %v16472_v17 = vld [vmem:[%s18143_s23 + $0x138c] ss:$16 sps:$4 sm:$0xff]   ;;  %v16470_v11 = vld [vmem:[%s18143_s23 + $0x1388] ss:$16 sps:$4 sm:$0xff]  }
 0x475   : > { %9736 = vmatprep.subr.bf16.mxu1 %v16421_v15  ;;  %v16475_v15 = vld [vmem:[%s18143_s23 + $0x136c] ss:$16 sps:$4 sm:$0xff]  }
 0x476   : > { %v16478_v3 = vld [vmem:[%s18143_s23 + $0x14ec] ss:$16 sps:$4 sm:$0xff]  }
 0x477   : > { %9770 = vmatpush1.bf16.msra.mxu0 %v16422_v1  ;;  %v16476_v1 = vld [vmem:[%s18143_s23 + $0x14e8] ss:$16 sps:$4 sm:$0xff]  }
 0x478   : > { %9737 = vmatpush1.bf16.msra.mxu1 %v16419_v25  ;;  %9771 = vmatprep.subr.bf16.mxu0 %v16430_v20  ;;  %v16473_v25 = vld [vmem:[%s18143_s23 + $0x1368] ss:$16 sps:$4 sm:$0xff]   ;;  %v16484_v20 = vld [vmem:[%s18143_s23 + $0x14cc] ss:$16 sps:$4 sm:$0xff]  }
 0x479   : > { %9738 = vmatprep.subr.bf16.mxu1 %v16427_v30  ;;  %v16481_v30 = vld [vmem:[%s18143_s23 + $0x134c] ss:$16 sps:$4 sm:$0xff]  }
 0x47b   : > { %9772 = vmatpush1.bf16.msra.mxu0 %v16428_v16 }
 0x47c   : > { %9739 = vmatpush2.bf16.msra.mxu1 %v16425_v2  ;;  %9773 = vmatprep.subr.bf16.mxu0 %v16436_v58  ;;  %v16482_v58 = vld [vmem:[%s18143_s23 + $0x14c8] ss:$16 sps:$4 sm:$0xff]  }
 0x47d   : > { %9740 = vmatprep.subr.bf16.mxu1 %v16433_v32  ;;  %v16479_v32 = vld [vmem:[%s18143_s23 + $0x1348] ss:$16 sps:$4 sm:$0xff]  }
 0x47f   : > { %9774 = vmatpush1.bf16.msra.mxu0 %v16434_v33  ;;  %v16487_v33 = vld [vmem:[%s18143_s23 + $0x132c] ss:$16 sps:$4 sm:$0xff]  }
 0x480   : > { %9741 = vmatpush2.bf16.msra.mxu1 %v16431_v7  ;;  %9775 = vmatprep.subr.bf16.mxu0 %v16442_v59 }
 0x481   : > { %9742 = vmatprep.subr.bf16.mxu1 %v16439_v51  ;;  %v16490_v51 = vld [vmem:[%s18143_s23 + $0x14ac] ss:$16 sps:$4 sm:$0xff]  }
 0x483   : > { %9776 = vmatpush1.bf16.msra.mxu0 %v16440_v53 }
 0x484   : > { %9743 = vmatpush2.bf16.msra.mxu1 %v16437_v23  ;;  %9777 = vmatprep.subr.bf16.mxu0 %v16448_v14  ;;  %v16488_v23 = vld [vmem:[%s18143_s23 + $0x14a8] ss:$16 sps:$4 sm:$0xff]   ;;  %v16496_v14 = vld [vmem:[%s18143_s23 + $0x148c] ss:$16 sps:$4 sm:$0xff]  }
 0x485   : > { %9744 = vmatprep.subr.bf16.mxu1 %v16445_v37  ;;  %v16493_v37 = vld [vmem:[%s18143_s23 + $0x130c] ss:$16 sps:$4 sm:$0xff]  }
 0x487   : > { %9778 = vmatpush1.bf16.msra.mxu0 %v16446_v41  ;;  %v16502_v41 = vld [vmem:[%s18143_s23 + $0x16ec] ss:$16 sps:$4 sm:$0xff]  }
 0x488   : > { %9745 = vmatpush2.bf16.msra.mxu1 %v16443_v49  ;;  %9779 = vmatprep.subr.bf16.mxu0 %v16454_v6  ;;  %v16499_v49 = vld [vmem:[%s18143_s23 + $0x146c] ss:$16 sps:$4 sm:$0xff]   ;;  %v16500_v6 = vld [vmem:[%s18143_s23 + $0x16e8] ss:$16 sps:$4 sm:$0xff]  }
 0x489   : > { %9746 = vmatprep.subr.bf16.mxu1 %v16451_v47  ;;  %v16497_v47 = vld [vmem:[%s18143_s23 + $0x1468] ss:$16 sps:$4 sm:$0xff]  }
 0x48b   : > { %9780 = vmatpush2.bf16.msra.mxu0 %v16452_v39  ;;  %v16508_v39 = vld [vmem:[%s18143_s23 + $0x16cc] ss:$16 sps:$4 sm:$0xff]  }
 0x48c   : > { %9747 = vmatpush2.bf16.msra.mxu1 %v16449_v38  ;;  %9781 = vmatprep.subr.bf16.mxu0 %v16460_v18  ;;  %v16505_v38 = vld [vmem:[%s18143_s23 + $0x144c] ss:$16 sps:$4 sm:$0xff]  }
 0x48d   : > { %9748 = vmatprep.subr.bf16.mxu1 %v16457_v24 }
 0x48f   : > { %9782 = vmatpush2.bf16.msra.mxu0 %v16458_v4  ;;  %v16506_v4 = vld [vmem:[%s18143_s23 + $0x16c8] ss:$16 sps:$4 sm:$0xff]  }
 0x490   : > { %9749 = vmatpush2.bf16.msra.mxu1 %v16455_v62  ;;  %9783 = vmatprep.subr.bf16.mxu0 %v16466_v36  ;;  %v16503_v62 = vld [vmem:[%s18143_s23 + $0x1448] ss:$16 sps:$4 sm:$0xff]   ;;  %v16511_v36 = vld [vmem:[%s18143_s23 + $0x142c] ss:$16 sps:$4 sm:$0xff]  }
 0x491   : > { %9750 = vmatprep.subr.bf16.mxu1 %v16463_v8 }
 0x493   : > { %9784 = vmatpush2.bf16.msra.mxu0 %v16464_v63 }
 0x494   : > { %9751 = vmatpush2.bf16.msra.mxu1 %v16461_v42  ;;  %9785 = vmatprep.subr.bf16.mxu0 %v16472_v17  ;;  %v16514_v42 = vld [vmem:[%s18143_s23 + $0x16ac] ss:$16 sps:$4 sm:$0xff]   ;;  %v16512_v17 = vld [vmem:[%s18143_s23 + $0x16a8] ss:$16 sps:$4 sm:$0xff]  }
 0x495   : > { %9752 = vmatprep.subr.bf16.mxu1 %v16469_v60  ;;  %v16509_v60 = vld [vmem:[%s18143_s23 + $0x1428] ss:$16 sps:$4 sm:$0xff]  }
 0x497   : > { %9786 = vmatpush2.bf16.msra.mxu0 %v16470_v11  ;;  %v16517_v11 = vld [vmem:[%s18143_s23 + $0x140c] ss:$16 sps:$4 sm:$0xff]  }
 0x498   : > { %9753 = vmatpush2.bf16.msra.mxu1 %v16467_v43  ;;  %9787 = vmatprep.subr.bf16.mxu0 %v16475_v15  ;;  %v16520_v15 = vld [vmem:[%s18143_s23 + $0x168c] ss:$16 sps:$4 sm:$0xff]  }
 0x499   : > { %9804 = vmatprep.subr.bf16.mxu1 %v16478_v3  ;;  %v16515_v3 = vld [vmem:[%s18143_s23 + $0x1408] ss:$16 sps:$4 sm:$0xff]  }
 0x49b   : > { %v9510_v2 = vpop.f32.mrf.mxu1  ;;  %9755 = vmatmul.mubr.bf16.vlgmr.msra.gmra.mxu1 %v18632_v46  ;;  %9788 = vmatpush2.bf16.msra.mxu0 %v16473_v25  ;;  %v16523_v25 = vld [vmem:[%s18143_s23 + $0x15ec] ss:$16 sps:$4 sm:$0xff]  }
 0x49c   : > { %v9511_v16 = vadd.f32 %v9510_v2, %v19478_v5  ;;  %9805 = vmatpush1.bf16.msra.mxu1 %v16476_v1  ;;  %9789 = vmatprep.subr.bf16.mxu0 %v16481_v30  ;;  %v16485_v5 = vld [vmem:[%s18143_s23 + $0x1328] ss:$16 sps:$4 sm:$0xff]   ;;  %v16526_v1 = vld [vmem:[%s18143_s23 + $0x166c] ss:$16 sps:$4 sm:$0xff]  }
 0x49d   : > { %v9512_v7 = vpop.f32.mrf.mxu1  ;;  %9806 = vmatprep.subr.bf16.mxu1 %v16484_v20  ;;  %9836 = vmatprep.mubr.bf16.mxu1 %v18654_v54  ;;  %v16494_v54 = vld [vmem:[%s18143_s23 + $0x1488] ss:$16 sps:$4 sm:$0xff]   ;;  %v16529_v2 = vld [vmem:[%s18143_s23 + $0x15cc] ss:$16 sps:$4 sm:$0xff]  }
 0x49e   : > { %v9513_v59 = vadd.f32 %v9512_v7, %v19484_v52  ;;  %v16491_v52 = vld [vmem:[%s18143_s23 + $0x1308] ss:$16 sps:$4 sm:$0xff]   ;;  %v16535_v7 = vld [vmem:[%s18143_s23 + $0x15ac] ss:$16 sps:$4 sm:$0xff]  }
 0x49f   : > { %v9514_v46 = vpop.f32.mrf.mxu1  ;;  %9790 = vmatpush2.bf16.msra.mxu0 %v16479_v32  ;;  %v16521_v30 = vld [vmem:[%s18143_s23 + $0x15e8] ss:$16 sps:$4 sm:$0xff]  }
 0x4a0   : > { %9807 = vmatpush1.bf16.msra.mxu1 %v16482_v58  ;;  %9791 = vmatprep.subr.bf16.mxu0 %v16487_v33  ;;  %v16524_v20 = vld [vmem:[%s18143_s23 + $0x1668] ss:$16 sps:$4 sm:$0xff]   ;;  %v16538_v33 = vld [vmem:[%s18143_s23 + $0x162c] ss:$16 sps:$4 sm:$0xff]  }
 0x4a1   : > { %v9515_v53 = vpop.f32.mrf.mxu1  ;;  %9808 = vmatprep.subr.bf16.mxu1 %v16490_v51  ;;  %v16527_v32 = vld [vmem:[%s18143_s23 + $0x15c8] ss:$16 sps:$4 sm:$0xff]   ;;  %v16541_v46 = vld [vmem:[%s18143_s23 + $0x158c] ss:$16 sps:$4 sm:$0xff]  }
 0x4a2   : > { %v16530_v58 = vld [vmem:[%s18143_s23 + $0x1648] ss:$16 sps:$4 sm:$0xff]  }
 0x4a3   : > { %9792 = vmatpush2.bf16.msra.mxu0 %v16485_v5  ;;  %v16533_v51 = vld [vmem:[%s18143_s23 + $0x15a8] ss:$16 sps:$4 sm:$0xff]   ;;  %v16544_v5 = vld [vmem:[%s18143_s23 + $0x160c] ss:$16 sps:$4 sm:$0xff]  }
 0x4a4   : > { %9809 = vmatpush1.bf16.msra.mxu1 %v16488_v23  ;;  %9793 = vmatprep.subr.bf16.mxu0 %v16493_v37  ;;  %v16539_v23 = vld [vmem:[%s18143_s23 + $0x1588] ss:$16 sps:$4 sm:$0xff]   ;;  %v16547_v37 = vld [vmem:[%s18143_s23 + $0x156c] ss:$16 sps:$4 sm:$0xff]  }
 0x4a5   : > { %9810 = vmatprep.subr.bf16.mxu1 %v16496_v14  ;;  %v16542_v53 = vld [vmem:[%s18143_s23 + $0x1608] ss:$16 sps:$4 sm:$0xff]   ;;  %v16550_v14 = vld [vmem:[%s18143_s23 + $0x17ec] ss:$16 sps:$4 sm:$0xff]  }
 0x4a7   : > { %9794 = vmatpush2.bf16.msra.mxu0 %v16491_v52  ;;  %v16545_v52 = vld [vmem:[%s18143_s23 + $0x1568] ss:$16 sps:$4 sm:$0xff]  }
 0x4a8   : > { %9811 = vmatpush1.bf16.msra.mxu1 %v16494_v54  ;;  %9845 = vmatprep.subr.bf16.mxu0 %v16502_v41  ;;  %v16548_v54 = vld [vmem:[%s18143_s23 + $0x17e8] ss:$16 sps:$4 sm:$0xff]   ;;  %v16556_v41 = vld [vmem:[%s18143_s23 + $0x17cc] ss:$16 sps:$4 sm:$0xff]  }
 0x4a9   : > { %9812 = vmatprep.subr.bf16.mxu1 %v16499_v49  ;;  %v16553_v49 = vld [vmem:[%s18143_s23 + $0x154c] ss:$16 sps:$4 sm:$0xff]  }
 0x4aa   : > { %v9551_v24 = vpop.f32.mrf.mxu0  ;;  %9796 = vmatmul.mubr.bf16.vlgmr.msra.gmra.mxu0 %v18636_v48 }
 0x4ab   : > { %v19552_v18 = vadd.f32 %v9551_v24, %v9511_v16  ;;  %9846 = vmatpush1.bf16.msra.mxu0 %v16500_v6  ;;  %9877 = vmatprep.mubr.bf16.mxu0 %v18658_v55  ;;  %v16518_v55 = vld [vmem:[%s18143_s23 + $0x1688] ss:$16 sps:$4 sm:$0xff]   ;;  %v16532_v16 = vld [vmem:[%s18143_s23 + $0x164c] ss:$16 sps:$4 sm:$0xff]  }
 0x4ac   : > { %9813 = vmatpush1.bf16.msra.mxu1 %v16497_v47  ;;  %v9553_v8 = vpop.f32.mrf.mxu0  ;;  %9847 = vmatprep.subr.bf16.mxu0 %v16508_v39  ;;  %v16551_v47 = vld [vmem:[%s18143_s23 + $0x1548] ss:$16 sps:$4 sm:$0xff]   ;;  %v16562_v39 = vld [vmem:[%s18143_s23 + $0x17ac] ss:$16 sps:$4 sm:$0xff]  }
 0x4ad   : > { %9814 = vmatprep.subr.bf16.mxu1 %v16505_v38  ;;  %v19558_v63 = vadd.f32 %v9553_v8, %v9513_v59  ;;  %v16536_v59 = vld [vmem:[%s18143_s23 + $0x1628] ss:$16 sps:$4 sm:$0xff]   ;;  %v16559_v38 = vld [vmem:[%s18143_s23 + $0x152c] ss:$16 sps:$4 sm:$0xff]  }
 0x4ae   : > { %v9555_v48 = vpop.f32.mrf.mxu0  ;;  %v16554_v6 = vld [vmem:[%s18143_s23 + $0x17c8] ss:$16 sps:$4 sm:$0xff]   ;;  %v16568_v8 = vld [vmem:[%s18143_s23 + $0x178c] ss:$16 sps:$4 sm:$0xff]  }
 0x4af   : > { %9848 = vmatpush1.bf16.msra.mxu0 %v16506_v4  ;;  %v16557_v24 = vld [vmem:[%s18143_s23 + $0x1528] ss:$16 sps:$4 sm:$0xff]   ;;  %v16565_v4 = vld [vmem:[%s18143_s23 + $0x150c] ss:$16 sps:$4 sm:$0xff]  }
 0x4b0   : > { %9815 = vmatpush1.bf16.msra.mxu1 %v16503_v62  ;;  %v9556_v43 = vpop.f32.mrf.mxu0  ;;  %9849 = vmatprep.subr.bf16.mxu0 %v16514_v42  ;;  %v16560_v62 = vld [vmem:[%s18143_s23 + $0x17a8] ss:$16 sps:$4 sm:$0xff]   ;;  %v16571_v48 = vld [vmem:[%s18143_s23 + $0x176c] ss:$16 sps:$4 sm:$0xff]  }
 0x4b1   : > { %9816 = vmatprep.subr.bf16.mxu1 %v16511_v36  ;;  %v16563_v36 = vld [vmem:[%s18143_s23 + $0x1508] ss:$16 sps:$4 sm:$0xff]  }
 0x4b2   : > { %v16566_v42 = vld [vmem:[%s18143_s23 + $0x1788] ss:$16 sps:$4 sm:$0xff]  }
 0x4b3   : > { %9850 = vmatpush1.bf16.msra.mxu0 %v16512_v17  ;;  %v16569_v17 = vld [vmem:[%s18143_s23 + $0x1768] ss:$16 sps:$4 sm:$0xff]  }
 0x4b4   : > { %9817 = vmatpush1.bf16.msra.mxu1 %v16509_v60  ;;  %9851 = vmatprep.subr.bf16.mxu0 %v16520_v15  ;;  %v16574_v60 = vld [vmem:[%s18143_s23 + $0x18ec] ss:$16 sps:$4 sm:$0xff]   ;;  %v16572_v43 = vld [vmem:[%s18143_s23 + $0x18e8] ss:$16 sps:$4 sm:$0xff]  }
 0x4b5   : > { %9818 = vmatprep.subr.bf16.mxu1 %v16517_v11  ;;  %v16577_v11 = vld [vmem:[%s18143_s23 + $0x174c] ss:$16 sps:$4 sm:$0xff]  }
 0x4b6   : > { %v16580_v15 = vld [vmem:[%s18143_s23 + $0x18cc] ss:$16 sps:$4 sm:$0xff]  }
 0x4b7   : > { %9852 = vmatpush1.bf16.msra.mxu0 %v16518_v55 }
 0x4b8   : > { %9819 = vmatpush1.bf16.msra.mxu1 %v16515_v3  ;;  %9853 = vmatprep.subr.bf16.mxu0 %v16526_v1  ;;  %v16578_v1 = vld [vmem:[%s18143_s23 + $0x18c8] ss:$16 sps:$4 sm:$0xff]  }
 0x4b9   : > { %9820 = vmatprep.subr.bf16.mxu1 %v16523_v25  ;;  %v16575_v25 = vld [vmem:[%s18143_s23 + $0x1748] ss:$16 sps:$4 sm:$0xff]  }
 0x4bb   : > { %9854 = vmatpush1.bf16.msra.mxu0 %v16524_v20  ;;  %v16583_v20 = vld [vmem:[%s18143_s23 + $0x172c] ss:$16 sps:$4 sm:$0xff]  }
 0x4bc   : > { %9821 = vmatpush2.bf16.msra.mxu1 %v16521_v30  ;;  %9855 = vmatprep.subr.bf16.mxu0 %v16532_v16 }
 0x4bd   : > { %9822 = vmatprep.subr.bf16.mxu1 %v16529_v2  ;;  %v16586_v2 = vld [vmem:[%s18143_s23 + $0x18ac] ss:$16 sps:$4 sm:$0xff]  }
 0x4bf   : > { %9856 = vmatpush1.bf16.msra.mxu0 %v16530_v58 }
 0x4c0   : > { %9823 = vmatpush2.bf16.msra.mxu1 %v16527_v32  ;;  %9857 = vmatprep.subr.bf16.mxu0 %v16538_v33  ;;  %v16584_v32 = vld [vmem:[%s18143_s23 + $0x18a8] ss:$16 sps:$4 sm:$0xff]   ;;  %v16592_v33 = vld [vmem:[%s18143_s23 + $0x188c] ss:$16 sps:$4 sm:$0xff]  }
 0x4c1   : > { %9824 = vmatprep.subr.bf16.mxu1 %v16535_v7  ;;  %v16589_v7 = vld [vmem:[%s18143_s23 + $0x170c] ss:$16 sps:$4 sm:$0xff]  }
 0x4c3   : > { %9858 = vmatpush1.bf16.msra.mxu0 %v16536_v59  ;;  %v16598_v59 = vld [vmem:[%s18143_s23 + $0x1aec] ss:$16 sps:$4 sm:$0xff]  }
 0x4c4   : > { %9825 = vmatpush2.bf16.msra.mxu1 %v16533_v51  ;;  %9859 = vmatprep.subr.bf16.mxu0 %v16544_v5  ;;  %v16595_v51 = vld [vmem:[%s18143_s23 + $0x186c] ss:$16 sps:$4 sm:$0xff]   ;;  %v16596_v5 = vld [vmem:[%s18143_s23 + $0x1ae8] ss:$16 sps:$4 sm:$0xff]  }
 0x4c5   : > { %9826 = vmatprep.subr.bf16.mxu1 %v16541_v46  ;;  %v16593_v46 = vld [vmem:[%s18143_s23 + $0x1868] ss:$16 sps:$4 sm:$0xff]  }
 0x4c7   : > { %9860 = vmatpush1.bf16.msra.mxu0 %v16542_v53  ;;  %v16604_v53 = vld [vmem:[%s18143_s23 + $0x1acc] ss:$16 sps:$4 sm:$0xff]  }
 0x4c8   : > { %9827 = vmatpush2.bf16.msra.mxu1 %v16539_v23  ;;  %9861 = vmatprep.subr.bf16.mxu0 %v16550_v14  ;;  %v16601_v23 = vld [vmem:[%s18143_s23 + $0x184c] ss:$16 sps:$4 sm:$0xff]  }
 0x4c9   : > { %9828 = vmatprep.subr.bf16.mxu1 %v16547_v37 }
 0x4cb   : > { %9862 = vmatpush2.bf16.msra.mxu0 %v16548_v54  ;;  %v16602_v54 = vld [vmem:[%s18143_s23 + $0x1ac8] ss:$16 sps:$4 sm:$0xff]  }
 0x4cc   : > { %9829 = vmatpush2.bf16.msra.mxu1 %v16545_v52  ;;  %9863 = vmatprep.subr.bf16.mxu0 %v16556_v41  ;;  %v16599_v52 = vld [vmem:[%s18143_s23 + $0x1848] ss:$16 sps:$4 sm:$0xff]   ;;  %v16607_v41 = vld [vmem:[%s18143_s23 + $0x182c] ss:$16 sps:$4 sm:$0xff]  }
 0x4cd   : > { %9830 = vmatprep.subr.bf16.mxu1 %v16553_v49 }
 0x4cf   : > { %9864 = vmatpush2.bf16.msra.mxu0 %v16554_v6 }
 0x4d0   : > { %9831 = vmatpush2.bf16.msra.mxu1 %v16551_v47  ;;  %9865 = vmatprep.subr.bf16.mxu0 %v16562_v39  ;;  %v16610_v47 = vld [vmem:[%s18143_s23 + $0x1aac] ss:$16 sps:$4 sm:$0xff]   ;;  %v16608_v39 = vld [vmem:[%s18143_s23 + $0x1aa8] ss:$16 sps:$4 sm:$0xff]  }
 0x4d1   : > { %9832 = vmatprep.subr.bf16.mxu1 %v16559_v38  ;;  %v16605_v38 = vld [vmem:[%s18143_s23 + $0x1828] ss:$16 sps:$4 sm:$0xff]  }
 0x4d3   : > { %9866 = vmatpush2.bf16.msra.mxu0 %v16560_v62  ;;  %v16613_v62 = vld [vmem:[%s18143_s23 + $0x180c] ss:$16 sps:$4 sm:$0xff]  }
 0x4d4   : > { %9833 = vmatpush2.bf16.msra.mxu1 %v16557_v24  ;;  %9867 = vmatprep.subr.bf16.mxu0 %v16568_v8  ;;  %v16611_v8 = vld [vmem:[%s18143_s23 + $0x1808] ss:$16 sps:$4 sm:$0xff]  }
 0x4d5   : > { %9834 = vmatprep.subr.bf16.mxu1 %v16565_v4  ;;  %v16616_v4 = vld [vmem:[%s18143_s23 + $0x1a8c] ss:$16 sps:$4 sm:$0xff]  }
 0x4d7   : > { %9868 = vmatpush2.bf16.msra.mxu0 %v16566_v42  ;;  %v16622_v42 = vld [vmem:[%s18143_s23 + $0x1a6c] ss:$16 sps:$4 sm:$0xff]  }
 0x4d8   : > { %9835 = vmatpush2.bf16.msra.mxu1 %v16563_v36  ;;  %9869 = vmatprep.subr.bf16.mxu0 %v16571_v48  ;;  %v16619_v36 = vld [vmem:[%s18143_s23 + $0x19ec] ss:$16 sps:$4 sm:$0xff]   ;;  %v16617_v48 = vld [vmem:[%s18143_s23 + $0x19e8] ss:$16 sps:$4 sm:$0xff]  }
 0x4d9   : > { %9886 = vmatprep.subr.bf16.mxu1 %v16574_v60  ;;  %v16620_v60 = vld [vmem:[%s18143_s23 + $0x1a68] ss:$16 sps:$4 sm:$0xff]  }
 0x4db   : > { %v9592_v3 = vpop.f32.mrf.mxu1  ;;  %9837 = vmatmul.mubr.bf16.vlgmr.msra.gmra.mxu1 %v18732_v44  ;;  %9870 = vmatpush2.bf16.msra.mxu0 %v16569_v17  ;;  %v16625_v17 = vld [vmem:[%s18143_s23 + $0x19cc] ss:$16 sps:$4 sm:$0xff]  }
 0x4dc   : > { %v9593_v55 = vadd.f32 %v9592_v3, %v19552_v18  ;;  %9887 = vmatpush1.bf16.msra.mxu1 %v16572_v43  ;;  %9871 = vmatprep.subr.bf16.mxu0 %v16577_v11  ;;  %v16581_v18 = vld [vmem:[%s18143_s23 + $0x1728] ss:$16 sps:$4 sm:$0xff]   ;;  %v16628_v43 = vld [vmem:[%s18143_s23 + $0x1a4c] ss:$16 sps:$4 sm:$0xff]  }
 0x4dd   : > { %v9594_v30 = vpop.f32.mrf.mxu1  ;;  %9888 = vmatprep.subr.bf16.mxu1 %v16580_v15  ;;  %9918 = vmatprep.mubr.bf16.mxu1 %v18754_v56  ;;  %v16590_v56 = vld [vmem:[%s18143_s23 + $0x1888] ss:$16 sps:$4 sm:$0xff]   ;;  %v16631_v3 = vld [vmem:[%s18143_s23 + $0x19ac] ss:$16 sps:$4 sm:$0xff]  }
 0x4de   : > { %v9595_v16 = vadd.f32 %v9594_v30, %v19558_v63  ;;  %v16587_v63 = vld [vmem:[%s18143_s23 + $0x1708] ss:$16 sps:$4 sm:$0xff]   ;;  %v16637_v30 = vld [vmem:[%s18143_s23 + $0x198c] ss:$16 sps:$4 sm:$0xff]  }
 0x4df   : > { %v9596_v44 = vpop.f32.mrf.mxu1  ;;  %9872 = vmatpush2.bf16.msra.mxu0 %v16575_v25  ;;  %v16623_v11 = vld [vmem:[%s18143_s23 + $0x19c8] ss:$16 sps:$4 sm:$0xff]  }
 0x4e0   : > { %9889 = vmatpush1.bf16.msra.mxu1 %v16578_v1  ;;  %9873 = vmatprep.subr.bf16.mxu0 %v16583_v20  ;;  %v16626_v15 = vld [vmem:[%s18143_s23 + $0x1a48] ss:$16 sps:$4 sm:$0xff]   ;;  %v16640_v20 = vld [vmem:[%s18143_s23 + $0x1a0c] ss:$16 sps:$4 sm:$0xff]  }
 0x4e1   : > { %v9597_v58 = vpop.f32.mrf.mxu1  ;;  %9890 = vmatprep.subr.bf16.mxu1 %v16586_v2  ;;  %v16629_v25 = vld [vmem:[%s18143_s23 + $0x19a8] ss:$16 sps:$4 sm:$0xff]   ;;  %v16643_v44 = vld [vmem:[%s18143_s23 + $0x196c] ss:$16 sps:$4 sm:$0xff]  }
 0x4e2   : > { %v16632_v1 = vld [vmem:[%s18143_s23 + $0x1a28] ss:$16 sps:$4 sm:$0xff]  }
 0x4e3   : > { %9874 = vmatpush2.bf16.msra.mxu0 %v16581_v18  ;;  %v16635_v2 = vld [vmem:[%s18143_s23 + $0x1988] ss:$16 sps:$4 sm:$0xff]   ;;  %v16646_v18 = vld [vmem:[%s18143_s23 + $0x1bec] ss:$16 sps:$4 sm:$0xff]  }
 0x4e4   : > { %9891 = vmatpush1.bf16.msra.mxu1 %v16584_v32  ;;  %9875 = vmatprep.subr.bf16.mxu0 %v16589_v7  ;;  %v16641_v32 = vld [vmem:[%s18143_s23 + $0x1968] ss:$16 sps:$4 sm:$0xff]   ;;  %v16649_v7 = vld [vmem:[%s18143_s23 + $0x194c] ss:$16 sps:$4 sm:$0xff]  }
 0x4e5   : > { %9892 = vmatprep.subr.bf16.mxu1 %v16592_v33  ;;  %v16644_v58 = vld [vmem:[%s18143_s23 + $0x1be8] ss:$16 sps:$4 sm:$0xff]   ;;  %v16652_v33 = vld [vmem:[%s18143_s23 + $0x1bcc] ss:$16 sps:$4 sm:$0xff]  }
 0x4e7   : > { %9876 = vmatpush2.bf16.msra.mxu0 %v16587_v63  ;;  %v16647_v63 = vld [vmem:[%s18143_s23 + $0x1948] ss:$16 sps:$4 sm:$0xff]  }
 0x4e8   : > { %9893 = vmatpush1.bf16.msra.mxu1 %v16590_v56  ;;  %9927 = vmatprep.subr.bf16.mxu0 %v16598_v59  ;;  %v16650_v56 = vld [vmem:[%s18143_s23 + $0x1bc8] ss:$16 sps:$4 sm:$0xff]   ;;  %v16658_v59 = vld [vmem:[%s18143_s23 + $0x1bac] ss:$16 sps:$4 sm:$0xff]  }
 0x4e9   : > { %9894 = vmatprep.subr.bf16.mxu1 %v16595_v51  ;;  %v16655_v51 = vld [vmem:[%s18143_s23 + $0x192c] ss:$16 sps:$4 sm:$0xff]  }
 0x4ea   : > { %v9633_v37 = vpop.f32.mrf.mxu0  ;;  %9878 = vmatmul.mubr.bf16.vlgmr.msra.gmra.mxu0 %v18736_v45 }
 0x4eb   : > { %v19626_v14 = vadd.f32 %v9633_v37, %v9593_v55  ;;  %9928 = vmatpush1.bf16.msra.mxu0 %v16596_v5  ;;  %9959 = vmatprep.mubr.bf16.mxu0 %v18758_v57  ;;  %v16614_v57 = vld [vmem:[%s18143_s23 + $0x1a88] ss:$16 sps:$4 sm:$0xff]   ;;  %v16634_v55 = vld [vmem:[%s18143_s23 + $0x1a2c] ss:$16 sps:$4 sm:$0xff]  }
 0x4ec   : > { %9895 = vmatpush1.bf16.msra.mxu1 %v16593_v46  ;;  %v9635_v49 = vpop.f32.mrf.mxu0  ;;  %9929 = vmatprep.subr.bf16.mxu0 %v16604_v53  ;;  %v16653_v46 = vld [vmem:[%s18143_s23 + $0x1928] ss:$16 sps:$4 sm:$0xff]   ;;  %v16664_v53 = vld [vmem:[%s18143_s23 + $0x1b8c] ss:$16 sps:$4 sm:$0xff]  }
 0x4ed   : > { %9896 = vmatprep.subr.bf16.mxu1 %v16601_v23  ;;  %v19632_v6 = vadd.f32 %v9635_v49, %v9595_v16  ;;  %v16638_v16 = vld [vmem:[%s18143_s23 + $0x1a08] ss:$16 sps:$4 sm:$0xff]   ;;  %v16661_v23 = vld [vmem:[%s18143_s23 + $0x190c] ss:$16 sps:$4 sm:$0xff]  }
 0x4ee   : > { %v9637_v45 = vpop.f32.mrf.mxu0  ;;  %v16656_v5 = vld [vmem:[%s18143_s23 + $0x1ba8] ss:$16 sps:$4 sm:$0xff]   ;;  %v16670_v49 = vld [vmem:[%s18143_s23 + $0x1cec] ss:$16 sps:$4 sm:$0xff]  }
 0x4ef   : > { %9930 = vmatpush1.bf16.msra.mxu0 %v16602_v54  ;;  %v16659_v37 = vld [vmem:[%s18143_s23 + $0x1908] ss:$16 sps:$4 sm:$0xff]   ;;  %v16667_v54 = vld [vmem:[%s18143_s23 + $0x1b6c] ss:$16 sps:$4 sm:$0xff]  }
 0x4f0   : > { %9897 = vmatpush1.bf16.msra.mxu1 %v16599_v52  ;;  %v9638_v24 = vpop.f32.mrf.mxu0  ;;  %9931 = vmatprep.subr.bf16.mxu0 %v16610_v47  ;;  %v16662_v52 = vld [vmem:[%s18143_s23 + $0x1b88] ss:$16 sps:$4 sm:$0xff]   ;;  %v16673_v45 = vld [vmem:[%s18143_s23 + $0x1b4c] ss:$16 sps:$4 sm:$0xff]  }
 0x4f1   : > { %9898 = vmatprep.subr.bf16.mxu1 %v16607_v41  ;;  %v16665_v41 = vld [vmem:[%s18143_s23 + $0x1b68] ss:$16 sps:$4 sm:$0xff]  }
 0x4f2   : > { %v16668_v47 = vld [vmem:[%s18143_s23 + $0x1ce8] ss:$16 sps:$4 sm:$0xff]  }
 0x4f3   : > { %9932 = vmatpush1.bf16.msra.mxu0 %v16608_v39 }
 0x4f4   : > { %9899 = vmatpush1.bf16.msra.mxu1 %v16605_v38  ;;  %9933 = vmatprep.subr.bf16.mxu0 %v16616_v4  ;;  %v16676_v38 = vld [vmem:[%s18143_s23 + $0x1ccc] ss:$16 sps:$4 sm:$0xff]   ;;  %v16674_v4 = vld [vmem:[%s18143_s23 + $0x1cc8] ss:$16 sps:$4 sm:$0xff]  }
 0x4f5   : > { %9900 = vmatprep.subr.bf16.mxu1 %v16613_v62  ;;  %v16671_v62 = vld [vmem:[%s18143_s23 + $0x1b48] ss:$16 sps:$4 sm:$0xff]  }
 0x4f7   : > { %9934 = vmatpush1.bf16.msra.mxu0 %v16614_v57  ;;  %v16679_v57 = vld [vmem:[%s18143_s23 + $0x1b2c] ss:$16 sps:$4 sm:$0xff]  }
 0x4f8   : > { %9901 = vmatpush1.bf16.msra.mxu1 %v16611_v8  ;;  %9935 = vmatprep.subr.bf16.mxu0 %v16622_v42 }
 0x4f9   : > { %9902 = vmatprep.subr.bf16.mxu1 %v16619_v36  ;;  %v16682_v36 = vld [vmem:[%s18143_s23 + $0x1cac] ss:$16 sps:$4 sm:$0xff]  }
 0x4fb   : > { %9936 = vmatpush1.bf16.msra.mxu0 %v16620_v60 }
 0x4fc   : > { %9903 = vmatpush2.bf16.msra.mxu1 %v16617_v48  ;;  %9937 = vmatprep.subr.bf16.mxu0 %v16628_v43  ;;  %v16680_v48 = vld [vmem:[%s18143_s23 + $0x1ca8] ss:$16 sps:$4 sm:$0xff]   ;;  %v16688_v43 = vld [vmem:[%s18143_s23 + $0x1c8c] ss:$16 sps:$4 sm:$0xff]  }
 0x4fd   : > { %9904 = vmatprep.subr.bf16.mxu1 %v16625_v17  ;;  %v16685_v17 = vld [vmem:[%s18143_s23 + $0x1b0c] ss:$16 sps:$4 sm:$0xff]  }
 0x4ff   : > { %9938 = vmatpush1.bf16.msra.mxu0 %v16626_v15  ;;  %v16694_v15 = vld [vmem:[%s18143_s23 + $0x1eec] ss:$16 sps:$4 sm:$0xff]  }
 0x500   : > { %9905 = vmatpush2.bf16.msra.mxu1 %v16623_v11  ;;  %9939 = vmatprep.subr.bf16.mxu0 %v16634_v55  ;;  %v16691_v11 = vld [vmem:[%s18143_s23 + $0x1c6c] ss:$16 sps:$4 sm:$0xff]   ;;  %v16692_v55 = vld [vmem:[%s18143_s23 + $0x1ee8] ss:$16 sps:$4 sm:$0xff]  }
 0x501   : > { %9906 = vmatprep.subr.bf16.mxu1 %v16631_v3  ;;  %v16689_v3 = vld [vmem:[%s18143_s23 + $0x1c68] ss:$16 sps:$4 sm:$0xff]  }
 0x503   : > { %9940 = vmatpush1.bf16.msra.mxu0 %v16632_v1  ;;  %v16700_v1 = vld [vmem:[%s18143_s23 + $0x1ecc] ss:$16 sps:$4 sm:$0xff]  }
 0x504   : > { %9907 = vmatpush2.bf16.msra.mxu1 %v16629_v25  ;;  %9941 = vmatprep.subr.bf16.mxu0 %v16640_v20  ;;  %v16697_v25 = vld [vmem:[%s18143_s23 + $0x1c4c] ss:$16 sps:$4 sm:$0xff]  }
 0x505   : > { %9908 = vmatprep.subr.bf16.mxu1 %v16637_v30 }
 0x507   : > { %9942 = vmatpush1.bf16.msra.mxu0 %v16638_v16  ;;  %v16698_v16 = vld [vmem:[%s18143_s23 + $0x1ec8] ss:$16 sps:$4 sm:$0xff]  }
 0x508   : > { %9909 = vmatpush2.bf16.msra.mxu1 %v16635_v2  ;;  %9943 = vmatprep.subr.bf16.mxu0 %v16646_v18  ;;  %v16695_v2 = vld [vmem:[%s18143_s23 + $0x1c48] ss:$16 sps:$4 sm:$0xff]   ;;  %v16703_v18 = vld [vmem:[%s18143_s23 + $0x1c2c] ss:$16 sps:$4 sm:$0xff]  }
 0x509   : > { %9910 = vmatprep.subr.bf16.mxu1 %v16643_v44 }
 0x50b   : > { %9944 = vmatpush2.bf16.msra.mxu0 %v16644_v58 }
 0x50c   : > { %9911 = vmatpush2.bf16.msra.mxu1 %v16641_v32  ;;  %9945 = vmatprep.subr.bf16.mxu0 %v16652_v33  ;;  %v16706_v32 = vld [vmem:[%s18143_s23 + $0x1eac] ss:$16 sps:$4 sm:$0xff]   ;;  %v16704_v33 = vld [vmem:[%s18143_s23 + $0x1ea8] ss:$16 sps:$4 sm:$0xff]  }
 0x50d   : > { %9912 = vmatprep.subr.bf16.mxu1 %v16649_v7  ;;  %v16701_v7 = vld [vmem:[%s18143_s23 + $0x1c28] ss:$16 sps:$4 sm:$0xff]  }
 0x50f   : > { %9946 = vmatpush2.bf16.msra.mxu0 %v16650_v56  ;;  %v16709_v56 = vld [vmem:[%s18143_s23 + $0x1c0c] ss:$16 sps:$4 sm:$0xff]  }
 0x510   : > { %9913 = vmatpush2.bf16.msra.mxu1 %v16647_v63  ;;  %9947 = vmatprep.subr.bf16.mxu0 %v16658_v59  ;;  %v16707_v59 = vld [vmem:[%s18143_s23 + $0x1c08] ss:$16 sps:$4 sm:$0xff]  }
 0x511   : > { %9914 = vmatprep.subr.bf16.mxu1 %v16655_v51  ;;  %v16712_v51 = vld [vmem:[%s18143_s23 + $0x1e8c] ss:$16 sps:$4 sm:$0xff]  }
 0x513   : > { %9948 = vmatpush2.bf16.msra.mxu0 %v16656_v5  ;;  %v16718_v5 = vld [vmem:[%s18143_s23 + $0x1e6c] ss:$16 sps:$4 sm:$0xff]  }
 0x514   : > { %9915 = vmatpush2.bf16.msra.mxu1 %v16653_v46  ;;  %9949 = vmatprep.subr.bf16.mxu0 %v16664_v53  ;;  %v16715_v46 = vld [vmem:[%s18143_s23 + $0x1dec] ss:$16 sps:$4 sm:$0xff]   ;;  %v16716_v53 = vld [vmem:[%s18143_s23 + $0x1e68] ss:$16 sps:$4 sm:$0xff]  }
 0x515   : > { %9916 = vmatprep.subr.bf16.mxu1 %v16661_v23  ;;  %v16713_v23 = vld [vmem:[%s18143_s23 + $0x1de8] ss:$16 sps:$4 sm:$0xff]  }
 0x517   : > { %9950 = vmatpush2.bf16.msra.mxu0 %v16662_v52  ;;  %v16724_v52 = vld [vmem:[%s18143_s23 + $0x1e4c] ss:$16 sps:$4 sm:$0xff]  }
 0x518   : > { %9917 = vmatpush2.bf16.msra.mxu1 %v16659_v37  ;;  %9951 = vmatprep.subr.bf16.mxu0 %v16667_v54  ;;  %v16721_v37 = vld [vmem:[%s18143_s23 + $0x1dcc] ss:$16 sps:$4 sm:$0xff]   ;;  %v16719_v54 = vld [vmem:[%s18143_s23 + $0x1dc8] ss:$16 sps:$4 sm:$0xff]  }
 0x519   : > { %9968 = vmatprep.subr.bf16.mxu1 %v16670_v49  ;;  %v16722_v49 = vld [vmem:[%s18143_s23 + $0x1e48] ss:$16 sps:$4 sm:$0xff]  }
 0x51b   : > { %v9674_v39 = vpop.f32.mrf.mxu1  ;;  %9919 = vmatmul.mubr.bf16.vlgmr.msra.gmra.mxu1 %v18832_v40  ;;  %9952 = vmatpush2.bf16.msra.mxu0 %v16665_v41  ;;  %v16727_v41 = vld [vmem:[%s18143_s23 + $0x1dac] ss:$16 sps:$4 sm:$0xff]  }
 0x51c   : > { %v9675_v24 = vadd.f32 %v9674_v39, %v19626_v14  ;;  %9969 = vmatpush1.bf16.msra.mxu1 %v16668_v47  ;;  %9953 = vmatprep.subr.bf16.mxu0 %v16673_v45  ;;  %v16677_v14 = vld [vmem:[%s18143_s23 + $0x1b28] ss:$16 sps:$4 sm:$0xff]   ;;  %v16730_v47 = vld [vmem:[%s18143_s23 + $0x1e2c] ss:$16 sps:$4 sm:$0xff]  }
 0x51d   : > { %v9676_v8 = vpop.f32.mrf.mxu1  ;;  %9970 = vmatprep.subr.bf16.mxu1 %v16676_v38  ;;  %10000 = vmatprep.mubr.bf16.mxu1 %v18854_v10  ;;  %v16686_v10 = vld [vmem:[%s18143_s23 + $0x1c88] ss:$16 sps:$4 sm:$0xff]   ;;  %v16733_v39 = vld [vmem:[%s18143_s23 + $0x1d8c] ss:$16 sps:$4 sm:$0xff]  }
 0x51e   : > { %v9677_v42 = vadd.f32 %v9676_v8, %v19632_v6  ;;  %v16683_v6 = vld [vmem:[%s18143_s23 + $0x1b08] ss:$16 sps:$4 sm:$0xff]   ;;  %v16739_v8 = vld [vmem:[%s18143_s23 + $0x1d6c] ss:$16 sps:$4 sm:$0xff]  }
 0x51f   : > { %v9678_v40 = vpop.f32.mrf.mxu1  ;;  %9954 = vmatpush2.bf16.msra.mxu0 %v16671_v62  ;;  %v16725_v45 = vld [vmem:[%s18143_s23 + $0x1da8] ss:$16 sps:$4 sm:$0xff]  }
 0x520   : > { %9971 = vmatpush1.bf16.msra.mxu1 %v16674_v4  ;;  %9955 = vmatprep.subr.bf16.mxu0 %v16679_v57  ;;  %v16728_v38 = vld [vmem:[%s18143_s23 + $0x1e28] ss:$16 sps:$4 sm:$0xff]   ;;  %v16742_v57 = vld [vmem:[%s18143_s23 + $0x1fec] ss:$16 sps:$4 sm:$0xff]  }
 0x521   : > { %v9679_v60 = vpop.f32.mrf.mxu1  ;;  %9972 = vmatprep.subr.bf16.mxu1 %v16682_v36  ;;  %v16731_v62 = vld [vmem:[%s18143_s23 + $0x1d88] ss:$16 sps:$4 sm:$0xff]   ;;  %v16745_v40 = vld [vmem:[%s18143_s23 + $0x1d4c] ss:$16 sps:$4 sm:$0xff]  }
 0x522   : > { %v16734_v4 = vld [vmem:[%s18143_s23 + $0x1e08] ss:$16 sps:$4 sm:$0xff]  }
 0x523   : > { %9956 = vmatpush2.bf16.msra.mxu0 %v16677_v14  ;;  %v16737_v36 = vld [vmem:[%s18143_s23 + $0x1d68] ss:$16 sps:$4 sm:$0xff]   ;;  %v16748_v14 = vld [vmem:[%s18143_s23 + $0x1fcc] ss:$16 sps:$4 sm:$0xff]  }
 0x524   : > { %9973 = vmatpush1.bf16.msra.mxu1 %v16680_v48  ;;  %9957 = vmatprep.subr.bf16.mxu0 %v16685_v17  ;;  %v16743_v48 = vld [vmem:[%s18143_s23 + $0x1d48] ss:$16 sps:$4 sm:$0xff]   ;;  %v16751_v17 = vld [vmem:[%s18143_s23 + $0x1d2c] ss:$16 sps:$4 sm:$0xff]  }
 0x525   : > { %9974 = vmatprep.subr.bf16.mxu1 %v16688_v43  ;;  %v16746_v60 = vld [vmem:[%s18143_s23 + $0x1fc8] ss:$16 sps:$4 sm:$0xff]   ;;  %v16754_v43 = vld [vmem:[%s18143_s23 + $0x1fac] ss:$16 sps:$4 sm:$0xff]  }
 0x527   : > { %9958 = vmatpush2.bf16.msra.mxu0 %v16683_v6  ;;  %v16749_v6 = vld [vmem:[%s18143_s23 + $0x1d28] ss:$16 sps:$4 sm:$0xff]  }
 0x528   : > { %9975 = vmatpush1.bf16.msra.mxu1 %v16686_v10  ;;  %10009 = vmatprep.subr.bf16.mxu0 %v16694_v15  ;;  %v16752_v10 = vld [vmem:[%s18143_s23 + $0x1fa8] ss:$16 sps:$4 sm:$0xff]   ;;  %v16760_v15 = vld [vmem:[%s18143_s23 + $0x1f8c] ss:$16 sps:$4 sm:$0xff]  }
 0x529   : > { %9976 = vmatprep.subr.bf16.mxu1 %v16691_v11  ;;  %v16757_v11 = vld [vmem:[%s18143_s23 + $0x1d0c] ss:$16 sps:$4 sm:$0xff]  }
 0x52a   : > { %v9715_v30 = vpop.f32.mrf.mxu0  ;;  %9960 = vmatmul.mubr.bf16.vlgmr.msra.gmra.mxu0 %v18836_v0 }
 0x52b   : > { %v19700_v20 = vadd.f32 %v9715_v30, %v9675_v24  ;;  %10010 = vmatpush1.bf16.msra.mxu0 %v16692_v55  ;;  %10041 = vmatprep.mubr.bf16.mxu0 %v18858_v12  ;;  %v16710_v12 = vld [vmem:[%s18143_s23 + $0x1e88] ss:$16 sps:$4 sm:$0xff]   ;;  %v16736_v24 = vld [vmem:[%s18143_s23 + $0x1e0c] ss:$16 sps:$4 sm:$0xff]  }
 0x52c   : > { %9977 = vmatpush1.bf16.msra.mxu1 %v16689_v3  ;;  %v9717_v44 = vpop.f32.mrf.mxu0  ;;  %10011 = vmatprep.subr.bf16.mxu0 %v16700_v1  ;;  %v16755_v3 = vld [vmem:[%s18143_s23 + $0x1d08] ss:$16 sps:$4 sm:$0xff]   ;;  %v16766_v1 = vld [vmem:[%s18143_s23 + $0x20ec] ss:$16 sps:$4 sm:$0xff]  }
 0x52d   : > { %9978 = vmatprep.subr.bf16.mxu1 %v16697_v25  ;;  %v19706_v58 = vadd.f32 %v9717_v44, %v9677_v42  ;;  %v16740_v42 = vld [vmem:[%s18143_s23 + $0x1fe8] ss:$16 sps:$4 sm:$0xff]   ;;  %v16763_v25 = vld [vmem:[%s18143_s23 + $0x1f6c] ss:$16 sps:$4 sm:$0xff]  }
 0x52e   : > { %v9719_v0 = vpop.f32.mrf.mxu0  ;;  %v16758_v55 = vld [vmem:[%s18143_s23 + $0x1f88] ss:$16 sps:$4 sm:$0xff]   ;;  %v16772_v44 = vld [vmem:[%s18143_s23 + $0x20cc] ss:$16 sps:$4 sm:$0xff]  }
 0x52f   : > { %10012 = vmatpush1.bf16.msra.mxu0 %v16698_v16  ;;  %v16761_v30 = vld [vmem:[%s18143_s23 + $0x1f68] ss:$16 sps:$4 sm:$0xff]   ;;  %v16769_v16 = vld [vmem:[%s18143_s23 + $0x1f4c] ss:$16 sps:$4 sm:$0xff]  }
 0x530   : > { %9979 = vmatpush1.bf16.msra.mxu1 %v16695_v2  ;;  %v9720_v63 = vpop.f32.mrf.mxu0  ;;  %10013 = vmatprep.subr.bf16.mxu0 %v16706_v32  ;;  %v16764_v2 = vld [vmem:[%s18143_s23 + $0x20e8] ss:$16 sps:$4 sm:$0xff]  }
 0x531   : > { %9980 = vmatprep.subr.bf16.mxu1 %v16703_v18  ;;  %v16767_v0 = vld [vmem:[%s18143_s23 + $0x1f48] ss:$16 sps:$4 sm:$0xff]   ;;  %v16775_v63 = vld [vmem:[%s18143_s23 + $0x1f2c] ss:$16 sps:$4 sm:$0xff]  }
 0x533   : > { %10014 = vmatpush1.bf16.msra.mxu0 %v16704_v33 }
 0x534   : > { %9981 = vmatpush1.bf16.msra.mxu1 %v16701_v7  ;;  %10015 = vmatprep.subr.bf16.mxu0 %v16712_v51  ;;  %v16770_v7 = vld [vmem:[%s18143_s23 + $0x20c8] ss:$16 sps:$4 sm:$0xff]  }
 0x535   : > { %9982 = vmatprep.subr.bf16.mxu1 %v16709_v56  ;;  %v16778_v56 = vld [vmem:[%s18143_s23 + $0x20ac] ss:$16 sps:$4 sm:$0xff]  }
 0x537   : > { %10016 = vmatpush1.bf16.msra.mxu0 %v16710_v12 }
 0x538   : > { %9983 = vmatpush1.bf16.msra.mxu1 %v16707_v59  ;;  %10017 = vmatprep.subr.bf16.mxu0 %v16718_v5  ;;  %v16776_v59 = vld [vmem:[%s18143_s23 + $0x20a8] ss:$16 sps:$4 sm:$0xff]   ;;  %v16784_v5 = vld [vmem:[%s18143_s23 + $0x208c] ss:$16 sps:$4 sm:$0xff]  }
 0x539   : > { %9984 = vmatprep.subr.bf16.mxu1 %v16715_v46  ;;  %v16781_v46 = vld [vmem:[%s18143_s23 + $0x1f0c] ss:$16 sps:$4 sm:$0xff]  }
 0x53b   : > { %10018 = vmatpush1.bf16.msra.mxu0 %v16716_v53  ;;  %v16790_v53 = vld [vmem:[%s18143_s23 + $0x22ec] ss:$16 sps:$4 sm:$0xff]  }
 0x53c   : > { %9985 = vmatpush2.bf16.msra.mxu1 %v16713_v23  ;;  %10019 = vmatprep.subr.bf16.mxu0 %v16724_v52  ;;  %v16787_v23 = vld [vmem:[%s18143_s23 + $0x206c] ss:$16 sps:$4 sm:$0xff]   ;;  %v16788_v52 = vld [vmem:[%s18143_s23 + $0x22e8] ss:$16 sps:$4 sm:$0xff]  }
 0x53d   : > { %9986 = vmatprep.subr.bf16.mxu1 %v16721_v37  ;;  %v16785_v37 = vld [vmem:[%s18143_s23 + $0x2068] ss:$16 sps:$4 sm:$0xff]  }
 0x53f   : > { %10020 = vmatpush1.bf16.msra.mxu0 %v16722_v49  ;;  %v16796_v49 = vld [vmem:[%s18143_s23 + $0x22cc] ss:$16 sps:$4 sm:$0xff]  }
 0x540   : > { %9987 = vmatpush2.bf16.msra.mxu1 %v16719_v54  ;;  %10021 = vmatprep.subr.bf16.mxu0 %v16730_v47  ;;  %v16793_v54 = vld [vmem:[%s18143_s23 + $0x204c] ss:$16 sps:$4 sm:$0xff]  }
 0x541   : > { %9988 = vmatprep.subr.bf16.mxu1 %v16727_v41 }
 0x543   : > { %10022 = vmatpush1.bf16.msra.mxu0 %v16728_v38  ;;  %v16794_v38 = vld [vmem:[%s18143_s23 + $0x22c8] ss:$16 sps:$4 sm:$0xff]  }
 0x544   : > { %9989 = vmatpush2.bf16.msra.mxu1 %v16725_v45  ;;  %10023 = vmatprep.subr.bf16.mxu0 %v16736_v24  ;;  %v16791_v45 = vld [vmem:[%s18143_s23 + $0x2048] ss:$16 sps:$4 sm:$0xff]   ;;  %v16799_v24 = vld [vmem:[%s18143_s23 + $0x202c] ss:$16 sps:$4 sm:$0xff]  }
 0x545   : > { %9990 = vmatprep.subr.bf16.mxu1 %v16733_v39 }
 0x547   : > { %10024 = vmatpush1.bf16.msra.mxu0 %v16734_v4 }
 0x548   : > { %9991 = vmatpush2.bf16.msra.mxu1 %v16731_v62  ;;  %10025 = vmatprep.subr.bf16.mxu0 %v16742_v57  ;;  %v16802_v62 = vld [vmem:[%s18143_s23 + $0x22ac] ss:$16 sps:$4 sm:$0xff]   ;;  %v16800_v57 = vld [vmem:[%s18143_s23 + $0x22a8] ss:$16 sps:$4 sm:$0xff]  }
 0x549   : > { %9992 = vmatprep.subr.bf16.mxu1 %v16739_v8  ;;  %v16797_v8 = vld [vmem:[%s18143_s23 + $0x2028] ss:$16 sps:$4 sm:$0xff]  }
 0x54b   : > { %10026 = vmatpush2.bf16.msra.mxu0 %v16740_v42  ;;  %v16805_v42 = vld [vmem:[%s18143_s23 + $0x200c] ss:$16 sps:$4 sm:$0xff]  }
 0x54c   : > { %9993 = vmatpush2.bf16.msra.mxu1 %v16737_v36  ;;  %10027 = vmatprep.subr.bf16.mxu0 %v16748_v14  ;;  %v16803_v14 = vld [vmem:[%s18143_s23 + $0x2008] ss:$16 sps:$4 sm:$0xff]  }
 0x54d   : > { %9994 = vmatprep.subr.bf16.mxu1 %v16745_v40  ;;  %v16808_v40 = vld [vmem:[%s18143_s23 + $0x228c] ss:$16 sps:$4 sm:$0xff]  }
 0x54f   : > { %10028 = vmatpush2.bf16.msra.mxu0 %v16746_v60  ;;  %v16814_v60 = vld [vmem:[%s18143_s23 + $0x226c] ss:$16 sps:$4 sm:$0xff]  }
 0x550   : > { %9995 = vmatpush2.bf16.msra.mxu1 %v16743_v48  ;;  %10029 = vmatprep.subr.bf16.mxu0 %v16754_v43  ;;  %v16811_v48 = vld [vmem:[%s18143_s23 + $0x21ec] ss:$16 sps:$4 sm:$0xff]   ;;  %v16812_v43 = vld [vmem:[%s18143_s23 + $0x2268] ss:$16 sps:$4 sm:$0xff]  }
 0x551   : > { %9996 = vmatprep.subr.bf16.mxu1 %v16751_v17  ;;  %v16809_v17 = vld [vmem:[%s18143_s23 + $0x21e8] ss:$16 sps:$4 sm:$0xff]  }
 0x553   : > { %10030 = vmatpush2.bf16.msra.mxu0 %v16752_v10  ;;  %v16820_v10 = vld [vmem:[%s18143_s23 + $0x224c] ss:$16 sps:$4 sm:$0xff]  }
 0x554   : > { %9997 = vmatpush2.bf16.msra.mxu1 %v16749_v6  ;;  %10031 = vmatprep.subr.bf16.mxu0 %v16760_v15  ;;  %v16817_v6 = vld [vmem:[%s18143_s23 + $0x21cc] ss:$16 sps:$4 sm:$0xff]   ;;  %v16818_v15 = vld [vmem:[%s18143_s23 + $0x2248] ss:$16 sps:$4 sm:$0xff]  }
 0x555   : > { %9998 = vmatprep.subr.bf16.mxu1 %v16757_v11  ;;  %v16815_v11 = vld [vmem:[%s18143_s23 + $0x21c8] ss:$16 sps:$4 sm:$0xff]  }
 0x557   : > { %10032 = vmatpush2.bf16.msra.mxu0 %v16758_v55  ;;  %v16826_v55 = vld [vmem:[%s18143_s23 + $0x222c] ss:$16 sps:$4 sm:$0xff]  }
 0x558   : > { %9999 = vmatpush2.bf16.msra.mxu1 %v16755_v3  ;;  %10033 = vmatprep.subr.bf16.mxu0 %v16763_v25  ;;  %v16823_v3 = vld [vmem:[%s18143_s23 + $0x21ac] ss:$16 sps:$4 sm:$0xff]   ;;  %v16821_v25 = vld [vmem:[%s18143_s23 + $0x21a8] ss:$16 sps:$4 sm:$0xff]  }
 0x559   : > { %10050 = vmatprep.subr.bf16.mxu1 %v16766_v1  ;;  %v16824_v1 = vld [vmem:[%s18143_s23 + $0x2228] ss:$16 sps:$4 sm:$0xff]  }
 0x55b   : > { %v9756_v18 = vpop.f32.mrf.mxu1  ;;  %10001 = vmatmul.mubr.bf16.vlgmr.msra.gmra.mxu1 %v18932_v9  ;;  %10034 = vmatpush2.bf16.msra.mxu0 %v16761_v30  ;;  %v16829_v30 = vld [vmem:[%s18143_s23 + $0x218c] ss:$16 sps:$4 sm:$0xff]  }
 0x55c   : > { %v9757_v32 = vadd.f32 %v9756_v18, %v19700_v20  ;;  %10051 = vmatpush1.bf16.msra.mxu1 %v16764_v2  ;;  %10035 = vmatprep.subr.bf16.mxu0 %v16769_v16  ;;  %v16773_v20 = vld [vmem:[%s18143_s23 + $0x1f28] ss:$16 sps:$4 sm:$0xff]   ;;  %v16832_v2 = vld [vmem:[%s18143_s23 + $0x220c] ss:$16 sps:$4 sm:$0xff]  }
 0x55d   : > { %v9758_v33 = vpop.f32.mrf.mxu1  ;;  %10052 = vmatprep.subr.bf16.mxu1 %v16772_v44  ;;  %10082 = vmatprep.mubr.bf16.mxu1 %v18954_v34  ;;  %v16782_v34 = vld [vmem:[%s18143_s23 + $0x2088] ss:$16 sps:$4 sm:$0xff]   ;;  %v16835_v18 = vld [vmem:[%s18143_s23 + $0x216c] ss:$16 sps:$4 sm:$0xff]  }
 0x55e   : > { %v9759_v51 = vadd.f32 %v9758_v33, %v19706_v58  ;;  %v16779_v58 = vld [vmem:[%s18143_s23 + $0x1f08] ss:$16 sps:$4 sm:$0xff]   ;;  %v16841_v33 = vld [vmem:[%s18143_s23 + $0x214c] ss:$16 sps:$4 sm:$0xff]  }
 0x55f   : > { %v9760_v9 = vpop.f32.mrf.mxu1  ;;  %10036 = vmatpush2.bf16.msra.mxu0 %v16767_v0  ;;  %v16827_v16 = vld [vmem:[%s18143_s23 + $0x2188] ss:$16 sps:$4 sm:$0xff]  }
 0x560   : > { %10053 = vmatpush1.bf16.msra.mxu1 %v16770_v7  ;;  %10037 = vmatprep.subr.bf16.mxu0 %v16775_v63  ;;  %v16830_v44 = vld [vmem:[%s18143_s23 + $0x2208] ss:$16 sps:$4 sm:$0xff]   ;;  %v16844_v63 = vld [vmem:[%s18143_s23 + $0x23cc] ss:$16 sps:$4 sm:$0xff]  }
 0x561   : > { %v9761_v12 = vpop.f32.mrf.mxu1  ;;  %10054 = vmatprep.subr.bf16.mxu1 %v16778_v56  ;;  %v16833_v0 = vld [vmem:[%s18143_s23 + $0x2168] ss:$16 sps:$4 sm:$0xff]   ;;  %v16847_v9 = vld [vmem:[%s18143_s23 + $0x212c] ss:$16 sps:$4 sm:$0xff]  }
 0x562   : > { %v16836_v7 = vld [vmem:[%s18143_s23 + $0x23e8] ss:$16 sps:$4 sm:$0xff]  }
 0x563   : > { %10038 = vmatpush2.bf16.msra.mxu0 %v16773_v20  ;;  %v16839_v56 = vld [vmem:[%s18143_s23 + $0x2148] ss:$16 sps:$4 sm:$0xff]   ;;  %v16850_v20 = vld [vmem:[%s18143_s23 + $0x23ac] ss:$16 sps:$4 sm:$0xff]  }
 0x564   : > { %10055 = vmatpush1.bf16.msra.mxu1 %v16776_v59  ;;  %10039 = vmatprep.subr.bf16.mxu0 %v16781_v46  ;;  %v16845_v59 = vld [vmem:[%s18143_s23 + $0x2128] ss:$16 sps:$4 sm:$0xff]   ;;  %v16853_v46 = vld [vmem:[%s18143_s23 + $0x210c] ss:$16 sps:$4 sm:$0xff]  }
 0x565   : > { %10056 = vmatprep.subr.bf16.mxu1 %v16784_v5  ;;  %v16848_v12 = vld [vmem:[%s18143_s23 + $0x23a8] ss:$16 sps:$4 sm:$0xff]   ;;  %v16856_v5 = vld [vmem:[%s18143_s23 + $0x238c] ss:$16 sps:$4 sm:$0xff]  }
 0x567   : > { %10040 = vmatpush2.bf16.msra.mxu0 %v16779_v58  ;;  %v16851_v58 = vld [vmem:[%s18143_s23 + $0x2108] ss:$16 sps:$4 sm:$0xff]  }
 0x568   : > { %10057 = vmatpush1.bf16.msra.mxu1 %v16782_v34  ;;  %10091 = vmatprep.subr.bf16.mxu0 %v16790_v53  ;;  %v16854_v34 = vld [vmem:[%s18143_s23 + $0x2388] ss:$16 sps:$4 sm:$0xff]   ;;  %v16862_v53 = vld [vmem:[%s18143_s23 + $0x24ec] ss:$16 sps:$4 sm:$0xff]  }
 0x569   : > { %10058 = vmatprep.subr.bf16.mxu1 %v16787_v23  ;;  %v16859_v23 = vld [vmem:[%s18143_s23 + $0x236c] ss:$16 sps:$4 sm:$0xff]  }
 0x56a   : > { %v9797_v41 = vpop.f32.mrf.mxu0  ;;  %10042 = vmatmul.mubr.bf16.vlgmr.msra.gmra.mxu0 %v18936_v29 }
 0x56b   : > { %v19774_v47 = vadd.f32 %v9797_v41, %v9757_v32  ;;  %10092 = vmatpush1.bf16.msra.mxu0 %v16788_v52  ;;  %10123 = vmatprep.mubr.bf16.mxu0 %v18958_v35  ;;  %v16806_v35 = vld [vmem:[%s18143_s23 + $0x2288] ss:$16 sps:$4 sm:$0xff]   ;;  %v16838_v32 = vld [vmem:[%s18143_s23 + $0x23ec] ss:$16 sps:$4 sm:$0xff]  }
 0x56c   : > { %10059 = vmatpush1.bf16.msra.mxu1 %v16785_v37  ;;  %v9799_v39 = vpop.f32.mrf.mxu0  ;;  %10093 = vmatprep.subr.bf16.mxu0 %v16796_v49  ;;  %v16857_v37 = vld [vmem:[%s18143_s23 + $0x2368] ss:$16 sps:$4 sm:$0xff]   ;;  %v16868_v49 = vld [vmem:[%s18143_s23 + $0x24cc] ss:$16 sps:$4 sm:$0xff]  }
 0x56d   : > { %10060 = vmatprep.subr.bf16.mxu1 %v16793_v54  ;;  %v19780_v4 = vadd.f32 %v9799_v39, %v9759_v51  ;;  %v16842_v51 = vld [vmem:[%s18143_s23 + $0x23c8] ss:$16 sps:$4 sm:$0xff]   ;;  %v16865_v54 = vld [vmem:[%s18143_s23 + $0x234c] ss:$16 sps:$4 sm:$0xff]  }
 0x56e   : > { %v9801_v29 = vpop.f32.mrf.mxu0  ;;  %v16860_v52 = vld [vmem:[%s18143_s23 + $0x24e8] ss:$16 sps:$4 sm:$0xff]  }
 0x56f   : > { %10094 = vmatpush1.bf16.msra.mxu0 %v16794_v38  ;;  %v16863_v38 = vld [vmem:[%s18143_s23 + $0x2348] ss:$16 sps:$4 sm:$0xff]   ;;  %v16874_v29 = vld [vmem:[%s18143_s23 + $0x24ac] ss:$16 sps:$4 sm:$0xff]  }
 0x570   : > { %10061 = vmatpush1.bf16.msra.mxu1 %v16791_v45  ;;  %v9802_v36 = vpop.f32.mrf.mxu0  ;;  %10095 = vmatprep.subr.bf16.mxu0 %v16802_v62  ;;  %v16866_v39 = vld [vmem:[%s18143_s23 + $0x24c8] ss:$16 sps:$4 sm:$0xff]   ;;  %v16871_v62 = vld [vmem:[%s18143_s23 + $0x232c] ss:$16 sps:$4 sm:$0xff]  }
 0x571   : > { %10062 = vmatprep.subr.bf16.mxu1 %v16799_v24 }
 0x573   : > { %10096 = vmatpush1.bf16.msra.mxu0 %v16800_v57  ;;  %v16872_v57 = vld [vmem:[%s18143_s23 + $0x24a8] ss:$16 sps:$4 sm:$0xff]  }
 0x574   : > { %10063 = vmatpush1.bf16.msra.mxu1 %v16797_v8  ;;  %10097 = vmatprep.subr.bf16.mxu0 %v16808_v40  ;;  %v16880_v40 = vld [vmem:[%s18143_s23 + $0x248c] ss:$16 sps:$4 sm:$0xff]  }
 0x575   : > { %10064 = vmatprep.subr.bf16.mxu1 %v16805_v42  ;;  %v16877_v42 = vld [vmem:[%s18143_s23 + $0x230c] ss:$16 sps:$4 sm:$0xff]  }
 0x577   : > { %10098 = vmatpush1.bf16.msra.mxu0 %v16806_v35  ;;  %v16886_v35 = vld [vmem:[%s18143_s23 + $0x26ec] ss:$16 sps:$4 sm:$0xff]  }
 0x578   : > { %10065 = vmatpush1.bf16.msra.mxu1 %v16803_v14  ;;  %10099 = vmatprep.subr.bf16.mxu0 %v16814_v60  ;;  %v16883_v14 = vld [vmem:[%s18143_s23 + $0x246c] ss:$16 sps:$4 sm:$0xff]   ;;  %v16884_v60 = vld [vmem:[%s18143_s23 + $0x26e8] ss:$16 sps:$4 sm:$0xff]  }
 0x579   : > { %10066 = vmatprep.subr.bf16.mxu1 %v16811_v48  ;;  %v16881_v48 = vld [vmem:[%s18143_s23 + $0x2468] ss:$16 sps:$4 sm:$0xff]  }
 0x57b   : > { %10100 = vmatpush1.bf16.msra.mxu0 %v16812_v43  ;;  %v16892_v43 = vld [vmem:[%s18143_s23 + $0x26cc] ss:$16 sps:$4 sm:$0xff]  }
 0x57c   : > { %10067 = vmatpush2.bf16.msra.mxu1 %v16809_v17  ;;  %10101 = vmatprep.subr.bf16.mxu0 %v16820_v10  ;;  %v16889_v17 = vld [vmem:[%s18143_s23 + $0x244c] ss:$16 sps:$4 sm:$0xff]  }
 0x57d   : > { %10068 = vmatprep.subr.bf16.mxu1 %v16817_v6 }
 0x57f   : > { %10102 = vmatpush1.bf16.msra.mxu0 %v16818_v15  ;;  %v16890_v15 = vld [vmem:[%s18143_s23 + $0x26c8] ss:$16 sps:$4 sm:$0xff]  }
 0x580   : > { %10069 = vmatpush2.bf16.msra.mxu1 %v16815_v11  ;;  %10103 = vmatprep.subr.bf16.mxu0 %v16826_v55  ;;  %v16887_v11 = vld [vmem:[%s18143_s23 + $0x2448] ss:$16 sps:$4 sm:$0xff]   ;;  %v16895_v55 = vld [vmem:[%s18143_s23 + $0x242c] ss:$16 sps:$4 sm:$0xff]  }
 0x581   : > { %10070 = vmatprep.subr.bf16.mxu1 %v16823_v3 }
 0x583   : > { %10104 = vmatpush1.bf16.msra.mxu0 %v16824_v1 }
 0x584   : > { %10071 = vmatpush2.bf16.msra.mxu1 %v16821_v25  ;;  %10105 = vmatprep.subr.bf16.mxu0 %v16832_v2  ;;  %v16898_v25 = vld [vmem:[%s18143_s23 + $0x26ac] ss:$16 sps:$4 sm:$0xff]   ;;  %v16896_v2 = vld [vmem:[%s18143_s23 + $0x26a8] ss:$16 sps:$4 sm:$0xff]  }
 0x585   : > { %10072 = vmatprep.subr.bf16.mxu1 %v16829_v30  ;;  %v16893_v30 = vld [vmem:[%s18143_s23 + $0x2428] ss:$16 sps:$4 sm:$0xff]  }
 0x587   : > { %10106 = vmatpush1.bf16.msra.mxu0 %v16830_v44  ;;  %v16901_v44 = vld [vmem:[%s18143_s23 + $0x240c] ss:$16 sps:$4 sm:$0xff]  }
 0x588   : > { %10073 = vmatpush2.bf16.msra.mxu1 %v16827_v16  ;;  %10107 = vmatprep.subr.bf16.mxu0 %v16838_v32  ;;  %v16899_v32 = vld [vmem:[%s18143_s23 + $0x2408] ss:$16 sps:$4 sm:$0xff]  }
 0x589   : > { %10074 = vmatprep.subr.bf16.mxu1 %v16835_v18  ;;  %v16904_v18 = vld [vmem:[%s18143_s23 + $0x268c] ss:$16 sps:$4 sm:$0xff]  }
 0x58b   : > { %10108 = vmatpush2.bf16.msra.mxu0 %v16836_v7  ;;  %v16910_v7 = vld [vmem:[%s18143_s23 + $0x266c] ss:$16 sps:$4 sm:$0xff]  }
 0x58c   : > { %10075 = vmatpush2.bf16.msra.mxu1 %v16833_v0  ;;  %10109 = vmatprep.subr.bf16.mxu0 %v16844_v63  ;;  %v16907_v0 = vld [vmem:[%s18143_s23 + $0x25ec] ss:$16 sps:$4 sm:$0xff]   ;;  %v16908_v63 = vld [vmem:[%s18143_s23 + $0x2668] ss:$16 sps:$4 sm:$0xff]  }
 0x58d   : > { %10076 = vmatprep.subr.bf16.mxu1 %v16841_v33  ;;  %v16905_v33 = vld [vmem:[%s18143_s23 + $0x25e8] ss:$16 sps:$4 sm:$0xff]  }
 0x58f   : > { %10110 = vmatpush2.bf16.msra.mxu0 %v16842_v51  ;;  %v16916_v51 = vld [vmem:[%s18143_s23 + $0x264c] ss:$16 sps:$4 sm:$0xff]  }
 0x590   : > { %10077 = vmatpush2.bf16.msra.mxu1 %v16839_v56  ;;  %10111 = vmatprep.subr.bf16.mxu0 %v16850_v20  ;;  %v16913_v56 = vld [vmem:[%s18143_s23 + $0x25cc] ss:$16 sps:$4 sm:$0xff]   ;;  %v16914_v20 = vld [vmem:[%s18143_s23 + $0x2648] ss:$16 sps:$4 sm:$0xff]  }
 0x591   : > { %10078 = vmatprep.subr.bf16.mxu1 %v16847_v9  ;;  %v16911_v9 = vld [vmem:[%s18143_s23 + $0x25c8] ss:$16 sps:$4 sm:$0xff]  }
 0x593   : > { %10112 = vmatpush2.bf16.msra.mxu0 %v16848_v12  ;;  %v16922_v12 = vld [vmem:[%s18143_s23 + $0x262c] ss:$16 sps:$4 sm:$0xff]  }
 0x594   : > { %10079 = vmatpush2.bf16.msra.mxu1 %v16845_v59  ;;  %10113 = vmatprep.subr.bf16.mxu0 %v16856_v5  ;;  %v16919_v59 = vld [vmem:[%s18143_s23 + $0x25ac] ss:$16 sps:$4 sm:$0xff]   ;;  %v16920_v5 = vld [vmem:[%s18143_s23 + $0x2628] ss:$16 sps:$4 sm:$0xff]  }
 0x595   : > { %10080 = vmatprep.subr.bf16.mxu1 %v16853_v46  ;;  %v16917_v46 = vld [vmem:[%s18143_s23 + $0x25a8] ss:$16 sps:$4 sm:$0xff]  }
 0x597   : > { %10114 = vmatpush2.bf16.msra.mxu0 %v16854_v34  ;;  %v16928_v34 = vld [vmem:[%s18143_s23 + $0x260c] ss:$16 sps:$4 sm:$0xff]  }
 0x598   : > { %10081 = vmatpush2.bf16.msra.mxu1 %v16851_v58  ;;  %10115 = vmatprep.subr.bf16.mxu0 %v16859_v23  ;;  %v16925_v58 = vld [vmem:[%s18143_s23 + $0x258c] ss:$16 sps:$4 sm:$0xff]   ;;  %v16923_v23 = vld [vmem:[%s18143_s23 + $0x2588] ss:$16 sps:$4 sm:$0xff]  }
 0x599   : > { %10132 = vmatprep.subr.bf16.mxu1 %v16862_v53  ;;  %v16926_v53 = vld [vmem:[%s18143_s23 + $0x2608] ss:$16 sps:$4 sm:$0xff]  }
 0x59b   : > { %v9838_v41 = vpop.f32.mrf.mxu1  ;;  %10083 = vmatmul.mubr.bf16.vlgmr.msra.gmra.mxu1 %v19042_v27  ;;  %10116 = vmatpush2.bf16.msra.mxu0 %v16857_v37  ;;  %v16931_v37 = vld [vmem:[%s18143_s23 + $0x256c] ss:$16 sps:$4 sm:$0xff]  }
 0x59c   : > { %v9839_v45 = vadd.f32 %v9838_v41, %v19774_v47  ;;  %10133 = vmatpush1.bf16.msra.mxu1 %v16860_v52  ;;  %10117 = vmatprep.subr.bf16.mxu0 %v16865_v54  ;;  %v16869_v47 = vld [vmem:[%s18143_s23 + $0x2328] ss:$16 sps:$4 sm:$0xff]   ;;  %v16934_v52 = vld [vmem:[%s18143_s23 + $0x27ec] ss:$16 sps:$4 sm:$0xff]  }
 0x59d   : > { %v9840_v24 = vpop.f32.mrf.mxu1  ;;  %10134 = vmatprep.subr.bf16.mxu1 %v16868_v49  ;;  %10164 = vmatprep.mubr.bf16.mxu1 %v19054_v22  ;;  %v16878_v22 = vld [vmem:[%s18143_s23 + $0x2488] ss:$16 sps:$4 sm:$0xff]   ;;  %v16937_v41 = vld [vmem:[%s18143_s23 + $0x254c] ss:$16 sps:$4 sm:$0xff]  }
 0x59e   : > { %v9841_v8 = vadd.f32 %v9840_v24, %v19780_v4  ;;  %v16875_v4 = vld [vmem:[%s18143_s23 + $0x2308] ss:$16 sps:$4 sm:$0xff]   ;;  %v16943_v24 = vld [vmem:[%s18143_s23 + $0x252c] ss:$16 sps:$4 sm:$0xff]  }
 0x59f   : > { %v9842_v27 = vpop.f32.mrf.mxu1  ;;  %10118 = vmatpush2.bf16.msra.mxu0 %v16863_v38  ;;  %v16929_v54 = vld [vmem:[%s18143_s23 + $0x2568] ss:$16 sps:$4 sm:$0xff]  }
 0x5a0   : > { %10135 = vmatpush1.bf16.msra.mxu1 %v16866_v39  ;;  %10119 = vmatprep.subr.bf16.mxu0 %v16871_v62  ;;  %v16932_v49 = vld [vmem:[%s18143_s23 + $0x27e8] ss:$16 sps:$4 sm:$0xff]   ;;  %v16946_v62 = vld [vmem:[%s18143_s23 + $0x27ac] ss:$16 sps:$4 sm:$0xff]  }
 0x5a1   : > { %v9843_v36 = vpop.f32.mrf.mxu1  ;;  %10136 = vmatprep.subr.bf16.mxu1 %v16874_v29  ;;  %v16935_v38 = vld [vmem:[%s18143_s23 + $0x2548] ss:$16 sps:$4 sm:$0xff]   ;;  %v16949_v27 = vld [vmem:[%s18143_s23 + $0x250c] ss:$16 sps:$4 sm:$0xff]  }
 0x5a2   : > { %v16938_v39 = vld [vmem:[%s18143_s23 + $0x27c8] ss:$16 sps:$4 sm:$0xff]  }
 0x5a3   : > { %10120 = vmatpush2.bf16.msra.mxu0 %v16869_v47  ;;  %v16941_v29 = vld [vmem:[%s18143_s23 + $0x2528] ss:$16 sps:$4 sm:$0xff]   ;;  %v16952_v47 = vld [vmem:[%s18143_s23 + $0x278c] ss:$16 sps:$4 sm:$0xff]  }
 0x5a4   : > { %10137 = vmatpush1.bf16.msra.mxu1 %v16872_v57  ;;  %10121 = vmatprep.subr.bf16.mxu0 %v16877_v42  ;;  %v16947_v57 = vld [vmem:[%s18143_s23 + $0x2508] ss:$16 sps:$4 sm:$0xff]   ;;  %v16955_v42 = vld [vmem:[%s18143_s23 + $0x276c] ss:$16 sps:$4 sm:$0xff]  }
 0x5a5   : > { %10138 = vmatprep.subr.bf16.mxu1 %v16880_v40  ;;  %v16950_v36 = vld [vmem:[%s18143_s23 + $0x2788] ss:$16 sps:$4 sm:$0xff]   ;;  %v16958_v40 = vld [vmem:[%s18143_s23 + $0x286c] ss:$16 sps:$4 sm:$0xff]  }
 0x5a7   : > { %10122 = vmatpush2.bf16.msra.mxu0 %v16875_v4  ;;  %v16953_v4 = vld [vmem:[%s18143_s23 + $0x2768] ss:$16 sps:$4 sm:$0xff]  }
 0x5a8   : > { %10139 = vmatpush1.bf16.msra.mxu1 %v16878_v22  ;;  %10173 = vmatprep.subr.bf16.mxu0 %v16886_v35  ;;  %v16956_v22 = vld [vmem:[%s18143_s23 + $0x2868] ss:$16 sps:$4 sm:$0xff]   ;;  %v16964_v35 = vld [vmem:[%s18143_s23 + $0x284c] ss:$16 sps:$4 sm:$0xff]  }
 0x5a9   : > { %10140 = vmatprep.subr.bf16.mxu1 %v16883_v14  ;;  %v16961_v14 = vld [vmem:[%s18143_s23 + $0x274c] ss:$16 sps:$4 sm:$0xff]  }
 0x5aa   : > { %v9879_v6 = vpop.f32.mrf.mxu0  ;;  %10124 = vmatmul.mubr.bf16.vlgmr.msra.gmra.mxu0 %v19046_v28 }
 0x5ab   : > { %v19848_v10 = vadd.f32 %v9879_v6, %v9839_v45  ;;  %10174 = vmatpush1.bf16.msra.mxu0 %v16884_v60  ;;  %10205 = vmatprep.mubr.bf16.mxu0 %v19058_v31  ;;  %v16902_v31 = vld [vmem:[%s18143_s23 + $0x2688] ss:$16 sps:$4 sm:$0xff]   ;;  %v16940_v45 = vld [vmem:[%s18143_s23 + $0x27cc] ss:$16 sps:$4 sm:$0xff]  }
 0x5ac   : > { %10141 = vmatpush1.bf16.msra.mxu1 %v16881_v48  ;;  %v9881_v3 = vpop.f32.mrf.mxu0  ;;  %10175 = vmatprep.subr.bf16.mxu0 %v16892_v43  ;;  %v16962_v43 = vld [vmem:[%s18143_s23 + $0x2848] ss:$16 sps:$4 sm:$0xff]  }
 0x5ad   : > { %10142 = vmatprep.subr.bf16.mxu1 %v16889_v17  ;;  %v19854_v1 = vadd.f32 %v9881_v3, %v9841_v8  ;;  %v16944_v8 = vld [vmem:[%s18143_s23 + $0x27a8] ss:$16 sps:$4 sm:$0xff]  }
 0x5ae   : > { %v9883_v28 = vpop.f32.mrf.mxu0  ;;  %v16959_v17 = vld [vmem:[%s18143_s23 + $0x2748] ss:$16 sps:$4 sm:$0xff]  }
 0x5af   : > { %10176 = vmatpush1.bf16.msra.mxu0 %v16890_v15  ;;  %v16970_v15 = vld [vmem:[%s18143_s23 + $0x282c] ss:$16 sps:$4 sm:$0xff]  }
 0x5b0   : > { %10143 = vmatpush1.bf16.msra.mxu1 %v16887_v11  ;;  %v9884_v16 = vpop.f32.mrf.mxu0  ;;  %10177 = vmatprep.subr.bf16.mxu0 %v16898_v25  ;;  %v16967_v11 = vld [vmem:[%s18143_s23 + $0x272c] ss:$16 sps:$4 sm:$0xff]  }
 0x5b1   : > { %10144 = vmatprep.subr.bf16.mxu1 %v16895_v55  ;;  %v16968_v55 = vld [vmem:[%s18143_s23 + $0x2828] ss:$16 sps:$4 sm:$0xff]   ;;  %v16973_v28 = vld [vmem:[%s18143_s23 + $0x270c] ss:$16 sps:$4 sm:$0xff]  }
 0x5b2   : > { %v16974_v16 = vld [vmem:[%s18143_s23 + $0x2808] ss:$16 sps:$4 sm:$0xff]  }
 0x5b3   : > { %10178 = vmatpush1.bf16.msra.mxu0 %v16896_v2  ;;  %v16971_v2 = vld [vmem:[%s18143_s23 + $0x2708] ss:$16 sps:$4 sm:$0xff]  }
 0x5b4   : > { %10145 = vmatpush1.bf16.msra.mxu1 %v16893_v30  ;;  %10179 = vmatprep.subr.bf16.mxu0 %v16904_v18  ;;  %v16976_v30 = vld [vmem:[%s18143_s23 + $0x280c] ss:$16 sps:$4 sm:$0xff]  }
 0x5b5   : > { %10146 = vmatprep.subr.bf16.mxu1 %v16901_v44 }
 0x5b7   : > { %10180 = vmatpush1.bf16.msra.mxu0 %v16902_v31 }
 0x5b8   : > { %10147 = vmatpush1.bf16.msra.mxu1 %v16899_v32  ;;  %10181 = vmatprep.subr.bf16.mxu0 %v16910_v7 }
 0x5b9   : > { %10148 = vmatprep.subr.bf16.mxu1 %v16907_v0 }
 0x5bb   : > { %10182 = vmatpush1.bf16.msra.mxu0 %v16908_v63 }
 0x5bc   : > { %10149 = vmatpush2.bf16.msra.mxu1 %v16905_v33  ;;  %10183 = vmatprep.subr.bf16.mxu0 %v16916_v51 }
 0x5bd   : > { %10150 = vmatprep.subr.bf16.mxu1 %v16913_v56 }
 0x5bf   : > { %10184 = vmatpush1.bf16.msra.mxu0 %v16914_v20 }
 0x5c0   : > { %10151 = vmatpush2.bf16.msra.mxu1 %v16911_v9  ;;  %10185 = vmatprep.subr.bf16.mxu0 %v16922_v12 }
 0x5c1   : > { %10152 = vmatprep.subr.bf16.mxu1 %v16919_v59 }
 0x5c3   : > { %10186 = vmatpush1.bf16.msra.mxu0 %v16920_v5 }
 0x5c4   : > { %10153 = vmatpush2.bf16.msra.mxu1 %v16917_v46  ;;  %10187 = vmatprep.subr.bf16.mxu0 %v16928_v34 }
 0x5c5   : > { %10154 = vmatprep.subr.bf16.mxu1 %v16925_v58 }
 0x5c7   : > { %10188 = vmatpush1.bf16.msra.mxu0 %v16926_v53 }
 0x5c8   : > { %10155 = vmatpush2.bf16.msra.mxu1 %v16923_v23  ;;  %10189 = vmatprep.subr.bf16.mxu0 %v16934_v52 }
 0x5c9   : > { %10156 = vmatprep.subr.bf16.mxu1 %v16931_v37 }
 0x5cb   : > { %10190 = vmatpush2.bf16.msra.mxu0 %v16932_v49 }
 0x5cc   : > { %10157 = vmatpush2.bf16.msra.mxu1 %v16929_v54  ;;  %10191 = vmatprep.subr.bf16.mxu0 %v16940_v45 }
 0x5cd   : > { %10158 = vmatprep.subr.bf16.mxu1 %v16937_v41 }
 0x5cf   : > { %10192 = vmatpush2.bf16.msra.mxu0 %v16938_v39 }
 0x5d0   : > { %10159 = vmatpush2.bf16.msra.mxu1 %v16935_v38  ;;  %10193 = vmatprep.subr.bf16.mxu0 %v16946_v62 }
 0x5d1   : > { %10160 = vmatprep.subr.bf16.mxu1 %v16943_v24 }
 0x5d3   : > { %10194 = vmatpush2.bf16.msra.mxu0 %v16944_v8  ;;  %v19921_v8 = vsub.s32 2, %v19377_v21 }
 0x5d4   : > { %10161 = vmatpush2.bf16.msra.mxu1 %v16941_v29  ;;  %10195 = vmatprep.subr.bf16.mxu0 %v16952_v47 }
 0x5d5   : > { %10162 = vmatprep.subr.bf16.mxu1 %v16949_v27 }
 0x5d7   : > { %10196 = vmatpush2.bf16.msra.mxu0 %v16950_v36 }
 0x5d8   : > { %10163 = vmatpush2.bf16.msra.mxu1 %v16947_v57  ;;  %10197 = vmatprep.subr.bf16.mxu0 %v16955_v42  ;;  %v19924_v57 = vsub.s32 3, %v19377_v21 }
 0x5d9   : > { %10222 = vmatprep.subr.bf16.mxu1 %v16958_v40 }
 0x5db   : > { %v9920_v48 = vpop.f32.mrf.mxu1  ;;  %10165 = vmatmul.mubr.bf16.vlgmr.msra.gmra.mxu1 %v19132_v61  ;;  %10198 = vmatpush2.bf16.msra.mxu0 %v16953_v4 }
 0x5dc   : > { %v9921_v60 = vadd.f32 %v9920_v48, %v19848_v10  ;;  %10223 = vmatpush1.bf16.msra.mxu1 %v16956_v22  ;;  %10199 = vmatprep.subr.bf16.mxu0 %v16961_v14  ;;  %v16965_v10 = vld [vmem:[%s18143_s23 + $0x2728] ss:$16 sps:$4 sm:$0xff]   ;;  %v16978_v22 = vld [vmem:[%s18150_s4] sm:$0xf] }
 0x5dd   : > { %v9922_v6 = vpop.f32.mrf.mxu1  ;;  %10224 = vmatprep.subr.bf16.mxu1 %v16964_v35  ;;  %10246 = vmatprep.mubr.bf16.mxu1 %v17845_v13  ;;  %v16977_v13 = vld [vmem:[%s20145_s20 + $0xa0] ss:$0 sps:$4 sm:$0xff]   ;;  %v10268_v14 = vrot.slane %v16978_v22, %v19921_v8 }
 0x5de   : > { %v9923_v3 = vadd.f32 %v9922_v6, %v19854_v1 }
 0x5df   : > { %v9924_v61 = vpop.f32.mrf.mxu1  ;;  %10200 = vmatpush2.bf16.msra.mxu0 %v16959_v17  ;;  %v16979_v17 = vld [vmem:[%s18156_s28] sm:$0xf]  ;;  %s20146_s28 = sld [smem:[#allocation35_spill]] (!%p14490_p13) }
 0x5e0   : > { %10225 = vmatpush1.bf16.msra.mxu1 %v16962_v43  ;;  %10201 = vmatprep.subr.bf16.mxu0 %v16967_v11  ;;  %v10294_v43 = vrot.slane %v16979_v17, %v19921_v8  ;;  %v10272_v11 = vrot.slane %v16978_v22, %v19924_v57 }
 0x5e1   : > { %v9925_v25 = vpop.f32.mrf.mxu1  ;;  %10226 = vmatprep.subr.bf16.mxu1 %v16970_v15 }
 0x5e3   : > { %10202 = vmatpush2.bf16.msra.mxu0 %v16965_v10  ;;  %v10298_v10 = vrot.slane %v16979_v17, %v19924_v57 }
 0x5e4   : > { %10227 = vmatpush1.bf16.msra.mxu1 %v16968_v55  ;;  %10203 = vmatprep.subr.bf16.mxu0 %v16973_v28 }
 0x5e5   : > { %10228 = vmatprep.subr.bf16.mxu1 %v16976_v30 }
 0x5e7   : > { %10204 = vmatpush2.bf16.msra.mxu0 %v16971_v2 }
 0x5e8   : > { %10229 = vmatpush1.bf16.msra.mxu1 %v16974_v16 }
 0x5ea   : > { %v9961_v1 = vpop.f32.mrf.mxu0  ;;  %10206 = vmatmul.mubr.bf16.vlgmr.msra.gmra.mxu0 %v19136_v50 }
 0x5eb   : > { %14487 = vmatmul.mubr.msk.bf16.vlgmr.msra.gmra.mxu1 %vm8529_vm0, %v16977_v13  ;;  %v9962_v44 = vadd.f32 %v9961_v1, %v9921_v60 }
 0x5ec   : > { %v9963_v18 = vpop.f32.mrf.mxu0 }
 0x5ed   : > { %v9964_v32 = vadd.f32 %v9963_v18, %v9923_v3 }
 0x5ee   : > { %v9965_v31 = vpop.f32.mrf.mxu0 }
 0x5f0   : > { %v9966_v0 = vpop.f32.mrf.mxu0 }
 0x61b   : > { %v10002_v7 = vpop.f32.mrf.mxu1 }
 0x61c   : > { %v10003_v33 = vadd.f32 %v10002_v7, %v9962_v44 }
 0x61d   : > { %v10004_v63 = vpop.f32.mrf.mxu1 }
 0x61e   : > { %v10005_v56 = vadd.f32 %v10004_v63, %v9964_v32 }
 0x61f   : > { %v10006_v51 = vpop.f32.mrf.mxu1 }
 0x621   : > { %v10007_v9 = vpop.f32.mrf.mxu1 }
 0x62a   : > { %v10043_v20 = vpop.f32.mrf.mxu0 }
 0x62b   : > { %v10044_v59 = vadd.f32 %v10043_v20, %v10003_v33 }
 0x62c   : > { %v10045_v50 = vpop.f32.mrf.mxu0 }
 0x62d   : > { %v10046_v12 = vadd.f32 %v10045_v50, %v10005_v56 }
 0x62e   : > { %v10047_v46 = vpop.f32.mrf.mxu0 }
 0x630   : > { %v10048_v5 = vpop.f32.mrf.mxu0 }
 0x65b   : > { %v10084_v58 = vpop.f32.mrf.mxu1 }
 0x65c   : > { %v10085_v34 = vadd.f32 %v10084_v58, %v10044_v59 }
 0x65d   : > { %v10086_v23 = vpop.f32.mrf.mxu1 }
 0x65e   : > { %v10087_v53 = vadd.f32 %v10086_v23, %v10046_v12 }
 0x65f   : > { %v10088_v37 = vpop.f32.mrf.mxu1 }
 0x661   : > { %v10089_v52 = vpop.f32.mrf.mxu1 }
 0x66a   : > { %v10125_v54 = vpop.f32.mrf.mxu0 }
 0x66b   : > { %v10126_v29 = vadd.f32 %v10125_v54, %v10085_v34 }
 0x66c   : > { %v10127_v49 = vpop.f32.mrf.mxu0 }
 0x66d   : > { %v10128_v27 = vadd.f32 %v10127_v49, %v10087_v53 }
 0x66e   : > { %v10129_v41 = vpop.f32.mrf.mxu0 }
 0x670   : > { %v10130_v45 = vpop.f32.mrf.mxu0 }
 0x69b   : > { %v10166_v38 = vpop.f32.mrf.mxu1 }
 0x69c   : > { %v10167_v47 = vadd.f32 %v10166_v38, %v10126_v29 }
 0x69d   : > { %v10168_v39 = vpop.f32.mrf.mxu1 }
 0x69e   : > { %v10169_v40 = vadd.f32 %v10168_v39, %v10128_v27 }
 0x69f   : > { %v10170_v24 = vpop.f32.mrf.mxu1 }
 0x6a1   : > { %v10171_v62 = vpop.f32.mrf.mxu1 }
 0x6aa   : > { %v10207_v36 = vpop.f32.mrf.mxu0 }
 0x6ab   : > { %v10248_v42 = vpop.f32.mrf.mxu1  ;;  %v10208_v4 = vadd.f32 %v10207_v36, %v10167_v47 }
 0x6ac   : > { %v10209_v35 = vpop.f32.mrf.mxu0 }
 0x6ad   : > { %v10250_v48 = vpop.f32.mrf.mxu1  ;;  %v10249_v60 = vadd.f32 %v10248_v42, %v10208_v4  ;;  %v10210_v6 = vadd.f32 %v10209_v35, %v10169_v40 }
 0x6ae   : > { %v10211_v21 = vpop.f32.mrf.mxu0 }
 0x6af   : > { %v10252_v15 = vpop.f32.mrf.mxu1  ;;  %v10279_v3 = vmul.f32 %v10268_v14, %v10249_v60  ;;  %v10251_v61 = vadd.f32 %v10250_v48, %v10210_v6 }
 0x6b0   : > { %v10212_v55 = vpop.f32.mrf.mxu0 }
 0x6b1   : > { %v10253_v25 = vpop.f32.mrf.mxu1  ;;  %v10305_v28 = vadd.f32 %v10294_v43, %v10279_v3  ;;  %v10280_v30 = vmul.f32 %v10272_v11, %v10251_v61 }
 0x6b3   : > { %v10309_v2 = vmax.f32 %v10305_v28, 0.0  ;;  %v10306_v16 = vadd.f32 %v10298_v10, %v10280_v30  ;;  %10323 = sbr.rel (%p14490_p13) target bundleno = 2907 (0xb5b), region = 112 }
 0x6b5   : > { %10318 = vst [vmem:[%s19415_s14 + $0x10] sm:$0xff] %v10309_v2  ;;  %v10310_v1 = vmax.f32 %v10306_v16, 0.0 }
 0x6b7   : > { %10319 = vst [vmem:[%s19415_s14 + $0x18] sm:$0xff] %v10310_v1 }
 0x6b8   : > { %v16980_v13 = vld [vmem:[#allocation9 + $0xe4] ss:$16 sps:$4 sm:$0xff]   ;;  %v16984_v18 = vld [vmem:[#allocation9 + $0xe0] ss:$16 sps:$4 sm:$0xff]   ;;  %vm12937_vm1 = vcmask 252928  }
 0x6b9   : > { %v16982_v44 = vld [vmem:[#allocation9 + $0x2e4] ss:$16 sps:$4 sm:$0xff]   ;;  %11876 = vmatprep.subr.bf16.mxu0 %v16980_v13  ;;  %v16985_v32 = vld [vmem:[#allocation9 + $0x2e0] ss:$16 sps:$4 sm:$0xff]  }
 0x6ba   : > { %11917 = vmatprep.subr.bf16.mxu1 %v16982_v44  ;;  %v16986_v31 = vld [vmem:[#allocation9 + $0xc4] ss:$16 sps:$4 sm:$0xff]   ;;  %11877 = vmatpush1.bf16.msra.mxu0 %v16984_v18  ;;  %v16990_v7 = vld [vmem:[#allocation9 + $0xc0] ss:$16 sps:$4 sm:$0xff]  }
 0x6bb   : > { %11918 = vmatpush1.bf16.msra.mxu1 %v16985_v32  ;;  %v16988_v0 = vld [vmem:[#allocation9 + $0x2c4] ss:$16 sps:$4 sm:$0xff]   ;;  %11878 = vmatprep.subr.bf16.mxu0 %v16986_v31  ;;  %v16991_v33 = vld [vmem:[#allocation9 + $0x2c0] ss:$16 sps:$4 sm:$0xff]  }
 0x6bc   : > { %11919 = vmatprep.subr.bf16.mxu1 %v16988_v0  ;;  %v16992_v63 = vld [vmem:[#allocation9 + $0xa4] ss:$16 sps:$4 sm:$0xff]   ;;  %v16996_v51 = vld [vmem:[#allocation9 + $0xa0] ss:$16 sps:$4 sm:$0xff]  }
 0x6bd   : > { %v16994_v56 = vld [vmem:[#allocation9 + $0x2a4] ss:$16 sps:$4 sm:$0xff]   ;;  %v16997_v9 = vld [vmem:[#allocation9 + $0x2a0] ss:$16 sps:$4 sm:$0xff]  }
 0x6be   : > { %11879 = vmatpush1.bf16.msra.mxu0 %v16990_v7  ;;  %v16998_v20 = vld [vmem:[#allocation9 + $0x84] ss:$16 sps:$4 sm:$0xff]   ;;  %v17002_v50 = vld [vmem:[#allocation9 + $0x80] ss:$16 sps:$4 sm:$0xff]   ;;  %v10325_v6 = vld [vmem:[#allocation2 + $0x8] sm:$0xff] }
 0x6bf   : > { %11920 = vmatpush1.bf16.msra.mxu1 %v16991_v33  ;;  %11880 = vmatprep.subr.bf16.mxu0 %v16992_v63  ;;  %v17000_v59 = vld [vmem:[#allocation9 + $0x284] ss:$16 sps:$4 sm:$0xff]   ;;  %v17003_v12 = vld [vmem:[#allocation9 + $0x280] ss:$16 sps:$4 sm:$0xff]   ;;  %v19935_v15 = vpack.c.bf16 %v10325_v6, %v10325_v6  ;;  %v10327_v3 = vld [vmem:[#allocation2 + $0x18] sm:$0xff] }
 0x6c0   : > { %11921 = vmatprep.subr.bf16.mxu1 %v16994_v56  ;;  %v17004_v46 = vld [vmem:[#allocation9 + $0x64] ss:$16 sps:$4 sm:$0xff]   ;;  %v17008_v58 = vld [vmem:[#allocation9 + $0x60] ss:$16 sps:$4 sm:$0xff]   ;;  %v19937_v10 = vpack.c.bf16 %v10327_v3, %v10327_v3 }
 0x6c1   : > { %v17006_v5 = vld [vmem:[#allocation9 + $0x264] ss:$16 sps:$4 sm:$0xff]   ;;  %v17009_v34 = vld [vmem:[#allocation9 + $0x260] ss:$16 sps:$4 sm:$0xff]   ;;  %11908 = vmatprep.mubr.bf16.mxu0 %v19935_v15 }
 0x6c2   : > { %11881 = vmatpush1.bf16.msra.mxu0 %v16996_v51  ;;  %v17010_v23 = vld [vmem:[#allocation9 + $0x44] ss:$16 sps:$4 sm:$0xff]   ;;  %v17014_v37 = vld [vmem:[#allocation9 + $0x40] ss:$16 sps:$4 sm:$0xff]   ;;  %11949 = vmatprep.mubr.bf16.mxu1 %v19937_v10 }
 0x6c3   : > { %11922 = vmatpush1.bf16.msra.mxu1 %v16997_v9  ;;  %11882 = vmatprep.subr.bf16.mxu0 %v16998_v20  ;;  %v17012_v53 = vld [vmem:[#allocation9 + $0x244] ss:$16 sps:$4 sm:$0xff]   ;;  %v17015_v52 = vld [vmem:[#allocation9 + $0x240] ss:$16 sps:$4 sm:$0xff]  }
 0x6c4   : > { %11923 = vmatprep.subr.bf16.mxu1 %v17000_v59  ;;  %v17016_v54 = vld [vmem:[#allocation9 + $0x24] ss:$16 sps:$4 sm:$0xff]   ;;  %v17020_v41 = vld [vmem:[#allocation9 + $0x20] ss:$16 sps:$4 sm:$0xff]  }
 0x6c5   : > { %v17018_v49 = vld [vmem:[#allocation9 + $0x224] ss:$16 sps:$4 sm:$0xff]   ;;  %v17021_v45 = vld [vmem:[#allocation9 + $0x220] ss:$16 sps:$4 sm:$0xff]  }
 0x6c6   : > { %11883 = vmatpush1.bf16.msra.mxu0 %v17002_v50  ;;  %v17022_v38 = vld [vmem:[#allocation9 + $0x4] ss:$16 sps:$4 sm:$0xff]   ;;  %v17026_v24 = vld [vmem:[#allocation9] ss:$16 sps:$4 sm:$0xff]  }
 0x6c7   : > { %11924 = vmatpush1.bf16.msra.mxu1 %v17003_v12  ;;  %11884 = vmatprep.subr.bf16.mxu0 %v17004_v46  ;;  %v17024_v39 = vld [vmem:[#allocation9 + $0x204] ss:$16 sps:$4 sm:$0xff]   ;;  %v17027_v62 = vld [vmem:[#allocation9 + $0x200] ss:$16 sps:$4 sm:$0xff]  }
 0x6c8   : > { %11925 = vmatprep.subr.bf16.mxu1 %v17006_v5  ;;  %v17028_v29 = vld [vmem:[#allocation9 + $0x1e4] ss:$16 sps:$4 sm:$0xff]   ;;  %v17032_v47 = vld [vmem:[#allocation9 + $0x1e0] ss:$16 sps:$4 sm:$0xff]  }
 0x6c9   : > { %v17030_v27 = vld [vmem:[#allocation9 + $0x3e4] ss:$16 sps:$4 sm:$0xff]   ;;  %v17033_v36 = vld [vmem:[#allocation9 + $0x3e0] ss:$16 sps:$4 sm:$0xff]  }
 0x6ca   : > { %11885 = vmatpush1.bf16.msra.mxu0 %v17008_v58  ;;  %v17034_v42 = vld [vmem:[#allocation9 + $0x1c4] ss:$16 sps:$4 sm:$0xff]   ;;  %v17038_v4 = vld [vmem:[#allocation9 + $0x1c0] ss:$16 sps:$4 sm:$0xff]  }
 0x6cb   : > { %11926 = vmatpush1.bf16.msra.mxu1 %v17009_v34  ;;  %11886 = vmatprep.subr.bf16.mxu0 %v17010_v23  ;;  %v17036_v40 = vld [vmem:[#allocation9 + $0x3c4] ss:$16 sps:$4 sm:$0xff]   ;;  %v17039_v22 = vld [vmem:[#allocation9 + $0x3c0] ss:$16 sps:$4 sm:$0xff]  }
 0x6cc   : > { %11927 = vmatprep.subr.bf16.mxu1 %v17012_v53  ;;  %v17040_v14 = vld [vmem:[#allocation9 + $0x1a4] ss:$16 sps:$4 sm:$0xff]   ;;  %v17044_v48 = vld [vmem:[#allocation9 + $0x1a0] ss:$16 sps:$4 sm:$0xff]  }
 0x6cd   : > { %v17042_v35 = vld [vmem:[#allocation9 + $0x3a4] ss:$16 sps:$4 sm:$0xff]   ;;  %v17045_v60 = vld [vmem:[#allocation9 + $0x3a0] ss:$16 sps:$4 sm:$0xff]  }
 0x6ce   : > { %11887 = vmatpush1.bf16.msra.mxu0 %v17014_v37  ;;  %v17046_v17 = vld [vmem:[#allocation9 + $0x184] ss:$16 sps:$4 sm:$0xff]   ;;  %v17050_v11 = vld [vmem:[#allocation9 + $0x180] ss:$16 sps:$4 sm:$0xff]  }
 0x6cf   : > { %11928 = vmatpush1.bf16.msra.mxu1 %v17015_v52  ;;  %11888 = vmatprep.subr.bf16.mxu0 %v17016_v54  ;;  %v17048_v43 = vld [vmem:[#allocation9 + $0x384] ss:$16 sps:$4 sm:$0xff]   ;;  %v17051_v21 = vld [vmem:[#allocation9 + $0x380] ss:$16 sps:$4 sm:$0xff]  }
 0x6d0   : > { %11929 = vmatprep.subr.bf16.mxu1 %v17018_v49  ;;  %v17052_v61 = vld [vmem:[#allocation9 + $0x164] ss:$16 sps:$4 sm:$0xff]   ;;  %v17056_v25 = vld [vmem:[#allocation9 + $0x160] ss:$16 sps:$4 sm:$0xff]  }
 0x6d1   : > { %v17054_v55 = vld [vmem:[#allocation9 + $0x364] ss:$16 sps:$4 sm:$0xff]   ;;  %v17057_v28 = vld [vmem:[#allocation9 + $0x360] ss:$16 sps:$4 sm:$0xff]  }
 0x6d2   : > { %11889 = vmatpush1.bf16.msra.mxu0 %v17020_v41  ;;  %v17058_v30 = vld [vmem:[#allocation9 + $0x144] ss:$16 sps:$4 sm:$0xff]   ;;  %v17062_v16 = vld [vmem:[#allocation9 + $0x140] ss:$16 sps:$4 sm:$0xff]  }
 0x6d3   : > { %11930 = vmatpush1.bf16.msra.mxu1 %v17021_v45  ;;  %11890 = vmatprep.subr.bf16.mxu0 %v17022_v38  ;;  %v17060_v2 = vld [vmem:[#allocation9 + $0x344] ss:$16 sps:$4 sm:$0xff]   ;;  %v17063_v1 = vld [vmem:[#allocation9 + $0x340] ss:$16 sps:$4 sm:$0xff]  }
 0x6d4   : > { %11931 = vmatprep.subr.bf16.mxu1 %v17024_v39  ;;  %v17064_v13 = vld [vmem:[#allocation9 + $0x124] ss:$16 sps:$4 sm:$0xff]   ;;  %v17068_v18 = vld [vmem:[#allocation9 + $0x120] ss:$16 sps:$4 sm:$0xff]  }
 0x6d5   : > { %v17066_v44 = vld [vmem:[#allocation9 + $0x324] ss:$16 sps:$4 sm:$0xff]   ;;  %v17069_v32 = vld [vmem:[#allocation9 + $0x320] ss:$16 sps:$4 sm:$0xff]  }
 0x6d6   : > { %11891 = vmatpush1.bf16.msra.mxu0 %v17026_v24  ;;  %v17070_v31 = vld [vmem:[#allocation9 + $0x104] ss:$16 sps:$4 sm:$0xff]   ;;  %v17074_v7 = vld [vmem:[#allocation9 + $0x100] ss:$16 sps:$4 sm:$0xff]  }
 0x6d7   : > { %11932 = vmatpush1.bf16.msra.mxu1 %v17027_v62  ;;  %11892 = vmatprep.subr.bf16.mxu0 %v17028_v29  ;;  %v17072_v0 = vld [vmem:[#allocation9 + $0x304] ss:$16 sps:$4 sm:$0xff]   ;;  %v17075_v33 = vld [vmem:[#allocation9 + $0x300] ss:$16 sps:$4 sm:$0xff]  }
 0x6d8   : > { %11933 = vmatprep.subr.bf16.mxu1 %v17030_v27  ;;  %v10324_v63 = vld [vmem:[#allocation2] sm:$0xff]  ;;  %v10326_v56 = vld [vmem:[#allocation2 + $0x10] sm:$0xff] }
 0x6d9   : > { %v17078_v51 = vld [vmem:[#allocation9 + $0x4e4] ss:$16 sps:$4 sm:$0xff]   ;;  %v19941_v20 = vpack.c.bf16 %v10324_v63, %v10324_v63  ;;  %v19943_v59 = vpack.c.bf16 %v10326_v56, %v10326_v56  ;;  %v17076_v50 = vld [vmem:[#allocation9 + $0x4e0] ss:$16 sps:$4 sm:$0xff]  }
 0x6da   : > { %11893 = vmatpush2.bf16.msra.mxu0 %v17032_v47  ;;  %v17081_v9 = vld [vmem:[#allocation9 + $0x6e4] ss:$16 sps:$4 sm:$0xff]   ;;  %v17079_v12 = vld [vmem:[#allocation9 + $0x6e0] ss:$16 sps:$4 sm:$0xff]  }
 0x6db   : > { %11934 = vmatpush2.bf16.msra.mxu1 %v17033_v36  ;;  %11894 = vmatprep.subr.bf16.mxu0 %v17034_v42  ;;  %v17084_v46 = vld [vmem:[#allocation9 + $0x4c4] ss:$16 sps:$4 sm:$0xff]   ;;  %v17082_v58 = vld [vmem:[#allocation9 + $0x4c0] ss:$16 sps:$4 sm:$0xff]  }
 0x6dc   : > { %11935 = vmatprep.subr.bf16.mxu1 %v17036_v40  ;;  %v17087_v5 = vld [vmem:[#allocation9 + $0x6c4] ss:$16 sps:$4 sm:$0xff]   ;;  %v17085_v34 = vld [vmem:[#allocation9 + $0x6c0] ss:$16 sps:$4 sm:$0xff]  }
 0x6dd   : > { %v17090_v23 = vld [vmem:[#allocation9 + $0x4a4] ss:$16 sps:$4 sm:$0xff]   ;;  %v17088_v37 = vld [vmem:[#allocation9 + $0x4a0] ss:$16 sps:$4 sm:$0xff]  }
 0x6de   : > { %11895 = vmatpush2.bf16.msra.mxu0 %v17038_v4  ;;  %v17093_v53 = vld [vmem:[#allocation9 + $0x6a4] ss:$16 sps:$4 sm:$0xff]   ;;  %v17091_v52 = vld [vmem:[#allocation9 + $0x6a0] ss:$16 sps:$4 sm:$0xff]   ;;  %v10329_v4 = vld [vmem:[#allocation2 + $0x28] sm:$0xff] }
 0x6df   : > { %11936 = vmatpush2.bf16.msra.mxu1 %v17039_v22  ;;  %11896 = vmatprep.subr.bf16.mxu0 %v17040_v14  ;;  %v17096_v54 = vld [vmem:[#allocation9 + $0x484] ss:$16 sps:$4 sm:$0xff]   ;;  %v17094_v41 = vld [vmem:[#allocation9 + $0x480] ss:$16 sps:$4 sm:$0xff]  }
 0x6e0   : > { %11937 = vmatprep.subr.bf16.mxu1 %v17042_v35  ;;  %v17099_v49 = vld [vmem:[#allocation9 + $0x684] ss:$16 sps:$4 sm:$0xff]   ;;  %v17097_v45 = vld [vmem:[#allocation9 + $0x680] ss:$16 sps:$4 sm:$0xff]   ;;  %v19947_v35 = vpack.c.bf16 %v10329_v4, %v10329_v4  ;;  %v17184_v4 = vld [vmem:[#allocation9 + $0xa8] ss:$16 sps:$4 sm:$0xff]  }
 0x6e1   : > { %v17102_v38 = vld [vmem:[#allocation9 + $0x464] ss:$16 sps:$4 sm:$0xff]   ;;  %v17100_v24 = vld [vmem:[#allocation9 + $0x460] ss:$16 sps:$4 sm:$0xff]  }
 0x6e2   : > { %11897 = vmatpush2.bf16.msra.mxu0 %v17044_v48  ;;  %v17105_v39 = vld [vmem:[#allocation9 + $0x664] ss:$16 sps:$4 sm:$0xff]   ;;  %v17103_v62 = vld [vmem:[#allocation9 + $0x660] ss:$16 sps:$4 sm:$0xff]   ;;  %v10331_v48 = vld [vmem:[#allocation2 + $0x38] sm:$0xff] }
 0x6e3   : > { %11938 = vmatpush2.bf16.msra.mxu1 %v17045_v60  ;;  %11898 = vmatprep.subr.bf16.mxu0 %v17046_v17  ;;  %v17108_v29 = vld [vmem:[#allocation9 + $0x444] ss:$16 sps:$4 sm:$0xff]   ;;  %v17106_v47 = vld [vmem:[#allocation9 + $0x440] ss:$16 sps:$4 sm:$0xff]   ;;  %v19949_v17 = vpack.c.bf16 %v10331_v48, %v10331_v48  ;;  %v17195_v48 = vld [vmem:[#allocation9 + $0x28c] ss:$16 sps:$4 sm:$0xff]  }
 0x6e4   : > { %11939 = vmatprep.subr.bf16.mxu1 %v17048_v43  ;;  %v17111_v27 = vld [vmem:[#allocation9 + $0x644] ss:$16 sps:$4 sm:$0xff]   ;;  %v17109_v36 = vld [vmem:[#allocation9 + $0x640] ss:$16 sps:$4 sm:$0xff]  }
 0x6e5   : > { %v17114_v42 = vld [vmem:[#allocation9 + $0x424] ss:$16 sps:$4 sm:$0xff]   ;;  %v17112_v22 = vld [vmem:[#allocation9 + $0x420] ss:$16 sps:$4 sm:$0xff]  }
 0x6e6   : > { %11899 = vmatpush2.bf16.msra.mxu0 %v17050_v11  ;;  %v17117_v40 = vld [vmem:[#allocation9 + $0x624] ss:$16 sps:$4 sm:$0xff]   ;;  %v17115_v14 = vld [vmem:[#allocation9 + $0x620] ss:$16 sps:$4 sm:$0xff]  }
 0x6e7   : > { %11940 = vmatpush2.bf16.msra.mxu1 %v17051_v21  ;;  %11900 = vmatprep.subr.bf16.mxu0 %v17052_v61  ;;  %v17120_v60 = vld [vmem:[#allocation9 + $0x404] ss:$16 sps:$4 sm:$0xff]   ;;  %v17118_v6 = vld [vmem:[#allocation9 + $0x400] ss:$16 sps:$4 sm:$0xff]  }
 0x6e8   : > { %11941 = vmatprep.subr.bf16.mxu1 %v17054_v55  ;;  %v17123_v43 = vld [vmem:[#allocation9 + $0x604] ss:$16 sps:$4 sm:$0xff]   ;;  %v17121_v11 = vld [vmem:[#allocation9 + $0x600] ss:$16 sps:$4 sm:$0xff]  }
 0x6e9   : > { %v17126_v21 = vld [vmem:[#allocation9 + $0x5e4] ss:$16 sps:$4 sm:$0xff]   ;;  %v17124_v61 = vld [vmem:[#allocation9 + $0x5e0] ss:$16 sps:$4 sm:$0xff]  }
 0x6ea   : > { %11901 = vmatpush2.bf16.msra.mxu0 %v17056_v25  ;;  %v17129_v3 = vld [vmem:[#allocation9 + $0x7e4] ss:$16 sps:$4 sm:$0xff]   ;;  %v17127_v55 = vld [vmem:[#allocation9 + $0x7e0] ss:$16 sps:$4 sm:$0xff]  }
 0x6eb   : > { %11942 = vmatpush2.bf16.msra.mxu1 %v17057_v28  ;;  %11902 = vmatprep.subr.bf16.mxu0 %v17058_v30  ;;  %v17132_v25 = vld [vmem:[#allocation9 + $0x5c4] ss:$16 sps:$4 sm:$0xff]   ;;  %v17130_v30 = vld [vmem:[#allocation9 + $0x5c0] ss:$16 sps:$4 sm:$0xff]  }
 0x6ec   : > { %11943 = vmatprep.subr.bf16.mxu1 %v17060_v2  ;;  %v17135_v28 = vld [vmem:[#allocation9 + $0x7c4] ss:$16 sps:$4 sm:$0xff]   ;;  %v17133_v2 = vld [vmem:[#allocation9 + $0x7c0] ss:$16 sps:$4 sm:$0xff]  }
 0x6ed   : > { %v17148_v63 = vld [vmem:[#allocation9 + $0x560] ss:$16 sps:$4 sm:$0xff]  }
 0x6ee   : > { %11903 = vmatpush2.bf16.msra.mxu0 %v17062_v16  ;;  %v17138_v16 = vld [vmem:[#allocation9 + $0x5a4] ss:$16 sps:$4 sm:$0xff]   ;;  %v17151_v56 = vld [vmem:[#allocation9 + $0x760] ss:$16 sps:$4 sm:$0xff]  }
 0x6ef   : > { %11944 = vmatpush2.bf16.msra.mxu1 %v17063_v1  ;;  %11904 = vmatprep.subr.bf16.mxu0 %v17064_v13  ;;  %v17141_v1 = vld [vmem:[#allocation9 + $0x7a4] ss:$16 sps:$4 sm:$0xff]   ;;  %v17136_v13 = vld [vmem:[#allocation9 + $0x5a0] ss:$16 sps:$4 sm:$0xff]  }
 0x6f0   : > { %11945 = vmatprep.subr.bf16.mxu1 %v17066_v44  ;;  %v17139_v44 = vld [vmem:[#allocation9 + $0x7a0] ss:$16 sps:$4 sm:$0xff]  }
 0x6f2   : > { %11905 = vmatpush2.bf16.msra.mxu0 %v17068_v18  ;;  %v17144_v18 = vld [vmem:[#allocation9 + $0x584] ss:$16 sps:$4 sm:$0xff]  }
 0x6f3   : > { %11946 = vmatpush2.bf16.msra.mxu1 %v17069_v32  ;;  %11906 = vmatprep.subr.bf16.mxu0 %v17070_v31  ;;  %v17147_v32 = vld [vmem:[#allocation9 + $0x784] ss:$16 sps:$4 sm:$0xff]   ;;  %v17142_v31 = vld [vmem:[#allocation9 + $0x580] ss:$16 sps:$4 sm:$0xff]  }
 0x6f4   : > { %11947 = vmatprep.subr.bf16.mxu1 %v17072_v0  ;;  %v17145_v0 = vld [vmem:[#allocation9 + $0x780] ss:$16 sps:$4 sm:$0xff]  }
 0x6f6   : > { %11907 = vmatpush2.bf16.msra.mxu0 %v17074_v7  ;;  %v17150_v7 = vld [vmem:[#allocation9 + $0x564] ss:$16 sps:$4 sm:$0xff]  }
 0x6f7   : > { %11948 = vmatpush2.bf16.msra.mxu1 %v17075_v33  ;;  %11958 = vmatprep.subr.bf16.mxu0 %v17078_v51  ;;  %v17153_v33 = vld [vmem:[#allocation9 + $0x764] ss:$16 sps:$4 sm:$0xff]  }
 0x6f8   : > { %11999 = vmatprep.subr.bf16.mxu1 %v17081_v9  ;;  %v17156_v51 = vld [vmem:[#allocation9 + $0x544] ss:$16 sps:$4 sm:$0xff]  }
 0x6f9   : > { %11909 = vmatmul.mubr.bf16.vlgmr.msra.gmra.mxu0 %v19941_v20  ;;  %v17159_v9 = vld [vmem:[#allocation9 + $0x744] ss:$16 sps:$4 sm:$0xff]  }
 0x6fa   : > { %11950 = vmatmul.mubr.bf16.vlgmr.msra.gmra.mxu1 %v19943_v59  ;;  %11959 = vmatpush1.bf16.msra.mxu0 %v17076_v50  ;;  %v17154_v50 = vld [vmem:[#allocation9 + $0x540] ss:$16 sps:$4 sm:$0xff]  }
 0x6fb   : > { %12000 = vmatpush1.bf16.msra.mxu1 %v17079_v12  ;;  %11960 = vmatprep.subr.bf16.mxu0 %v17084_v46  ;;  %v17157_v12 = vld [vmem:[#allocation9 + $0x740] ss:$16 sps:$4 sm:$0xff]   ;;  %v17162_v46 = vld [vmem:[#allocation9 + $0x524] ss:$16 sps:$4 sm:$0xff]  }
 0x6fc   : > { %12001 = vmatprep.subr.bf16.mxu1 %v17087_v5  ;;  %11990 = vmatprep.mubr.bf16.mxu0 %v19947_v35  ;;  %v17165_v5 = vld [vmem:[#allocation9 + $0x724] ss:$16 sps:$4 sm:$0xff]  }
 0x6fd   : > { %12031 = vmatprep.mubr.bf16.mxu1 %v19949_v17 }
 0x6fe   : > { %11961 = vmatpush1.bf16.msra.mxu0 %v17082_v58  ;;  %v17160_v58 = vld [vmem:[#allocation9 + $0x520] ss:$16 sps:$4 sm:$0xff]  }
 0x6ff   : > { %12002 = vmatpush1.bf16.msra.mxu1 %v17085_v34  ;;  %11962 = vmatprep.subr.bf16.mxu0 %v17090_v23  ;;  %v17163_v34 = vld [vmem:[#allocation9 + $0x720] ss:$16 sps:$4 sm:$0xff]   ;;  %v17168_v23 = vld [vmem:[#allocation9 + $0x504] ss:$16 sps:$4 sm:$0xff]  }
 0x700   : > { %12003 = vmatprep.subr.bf16.mxu1 %v17093_v53  ;;  %v17171_v53 = vld [vmem:[#allocation9 + $0x704] ss:$16 sps:$4 sm:$0xff]  }
 0x702   : > { %11963 = vmatpush1.bf16.msra.mxu0 %v17088_v37  ;;  %v17166_v37 = vld [vmem:[#allocation9 + $0x500] ss:$16 sps:$4 sm:$0xff]  }
 0x703   : > { %12004 = vmatpush1.bf16.msra.mxu1 %v17091_v52  ;;  %11964 = vmatprep.subr.bf16.mxu0 %v17096_v54  ;;  %v17169_v52 = vld [vmem:[#allocation9 + $0x700] ss:$16 sps:$4 sm:$0xff]  }
 0x704   : > { %12005 = vmatprep.subr.bf16.mxu1 %v17099_v49  ;;  %v10328_v54 = vld [vmem:[#allocation2 + $0x20] sm:$0xff]  ;;  %v10330_v49 = vld [vmem:[#allocation2 + $0x30] sm:$0xff] }
 0x706   : > { %11965 = vmatpush1.bf16.msra.mxu0 %v17094_v41  ;;  %v17174_v41 = vld [vmem:[#allocation9 + $0xec] ss:$16 sps:$4 sm:$0xff]  }
 0x707   : > { %12006 = vmatpush1.bf16.msra.mxu1 %v17097_v45  ;;  %11966 = vmatprep.subr.bf16.mxu0 %v17102_v38  ;;  %v17177_v45 = vld [vmem:[#allocation9 + $0x2ec] ss:$16 sps:$4 sm:$0xff]   ;;  %v19953_v38 = vpack.c.bf16 %v10328_v54, %v10328_v54 }
 0x708   : > { %12007 = vmatprep.subr.bf16.mxu1 %v17105_v39  ;;  %v19955_v39 = vpack.c.bf16 %v10330_v49, %v10330_v49  ;;  %v17252_v54 = vld [vmem:[#allocation9 + $0x14c] ss:$16 sps:$4 sm:$0xff]  }
 0x709   : > { %v17255_v49 = vld [vmem:[#allocation9 + $0x34c] ss:$16 sps:$4 sm:$0xff]  }
 0x70a   : > { %11967 = vmatpush1.bf16.msra.mxu0 %v17100_v24  ;;  %v17172_v24 = vld [vmem:[#allocation9 + $0xe8] ss:$16 sps:$4 sm:$0xff]  }
 0x70b   : > { %12008 = vmatpush1.bf16.msra.mxu1 %v17103_v62  ;;  %11968 = vmatprep.subr.bf16.mxu0 %v17108_v29  ;;  %v17175_v62 = vld [vmem:[#allocation9 + $0x2e8] ss:$16 sps:$4 sm:$0xff]   ;;  %v17180_v29 = vld [vmem:[#allocation9 + $0xcc] ss:$16 sps:$4 sm:$0xff]  }
 0x70c   : > { %12009 = vmatprep.subr.bf16.mxu1 %v17111_v27  ;;  %v17183_v27 = vld [vmem:[#allocation9 + $0x2cc] ss:$16 sps:$4 sm:$0xff]  }
 0x70e   : > { %11969 = vmatpush1.bf16.msra.mxu0 %v17106_v47  ;;  %v17178_v47 = vld [vmem:[#allocation9 + $0xc8] ss:$16 sps:$4 sm:$0xff]  }
 0x70f   : > { %12010 = vmatpush1.bf16.msra.mxu1 %v17109_v36  ;;  %11970 = vmatprep.subr.bf16.mxu0 %v17114_v42  ;;  %v17181_v36 = vld [vmem:[#allocation9 + $0x2c8] ss:$16 sps:$4 sm:$0xff]   ;;  %v17186_v42 = vld [vmem:[#allocation9 + $0xac] ss:$16 sps:$4 sm:$0xff]  }
 0x710   : > { %12011 = vmatprep.subr.bf16.mxu1 %v17117_v40  ;;  %v17189_v40 = vld [vmem:[#allocation9 + $0x2ac] ss:$16 sps:$4 sm:$0xff]  }
 0x712   : > { %11971 = vmatpush1.bf16.msra.mxu0 %v17112_v22  ;;  %v17187_v22 = vld [vmem:[#allocation9 + $0x2a8] ss:$16 sps:$4 sm:$0xff]  }
 0x713   : > { %12012 = vmatpush1.bf16.msra.mxu1 %v17115_v14  ;;  %11972 = vmatprep.subr.bf16.mxu0 %v17120_v60  ;;  %v17192_v14 = vld [vmem:[#allocation9 + $0x8c] ss:$16 sps:$4 sm:$0xff]   ;;  %v17190_v60 = vld [vmem:[#allocation9 + $0x88] ss:$16 sps:$4 sm:$0xff]  }
 0x714   : > { %12013 = vmatprep.subr.bf16.mxu1 %v17123_v43  ;;  %v17193_v43 = vld [vmem:[#allocation9 + $0x288] ss:$16 sps:$4 sm:$0xff]  }
 0x716   : > { %11973 = vmatpush1.bf16.msra.mxu0 %v17118_v6  ;;  %v17198_v6 = vld [vmem:[#allocation9 + $0x6c] ss:$16 sps:$4 sm:$0xff]  }
 0x717   : > { %12014 = vmatpush1.bf16.msra.mxu1 %v17121_v11  ;;  %11974 = vmatprep.subr.bf16.mxu0 %v17126_v21  ;;  %v17201_v11 = vld [vmem:[#allocation9 + $0x26c] ss:$16 sps:$4 sm:$0xff]   ;;  %v17196_v21 = vld [vmem:[#allocation9 + $0x68] ss:$16 sps:$4 sm:$0xff]  }
 0x718   : > { %12015 = vmatprep.subr.bf16.mxu1 %v17129_v3  ;;  %v17207_v3 = vld [vmem:[#allocation9 + $0x24c] ss:$16 sps:$4 sm:$0xff]  }
 0x71a   : > { %11975 = vmatpush2.bf16.msra.mxu0 %v17124_v61  ;;  %v17202_v61 = vld [vmem:[#allocation9 + $0x48] ss:$16 sps:$4 sm:$0xff]  }
 0x71b   : > { %12016 = vmatpush2.bf16.msra.mxu1 %v17127_v55  ;;  %11976 = vmatprep.subr.bf16.mxu0 %v17132_v25  ;;  %v17205_v55 = vld [vmem:[#allocation9 + $0x248] ss:$16 sps:$4 sm:$0xff]   ;;  %v17210_v25 = vld [vmem:[#allocation9 + $0x2c] ss:$16 sps:$4 sm:$0xff]  }
 0x71c   : > { %12017 = vmatprep.subr.bf16.mxu1 %v17135_v28  ;;  %v17213_v28 = vld [vmem:[#allocation9 + $0x22c] ss:$16 sps:$4 sm:$0xff]  }
 0x71e   : > { %11977 = vmatpush2.bf16.msra.mxu0 %v17130_v30  ;;  %v17208_v30 = vld [vmem:[#allocation9 + $0x28] ss:$16 sps:$4 sm:$0xff]  }
 0x71f   : > { %12018 = vmatpush2.bf16.msra.mxu1 %v17133_v2  ;;  %11978 = vmatprep.subr.bf16.mxu0 %v17138_v16  ;;  %v17211_v2 = vld [vmem:[#allocation9 + $0x228] ss:$16 sps:$4 sm:$0xff]   ;;  %v17216_v16 = vld [vmem:[#allocation9 + $0xc] ss:$16 sps:$4 sm:$0xff]  }
 0x720   : > { %12019 = vmatprep.subr.bf16.mxu1 %v17141_v1  ;;  %v17219_v1 = vld [vmem:[#allocation9 + $0x20c] ss:$16 sps:$4 sm:$0xff]  }
 0x722   : > { %11979 = vmatpush2.bf16.msra.mxu0 %v17136_v13  ;;  %v17214_v13 = vld [vmem:[#allocation9 + $0x8] ss:$16 sps:$4 sm:$0xff]  }
 0x723   : > { %12020 = vmatpush2.bf16.msra.mxu1 %v17139_v44  ;;  %11980 = vmatprep.subr.bf16.mxu0 %v17144_v18  ;;  %v17217_v44 = vld [vmem:[#allocation9 + $0x208] ss:$16 sps:$4 sm:$0xff]   ;;  %v17222_v18 = vld [vmem:[#allocation9 + $0x1ec] ss:$16 sps:$4 sm:$0xff]  }
 0x724   : > { %12021 = vmatprep.subr.bf16.mxu1 %v17147_v32  ;;  %v17225_v32 = vld [vmem:[#allocation9 + $0x3ec] ss:$16 sps:$4 sm:$0xff]  }
 0x726   : > { %11981 = vmatpush2.bf16.msra.mxu0 %v17142_v31  ;;  %v17220_v31 = vld [vmem:[#allocation9 + $0x1e8] ss:$16 sps:$4 sm:$0xff]  }
 0x727   : > { %12022 = vmatpush2.bf16.msra.mxu1 %v17145_v0  ;;  %11982 = vmatprep.subr.bf16.mxu0 %v17150_v7  ;;  %v17223_v0 = vld [vmem:[#allocation9 + $0x3e8] ss:$16 sps:$4 sm:$0xff]   ;;  %v17228_v7 = vld [vmem:[#allocation9 + $0x1cc] ss:$16 sps:$4 sm:$0xff]  }
 0x728   : > { %12023 = vmatprep.subr.bf16.mxu1 %v17153_v33  ;;  %v17231_v33 = vld [vmem:[#allocation9 + $0x3cc] ss:$16 sps:$4 sm:$0xff]  }
 0x72a   : > { %11983 = vmatpush2.bf16.msra.mxu0 %v17148_v63  ;;  %v17226_v63 = vld [vmem:[#allocation9 + $0x1c8] ss:$16 sps:$4 sm:$0xff]  }
 0x72b   : > { %12024 = vmatpush2.bf16.msra.mxu1 %v17151_v56  ;;  %11984 = vmatprep.subr.bf16.mxu0 %v17156_v51  ;;  %v17229_v56 = vld [vmem:[#allocation9 + $0x3c8] ss:$16 sps:$4 sm:$0xff]   ;;  %v17234_v51 = vld [vmem:[#allocation9 + $0x1ac] ss:$16 sps:$4 sm:$0xff]  }
 0x72c   : > { %12025 = vmatprep.subr.bf16.mxu1 %v17159_v9  ;;  %v17237_v9 = vld [vmem:[#allocation9 + $0x3ac] ss:$16 sps:$4 sm:$0xff]  }
 0x72e   : > { %11985 = vmatpush2.bf16.msra.mxu0 %v17154_v50  ;;  %v17232_v50 = vld [vmem:[#allocation9 + $0x1a8] ss:$16 sps:$4 sm:$0xff]  }
 0x72f   : > { %12026 = vmatpush2.bf16.msra.mxu1 %v17157_v12  ;;  %11986 = vmatprep.subr.bf16.mxu0 %v17162_v46  ;;  %v17235_v12 = vld [vmem:[#allocation9 + $0x3a8] ss:$16 sps:$4 sm:$0xff]   ;;  %v17240_v46 = vld [vmem:[#allocation9 + $0x18c] ss:$16 sps:$4 sm:$0xff]  }
 0x730   : > { %12027 = vmatprep.subr.bf16.mxu1 %v17165_v5  ;;  %v17243_v5 = vld [vmem:[#allocation9 + $0x38c] ss:$16 sps:$4 sm:$0xff]  }
 0x732   : > { %11987 = vmatpush2.bf16.msra.mxu0 %v17160_v58  ;;  %v17238_v58 = vld [vmem:[#allocation9 + $0x188] ss:$16 sps:$4 sm:$0xff]  }
 0x733   : > { %12028 = vmatpush2.bf16.msra.mxu1 %v17163_v34  ;;  %11988 = vmatprep.subr.bf16.mxu0 %v17168_v23  ;;  %v17241_v34 = vld [vmem:[#allocation9 + $0x388] ss:$16 sps:$4 sm:$0xff]   ;;  %v17246_v23 = vld [vmem:[#allocation9 + $0x16c] ss:$16 sps:$4 sm:$0xff]  }
 0x734   : > { %12029 = vmatprep.subr.bf16.mxu1 %v17171_v53  ;;  %v17249_v53 = vld [vmem:[#allocation9 + $0x36c] ss:$16 sps:$4 sm:$0xff]  }
 0x736   : > { %11989 = vmatpush2.bf16.msra.mxu0 %v17166_v37  ;;  %v17244_v37 = vld [vmem:[#allocation9 + $0x168] ss:$16 sps:$4 sm:$0xff]  }
 0x737   : > { %12030 = vmatpush2.bf16.msra.mxu1 %v17169_v52  ;;  %12040 = vmatprep.subr.bf16.mxu0 %v17174_v41  ;;  %v17247_v52 = vld [vmem:[#allocation9 + $0x368] ss:$16 sps:$4 sm:$0xff]  }
 0x738   : > { %12081 = vmatprep.subr.bf16.mxu1 %v17177_v45  ;;  %v17250_v41 = vld [vmem:[#allocation9 + $0x148] ss:$16 sps:$4 sm:$0xff]  }
 0x739   : > { %11991 = vmatmul.mubr.bf16.vlgmr.msra.gmra.mxu0 %v19953_v38  ;;  %v17253_v45 = vld [vmem:[#allocation9 + $0x348] ss:$16 sps:$4 sm:$0xff]  }
 0x73a   : > { %12032 = vmatmul.mubr.bf16.vlgmr.msra.gmra.mxu1 %v19955_v39  ;;  %12041 = vmatpush1.bf16.msra.mxu0 %v17172_v24  ;;  %v17258_v24 = vld [vmem:[#allocation9 + $0x12c] ss:$16 sps:$4 sm:$0xff]  }
 0x73b   : > { %12082 = vmatpush1.bf16.msra.mxu1 %v17175_v62  ;;  %12042 = vmatprep.subr.bf16.mxu0 %v17180_v29  ;;  %v17261_v62 = vld [vmem:[#allocation9 + $0x32c] ss:$16 sps:$4 sm:$0xff]   ;;  %v17256_v29 = vld [vmem:[#allocation9 + $0x128] ss:$16 sps:$4 sm:$0xff]  }
 0x73c   : > { %12083 = vmatprep.subr.bf16.mxu1 %v17183_v27  ;;  %12072 = vmatprep.mubr.bf16.mxu0 %v19935_v15  ;;  %v17199_v15 = vld [vmem:[#allocation9 + $0x268] ss:$16 sps:$4 sm:$0xff]  }
 0x73d   : > { %12113 = vmatprep.mubr.bf16.mxu1 %v19937_v10  ;;  %v17204_v10 = vld [vmem:[#allocation9 + $0x4c] ss:$16 sps:$4 sm:$0xff]   ;;  %v17259_v27 = vld [vmem:[#allocation9 + $0x328] ss:$16 sps:$4 sm:$0xff]  }
 0x73e   : > { %12043 = vmatpush1.bf16.msra.mxu0 %v17178_v47  ;;  %v17264_v47 = vld [vmem:[#allocation9 + $0x10c] ss:$16 sps:$4 sm:$0xff]  }
 0x73f   : > { %12084 = vmatpush1.bf16.msra.mxu1 %v17181_v36  ;;  %12044 = vmatprep.subr.bf16.mxu0 %v17186_v42  ;;  %v17267_v36 = vld [vmem:[#allocation9 + $0x30c] ss:$16 sps:$4 sm:$0xff]   ;;  %v17262_v42 = vld [vmem:[#allocation9 + $0x108] ss:$16 sps:$4 sm:$0xff]  }
 0x740   : > { %12085 = vmatprep.subr.bf16.mxu1 %v17189_v40  ;;  %v17265_v40 = vld [vmem:[#allocation9 + $0x308] ss:$16 sps:$4 sm:$0xff]  }
 0x742   : > { %12045 = vmatpush1.bf16.msra.mxu0 %v17184_v4  ;;  %v17270_v4 = vld [vmem:[#allocation9 + $0x4ec] ss:$16 sps:$4 sm:$0xff]  }
 0x743   : > { %12086 = vmatpush1.bf16.msra.mxu1 %v17187_v22  ;;  %12046 = vmatprep.subr.bf16.mxu0 %v17192_v14  ;;  %v17273_v22 = vld [vmem:[#allocation9 + $0x6ec] ss:$16 sps:$4 sm:$0xff]   ;;  %v17268_v14 = vld [vmem:[#allocation9 + $0x4e8] ss:$16 sps:$4 sm:$0xff]  }
 0x744   : > { %12087 = vmatprep.subr.bf16.mxu1 %v17195_v48  ;;  %v17271_v48 = vld [vmem:[#allocation9 + $0x6e8] ss:$16 sps:$4 sm:$0xff]  }
 0x746   : > { %12047 = vmatpush1.bf16.msra.mxu0 %v17190_v60  ;;  %v17276_v60 = vld [vmem:[#allocation9 + $0x4cc] ss:$16 sps:$4 sm:$0xff]  }
 0x747   : > { %12088 = vmatpush1.bf16.msra.mxu1 %v17193_v43  ;;  %12048 = vmatprep.subr.bf16.mxu0 %v17198_v6  ;;  %v17279_v43 = vld [vmem:[#allocation9 + $0x6cc] ss:$16 sps:$4 sm:$0xff]   ;;  %v17274_v6 = vld [vmem:[#allocation9 + $0x4c8] ss:$16 sps:$4 sm:$0xff]  }
 0x748   : > { %12089 = vmatprep.subr.bf16.mxu1 %v17201_v11  ;;  %v17277_v11 = vld [vmem:[#allocation9 + $0x6c8] ss:$16 sps:$4 sm:$0xff]  }
 0x74a   : > { %12049 = vmatpush1.bf16.msra.mxu0 %v17196_v21  ;;  %v17282_v21 = vld [vmem:[#allocation9 + $0x4ac] ss:$16 sps:$4 sm:$0xff]  }
 0x74b   : > { %12090 = vmatpush1.bf16.msra.mxu1 %v17199_v15  ;;  %12050 = vmatprep.subr.bf16.mxu0 %v17204_v10  ;;  %v17285_v15 = vld [vmem:[#allocation9 + $0x6ac] ss:$16 sps:$4 sm:$0xff]   ;;  %v17280_v10 = vld [vmem:[#allocation9 + $0x4a8] ss:$16 sps:$4 sm:$0xff]  }
 0x74c   : > { %12091 = vmatprep.subr.bf16.mxu1 %v17207_v3  ;;  %v17283_v3 = vld [vmem:[#allocation9 + $0x6a8] ss:$16 sps:$4 sm:$0xff]  }
 0x74e   : > { %12051 = vmatpush1.bf16.msra.mxu0 %v17202_v61  ;;  %v17288_v61 = vld [vmem:[#allocation9 + $0x48c] ss:$16 sps:$4 sm:$0xff]  }
 0x74f   : > { %12092 = vmatpush1.bf16.msra.mxu1 %v17205_v55  ;;  %12052 = vmatprep.subr.bf16.mxu0 %v17210_v25  ;;  %v17286_v55 = vld [vmem:[#allocation9 + $0x488] ss:$16 sps:$4 sm:$0xff]   ;;  %v17294_v25 = vld [vmem:[#allocation9 + $0x46c] ss:$16 sps:$4 sm:$0xff]  }
 0x750   : > { %12093 = vmatprep.subr.bf16.mxu1 %v17213_v28  ;;  %v17297_v28 = vld [vmem:[#allocation9 + $0x66c] ss:$16 sps:$4 sm:$0xff]  }
 0x752   : > { %12053 = vmatpush1.bf16.msra.mxu0 %v17208_v30  ;;  %v17292_v30 = vld [vmem:[#allocation9 + $0x468] ss:$16 sps:$4 sm:$0xff]  }
 0x753   : > { %12094 = vmatpush1.bf16.msra.mxu1 %v17211_v2  ;;  %12054 = vmatprep.subr.bf16.mxu0 %v17216_v16  ;;  %v17295_v2 = vld [vmem:[#allocation9 + $0x668] ss:$16 sps:$4 sm:$0xff]   ;;  %v17300_v16 = vld [vmem:[#allocation9 + $0x44c] ss:$16 sps:$4 sm:$0xff]  }
 0x754   : > { %12095 = vmatprep.subr.bf16.mxu1 %v17219_v1  ;;  %v17301_v1 = vld [vmem:[#allocation9 + $0x648] ss:$16 sps:$4 sm:$0xff]  }
 0x756   : > { %12055 = vmatpush1.bf16.msra.mxu0 %v17214_v13  ;;  %v17306_v13 = vld [vmem:[#allocation9 + $0x42c] ss:$16 sps:$4 sm:$0xff]  }
 0x757   : > { %12096 = vmatpush1.bf16.msra.mxu1 %v17217_v44  ;;  %12056 = vmatprep.subr.bf16.mxu0 %v17222_v18  ;;  %v17309_v44 = vld [vmem:[#allocation9 + $0x62c] ss:$16 sps:$4 sm:$0xff]   ;;  %v17304_v18 = vld [vmem:[#allocation9 + $0x428] ss:$16 sps:$4 sm:$0xff]  }
 0x758   : > { %12097 = vmatprep.subr.bf16.mxu1 %v17225_v32  ;;  %v17307_v32 = vld [vmem:[#allocation9 + $0x628] ss:$16 sps:$4 sm:$0xff]  }
 0x75a   : > { %12057 = vmatpush2.bf16.msra.mxu0 %v17220_v31  ;;  %v17312_v31 = vld [vmem:[#allocation9 + $0x40c] ss:$16 sps:$4 sm:$0xff]  }
 0x75b   : > { %12098 = vmatpush2.bf16.msra.mxu1 %v17223_v0  ;;  %12058 = vmatprep.subr.bf16.mxu0 %v17228_v7  ;;  %v17315_v0 = vld [vmem:[#allocation9 + $0x60c] ss:$16 sps:$4 sm:$0xff]   ;;  %v17310_v7 = vld [vmem:[#allocation9 + $0x408] ss:$16 sps:$4 sm:$0xff]  }
 0x75c   : > { %12099 = vmatprep.subr.bf16.mxu1 %v17231_v33  ;;  %v17313_v33 = vld [vmem:[#allocation9 + $0x608] ss:$16 sps:$4 sm:$0xff]  }
 0x75e   : > { %12059 = vmatpush2.bf16.msra.mxu0 %v17226_v63  ;;  %v17318_v63 = vld [vmem:[#allocation9 + $0x5ec] ss:$16 sps:$4 sm:$0xff]  }
 0x75f   : > { %12100 = vmatpush2.bf16.msra.mxu1 %v17229_v56  ;;  %12060 = vmatprep.subr.bf16.mxu0 %v17234_v51  ;;  %v17321_v56 = vld [vmem:[#allocation9 + $0x7ec] ss:$16 sps:$4 sm:$0xff]   ;;  %v17316_v51 = vld [vmem:[#allocation9 + $0x5e8] ss:$16 sps:$4 sm:$0xff]  }
 0x760   : > { %12101 = vmatprep.subr.bf16.mxu1 %v17237_v9  ;;  %v17319_v9 = vld [vmem:[#allocation9 + $0x7e8] ss:$16 sps:$4 sm:$0xff]  }
 0x762   : > { %12061 = vmatpush2.bf16.msra.mxu0 %v17232_v50  ;;  %v17324_v50 = vld [vmem:[#allocation9 + $0x5cc] ss:$16 sps:$4 sm:$0xff]  }
 0x763   : > { %12102 = vmatpush2.bf16.msra.mxu1 %v17235_v12  ;;  %12062 = vmatprep.subr.bf16.mxu0 %v17240_v46  ;;  %v17327_v12 = vld [vmem:[#allocation9 + $0x7cc] ss:$16 sps:$4 sm:$0xff]   ;;  %v17322_v46 = vld [vmem:[#allocation9 + $0x5c8] ss:$16 sps:$4 sm:$0xff]  }
 0x764   : > { %12103 = vmatprep.subr.bf16.mxu1 %v17243_v5  ;;  %v17325_v5 = vld [vmem:[#allocation9 + $0x7c8] ss:$16 sps:$4 sm:$0xff]  }
 0x766   : > { %12063 = vmatpush2.bf16.msra.mxu0 %v17238_v58  ;;  %v17330_v58 = vld [vmem:[#allocation9 + $0x5ac] ss:$16 sps:$4 sm:$0xff]  }
 0x767   : > { %12104 = vmatpush2.bf16.msra.mxu1 %v17241_v34  ;;  %12064 = vmatprep.subr.bf16.mxu0 %v17246_v23  ;;  %v17333_v34 = vld [vmem:[#allocation9 + $0x7ac] ss:$16 sps:$4 sm:$0xff]   ;;  %v17328_v23 = vld [vmem:[#allocation9 + $0x5a8] ss:$16 sps:$4 sm:$0xff]  }
 0x768   : > { %12105 = vmatprep.subr.bf16.mxu1 %v17249_v53  ;;  %v17331_v53 = vld [vmem:[#allocation9 + $0x7a8] ss:$16 sps:$4 sm:$0xff]  }
 0x76a   : > { %12065 = vmatpush2.bf16.msra.mxu0 %v17244_v37  ;;  %v17336_v37 = vld [vmem:[#allocation9 + $0x58c] ss:$16 sps:$4 sm:$0xff]  }
 0x76b   : > { %12106 = vmatpush2.bf16.msra.mxu1 %v17247_v52  ;;  %12066 = vmatprep.subr.bf16.mxu0 %v17252_v54  ;;  %v17339_v52 = vld [vmem:[#allocation9 + $0x78c] ss:$16 sps:$4 sm:$0xff]   ;;  %v17334_v54 = vld [vmem:[#allocation9 + $0x588] ss:$16 sps:$4 sm:$0xff]  }
 0x76c   : > { %12107 = vmatprep.subr.bf16.mxu1 %v17255_v49  ;;  %v17337_v49 = vld [vmem:[#allocation9 + $0x788] ss:$16 sps:$4 sm:$0xff]  }
 0x76e   : > { %12067 = vmatpush2.bf16.msra.mxu0 %v17250_v41  ;;  %v17342_v41 = vld [vmem:[#allocation9 + $0x56c] ss:$16 sps:$4 sm:$0xff]  }
 0x76f   : > { %12108 = vmatpush2.bf16.msra.mxu1 %v17253_v45  ;;  %12068 = vmatprep.subr.bf16.mxu0 %v17258_v24  ;;  %v17345_v45 = vld [vmem:[#allocation9 + $0x76c] ss:$16 sps:$4 sm:$0xff]   ;;  %v17340_v24 = vld [vmem:[#allocation9 + $0x568] ss:$16 sps:$4 sm:$0xff]  }
 0x770   : > { %12109 = vmatprep.subr.bf16.mxu1 %v17261_v62  ;;  %v17343_v62 = vld [vmem:[#allocation9 + $0x768] ss:$16 sps:$4 sm:$0xff]  }
 0x772   : > { %12069 = vmatpush2.bf16.msra.mxu0 %v17256_v29  ;;  %v17348_v29 = vld [vmem:[#allocation9 + $0x54c] ss:$16 sps:$4 sm:$0xff]  }
 0x773   : > { %12110 = vmatpush2.bf16.msra.mxu1 %v17259_v27  ;;  %12070 = vmatprep.subr.bf16.mxu0 %v17264_v47  ;;  %v17351_v27 = vld [vmem:[#allocation9 + $0x74c] ss:$16 sps:$4 sm:$0xff]   ;;  %v17346_v47 = vld [vmem:[#allocation9 + $0x548] ss:$16 sps:$4 sm:$0xff]  }
 0x774   : > { %12111 = vmatprep.subr.bf16.mxu1 %v17267_v36  ;;  %v17349_v36 = vld [vmem:[#allocation9 + $0x748] ss:$16 sps:$4 sm:$0xff]  }
 0x776   : > { %12071 = vmatpush2.bf16.msra.mxu0 %v17262_v42  ;;  %v17354_v42 = vld [vmem:[#allocation9 + $0x52c] ss:$16 sps:$4 sm:$0xff]  }
 0x777   : > { %12112 = vmatpush2.bf16.msra.mxu1 %v17265_v40  ;;  %12122 = vmatprep.subr.bf16.mxu0 %v17270_v4  ;;  %v17357_v40 = vld [vmem:[#allocation9 + $0x72c] ss:$16 sps:$4 sm:$0xff]   ;;  %v17352_v4 = vld [vmem:[#allocation9 + $0x528] ss:$16 sps:$4 sm:$0xff]  }
 0x778   : > { %12163 = vmatprep.subr.bf16.mxu1 %v17273_v22  ;;  %v17355_v22 = vld [vmem:[#allocation9 + $0x728] ss:$16 sps:$4 sm:$0xff]  }
 0x779   : > { %12073 = vmatmul.mubr.bf16.vlgmr.msra.gmra.mxu0 %v19941_v20  ;;  %v17291_v20 = vld [vmem:[#allocation9 + $0x68c] ss:$16 sps:$4 sm:$0xff]  }
 0x77a   : > { %12114 = vmatmul.mubr.bf16.vlgmr.msra.gmra.mxu1 %v19943_v59  ;;  %12123 = vmatpush1.bf16.msra.mxu0 %v17268_v14  ;;  %v17289_v59 = vld [vmem:[#allocation9 + $0x688] ss:$16 sps:$4 sm:$0xff]   ;;  %v17360_v14 = vld [vmem:[#allocation9 + $0x50c] ss:$16 sps:$4 sm:$0xff]  }
 0x77b   : > { %12164 = vmatpush1.bf16.msra.mxu1 %v17271_v48  ;;  %12124 = vmatprep.subr.bf16.mxu0 %v17276_v60  ;;  %v17363_v48 = vld [vmem:[#allocation9 + $0x70c] ss:$16 sps:$4 sm:$0xff]   ;;  %v17358_v60 = vld [vmem:[#allocation9 + $0x508] ss:$16 sps:$4 sm:$0xff]  }
 0x77c   : > { %12165 = vmatprep.subr.bf16.mxu1 %v17279_v43  ;;  %12154 = vmatprep.mubr.bf16.mxu0 %v19947_v35  ;;  %v17303_v35 = vld [vmem:[#allocation9 + $0x64c] ss:$16 sps:$4 sm:$0xff]   ;;  %v17361_v43 = vld [vmem:[#allocation9 + $0x708] ss:$16 sps:$4 sm:$0xff]  }
 0x77d   : > { %12195 = vmatprep.mubr.bf16.mxu1 %v19949_v17  ;;  %v17298_v17 = vld [vmem:[#allocation9 + $0x448] ss:$16 sps:$4 sm:$0xff]  }
 0x77e   : > { %12125 = vmatpush1.bf16.msra.mxu0 %v17274_v6  ;;  %v17366_v6 = vld [vmem:[#allocation14 + $0x74] ss:$8 sps:$4 sm:$0xff]  }
 0x77f   : > { %12166 = vmatpush1.bf16.msra.mxu1 %v17277_v11  ;;  %12126 = vmatprep.subr.bf16.mxu0 %v17282_v21  ;;  %v17364_v11 = vld [vmem:[#allocation14 + $0x70] ss:$8 sps:$4 sm:$0xff]   ;;  %v17369_v21 = vld [vmem:[#allocation14 + $0x64] ss:$8 sps:$4 sm:$0xff]  }
 0x780   : > { %12167 = vmatprep.subr.bf16.mxu1 %v17285_v15 }
 0x782   : > { %12127 = vmatpush1.bf16.msra.mxu0 %v17280_v10 }
 0x783   : > { %12168 = vmatpush1.bf16.msra.mxu1 %v17283_v3  ;;  %12128 = vmatprep.subr.bf16.mxu0 %v17288_v61  ;;  %v17367_v61 = vld [vmem:[#allocation14 + $0x60] ss:$8 sps:$4 sm:$0xff]  }
 0x784   : > { %12169 = vmatprep.subr.bf16.mxu1 %v17291_v20 }
 0x786   : > { %12129 = vmatpush1.bf16.msra.mxu0 %v17286_v55 }
 0x787   : > { %12170 = vmatpush1.bf16.msra.mxu1 %v17289_v59  ;;  %12130 = vmatprep.subr.bf16.mxu0 %v17294_v25  ;;  %v17372_v59 = vld [vmem:[#allocation14 + $0x54] ss:$8 sps:$4 sm:$0xff]  }
 0x788   : > { %12171 = vmatprep.subr.bf16.mxu1 %v17297_v28 }
 0x78a   : > { %12131 = vmatpush1.bf16.msra.mxu0 %v17292_v30  ;;  %v17370_v30 = vld [vmem:[#allocation14 + $0x50] ss:$8 sps:$4 sm:$0xff]  }
 0x78b   : > { %12172 = vmatpush1.bf16.msra.mxu1 %v17295_v2  ;;  %12132 = vmatprep.subr.bf16.mxu0 %v17300_v16 }
 0x78c   : > { %12173 = vmatprep.subr.bf16.mxu1 %v17303_v35  ;;  %v17412_v35 = vld [vmem:[#allocation14 + $0x170] ss:$8 sps:$4 sm:$0xff]  }
 0x78e   : > { %12133 = vmatpush1.bf16.msra.mxu0 %v17298_v17  ;;  %v17417_v17 = vld [vmem:[#allocation14 + $0x164] ss:$8 sps:$4 sm:$0xff]  }
 0x78f   : > { %12174 = vmatpush1.bf16.msra.mxu1 %v17301_v1  ;;  %12134 = vmatprep.subr.bf16.mxu0 %v17306_v13  ;;  %v17373_v1 = vld [vmem:[#allocation14 + $0x40] ss:$8 sps:$4 sm:$0xff]  }
 0x790   : > { %12175 = vmatprep.subr.bf16.mxu1 %v17309_v44  ;;  %v17415_v13 = vld [vmem:[#allocation14 + $0x160] ss:$8 sps:$4 sm:$0xff]   ;;  %v17378_v44 = vld [vmem:[#allocation14 + $0x34] ss:$8 sps:$4 sm:$0xff]  }
 0x792   : > { %12135 = vmatpush1.bf16.msra.mxu0 %v17304_v18  ;;  %v17420_v18 = vld [vmem:[#allocation14 + $0x154] ss:$8 sps:$4 sm:$0xff]  }
 0x793   : > { %12176 = vmatpush1.bf16.msra.mxu1 %v17307_v32  ;;  %12136 = vmatprep.subr.bf16.mxu0 %v17312_v31  ;;  %v17376_v32 = vld [vmem:[#allocation14 + $0x30] ss:$8 sps:$4 sm:$0xff]  }
 0x794   : > { %12177 = vmatprep.subr.bf16.mxu1 %v17315_v0  ;;  %v17418_v31 = vld [vmem:[#allocation14 + $0x150] ss:$8 sps:$4 sm:$0xff]   ;;  %v17381_v0 = vld [vmem:[#allocation14 + $0x24] ss:$8 sps:$4 sm:$0xff]  }
 0x796   : > { %12137 = vmatpush1.bf16.msra.mxu0 %v17310_v7  ;;  %v17423_v7 = vld [vmem:[#allocation14 + $0x144] ss:$8 sps:$4 sm:$0xff]  }
 0x797   : > { %12178 = vmatpush1.bf16.msra.mxu1 %v17313_v33  ;;  %12138 = vmatprep.subr.bf16.mxu0 %v17318_v63  ;;  %v17379_v33 = vld [vmem:[#allocation14 + $0x20] ss:$8 sps:$4 sm:$0xff]  }
 0x798   : > { %12179 = vmatprep.subr.bf16.mxu1 %v17321_v56  ;;  %v17421_v63 = vld [vmem:[#allocation14 + $0x140] ss:$8 sps:$4 sm:$0xff]   ;;  %v17384_v56 = vld [vmem:[#allocation14 + $0x14] ss:$8 sps:$4 sm:$0xff]  }
 0x79a   : > { %12139 = vmatpush2.bf16.msra.mxu0 %v17316_v51  ;;  %v17426_v51 = vld [vmem:[#allocation14 + $0x134] ss:$8 sps:$4 sm:$0xff]  }
 0x79b   : > { %12180 = vmatpush2.bf16.msra.mxu1 %v17319_v9  ;;  %12140 = vmatprep.subr.bf16.mxu0 %v17324_v50  ;;  %v17382_v9 = vld [vmem:[#allocation14 + $0x10] ss:$8 sps:$4 sm:$0xff]  }
 0x79c   : > { %12181 = vmatprep.subr.bf16.mxu1 %v17327_v12  ;;  %v17424_v50 = vld [vmem:[#allocation14 + $0x130] ss:$8 sps:$4 sm:$0xff]   ;;  %v17387_v12 = vld [vmem:[#allocation14 + $0x4] ss:$8 sps:$4 sm:$0xff]  }
 0x79e   : > { %12141 = vmatpush2.bf16.msra.mxu0 %v17322_v46  ;;  %v17429_v46 = vld [vmem:[#allocation14 + $0x124] ss:$8 sps:$4 sm:$0xff]  }
 0x79f   : > { %12182 = vmatpush2.bf16.msra.mxu1 %v17325_v5  ;;  %12142 = vmatprep.subr.bf16.mxu0 %v17330_v58  ;;  %v17385_v5 = vld [vmem:[#allocation14] ss:$8 sps:$4 sm:$0xff]  }
 0x7a0   : > { %12183 = vmatprep.subr.bf16.mxu1 %v17333_v34  ;;  %v17427_v58 = vld [vmem:[#allocation14 + $0x120] ss:$8 sps:$4 sm:$0xff]   ;;  %v17390_v34 = vld [vmem:[#allocation14 + $0xf4] ss:$8 sps:$4 sm:$0xff]  }
 0x7a2   : > { %12143 = vmatpush2.bf16.msra.mxu0 %v17328_v23  ;;  %v17432_v23 = vld [vmem:[#allocation14 + $0x114] ss:$8 sps:$4 sm:$0xff]  }
 0x7a3   : > { %12184 = vmatpush2.bf16.msra.mxu1 %v17331_v53  ;;  %12144 = vmatprep.subr.bf16.mxu0 %v17336_v37  ;;  %v17388_v53 = vld [vmem:[#allocation14 + $0xf0] ss:$8 sps:$4 sm:$0xff]  }
 0x7a4   : > { %12185 = vmatprep.subr.bf16.mxu1 %v17339_v52  ;;  %v17430_v37 = vld [vmem:[#allocation14 + $0x110] ss:$8 sps:$4 sm:$0xff]   ;;  %v17393_v52 = vld [vmem:[#allocation14 + $0xe4] ss:$8 sps:$4 sm:$0xff]  }
 0x7a6   : > { %12145 = vmatpush2.bf16.msra.mxu0 %v17334_v54  ;;  %v17435_v54 = vld [vmem:[#allocation14 + $0x104] ss:$8 sps:$4 sm:$0xff]  }
 0x7a7   : > { %12186 = vmatpush2.bf16.msra.mxu1 %v17337_v49  ;;  %12146 = vmatprep.subr.bf16.mxu0 %v17342_v41  ;;  %v17391_v49 = vld [vmem:[#allocation14 + $0xe0] ss:$8 sps:$4 sm:$0xff]  }
 0x7a8   : > { %12187 = vmatprep.subr.bf16.mxu1 %v17345_v45  ;;  %v17433_v41 = vld [vmem:[#allocation14 + $0x100] ss:$8 sps:$4 sm:$0xff]   ;;  %v17396_v45 = vld [vmem:[#allocation14 + $0xd4] ss:$8 sps:$4 sm:$0xff]  }
 0x7aa   : > { %12147 = vmatpush2.bf16.msra.mxu0 %v17340_v24  ;;  %v17438_v24 = vld [vmem:[#allocation14 + $0x1f4] ss:$8 sps:$4 sm:$0xff]  }
 0x7ab   : > { %12188 = vmatpush2.bf16.msra.mxu1 %v17343_v62  ;;  %12148 = vmatprep.subr.bf16.mxu0 %v17348_v29  ;;  %v17394_v62 = vld [vmem:[#allocation14 + $0xd0] ss:$8 sps:$4 sm:$0xff]  }
 0x7ac   : > { %12189 = vmatprep.subr.bf16.mxu1 %v17351_v27  ;;  %v17436_v29 = vld [vmem:[#allocation14 + $0x1f0] ss:$8 sps:$4 sm:$0xff]   ;;  %v17399_v27 = vld [vmem:[#allocation14 + $0xc4] ss:$8 sps:$4 sm:$0xff]  }
 0x7ae   : > { %12149 = vmatpush2.bf16.msra.mxu0 %v17346_v47  ;;  %v17441_v47 = vld [vmem:[#allocation14 + $0x1e4] ss:$8 sps:$4 sm:$0xff]  }
 0x7af   : > { %12190 = vmatpush2.bf16.msra.mxu1 %v17349_v36  ;;  %12150 = vmatprep.subr.bf16.mxu0 %v17354_v42  ;;  %v17397_v36 = vld [vmem:[#allocation14 + $0xc0] ss:$8 sps:$4 sm:$0xff]  }
 0x7b0   : > { %12191 = vmatprep.subr.bf16.mxu1 %v17357_v40  ;;  %v17439_v42 = vld [vmem:[#allocation14 + $0x1e0] ss:$8 sps:$4 sm:$0xff]   ;;  %v17402_v40 = vld [vmem:[#allocation14 + $0xb4] ss:$8 sps:$4 sm:$0xff]  }
 0x7b2   : > { %12151 = vmatpush2.bf16.msra.mxu0 %v17352_v4  ;;  %v17444_v4 = vld [vmem:[#allocation14 + $0x1d4] ss:$8 sps:$4 sm:$0xff]  }
 0x7b3   : > { %12192 = vmatpush2.bf16.msra.mxu1 %v17355_v22  ;;  %12152 = vmatprep.subr.bf16.mxu0 %v17360_v14  ;;  %v17400_v22 = vld [vmem:[#allocation14 + $0xb0] ss:$8 sps:$4 sm:$0xff]  }
 0x7b4   : > { %12193 = vmatprep.subr.bf16.mxu1 %v17363_v48  ;;  %v17442_v14 = vld [vmem:[#allocation14 + $0x1d0] ss:$8 sps:$4 sm:$0xff]   ;;  %v17405_v48 = vld [vmem:[#allocation14 + $0xa4] ss:$8 sps:$4 sm:$0xff]  }
 0x7b6   : > { %12153 = vmatpush2.bf16.msra.mxu0 %v17358_v60  ;;  %v17447_v60 = vld [vmem:[#allocation14 + $0x1c4] ss:$8 sps:$4 sm:$0xff]  }
 0x7b7   : > { %12194 = vmatpush2.bf16.msra.mxu1 %v17361_v43  ;;  %12648 = vmatprep.subr.bf16.mxu0 %v17366_v6  ;;  %v17403_v43 = vld [vmem:[#allocation14 + $0xa0] ss:$8 sps:$4 sm:$0xff]  }
 0x7b8   : > { %v17445_v6 = vld [vmem:[#allocation14 + $0x1c0] ss:$8 sps:$4 sm:$0xff]  }
 0x7b9   : > { %v11910_v15 = vpop.f32.mrf.mxu0  ;;  %12155 = vmatmul.mubr.bf16.vlgmr.msra.gmra.mxu0 %v19953_v38  ;;  %v17375_v38 = vld [vmem:[#allocation14 + $0x44] ss:$8 sps:$4 sm:$0xff]  }
 0x7ba   : > { %v11951_v10 = vpop.f32.mrf.mxu1  ;;  %12196 = vmatmul.mubr.bf16.vlgmr.msra.gmra.mxu1 %v19955_v39  ;;  %12649 = vmatpush1.bf16.msra.mxu0 %v17364_v11  ;;  %v17414_v39 = vld [vmem:[#allocation14 + $0x174] ss:$8 sps:$4 sm:$0xff]  }
 0x7bb   : > { %v19967_v3 = vadd.f32 %v11951_v10, %v11910_v15  ;;  %v19969_v20 = vpop.f32.mrf.mxu0  ;;  %12650 = vmatprep.subr.bf16.mxu0 %v17369_v21  ;;  %12689 = vmatprep.subr.bf16.mxu1 %v17414_v39  ;;  %v17408_v11 = vld [vmem:[#allocation14 + $0x94] ss:$8 sps:$4 sm:$0xff]   ;;  %v17406_v21 = vld [vmem:[#allocation14 + $0x90] ss:$8 sps:$4 sm:$0xff]   ;;  %v17411_v15 = vld [vmem:[#allocation14 + $0x84] ss:$8 sps:$4 sm:$0xff]  }
 0x7bc   : > { %v19971_v55 = vpop.f32.mrf.mxu1  ;;  %12690 = vmatpush1.bf16.msra.mxu1 %v17412_v35  ;;  %v17409_v10 = vld [vmem:[#allocation14 + $0x80] ss:$8 sps:$4 sm:$0xff]  }
 0x7bd   : > { %v11914_v25 = vpop.f32.mrf.mxu0  ;;  %12691 = vmatprep.subr.bf16.mxu1 %v17417_v17 }
 0x7be   : > { %v11955_v28 = vpop.f32.mrf.mxu1  ;;  %12651 = vmatpush1.bf16.msra.mxu0 %v17367_v61  ;;  %v19973_v61 = vld [vmem:[#allocation11] sm:$0xf] }
 0x7bf   : > { %v11915_v2 = vpop.f32.mrf.mxu0  ;;  %12652 = vmatprep.subr.bf16.mxu0 %v17372_v59  ;;  %v17450_v59 = vld [vmem:[#allocation14 + $0x1b4] ss:$8 sps:$4 sm:$0xff]   ;;  %v17448_v25 = vld [vmem:[#allocation14 + $0x1b0] ss:$8 sps:$4 sm:$0xff]   ;;  %v12209_v35 = vrot.slane %v19973_v61, %v19385_v19 }
 0x7c0   : > { %v11956_v16 = vpop.f32.mrf.mxu1  ;;  %12692 = vmatpush1.bf16.msra.mxu1 %v17415_v13  ;;  %v19975_v2 = vld [vmem:[#allocation12] sm:$0xf] }
 0x7c1   : > { %12693 = vmatprep.subr.bf16.mxu1 %v17420_v18  ;;  %v11954_v16 = vadd.f32 %v19971_v55, %v19969_v20 }
 0x7c2   : > { %12653 = vmatpush1.bf16.msra.mxu0 %v17370_v30 }
 0x7c3   : > { %12654 = vmatprep.subr.bf16.mxu0 %v17375_v38 }
 0x7c4   : > { %12694 = vmatpush1.bf16.msra.mxu1 %v17418_v31  ;;  %v17451_v31 = vld [vmem:[#allocation14 + $0x1a0] ss:$8 sps:$4 sm:$0xff]  }
 0x7c5   : > { %12695 = vmatprep.subr.bf16.mxu1 %v17423_v7  ;;  %v12239_v7 = vrot.slane %v19975_v2, %v19394_v26 }
 0x7c6   : > { %12655 = vmatpush1.bf16.msra.mxu0 %v17373_v1  ;;  %v17453_v1 = vld [vmem:[#allocation14 + $0x1a4] ss:$8 sps:$4 sm:$0xff]  }
 0x7c7   : > { %12656 = vmatprep.subr.bf16.mxu0 %v17378_v44  ;;  %v12235_v44 = vrot.slane %v19975_v2, %v19385_v19 }
 0x7c8   : > { %12696 = vmatpush1.bf16.msra.mxu1 %v17421_v63 }
 0x7c9   : > { %12697 = vmatprep.subr.bf16.mxu1 %v17426_v51 }
 0x7ca   : > { %12657 = vmatpush1.bf16.msra.mxu0 %v17376_v32  ;;  %v12213_v32 = vrot.slane %v19973_v61, %v19394_v26 }
 0x7cb   : > { %12658 = vmatprep.subr.bf16.mxu0 %v17381_v0 }
 0x7cc   : > { %12698 = vmatpush1.bf16.msra.mxu1 %v17424_v50  ;;  %v17454_v50 = vld [vmem:[#allocation14 + $0x190] ss:$8 sps:$4 sm:$0xff]  }
 0x7cd   : > { %12699 = vmatprep.subr.bf16.mxu1 %v17429_v46 }
 0x7ce   : > { %12659 = vmatpush1.bf16.msra.mxu0 %v17379_v33 }
 0x7cf   : > { %12660 = vmatprep.subr.bf16.mxu0 %v17384_v56  ;;  %v17456_v56 = vld [vmem:[#allocation14 + $0x194] ss:$8 sps:$4 sm:$0xff]  }
 0x7d0   : > { %12700 = vmatpush1.bf16.msra.mxu1 %v17427_v58 }
 0x7d1   : > { %12701 = vmatprep.subr.bf16.mxu1 %v17432_v23 }
 0x7d2   : > { %12661 = vmatpush1.bf16.msra.mxu0 %v17382_v9 }
 0x7d3   : > { %12662 = vmatprep.subr.bf16.mxu0 %v17387_v12 }
 0x7d4   : > { %12702 = vmatpush1.bf16.msra.mxu1 %v17430_v37 }
 0x7d5   : > { %12703 = vmatprep.subr.bf16.mxu1 %v17435_v54 }
 0x7d6   : > { %12663 = vmatpush1.bf16.msra.mxu0 %v17385_v5  ;;  %v17459_v5 = vld [vmem:[#allocation14 + $0x184] ss:$8 sps:$4 sm:$0xff]  }
 0x7d7   : > { %12664 = vmatprep.subr.bf16.mxu0 %v17390_v34  ;;  %v17457_v34 = vld [vmem:[#allocation14 + $0x180] ss:$8 sps:$4 sm:$0xff]  }
 0x7d8   : > { %12704 = vmatpush1.bf16.msra.mxu1 %v17433_v41 }
 0x7d9   : > { %12705 = vmatprep.subr.bf16.mxu1 %v17438_v24 }
 0x7da   : > { %12665 = vmatpush2.bf16.msra.mxu0 %v17388_v53 }
 0x7db   : > { %12666 = vmatprep.subr.bf16.mxu0 %v17393_v52 }
 0x7dc   : > { %12706 = vmatpush2.bf16.msra.mxu1 %v17436_v29 }
 0x7dd   : > { %12707 = vmatprep.subr.bf16.mxu1 %v17441_v47  ;;  %v17461_v47 = vld [vmem:[%s20146_s28 + $0x38] sm:$0xff]  }
 0x7de   : > { %12667 = vmatpush2.bf16.msra.mxu0 %v17391_v49 }
 0x7df   : > { %12668 = vmatprep.subr.bf16.mxu0 %v17396_v45 }
 0x7e0   : > { %12708 = vmatpush2.bf16.msra.mxu1 %v17439_v42  ;;  %v17463_v42 = vld [vmem:[%s20146_s28 + $0x30] sm:$0xff]  }
 0x7e1   : > { %12709 = vmatprep.subr.bf16.mxu1 %v17444_v4  ;;  %v17465_v4 = vld [vmem:[%s20146_s28 + $0x28] sm:$0xff]  }
 0x7e2   : > { %12669 = vmatpush2.bf16.msra.mxu0 %v17394_v62 }
 0x7e3   : > { %12670 = vmatprep.subr.bf16.mxu0 %v17399_v27  ;;  %v17460_v27 = vld [vmem:[%s20146_s28 + $0x78] sm:$0xff]  }
 0x7e4   : > { %12710 = vmatpush2.bf16.msra.mxu1 %v17442_v14  ;;  %v17467_v14 = vld [vmem:[%s20146_s28 + $0x20] sm:$0xff]  }
 0x7e5   : > { %12711 = vmatprep.subr.bf16.mxu1 %v17447_v60  ;;  %v17469_v60 = vld [vmem:[%s20146_s28 + $0x18] sm:$0xff]  }
 0x7e6   : > { %12671 = vmatpush2.bf16.msra.mxu0 %v17397_v36  ;;  %v17462_v36 = vld [vmem:[%s20146_s28 + $0x70] sm:$0xff]  }
 0x7e7   : > { %12672 = vmatprep.subr.bf16.mxu0 %v17402_v40  ;;  %v17464_v40 = vld [vmem:[%s20146_s28 + $0x68] sm:$0xff]  }
 0x7e8   : > { %12712 = vmatpush2.bf16.msra.mxu1 %v17445_v6 }
 0x7e9   : > { %12713 = vmatprep.subr.bf16.mxu1 %v17450_v59 }
 0x7ea   : > { %12673 = vmatpush2.bf16.msra.mxu0 %v17400_v22  ;;  %v17466_v22 = vld [vmem:[%s20146_s28 + $0x60] sm:$0xff]  }
 0x7eb   : > { %12674 = vmatprep.subr.bf16.mxu0 %v17405_v48  ;;  %v17468_v48 = vld [vmem:[%s20146_s28 + $0x58] sm:$0xff]  }
 0x7ec   : > { %12714 = vmatpush2.bf16.msra.mxu1 %v17448_v25 }
 0x7ed   : > { %12715 = vmatprep.subr.bf16.mxu1 %v17453_v1  ;;  %v12247_v1 = vrot.slane %v19975_v2, %v19924_v57 }
 0x7ee   : > { %12675 = vmatpush2.bf16.msra.mxu0 %v17403_v43 }
 0x7ef   : > { %12676 = vmatprep.subr.bf16.mxu0 %v17408_v11 }
 0x7f0   : > { %12716 = vmatpush2.bf16.msra.mxu1 %v17451_v31 }
 0x7f1   : > { %12717 = vmatprep.subr.bf16.mxu1 %v17456_v56 }
 0x7f2   : > { %12677 = vmatpush2.bf16.msra.mxu0 %v17406_v21 }
 0x7f3   : > { %12678 = vmatprep.subr.bf16.mxu0 %v17411_v15  ;;  %v12217_v15 = vrot.slane %v19973_v61, %v19921_v8 }
 0x7f4   : > { %12718 = vmatpush2.bf16.msra.mxu1 %v17454_v50  ;;  %v12730_v50 = vld [vmem:[#allocation15] sm:$0x3] }
 0x7f5   : > { %12719 = vmatprep.subr.bf16.mxu1 %v17459_v5 }
 0x7f6   : > { %12679 = vmatpush2.bf16.msra.mxu0 %v17409_v10 }
 0x7f7   : > { %14835 = vmatprep.subr.bf16.mxu0 %v17460_v27 }
 0x7f8   : > { %12720 = vmatpush2.bf16.msra.mxu1 %v17457_v34 }
 0x7f9   : > { %v11992_v28 = vpop.f32.mrf.mxu0 }
 0x7fa   : > { %v12033_v30 = vpop.f32.mrf.mxu1  ;;  %v11993_v38 = vadd.f32 %v11992_v28, %v19967_v3  ;;  %v12243_v28 = vrot.slane %v19975_v2, %v19921_v8 }
 0x7fb   : > { %v11994_v39 = vpop.f32.mrf.mxu0 }
 0x7fc   : > { %v12035_v17 = vpop.f32.mrf.mxu1  ;;  %v12034_v13 = vadd.f32 %v12033_v30, %v11993_v38  ;;  %v11995_v18 = vadd.f32 %v11994_v39, %v11954_v16  ;;  %v12221_v16 = vrot.slane %v19973_v61, %v19924_v57  ;;  %v17470_v61 = vld [vmem:[%s20146_s28 + $0x50] sm:$0xff]  }
 0x7fd   : > { %v11996_v0 = vpop.f32.mrf.mxu0  ;;  %v17471_v57 = vld [vmem:[%s20146_s28 + $0x10] sm:$0xff]  }
 0x7fe   : > { %v12037_v20 = vpop.f32.mrf.mxu1  ;;  %v12226_v3 = vmul.f32 %v12209_v35, %v12034_v13  ;;  %v12036_v55 = vadd.f32 %v12035_v17, %v11995_v18 }
 0x7ff   : > { %v11997_v33 = vpop.f32.mrf.mxu0 }
 0x800   : > { %v12038_v63 = vpop.f32.mrf.mxu1  ;;  %v12252_v51 = vadd.f32 %v12235_v44, %v12226_v3  ;;  %v12227_v9 = vmul.f32 %v12213_v32, %v12036_v55  ;;  %v17472_v33 = vld [vmem:[%s20146_s28 + $0x48] sm:$0xff]  }
 0x801   : > { %v17473_v63 = vld [vmem:[%s20146_s28 + $0x8] sm:$0xff]  }
 0x802   : > { %v12253_v12 = vadd.f32 %v12239_v7, %v12227_v9  ;;  %v12256_v46 = vmax.f32 %v12252_v51, 0.0  ;;  %v17474_v51 = vld [vmem:[%s20146_s28 + $0x40] sm:$0xff]  }
 0x803   : > { %v17475_v9 = vld [vmem:[%s20146_s28] sm:$0xff]  }
 0x804   : > { %v12257_v58 = vmax.f32 %v12253_v12, 0.0  ;;  %v12260_v53 = vpack.c.bf16 %v12256_v46, %v12256_v46  ;;  %v12744_v12 = vld [vmem:[#allocation17] sm:$0x3]  ;;  %v12735_v46 = vrot.slane %v12730_v50, %v19385_v19 }
 0x805   : > { %v12749_v34 = vrot.slane %v12744_v12, %v19385_v19  ;;  %v14811_v19 = vld [vmem:[#allocation18] ss:$0 sm:$0xff] }
 0x806   : > { %v12261_v23 = vpack.c.bf16 %v12257_v58, %v12257_v58 }
 0x808   : > { %12680 = vmatprep.mubr.bf16.mxu0 %v12261_v23  ;;  %v12739_v23 = vrot.slane %v12730_v50, %v19394_v26 }
 0x809   : > { %12681 = vmatmul.mubr.bf16.vlgmr.msra.gmra.mxu0 %v12260_v53 }
 0x80a   : > { %14836 = vmatpush3.bf16.msra.mxu0 %v17461_v47 }
 0x80b   : > { %14837 = vmatprep.subr.bf16.mxu0 %v17462_v36 }
 0x80e   : > { %14838 = vmatpush3.bf16.msra.mxu0 %v17463_v42 }
 0x80f   : > { %14839 = vmatprep.subr.bf16.mxu0 %v17464_v40 }
 0x812   : > { %14840 = vmatpush3.bf16.msra.mxu0 %v17465_v4 }
 0x813   : > { %14841 = vmatprep.subr.bf16.mxu0 %v17466_v22 }
 0x816   : > { %14842 = vmatpush3.bf16.msra.mxu0 %v17467_v14 }
 0x817   : > { %14843 = vmatprep.subr.bf16.mxu0 %v17468_v48 }
 0x81a   : > { %14844 = vmatpush3.bf16.msra.mxu0 %v17469_v60 }
 0x81b   : > { %14845 = vmatprep.subr.bf16.mxu0 %v17470_v61 }
 0x81e   : > { %14846 = vmatpush3.bf16.msra.mxu0 %v17471_v57 }
 0x81f   : > { %14847 = vmatprep.subr.bf16.mxu0 %v17472_v33 }
 0x822   : > { %14848 = vmatpush3.bf16.msra.mxu0 %v17473_v63 }
 0x823   : > { %14849 = vmatprep.subr.bf16.mxu0 %v17474_v51 }
 0x826   : > { %14850 = vmatpush3.bf16.msra.mxu0 %v17475_v9 }
 0x839   : > { %v12074_v37 = vpop.f32.mrf.mxu0 }
 0x83a   : > { %v12115_v52 = vpop.f32.mrf.mxu1 }
 0x83b   : > { %v12116_v54 = vadd.f32 %v12115_v52, %v12074_v37  ;;  %v12076_v49 = vpop.f32.mrf.mxu0 }
 0x83c   : > { %v12117_v41 = vpop.f32.mrf.mxu1 }
 0x83d   : > { %v12078_v45 = vpop.f32.mrf.mxu0  ;;  %v12118_v11 = vadd.f32 %v12117_v41, %v12076_v49 }
 0x83e   : > { %v12119_v24 = vpop.f32.mrf.mxu1 }
 0x83f   : > { %v12079_v62 = vpop.f32.mrf.mxu0 }
 0x840   : > { %v12120_v29 = vpop.f32.mrf.mxu1 }
 0x879   : > { %v12156_v43 = vpop.f32.mrf.mxu0 }
 0x87a   : > { %v12197_v6 = vpop.f32.mrf.mxu1  ;;  %v12157_v21 = vadd.f32 %v12156_v43, %v12116_v54  ;;  %v12753_v54 = vrot.slane %v12744_v12, %v19394_v26 }
 0x87b   : > { %v12158_v10 = vpop.f32.mrf.mxu0 }
 0x87c   : > { %v12199_v59 = vpop.f32.mrf.mxu1  ;;  %v12198_v25 = vadd.f32 %v12197_v6, %v12157_v21  ;;  %v12159_v30 = vadd.f32 %v12158_v10, %v12118_v11 }
 0x87d   : > { %v12160_v38 = vpop.f32.mrf.mxu0 }
 0x87e   : > { %v12201_v35 = vpop.f32.mrf.mxu1  ;;  %v12228_v39 = vmul.f32 %v12217_v15, %v12198_v25  ;;  %v12200_v17 = vadd.f32 %v12199_v59, %v12159_v30 }
 0x87f   : > { %v12161_v13 = vpop.f32.mrf.mxu0 }
 0x880   : > { %v12202_v44 = vpop.f32.mrf.mxu1  ;;  %v12254_v18 = vadd.f32 %v12243_v28, %v12228_v39  ;;  %v12229_v32 = vmul.f32 %v12221_v16, %v12200_v17 }
 0x882   : > { %v12255_v31 = vadd.f32 %v12247_v1, %v12229_v32  ;;  %v12258_v0 = vmax.f32 %v12254_v18, 0.0 }
 0x884   : > { %v12259_v20 = vmax.f32 %v12255_v31, 0.0  ;;  %v12262_v8 = vpack.c.bf16 %v12258_v0, %v12258_v0 }
 0x886   : > { %v12263_v3 = vpack.c.bf16 %v12259_v20, %v12259_v20 }
 0x888   : > { %12721 = vmatprep.mubr.bf16.mxu1 %v12263_v3 }
 0x889   : > { %12722 = vmatmul.mubr.bf16.vlgmr.msra.gmra.mxu1 %v12262_v8 }
 0x8c9   : > { %v12682_v55 = vpop.f32.mrf.mxu0 }
 0x8cb   : > { %v12684_v2 = vpop.f32.mrf.mxu0 }
 0x8cd   : > { %v12686_v7 = vpop.f32.mrf.mxu0 }
 0x8cf   : > { %v12687_v56 = vpop.f32.mrf.mxu0 }
 0x949   : > { %v12723_v5 = vpop.f32.mrf.mxu1 }
 0x94a   : > { %v12724_v58 = vadd.f32 %v12723_v5, %v12682_v55 }
 0x94b   : > { %v12725_v53 = vpop.f32.mrf.mxu1 }
 0x94c   : > { %v12742_v37 = vmul.f32 %v12735_v46, %v12724_v58  ;;  %v12726_v52 = vadd.f32 %v12725_v53, %v12684_v2 }
 0x94d   : > { %v12727_v49 = vpop.f32.mrf.mxu1 }
 0x94e   : > { %v12756_v41 = vadd.f32 %v12749_v34, %v12742_v37  ;;  %v12743_v45 = vmul.f32 %v12739_v23, %v12726_v52 }
 0x94f   : > { %v12728_v24 = vpop.f32.mrf.mxu1 }
 0x950   : > { %v12757_v62 = vadd.f32 %v12753_v54, %v12743_v45  ;;  %v12758_v29 = vmax.f32 %v12756_v41, 0.0 }
 0x952   : > { %v12759_v27 = vmax.f32 %v12757_v62, 0.0  ;;  %v12760_v36 = vpack.c.bf16 %v12758_v29, %v12758_v29 }
 0x954   : > { %v12761_v47 = vpack.c.bf16 %v12759_v27, %v12759_v27 }
 0x956   : > { %12929 = vmatprep.mubr.bf16.mxu0 %v12761_v47 }
 0x957   : > { %12930 = vmatmul.mubr.bf16.vlgmr.msra.gmra.mxu0 %v12760_v36 }
 0xa17   : > { %v14851_v42 = vpop.f32.mrf.mxu0 }
 0xa19   : > { %v14852_v40 = vpop.f32.mrf.mxu0 }
 0xa1a   : > { %v14853_v4 = vadd.f32 %v14852_v40, %v14851_v42 }
 0xa1b   : > { %v14854_v22 = vpop.f32.mrf.mxu0 }
 0xa1c   : > { %v12932_v14 = vadd.f32 %v14853_v4, %v14811_v19 }
 0xa1d   : > { %v14855_v48 = vpop.f32.mrf.mxu0 }
 0xa1e   : > { %v12938_v26 = vsel %vm12937_vm1, %v12932_v14, -inf }
 0xa1f   : > { %12939 = vmax.xlane.f32.xlu0 %v12938_v26 }
 0xaa8   : > { %v12940_v60 = vpop.xlane.xlu0 %12939 }
 0xaa9   : > { %v12941_v43 = vsub.f32 %v12932_v14, %v12940_v60 }
 0xaab   : > { %v12942_v6 = vmul.f32 1.442695, %v12941_v43 }
 0xaad   : > { %17476 = vpow2.f32 %v12942_v6 }
 0xaba   : > { %v17477_v11 = vpop.eup %17476 }
 0xabb   : > { %v12944_v21 = vsel %vm12937_vm1, %v17477_v11, 0.0 }
 0xabc   : > { %12945 = vadd.xlane.f32.xlu0 %v12944_v21 }
 0xb45   : > { %v12946_v15 = vpop.xlane.xlu0 %12945 }
 0xb46   : > { %17478 = vlog2.f32 %v12946_v15 }
 0xb53   : > { %v17479_v10 = vpop.eup %17478 }
 0xb54   : > { %v12948_v59 = vmul.f32 0.6931472, %v17479_v10 }
 0xb56   : > { %v12949_v25 = vadd.f32 %v12948_v59, %v12940_v60 }
 0xb58   : > { %v12950_v28 = vsub.f32 %v12932_v14, %v12949_v25 }
 0xb5a   : > { %12951 = vst.msk [vmem:[#allocation20] sm:$0xff] %vm12937_vm1, %v12950_v28 }
 0xb5b PF: > { %p14944_p3 = scmp.eq.s32.totalorder %s17933_s27, 1  ;;  %s17846_s10 = smov [#allocation20]  }
 0xb5c   : > { %s12959_s19 = sshll.u32 %s17846_s10, 4  ;;  %s12960_s19 = int_to_ptr.vmem [resolvable:$true] %s12959_s19 }
 0xb5d   : > { %s17746_s12 = scalar_lea.vmem %s12960_s19, 128  ;;  %p17753_p2 = scmp.lt.s32.totalorder %s12960_s19, %s12960_s19 }
 0xb5e   : > { %p17747_p9 = scmp.ne.s32.totalorder %s12960_s19, %s17746_s12  ;;  %p17754_p7 = scmp.lt.s32.totalorder %s17746_s12, %s17746_s12 }
 0xb60   : > { %p17748_p12 = pnand %p17747_p9, %p14944_p3  ;;  %p17755_p11 = por %p17754_p7, %p17753_p2 }
 0xb62   : > { %p17749_p10 = pneg %p17748_p12 }
 0xb64   : > { %p17756_p0 = pnand %p17755_p11, %p17749_p10 }
 0xb66   : > { %17759 = shalt.err (!%p17756_p0)
}
 0xb67   : > { %s20147_s14 = sld [smem:[#allocation36_spill]] }
 0xb6d   : > { %14894 = dma.vmem_to_hbm [thread:$0]  (%p14944_p3), %s12960_s19, 128, %s20147_s14, [#allocation5]  }
 0xb6e   : > { %17811 = dma.done.wait (%p14944_p3), [#allocation5], 128  }
 0xb6f   : > { %17813 = vsyncadd (%p14944_p3), [#allocation5], 4294967168 }
 0xb70 PF: > { %s20148_s24 = sld [smem:[#allocation29_spill]]  ;;  %s20151_s21 = smov %s17820_s22 }
 0xb71   : > { %s20149_s16 = sld [smem:[#allocation28_spill]] }
 0xb72   : > { %s20150_s23 = sld [smem:[#allocation30_spill]] }
 0xb76   : > { %p30_p4 = scmp.ge.s32.totalorder %s20148_s24, 4  }
 0xb77   : > { %s20152_s22 = smov %s20149_s16 }
 0xb78   :  { %32 = sbr.rel (!%p30_p4) target bundleno = 17 (0x11), region = 162 }
 0xb7d   :  { %12972 = vsyncpa [#allocation4], 1 }
 0xb7e   :  { %12974 = vsyncpa [#allocation4 + $0x1], 1 }
 0xb7f   :  { %12975 = vsyncpa [#allocation7], 1 }
 0xb80   :  { %12977 = vsyncpa [#allocation7 + $0x1], 1 }
 0xb81   :  { %12978 = vsyncpa [#allocation10], 1 }
 0xb82   :  { %12979 = vsyncpa [#allocation13], 1 }
 0xb83   :  { %12980 = vsyncpa [#allocation16], 1 }
 0xb84   :  { %12981 = vsyncpa [#allocation19], 1 }
 0xb85   :  { %12982 = vsyncpa [#allocation5], 1 }
 0xb86   :  { %12984 = vsyncpa [#allocation5 + $0x1], 1 }

</bundles_post_ra>
